<compile_context>
chip_gen: v7x
topology: tpu7x:2x2x1
jax: 0.10.0
libtpu: 0.0.40
codegen_flags: <defaults>
</compile_context>

<pallas_src>
import functools

import jax
import jax.numpy as jnp
from jax.experimental import pallas as pl
from jax.experimental.pallas import tpu as pltpu

EPS = 1e-5                    # BatchNorm eps (PyTorch default)
LANE = 128                    # TPU lane width
DILATIONS = (6, 12, 18)       # ASPP dilations
PAD = max(DILATIONS)          # one shared spatial zero-padding for all taps
TH = 6                        # output-row block; divides PAD +/- every dilation
MATMUL_DTYPE = jnp.bfloat16   # matmul inputs (f32 accumulate)
VMEM_LIMIT = 48 * 1024 * 1024


# ---------------------------------------------------------------------------
# Small helpers
# ---------------------------------------------------------------------------
def _round_up(x, m):
    return ((x + m - 1) // m) * m


def _pad_axis(a, axis, mult):
    size = a.shape[axis]
    pad = (-size) % mult
    if pad == 0:
        return a
    widths = [(0, 0)] * a.ndim
    widths[axis] = (0, pad)
    return jnp.pad(a, widths)


def _largest_divisor_leq(n, cap):
    for t in range(min(cap, n), 0, -1):
        if n % t == 0:
            return t
    return 1


def _fold_bn(stats, count, gamma, beta):
    """Fold (sum, sumsq) batch stats + gamma/beta into one scale/bias pair."""
    # TODO(synk): E[x^2]-E[x]^2 in f32 can cancel for very large |mean|*M;
    # fine at ASPP scales, switch to per-tile mean-subtracted partials if not.
    mean = stats[0:1, :] / count
    var = jnp.maximum(stats[1:2, :] / count - mean * mean, 0.0)
    scale = gamma * jax.lax.rsqrt(var + EPS)
    bias = beta - mean * scale
    return scale, bias          # each (1, C)


# ---------------------------------------------------------------------------
# Kernel 1: dilated 3x3 conv as 9 shifted matmuls over a TH-row block,
# accumulated in a VMEM scratch; optional fused 1x1-conv branch; per-cell
# (2, C) partial BN stats so the grid can be fully "parallel".
# ---------------------------------------------------------------------------
def _dil_conv_kernel(*refs, dil, th, w_out, h_real, cp, fuse_1x1):
    if fuse_1x1:
        (x0_ref, x1_ref, x2_ref, w_ref, w1_ref,
         y_ref, s_ref, y1_ref, s1_ref, acc_ref) = refs
    else:
        x0_ref, x1_ref, x2_ref, w_ref, y_ref, s_ref, acc_ref = refs

    h_blk = pl.program_id(1)
    acc_ref[...] = jnp.zeros_like(acc_ref)

    taps = (x0_ref, x1_ref, x2_ref)
    for ky in range(3):
        xr = taps[ky]
        for kx in range(3):
            col0 = PAD + (kx - 1) * dil                       # static offset
            xs = xr[0, :, pl.ds(col0, w_out), :]              # (TH, W, Cin_p)
            acc_ref[...] += jnp.dot(xs.reshape(th * w_out, xs.shape[-1]),
                                    w_ref[ky, kx],
                                    preferred_element_type=jnp.float32)

    acc3 = acc_ref[...].reshape(th, w_out, cp)
    if h_real % th:
        # Rows belonging to the H padding see real data through the taps —
        # zero them so the BN stats (and downstream consumers) stay exact.
        row = jax.lax.broadcasted_iota(jnp.int32, (th, 1, 1), 0) + h_blk * th
        acc3 = jnp.where(row < h_real, acc3, 0.0)
    y_ref[0] = acc3.astype(y_ref.dtype)
    accm = acc3.reshape(th * w_out, cp)
    s_ref[0, 0, 0:1, :] = jnp.sum(accm, axis=0, keepdims=True)
    s_ref[0, 0, 1:2, :] = jnp.sum(accm * accm, axis=0, keepdims=True)

    if fuse_1x1:
        # Branch 1 (1x1 conv): the centre tap's centre columns are exactly the
        # un-shifted input rows of this block, already resident in VMEM.
        xc = x1_ref[0, :, pl.ds(PAD, w_out), :]
        y1 = jnp.dot(xc.reshape(th * w_out, xc.shape[-1]), w1_ref[...],
                     preferred_element_type=jnp.float32)
        # Padded-H rows here come from zero input => zero output: no mask.
        y1_ref[0] = y1.reshape(th, w_out, cp).astype(y1_ref.dtype)
        s1_ref[0, 0, 0:1, :] = jnp.sum(y1, axis=0, keepdims=True)
        s1_ref[0, 0, 1:2, :] = jnp.sum(y1 * y1, axis=0, keepdims=True)


def dilated_conv3x3(xpad, w3, dil, h_real, w1=None):
    """xpad: (N, H_pad+2*PAD, W+2*PAD, Cin_p) bf16 shared padded input.
    w3: (3, 3, Cin_p, Cp) bf16.  Returns (y, stats[, y1, stats1])."""
    n, hq, wq, cinp = xpad.shape
    cp = w3.shape[-1]
    h_pad = hq - 2 * PAD
    w_out = wq - 2 * PAD
    assert h_pad % TH == 0 and (PAD - dil) % TH == 0 and (PAD + dil) % TH == 0
    hb = h_pad // TH
    fuse = w1 is not None

    kern = functools.partial(_dil_conv_kernel, dil=dil, th=TH, w_out=w_out,
                             h_real=h_real, cp=cp, fuse_1x1=fuse)

    def tap_spec(ky):
        off = (PAD + (ky - 1) * dil) // TH      # static, exact by construction

        def imap(nn, hh):
            return (nn, hh + off, 0, 0)

        return pl.BlockSpec((1, TH, wq, cinp), imap)

    y_spec = pl.BlockSpec((1, TH, w_out, cp), lambda nn, hh: (nn, hh, 0, 0))
    s_spec = pl.BlockSpec((1, 1, 2, cp), lambda nn, hh: (nn, hh, 0, 0))

    in_specs = [tap_spec(0), tap_spec(1), tap_spec(2),
                pl.BlockSpec((3, 3, cinp, cp), lambda nn, hh: (0, 0, 0, 0))]
    inputs = [xpad, xpad, xpad, w3]
    out_shape = [jax.ShapeDtypeStruct((n, h_pad, w_out, cp), MATMUL_DTYPE),
                 jax.ShapeDtypeStruct((n, hb, 2, cp), jnp.float32)]
    out_specs = [y_spec, s_spec]
    if fuse:
        in_specs.append(pl.BlockSpec((cinp, cp), lambda nn, hh: (0, 0)))
        inputs.append(w1)
        out_shape += [jax.ShapeDtypeStruct((n, h_pad, w_out, cp), MATMUL_DTYPE),
                      jax.ShapeDtypeStruct((n, hb, 2, cp), jnp.float32)]
        out_specs += [y_spec, s_spec]

    return pl.pallas_call(
        kern,
        out_shape=tuple(out_shape),
        grid=(n, hb),
        in_specs=in_specs,
        out_specs=tuple(out_specs),
        scratch_shapes=[pltpu.VMEM((TH * w_out, cp), jnp.float32)],
        compiler_params=pltpu.CompilerParams(
            dimension_semantics=("parallel", "parallel"),
            vmem_limit_bytes=VMEM_LIMIT),
    )(*inputs)


# ---------------------------------------------------------------------------
# Kernel 2: final 1x1 projection.  Normalizes the four branch outputs on the
# fly (folded BN scale/bias + ReLU), multiplies each with its wf block into a
# VMEM accumulator seeded with the pooled-branch per-image bias row, and
# emits per-cell partial stats for the final BN.
# ---------------------------------------------------------------------------
def _final_proj_kernel(y1_ref, y2_ref, y3_ref, y4_ref, sc_ref, bi_ref,
                       wf_ref, b5_ref, yf_ref, sf_ref, acc_ref,
                       *, tf, w_out, h_real, cp):
    h_blk = pl.program_id(1)
    acc_ref[...] = jnp.broadcast_to(b5_ref[0], (tf * w_out, cp))
    sc = sc_ref[...]                                          # (4, Cp)
    bi = bi_ref[...]                                          # (4, Cp)
    for idx, yb in enumerate((y1_ref, y2_ref, y3_ref, y4_ref)):
        yv = yb[0].reshape(tf * w_out, cp).astype(jnp.float32)
        z = jnp.maximum(yv * sc[idx:idx + 1, :] + bi[idx:idx + 1, :], 0.0)
        acc_ref[...] += jnp.dot(z.astype(MATMUL_DTYPE), wf_ref[idx],
                                preferred_element_type=jnp.float32)

    acc3 = acc_ref[...].reshape(tf, w_out, cp)
    if h_real % tf:
        # Padded-H rows would otherwise contribute relu(bias)+bias5 to stats.
        row = jax.lax.broadcasted_iota(jnp.int32, (tf, 1, 1), 0) + h_blk * tf
        acc3 = jnp.where(row < h_real, acc3, 0.0)
    yf_ref[0] = acc3
    accm = acc3.reshape(tf * w_out, cp)
    sf_ref[0, 0, 0:1, :] = jnp.sum(accm, axis=0, keepdims=True)
    sf_ref[0, 0, 1:2, :] = jnp.sum(accm * accm, axis=0, keepdims=True)


def final_projection(y_branches, scales, biases, wf4, bias5, h_real):
    n, h_pad, w_out, cp = y_branches[0].shape
    tf = _largest_divisor_leq(h_pad, max(1, 1024 // max(w_out, 1)))
    hb = h_pad // tf
    kern = functools.partial(_final_proj_kernel, tf=tf, w_out=w_out,
                             h_real=h_real, cp=cp)
    y_spec = pl.BlockSpec((1, tf, w_out, cp), lambda nn, hh: (nn, hh, 0, 0))
    s_spec = pl.BlockSpec((1, 1, 2, cp), lambda nn, hh: (nn, hh, 0, 0))
    return pl.pallas_call(
        kern,
        out_shape=(jax.ShapeDtypeStruct((n, h_pad, w_out, cp), jnp.float32),
                   jax.ShapeDtypeStruct((n, hb, 2, cp), jnp.float32)),
        grid=(n, hb),
        in_specs=[y_spec, y_spec, y_spec, y_spec,
                  pl.BlockSpec((4, cp), lambda nn, hh: (0, 0)),
                  pl.BlockSpec((4, cp), lambda nn, hh: (0, 0)),
                  pl.BlockSpec((4, cp, cp), lambda nn, hh: (0, 0, 0)),
                  pl.BlockSpec((1, 1, cp), lambda nn, hh: (nn, 0, 0))],
        out_specs=(y_spec, s_spec),
        scratch_shapes=[pltpu.VMEM((tf * w_out, cp), jnp.float32)],
        compiler_params=pltpu.CompilerParams(
            dimension_semantics=("parallel", "parallel"),
            vmem_limit_bytes=VMEM_LIMIT),
    )(y_branches[0], y_branches[1], y_branches[2], y_branches[3],
      scales, biases, wf4, bias5)


# ---------------------------------------------------------------------------
# Forward pass (glue / layout plumbing in plain JAX)
# ---------------------------------------------------------------------------
def asspmy_forward(x_nchw, params):
    n, cin, h, w = x_nchw.shape
    cout = params["w1"].shape[-1]
    cinp = _round_up(cin, LANE)
    cp = _round_up(cout, LANE)
    h_pad = _round_up(h, TH)
    count = float(n * h * w)                         # real BN sample count

    # NHWC + lane-dense channel padding (no-op at real ASPP channel counts).
    x = jnp.transpose(x_nchw, (0, 2, 3, 1))          # (N, H, W, Cin)
    xc = _pad_axis(x, 3, LANE)                       # (N, H, W, Cin_p)

    # One shared zero-padded copy (PAD = max dilation, plus H_pad extra rows
    # at the bottom) feeds all dilated branches; cast once to bf16.
    xpad = jnp.pad(xc, ((0, 0), (PAD, PAD + h_pad - h), (PAD, PAD), (0, 0)))
    xpad = xpad.astype(MATMUL_DTYPE)

    def pad_w_1x1(wgt):                              # (1,1,Cin,Cout)->(Cin_p,Cp)
        w2 = wgt.reshape(cin, cout)
        return _pad_axis(_pad_axis(w2, 0, LANE), 1, LANE).astype(MATMUL_DTYPE)

    def pad_w_3x3(wgt):                              # (3,3,Cin,Cout)->(3,3,Cin_p,Cp)
        return _pad_axis(_pad_axis(wgt, 2, LANE), 3, LANE).astype(MATMUL_DTYPE)

    def pad_gb(v):                                   # (1,Cout) -> (1,Cp)
        return _pad_axis(v, 1, LANE)

    # ---- branches 1-4: dilated 3x3 convs (branch 1 fused into d=6) ---------
    y2, s2, y1, s1 = dilated_conv3x3(xpad, pad_w_3x3(params["w2"]),
                                     DILATIONS[0], h, w1=pad_w_1x1(params["w1"]))
    y3, s3 = dilated_conv3x3(xpad, pad_w_3x3(params["w3"]), DILATIONS[1], h)
    y4, s4 = dilated_conv3x3(xpad, pad_w_3x3(params["w4"]), DILATIONS[2], h)

    # Fold each branch's training-mode BN (batch stats over real N*H*W).
    scales, biases = [], []
    for s, name in zip((s1, s2, s3, s4), ("1", "2", "3", "4")):
        sc, bi = _fold_bn(jnp.sum(s, axis=(0, 1)), count,
                          pad_gb(params["g" + name]), pad_gb(params["b" + name]))
        scales.append(sc)
        biases.append(bi)
    scales = jnp.concatenate(scales, axis=0)          # (4, Cp)
    biases = jnp.concatenate(biases, axis=0)          # (4, Cp)

    # ---- branch 5: global avg pool -> 1x1 conv -> BN -> ReLU (plain JAX) ---
    pooled = jnp.mean(x, axis=(1, 2))                 # (N, Cin)
    y5 = pooled @ params["w5"].reshape(cin, cout)     # (N, Cout)
    m5 = jnp.mean(y5, axis=0, keepdims=True)
    v5 = jnp.mean((y5 - m5) ** 2, axis=0, keepdims=True)
    x5 = jnp.maximum((y5 - m5) * jax.lax.rsqrt(v5 + EPS) * params["g5"]
                     + params["b5"], 0.0)             # (N, Cout)

    # ---- final 1x1 projection: wf split into 5 blocks (no concat) ----------
    wf = params["wf"].reshape(5 * cout, cout)
    wf_blocks = [wf[i * cout:(i + 1) * cout] for i in range(5)]
    wf4 = jnp.stack([_pad_axis(_pad_axis(b, 0, LANE), 1, LANE)
                     for b in wf_blocks[:4]], axis=0).astype(MATMUL_DTYPE)
    # bilinear(align_corners=True) upsample from 1x1 is a constant broadcast:
    # fold the pooled branch into a per-image additive bias row.
    bias5 = _pad_axis(x5 @ wf_blocks[4], 1, LANE).reshape(n, 1, cp)

    yf, sf = final_projection((y1, y2, y3, y4), scales, biases, wf4, bias5, h)
    sc_f, bi_f = _fold_bn(jnp.sum(sf, axis=(0, 1)), count,
                          pad_gb(params["gf"]), pad_gb(params["bf"]))

    # Folded final BN + ReLU + channel slice + NCHW transpose: one fused XLA
    # elementwise pass (output channels < 128 lanes -> leave layout to XLA).
    out = jnp.maximum(yf * sc_f.reshape(1, 1, 1, cp)
                      + bi_f.reshape(1, 1, 1, cp), 0.0)
    out = out[:, :h, :, :cout]
    return jnp.transpose(out, (0, 3, 1, 2))           # NCHW


# ---------------------------------------------------------------------------
# Deterministic parameter init (synthetic; HWIO weight layout)
# ---------------------------------------------------------------------------
def init_params(key, cin, cout):
    ks = jax.random.split(key, 12)

    def wgt(k, shape, fan_in):
        return jax.random.normal(k, shape, jnp.float32) / jnp.sqrt(float(fan_in))

    params = {
        "w1": wgt(ks[0], (1, 1, cin, cout), cin),
        "w2": wgt(ks[1], (3, 3, cin, cout), 9 * cin),
        "w3": wgt(ks[2], (3, 3, cin, cout), 9 * cin),
        "w4": wgt(ks[3], (3, 3, cin, cout), 9 * cin),
        "w5": wgt(ks[4], (1, 1, cin, cout), cin),
        "wf": wgt(ks[5], (1, 1, 5 * cout, cout), 5 * cout),
    }
    for i, name in enumerate(["1", "2", "3", "4", "5", "f"]):
        kg, kb = jax.random.split(ks[6 + i])
        params["g" + name] = 1.0 + 0.1 * jax.random.normal(kg, (1, cout), jnp.float32)
        params["b" + name] = 0.1 * jax.random.normal(kb, (1, cout), jnp.float32)
    return params


# ---------------------------------------------------------------------------
# Pure-JAX reference (mirrors the PyTorch forward, training-mode BN)
# ---------------------------------------------------------------------------
def ref_forward(x_nchw, params):
    def conv(xx, w_hwio, pad, dil):
        return jax.lax.conv_general_dilated(
            xx, w_hwio, window_strides=(1, 1),
            padding=((pad, pad), (pad, pad)),
            rhs_dilation=(dil, dil),
            dimension_numbers=("NCHW", "HWIO", "NCHW"))

    def bn(y, g, b):
        mean = y.mean(axis=(0, 2, 3), keepdims=True)
        var = ((y - mean) ** 2).mean(axis=(0, 2, 3), keepdims=True)
        return ((y - mean) / jnp.sqrt(var + EPS)) * g.reshape(1, -1, 1, 1) \
            + b.reshape(1, -1, 1, 1)

    relu = lambda t: jnp.maximum(t, 0.0)

    x1 = relu(bn(conv(x_nchw, params["w1"], 0, 1), params["g1"], params["b1"]))
    x2 = relu(bn(conv(x_nchw, params["w2"], 6, 6), params["g2"], params["b2"]))
    x3 = relu(bn(conv(x_nchw, params["w3"], 12, 12), params["g3"], params["b3"]))
    x4 = relu(bn(conv(x_nchw, params["w4"], 18, 18), params["g4"], params["b4"]))
    x5 = x_nchw.mean(axis=(2, 3), keepdims=True)
    x5 = relu(bn(conv(x5, params["w5"], 0, 1), params["g5"], params["b5"]))
    n, _, h, w = x_nchw.shape
    x5 = jnp.broadcast_to(x5, (n, x5.shape[1], h, w))
    cat = jnp.concatenate((x1, x2, x3, x4, x5), axis=1)
    return relu(bn(conv(cat, params["wf"], 0, 1), params["gf"], params["bf"]))


if __name__ == "__main__":
    key = jax.random.PRNGKey(0)
    kx, kp = jax.random.split(key)
    N, Cin, Cout, H, W = 2, 4, 8, 16, 16
    x = jax.random.normal(kx, (N, Cin, H, W), jnp.float32)
    params = init_params(kp, Cin, Cout)

    out = jax.jit(asspmy_forward)(x, params)
    out = jax.block_until_ready(out)

    ref = ref_forward(x, params)
    assert out.shape == (N, Cout, H, W), out.shape
    # bf16 matmul inputs (f32 accumulate) vs. an all-f32 reference.
    if not bool(jnp.allclose(out, ref, atol=5e-2, rtol=5e-2)):
        max_err = float(jnp.max(jnp.abs(out - ref)))
        raise AssertionError(f"mismatch vs reference, max abs err={max_err}")

    print("KERNEL_OK")
</pallas_src>

<mosaic_0001>
module attributes {stable_mosaic.version = 11 : i64} {
  func.func @_dil_conv_kernel(%arg0: i32, %arg1: i32, %arg2: memref<1x6x52x128xbf16, #tpu.memory_space<vmem>>, %arg3: memref<1x6x52x128xbf16, #tpu.memory_space<vmem>>, %arg4: memref<1x6x52x128xbf16, #tpu.memory_space<vmem>>, %arg5: memref<3x3x128x128xbf16, #tpu.memory_space<vmem>>, %arg6: memref<128x128xbf16, #tpu.memory_space<vmem>>, %arg7: memref<1x6x16x128xbf16, #tpu.memory_space<vmem>>, %arg8: memref<1x1x2x128xf32, #tpu.memory_space<vmem>>, %arg9: memref<1x6x16x128xbf16, #tpu.memory_space<vmem>>, %arg10: memref<1x1x2x128xf32, #tpu.memory_space<vmem>>, %arg11: memref<96x128xf32, #tpu.memory_space<vmem>>) attributes {dimension_semantics = [#tpu.dimension_semantics<parallel>, #tpu.dimension_semantics<parallel>], iteration_bounds = array<i64: 2, 3>, scalar_prefetch = 0 : i64, scratch_operands = 1 : i64, tpu.core_type = #tpu.core_type<tc>, window_params = [{transform_indices = @transform_0, window_bounds = array<i64: 1, 6, 52, 128>}, {transform_indices = @transform_1, window_bounds = array<i64: 1, 6, 52, 128>}, {transform_indices = @transform_2, window_bounds = array<i64: 1, 6, 52, 128>}, {pipeline_mode = #tpu.pipeline_mode<synchronous>, transform_indices = @transform_3, window_bounds = array<i64: 3, 3, 128, 128>}, {pipeline_mode = #tpu.pipeline_mode<synchronous>, transform_indices = @transform_4, window_bounds = array<i64: 128, 128>}, {transform_indices = @transform_5, window_bounds = array<i64: 1, 6, 16, 128>}, {transform_indices = @transform_6, window_bounds = array<i64: 1, 1, 2, 128>}, {transform_indices = @transform_7, window_bounds = array<i64: 1, 6, 16, 128>}, {transform_indices = @transform_8, window_bounds = array<i64: 1, 1, 2, 128>}]} {
    %cst = arith.constant 0.000000e+00 : f32
    %0 = vector.broadcast %cst : f32 to vector<96x128xf32>
    %c0 = arith.constant 0 : index
    %c0_0 = arith.constant 0 : index
    %1 = vector.load %arg11[%c0, %c0_0] : memref<96x128xf32, #tpu.memory_space<vmem>>, vector<96x128xf32>
    tpu.vector_store %arg11[%c0, %c0_0], %0 {strides = array<i32>} : memref<96x128xf32, #tpu.memory_space<vmem>>, vector<96x128xf32>,
    %c0_1 = arith.constant 0 : index
    %c0_2 = arith.constant 0 : index
    %c12 = arith.constant 12 : index
    %c0_3 = arith.constant 0 : index
    %2 = vector.load %arg2[%c0_1, %c0_2, %c12, %c0_3] : memref<1x6x52x128xbf16, #tpu.memory_space<vmem>>, vector<1x6x16x128xbf16>
    %3 = vector.shape_cast %2 : vector<1x6x16x128xbf16> to vector<6x16x128xbf16>
    %c0_4 = arith.constant 0 : index
    %c0_5 = arith.constant 0 : index
    %4 = vector.load %arg11[%c0_4, %c0_5] : memref<96x128xf32, #tpu.memory_space<vmem>>, vector<96x128xf32>
    %5 = vector.shape_cast %3 : vector<6x16x128xbf16> to vector<96x128xbf16>
    %c0_6 = arith.constant 0 : index
    %c0_7 = arith.constant 0 : index
    %c0_8 = arith.constant 0 : index
    %c0_9 = arith.constant 0 : index
    %6 = vector.load %arg5[%c0_6, %c0_7, %c0_8, %c0_9] : memref<3x3x128x128xbf16, #tpu.memory_space<vmem>>, vector<1x1x128x128xbf16>
    %7 = vector.shape_cast %6 : vector<1x1x128x128xbf16> to vector<128x128xbf16>
    %cst_10 = arith.constant dense<0.000000e+00> : vector<96x128xf32>
    %8 = tpu.matmul %5, %7, %cst_10 {dimension_numbers = #tpu.dot_dimension_numbers<[1], [0], [0], [1], [0, 0, 1, 1], [], []>} : vector<96x128xbf16>, vector<128x128xbf16>, vector<96x128xf32> -> vector<96x128xf32>
    %9 = arith.addf %4, %8 : vector<96x128xf32>
    %c0_11 = arith.constant 0 : index
    %c0_12 = arith.constant 0 : index
    %10 = vector.load %arg11[%c0_11, %c0_12] : memref<96x128xf32, #tpu.memory_space<vmem>>, vector<96x128xf32>
    tpu.vector_store %arg11[%c0_11, %c0_12], %9 {strides = array<i32>} : memref<96x128xf32, #tpu.memory_space<vmem>>, vector<96x128xf32>,
    %c0_13 = arith.constant 0 : index
    %c0_14 = arith.constant 0 : index
    %c18 = arith.constant 18 : index
    %c0_15 = arith.constant 0 : index
    %11 = vector.load %arg2[%c0_13, %c0_14, %c18, %c0_15] : memref<1x6x52x128xbf16, #tpu.memory_space<vmem>>, vector<1x6x16x128xbf16>
    %12 = vector.shape_cast %11 : vector<1x6x16x128xbf16> to vector<6x16x128xbf16>
    %c0_16 = arith.constant 0 : index
    %c0_17 = arith.constant 0 : index
    %13 = vector.load %arg11[%c0_16, %c0_17] : memref<96x128xf32, #tpu.memory_space<vmem>>, vector<96x128xf32>
    %14 = vector.shape_cast %12 : vector<6x16x128xbf16> to vector<96x128xbf16>
    %c0_18 = arith.constant 0 : index
    %c1 = arith.constant 1 : index
    %c0_19 = arith.constant 0 : index
    %c0_20 = arith.constant 0 : index
    %15 = vector.load %arg5[%c0_18, %c1, %c0_19, %c0_20] : memref<3x3x128x128xbf16, #tpu.memory_space<vmem>>, vector<1x1x128x128xbf16>
    %16 = vector.shape_cast %15 : vector<1x1x128x128xbf16> to vector<128x128xbf16>
    %cst_21 = arith.constant dense<0.000000e+00> : vector<96x128xf32>
    %17 = tpu.matmul %14, %16, %cst_21 {dimension_numbers = #tpu.dot_dimension_numbers<[1], [0], [0], [1], [0, 0, 1, 1], [], []>} : vector<96x128xbf16>, vector<128x128xbf16>, vector<96x128xf32> -> vector<96x128xf32>
    %18 = arith.addf %13, %17 : vector<96x128xf32>
    %c0_22 = arith.constant 0 : index
    %c0_23 = arith.constant 0 : index
    %19 = vector.load %arg11[%c0_22, %c0_23] : memref<96x128xf32, #tpu.memory_space<vmem>>, vector<96x128xf32>
    tpu.vector_store %arg11[%c0_22, %c0_23], %18 {strides = array<i32>} : memref<96x128xf32, #tpu.memory_space<vmem>>, vector<96x128xf32>,
    %c0_24 = arith.constant 0 : index
    %c0_25 = arith.constant 0 : index
    %c24 = arith.constant 24 : index
    %c0_26 = arith.constant 0 : index
    %20 = vector.load %arg2[%c0_24, %c0_25, %c24, %c0_26] : memref<1x6x52x128xbf16, #tpu.memory_space<vmem>>, vector<1x6x16x128xbf16>
    %21 = vector.shape_cast %20 : vector<1x6x16x128xbf16> to vector<6x16x128xbf16>
    %c0_27 = arith.constant 0 : index
    %c0_28 = arith.constant 0 : index
    %22 = vector.load %arg11[%c0_27, %c0_28] : memref<96x128xf32, #tpu.memory_space<vmem>>, vector<96x128xf32>
    %23 = vector.shape_cast %21 : vector<6x16x128xbf16> to vector<96x128xbf16>
    %c0_29 = arith.constant 0 : index
    %c2 = arith.constant 2 : index
    %c0_30 = arith.constant 0 : index
    %c0_31 = arith.constant 0 : index
    %24 = vector.load %arg5[%c0_29, %c2, %c0_30, %c0_31] : memref<3x3x128x128xbf16, #tpu.memory_space<vmem>>, vector<1x1x128x128xbf16>
    %25 = vector.shape_cast %24 : vector<1x1x128x128xbf16> to vector<128x128xbf16>
    %cst_32 = arith.constant dense<0.000000e+00> : vector<96x128xf32>
    %26 = tpu.matmul %23, %25, %cst_32 {dimension_numbers = #tpu.dot_dimension_numbers<[1], [0], [0], [1], [0, 0, 1, 1], [], []>} : vector<96x128xbf16>, vector<128x128xbf16>, vector<96x128xf32> -> vector<96x128xf32>
    %27 = arith.addf %22, %26 : vector<96x128xf32>
    %c0_33 = arith.constant 0 : index
    %c0_34 = arith.constant 0 : index
    %28 = vector.load %arg11[%c0_33, %c0_34] : memref<96x128xf32, #tpu.memory_space<vmem>>, vector<96x128xf32>
    tpu.vector_store %arg11[%c0_33, %c0_34], %27 {strides = array<i32>} : memref<96x128xf32, #tpu.memory_space<vmem>>, vector<96x128xf32>,
    %c0_35 = arith.constant 0 : index
    %c0_36 = arith.constant 0 : index
    %c12_37 = arith.constant 12 : index
    %c0_38 = arith.constant 0 : index
    %29 = vector.load %arg3[%c0_35, %c0_36, %c12_37, %c0_38] : memref<1x6x52x128xbf16, #tpu.memory_space<vmem>>, vector<1x6x16x128xbf16>
    %30 = vector.shape_cast %29 : vector<1x6x16x128xbf16> to vector<6x16x128xbf16>
    %c0_39 = arith.constant 0 : index
    %c0_40 = arith.constant 0 : index
    %31 = vector.load %arg11[%c0_39, %c0_40] : memref<96x128xf32, #tpu.memory_space<vmem>>, vector<96x128xf32>
    %32 = vector.shape_cast %30 : vector<6x16x128xbf16> to vector<96x128xbf16>
    %c1_41 = arith.constant 1 : index
    %c0_42 = arith.constant 0 : index
    %c0_43 = arith.constant 0 : index
    %c0_44 = arith.constant 0 : index
    %33 = vector.load %arg5[%c1_41, %c0_42, %c0_43, %c0_44] : memref<3x3x128x128xbf16, #tpu.memory_space<vmem>>, vector<1x1x128x128xbf16>
    %34 = vector.shape_cast %33 : vector<1x1x128x128xbf16> to vector<128x128xbf16>
    %cst_45 = arith.constant dense<0.000000e+00> : vector<96x128xf32>
    %35 = tpu.matmul %32, %34, %cst_45 {dimension_numbers = #tpu.dot_dimension_numbers<[1], [0], [0], [1], [0, 0, 1, 1], [], []>} : vector<96x128xbf16>, vector<128x128xbf16>, vector<96x128xf32> -> vector<96x128xf32>
    %36 = arith.addf %31, %35 : vector<96x128xf32>
    %c0_46 = arith.constant 0 : index
    %c0_47 = arith.constant 0 : index
    %37 = vector.load %arg11[%c0_46, %c0_47] : memref<96x128xf32, #tpu.memory_space<vmem>>, vector<96x128xf32>
    tpu.vector_store %arg11[%c0_46, %c0_47], %36 {strides = array<i32>} : memref<96x128xf32, #tpu.memory_space<vmem>>, vector<96x128xf32>,
    %c0_48 = arith.constant 0 : index
    %c0_49 = arith.constant 0 : index
    %c18_50 = arith.constant 18 : index
    %c0_51 = arith.constant 0 : index
    %38 = vector.load %arg3[%c0_48, %c0_49, %c18_50, %c0_51] : memref<1x6x52x128xbf16, #tpu.memory_space<vmem>>, vector<1x6x16x128xbf16>
    %39 = vector.shape_cast %38 : vector<1x6x16x128xbf16> to vector<6x16x128xbf16>
    %c0_52 = arith.constant 0 : index
    %c0_53 = arith.constant 0 : index
    %40 = vector.load %arg11[%c0_52, %c0_53] : memref<96x128xf32, #tpu.memory_space<vmem>>, vector<96x128xf32>
    %41 = vector.shape_cast %39 : vector<6x16x128xbf16> to vector<96x128xbf16>
    %c1_54 = arith.constant 1 : index
    %c1_55 = arith.constant 1 : index
    %c0_56 = arith.constant 0 : index
    %c0_57 = arith.constant 0 : index
    %42 = vector.load %arg5[%c1_54, %c1_55, %c0_56, %c0_57] : memref<3x3x128x128xbf16, #tpu.memory_space<vmem>>, vector<1x1x128x128xbf16>
    %43 = vector.shape_cast %42 : vector<1x1x128x128xbf16> to vector<128x128xbf16>
    %cst_58 = arith.constant dense<0.000000e+00> : vector<96x128xf32>
    %44 = tpu.matmul %41, %43, %cst_58 {dimension_numbers = #tpu.dot_dimension_numbers<[1], [0], [0], [1], [0, 0, 1, 1], [], []>} : vector<96x128xbf16>, vector<128x128xbf16>, vector<96x128xf32> -> vector<96x128xf32>
    %45 = arith.addf %40, %44 : vector<96x128xf32>
    %c0_59 = arith.constant 0 : index
    %c0_60 = arith.constant 0 : index
    %46 = vector.load %arg11[%c0_59, %c0_60] : memref<96x128xf32, #tpu.memory_space<vmem>>, vector<96x128xf32>
    tpu.vector_store %arg11[%c0_59, %c0_60], %45 {strides = array<i32>} : memref<96x128xf32, #tpu.memory_space<vmem>>, vector<96x128xf32>,
    %c0_61 = arith.constant 0 : index
    %c0_62 = arith.constant 0 : index
    %c24_63 = arith.constant 24 : index
    %c0_64 = arith.constant 0 : index
    %47 = vector.load %arg3[%c0_61, %c0_62, %c24_63, %c0_64] : memref<1x6x52x128xbf16, #tpu.memory_space<vmem>>, vector<1x6x16x128xbf16>
    %48 = vector.shape_cast %47 : vector<1x6x16x128xbf16> to vector<6x16x128xbf16>
    %c0_65 = arith.constant 0 : index
    %c0_66 = arith.constant 0 : index
    %49 = vector.load %arg11[%c0_65, %c0_66] : memref<96x128xf32, #tpu.memory_space<vmem>>, vector<96x128xf32>
    %50 = vector.shape_cast %48 : vector<6x16x128xbf16> to vector<96x128xbf16>
    %c1_67 = arith.constant 1 : index
    %c2_68 = arith.constant 2 : index
    %c0_69 = arith.constant 0 : index
    %c0_70 = arith.constant 0 : index
    %51 = vector.load %arg5[%c1_67, %c2_68, %c0_69, %c0_70] : memref<3x3x128x128xbf16, #tpu.memory_space<vmem>>, vector<1x1x128x128xbf16>
    %52 = vector.shape_cast %51 : vector<1x1x128x128xbf16> to vector<128x128xbf16>
    %cst_71 = arith.constant dense<0.000000e+00> : vector<96x128xf32>
    %53 = tpu.matmul %50, %52, %cst_71 {dimension_numbers = #tpu.dot_dimension_numbers<[1], [0], [0], [1], [0, 0, 1, 1], [], []>} : vector<96x128xbf16>, vector<128x128xbf16>, vector<96x128xf32> -> vector<96x128xf32>
    %54 = arith.addf %49, %53 : vector<96x128xf32>
    %c0_72 = arith.constant 0 : index
    %c0_73 = arith.constant 0 : index
    %55 = vector.load %arg11[%c0_72, %c0_73] : memref<96x128xf32, #tpu.memory_space<vmem>>, vector<96x128xf32>
    tpu.vector_store %arg11[%c0_72, %c0_73], %54 {strides = array<i32>} : memref<96x128xf32, #tpu.memory_space<vmem>>, vector<96x128xf32>,
    %c0_74 = arith.constant 0 : index
    %c0_75 = arith.constant 0 : index
    %c12_76 = arith.constant 12 : index
    %c0_77 = arith.constant 0 : index
    %56 = vector.load %arg4[%c0_74, %c0_75, %c12_76, %c0_77] : memref<1x6x52x128xbf16, #tpu.memory_space<vmem>>, vector<1x6x16x128xbf16>
    %57 = vector.shape_cast %56 : vector<1x6x16x128xbf16> to vector<6x16x128xbf16>
    %c0_78 = arith.constant 0 : index
    %c0_79 = arith.constant 0 : index
    %58 = vector.load %arg11[%c0_78, %c0_79] : memref<96x128xf32, #tpu.memory_space<vmem>>, vector<96x128xf32>
    %59 = vector.shape_cast %57 : vector<6x16x128xbf16> to vector<96x128xbf16>
    %c2_80 = arith.constant 2 : index
    %c0_81 = arith.constant 0 : index
    %c0_82 = arith.constant 0 : index
    %c0_83 = arith.constant 0 : index
    %60 = vector.load %arg5[%c2_80, %c0_81, %c0_82, %c0_83] : memref<3x3x128x128xbf16, #tpu.memory_space<vmem>>, vector<1x1x128x128xbf16>
    %61 = vector.shape_cast %60 : vector<1x1x128x128xbf16> to vector<128x128xbf16>
    %cst_84 = arith.constant dense<0.000000e+00> : vector<96x128xf32>
    %62 = tpu.matmul %59, %61, %cst_84 {dimension_numbers = #tpu.dot_dimension_numbers<[1], [0], [0], [1], [0, 0, 1, 1], [], []>} : vector<96x128xbf16>, vector<128x128xbf16>, vector<96x128xf32> -> vector<96x128xf32>
    %63 = arith.addf %58, %62 : vector<96x128xf32>
    %c0_85 = arith.constant 0 : index
    %c0_86 = arith.constant 0 : index
    %64 = vector.load %arg11[%c0_85, %c0_86] : memref<96x128xf32, #tpu.memory_space<vmem>>, vector<96x128xf32>
    tpu.vector_store %arg11[%c0_85, %c0_86], %63 {strides = array<i32>} : memref<96x128xf32, #tpu.memory_space<vmem>>, vector<96x128xf32>,
    %c0_87 = arith.constant 0 : index
    %c0_88 = arith.constant 0 : index
    %c18_89 = arith.constant 18 : index
    %c0_90 = arith.constant 0 : index
    %65 = vector.load %arg4[%c0_87, %c0_88, %c18_89, %c0_90] : memref<1x6x52x128xbf16, #tpu.memory_space<vmem>>, vector<1x6x16x128xbf16>
    %66 = vector.shape_cast %65 : vector<1x6x16x128xbf16> to vector<6x16x128xbf16>
    %c0_91 = arith.constant 0 : index
    %c0_92 = arith.constant 0 : index
    %67 = vector.load %arg11[%c0_91, %c0_92] : memref<96x128xf32, #tpu.memory_space<vmem>>, vector<96x128xf32>
    %68 = vector.shape_cast %66 : vector<6x16x128xbf16> to vector<96x128xbf16>
    %c2_93 = arith.constant 2 : index
    %c1_94 = arith.constant 1 : index
    %c0_95 = arith.constant 0 : index
    %c0_96 = arith.constant 0 : index
    %69 = vector.load %arg5[%c2_93, %c1_94, %c0_95, %c0_96] : memref<3x3x128x128xbf16, #tpu.memory_space<vmem>>, vector<1x1x128x128xbf16>
    %70 = vector.shape_cast %69 : vector<1x1x128x128xbf16> to vector<128x128xbf16>
    %cst_97 = arith.constant dense<0.000000e+00> : vector<96x128xf32>
    %71 = tpu.matmul %68, %70, %cst_97 {dimension_numbers = #tpu.dot_dimension_numbers<[1], [0], [0], [1], [0, 0, 1, 1], [], []>} : vector<96x128xbf16>, vector<128x128xbf16>, vector<96x128xf32> -> vector<96x128xf32>
    %72 = arith.addf %67, %71 : vector<96x128xf32>
    %c0_98 = arith.constant 0 : index
    %c0_99 = arith.constant 0 : index
    %73 = vector.load %arg11[%c0_98, %c0_99] : memref<96x128xf32, #tpu.memory_space<vmem>>, vector<96x128xf32>
    tpu.vector_store %arg11[%c0_98, %c0_99], %72 {strides = array<i32>} : memref<96x128xf32, #tpu.memory_space<vmem>>, vector<96x128xf32>,
    %c0_100 = arith.constant 0 : index
    %c0_101 = arith.constant 0 : index
    %c24_102 = arith.constant 24 : index
    %c0_103 = arith.constant 0 : index
    %74 = vector.load %arg4[%c0_100, %c0_101, %c24_102, %c0_103] : memref<1x6x52x128xbf16, #tpu.memory_space<vmem>>, vector<1x6x16x128xbf16>
    %75 = vector.shape_cast %74 : vector<1x6x16x128xbf16> to vector<6x16x128xbf16>
    %c0_104 = arith.constant 0 : index
    %c0_105 = arith.constant 0 : index
    %76 = vector.load %arg11[%c0_104, %c0_105] : memref<96x128xf32, #tpu.memory_space<vmem>>, vector<96x128xf32>
    %77 = vector.shape_cast %75 : vector<6x16x128xbf16> to vector<96x128xbf16>
    %c2_106 = arith.constant 2 : index
    %c2_107 = arith.constant 2 : index
    %c0_108 = arith.constant 0 : index
    %c0_109 = arith.constant 0 : index
    %78 = vector.load %arg5[%c2_106, %c2_107, %c0_108, %c0_109] : memref<3x3x128x128xbf16, #tpu.memory_space<vmem>>, vector<1x1x128x128xbf16>
    %79 = vector.shape_cast %78 : vector<1x1x128x128xbf16> to vector<128x128xbf16>
    %cst_110 = arith.constant dense<0.000000e+00> : vector<96x128xf32>
    %80 = tpu.matmul %77, %79, %cst_110 {dimension_numbers = #tpu.dot_dimension_numbers<[1], [0], [0], [1], [0, 0, 1, 1], [], []>} : vector<96x128xbf16>, vector<128x128xbf16>, vector<96x128xf32> -> vector<96x128xf32>
    %81 = arith.addf %76, %80 : vector<96x128xf32>
    %c0_111 = arith.constant 0 : index
    %c0_112 = arith.constant 0 : index
    %82 = vector.load %arg11[%c0_111, %c0_112] : memref<96x128xf32, #tpu.memory_space<vmem>>, vector<96x128xf32>
    tpu.vector_store %arg11[%c0_111, %c0_112], %81 {strides = array<i32>} : memref<96x128xf32, #tpu.memory_space<vmem>>, vector<96x128xf32>,
    %c0_113 = arith.constant 0 : index
    %c0_114 = arith.constant 0 : index
    %83 = vector.load %arg11[%c0_113, %c0_114] : memref<96x128xf32, #tpu.memory_space<vmem>>, vector<96x128xf32>
    %84 = vector.shape_cast %83 : vector<96x128xf32> to vector<6x16x128xf32>
    %85 = tpu.iota {dimensions = array<i32: 0>} : vector<6x1x1xi32>
    %c6_i32 = arith.constant 6 : i32
    %86 = arith.muli %arg1, %c6_i32 : i32
    %87 = vector.broadcast %86 : i32 to vector<6x1x1xi32>
    %88 = arith.addi %85, %87 : vector<6x1x1xi32>
    %c16_i32 = arith.constant 16 : i32
    %89 = vector.broadcast %c16_i32 : i32 to vector<6x1x1xi32>
    %90 = arith.cmpi slt, %88, %89 : vector<6x1x1xi32>
    %cst_115 = arith.constant 0.000000e+00 : f32
    %91 = vector.shape_cast %90 : vector<6x1x1xi1> to vector<6x1x1xi1>
    %92 = vector.broadcast %91 : vector<6x1x1xi1> to vector<6x16x128xi1>
    %93 = vector.broadcast %cst_115 : f32 to vector<6x16x128xf32>
    %94 = arith.select %92, %84, %93 : vector<6x16x128xi1>, vector<6x16x128xf32>
    %95 = arith.truncf %94 : vector<6x16x128xf32> to vector<6x16x128xbf16>
    %c0_116 = arith.constant 0 : index
    %c0_117 = arith.constant 0 : index
    %c0_118 = arith.constant 0 : index
    %c0_119 = arith.constant 0 : index
    %96 = vector.load %arg7[%c0_116, %c0_117, %c0_118, %c0_119] : memref<1x6x16x128xbf16, #tpu.memory_space<vmem>>, vector<1x6x16x128xbf16>
    %97 = vector.shape_cast %96 : vector<1x6x16x128xbf16> to vector<6x16x128xbf16>
    %98 = vector.shape_cast %95 : vector<6x16x128xbf16> to vector<1x6x16x128xbf16>
    tpu.vector_store %arg7[%c0_116, %c0_117, %c0_118, %c0_119], %98 {strides = array<i32>} : memref<1x6x16x128xbf16, #tpu.memory_space<vmem>>, vector<1x6x16x128xbf16>,
    %99 = vector.shape_cast %94 : vector<6x16x128xf32> to vector<96x128xf32>
    %cst_120 = arith.constant dense<0.000000e+00> : vector<128xf32>
    %100 = vector.multi_reduction <add>, %99, %cst_120 [0] : vector<96x128xf32> to vector<128xf32>
    %101 = vector.shape_cast %100 : vector<128xf32> to vector<1x128xf32>
    %c0_121 = arith.constant 0 : index
    %c0_122 = arith.constant 0 : index
    %c0_123 = arith.constant 0 : index
    %c0_124 = arith.constant 0 : index
    %102 = vector.load %arg8[%c0_121, %c0_122, %c0_123, %c0_124] : memref<1x1x2x128xf32, #tpu.memory_space<vmem>>, vector<1x1x1x128xf32>
    %103 = vector.shape_cast %102 : vector<1x1x1x128xf32> to vector<1x128xf32>
    %104 = vector.shape_cast %101 : vector<1x128xf32> to vector<1x1x1x128xf32>
    tpu.vector_store %arg8[%c0_121, %c0_122, %c0_123, %c0_124], %104 {strides = array<i32>} : memref<1x1x2x128xf32, #tpu.memory_space<vmem>>, vector<1x1x1x128xf32>,
    %105 = arith.mulf %99, %99 : vector<96x128xf32>
    %cst_125 = arith.constant dense<0.000000e+00> : vector<128xf32>
    %106 = vector.multi_reduction <add>, %105, %cst_125 [0] : vector<96x128xf32> to vector<128xf32>
    %107 = vector.shape_cast %106 : vector<128xf32> to vector<1x128xf32>
    %c0_126 = arith.constant 0 : index
    %c0_127 = arith.constant 0 : index
    %c1_128 = arith.constant 1 : index
    %c0_129 = arith.constant 0 : index
    %108 = vector.load %arg8[%c0_126, %c0_127, %c1_128, %c0_129] : memref<1x1x2x128xf32, #tpu.memory_space<vmem>>, vector<1x1x1x128xf32>
    %109 = vector.shape_cast %108 : vector<1x1x1x128xf32> to vector<1x128xf32>
    %110 = vector.shape_cast %107 : vector<1x128xf32> to vector<1x1x1x128xf32>
    tpu.vector_store %arg8[%c0_126, %c0_127, %c1_128, %c0_129], %110 {strides = array<i32>} : memref<1x1x2x128xf32, #tpu.memory_space<vmem>>, vector<1x1x1x128xf32>,
    %c0_130 = arith.constant 0 : index
    %c0_131 = arith.constant 0 : index
    %c18_132 = arith.constant 18 : index
    %c0_133 = arith.constant 0 : index
    %111 = vector.load %arg3[%c0_130, %c0_131, %c18_132, %c0_133] : memref<1x6x52x128xbf16, #tpu.memory_space<vmem>>, vector<1x6x16x128xbf16>
    %112 = vector.shape_cast %111 : vector<1x6x16x128xbf16> to vector<6x16x128xbf16>
    %113 = vector.shape_cast %112 : vector<6x16x128xbf16> to vector<96x128xbf16>
    %c0_134 = arith.constant 0 : index
    %c0_135 = arith.constant 0 : index
    %114 = vector.load %arg6[%c0_134, %c0_135] : memref<128x128xbf16, #tpu.memory_space<vmem>>, vector<128x128xbf16>
    %cst_136 = arith.constant dense<0.000000e+00> : vector<96x128xf32>
    %115 = tpu.matmul %113, %114, %cst_136 {dimension_numbers = #tpu.dot_dimension_numbers<[1], [0], [0], [1], [0, 0, 1, 1], [], []>} : vector<96x128xbf16>, vector<128x128xbf16>, vector<96x128xf32> -> vector<96x128xf32>
    %116 = vector.shape_cast %115 : vector<96x128xf32> to vector<6x16x128xf32>
    %117 = arith.truncf %116 : vector<6x16x128xf32> to vector<6x16x128xbf16>
    %c0_137 = arith.constant 0 : index
    %c0_138 = arith.constant 0 : index
    %c0_139 = arith.constant 0 : index
    %c0_140 = arith.constant 0 : index
    %118 = vector.load %arg9[%c0_137, %c0_138, %c0_139, %c0_140] : memref<1x6x16x128xbf16, #tpu.memory_space<vmem>>, vector<1x6x16x128xbf16>
    %119 = vector.shape_cast %118 : vector<1x6x16x128xbf16> to vector<6x16x128xbf16>
    %120 = vector.shape_cast %117 : vector<6x16x128xbf16> to vector<1x6x16x128xbf16>
    tpu.vector_store %arg9[%c0_137, %c0_138, %c0_139, %c0_140], %120 {strides = array<i32>} : memref<1x6x16x128xbf16, #tpu.memory_space<vmem>>, vector<1x6x16x128xbf16>,
    %cst_141 = arith.constant dense<0.000000e+00> : vector<128xf32>
    %121 = vector.multi_reduction <add>, %115, %cst_141 [0] : vector<96x128xf32> to vector<128xf32>
    %122 = vector.shape_cast %121 : vector<128xf32> to vector<1x128xf32>
    %c0_142 = arith.constant 0 : index
    %c0_143 = arith.constant 0 : index
    %c0_144 = arith.constant 0 : index
    %c0_145 = arith.constant 0 : index
    %123 = vector.load %arg10[%c0_142, %c0_143, %c0_144, %c0_145] : memref<1x1x2x128xf32, #tpu.memory_space<vmem>>, vector<1x1x1x128xf32>
    %124 = vector.shape_cast %123 : vector<1x1x1x128xf32> to vector<1x128xf32>
    %125 = vector.shape_cast %122 : vector<1x128xf32> to vector<1x1x1x128xf32>
    tpu.vector_store %arg10[%c0_142, %c0_143, %c0_144, %c0_145], %125 {strides = array<i32>} : memref<1x1x2x128xf32, #tpu.memory_space<vmem>>, vector<1x1x1x128xf32>,
    %126 = arith.mulf %115, %115 : vector<96x128xf32>
    %cst_146 = arith.constant dense<0.000000e+00> : vector<128xf32>
    %127 = vector.multi_reduction <add>, %126, %cst_146 [0] : vector<96x128xf32> to vector<128xf32>
    %128 = vector.shape_cast %127 : vector<128xf32> to vector<1x128xf32>
    %c0_147 = arith.constant 0 : index
    %c0_148 = arith.constant 0 : index
    %c1_149 = arith.constant 1 : index
    %c0_150 = arith.constant 0 : index
    %129 = vector.load %arg10[%c0_147, %c0_148, %c1_149, %c0_150] : memref<1x1x2x128xf32, #tpu.memory_space<vmem>>, vector<1x1x1x128xf32>
    %130 = vector.shape_cast %129 : vector<1x1x1x128xf32> to vector<1x128xf32>
    %131 = vector.shape_cast %128 : vector<1x128xf32> to vector<1x1x1x128xf32>
    tpu.vector_store %arg10[%c0_147, %c0_148, %c1_149, %c0_150], %131 {strides = array<i32>} : memref<1x1x2x128xf32, #tpu.memory_space<vmem>>, vector<1x1x1x128xf32>,
    return
  }
  func.func @transform_0(%arg0: i32, %arg1: i32) -> (i32, i32, i32, i32) {
    %c2_i32 = arith.constant 2 : i32
    %0 = arith.addi %arg1, %c2_i32 : i32
    %c0_i32 = arith.constant 0 : i32
    %c0_i32_0 = arith.constant 0 : i32
    %c0_i32_1 = arith.constant 0 : i32
    return %arg0, %0, %c0_i32, %c0_i32_0 : i32, i32, i32, i32
  }
  func.func @transform_1(%arg0: i32, %arg1: i32) -> (i32, i32, i32, i32) {
    %c3_i32 = arith.constant 3 : i32
    %0 = arith.addi %arg1, %c3_i32 : i32
    %c0_i32 = arith.constant 0 : i32
    %c0_i32_0 = arith.constant 0 : i32
    %c0_i32_1 = arith.constant 0 : i32
    return %arg0, %0, %c0_i32, %c0_i32_0 : i32, i32, i32, i32
  }
  func.func @transform_2(%arg0: i32, %arg1: i32) -> (i32, i32, i32, i32) {
    %c4_i32 = arith.constant 4 : i32
    %0 = arith.addi %arg1, %c4_i32 : i32
    %c0_i32 = arith.constant 0 : i32
    %c0_i32_0 = arith.constant 0 : i32
    %c0_i32_1 = arith.constant 0 : i32
    return %arg0, %0, %c0_i32, %c0_i32_0 : i32, i32, i32, i32
  }
  func.func @transform_3(%arg0: i32, %arg1: i32) -> (i32, i32, i32, i32) {
    %c0_i32 = arith.constant 0 : i32
    %c0_i32_0 = arith.constant 0 : i32
    %c0_i32_1 = arith.constant 0 : i32
    %c0_i32_2 = arith.constant 0 : i32
    %c0_i32_3 = arith.constant 0 : i32
    return %c0_i32, %c0_i32_0, %c0_i32_1, %c0_i32_2 : i32, i32, i32, i32
  }
  func.func @transform_4(%arg0: i32, %arg1: i32) -> (i32, i32) {
    %c0_i32 = arith.constant 0 : i32
    %c0_i32_0 = arith.constant 0 : i32
    %c0_i32_1 = arith.constant 0 : i32
    return %c0_i32, %c0_i32_0 : i32, i32
  }
  func.func @transform_5(%arg0: i32, %arg1: i32) -> (i32, i32, i32, i32) {
    %c0_i32 = arith.constant 0 : i32
    %c0_i32_0 = arith.constant 0 : i32
    %c0_i32_1 = arith.constant 0 : i32
    return %arg0, %arg1, %c0_i32, %c0_i32_0 : i32, i32, i32, i32
  }
  func.func @transform_6(%arg0: i32, %arg1: i32) -> (i32, i32, i32, i32) {
    %c0_i32 = arith.constant 0 : i32
    %c0_i32_0 = arith.constant 0 : i32
    %c0_i32_1 = arith.constant 0 : i32
    return %arg0, %arg1, %c0_i32, %c0_i32_0 : i32, i32, i32, i32
  }
  func.func @transform_7(%arg0: i32, %arg1: i32) -> (i32, i32, i32, i32) {
    %c0_i32 = arith.constant 0 : i32
    %c0_i32_0 = arith.constant 0 : i32
    %c0_i32_1 = arith.constant 0 : i32
    return %arg0, %arg1, %c0_i32, %c0_i32_0 : i32, i32, i32, i32
  }
  func.func @transform_8(%arg0: i32, %arg1: i32) -> (i32, i32, i32, i32) {
    %c0_i32 = arith.constant 0 : i32
    %c0_i32_0 = arith.constant 0 : i32
    %c0_i32_1 = arith.constant 0 : i32
    return %arg0, %arg1, %c0_i32, %c0_i32_0 : i32, i32, i32, i32
  }
}

module attributes {stable_mosaic.version = 11 : i64} {
  func.func @_dil_conv_kernel(%arg0: i32, %arg1: i32, %arg2: memref<1x6x52x128xbf16, #tpu.memory_space<vmem>>, %arg3: memref<1x6x52x128xbf16, #tpu.memory_space<vmem>>, %arg4: memref<1x6x52x128xbf16, #tpu.memory_space<vmem>>, %arg5: memref<3x3x128x128xbf16, #tpu.memory_space<vmem>>, %arg6: memref<1x6x16x128xbf16, #tpu.memory_space<vmem>>, %arg7: memref<1x1x2x128xf32, #tpu.memory_space<vmem>>, %arg8: memref<96x128xf32, #tpu.memory_space<vmem>>) attributes {dimension_semantics = [#tpu.dimension_semantics<parallel>, #tpu.dimension_semantics<parallel>], iteration_bounds = array<i64: 2, 3>, scalar_prefetch = 0 : i64, scratch_operands = 1 : i64, tpu.core_type = #tpu.core_type<tc>, window_params = [{transform_indices = @transform_0, window_bounds = array<i64: 1, 6, 52, 128>}, {transform_indices = @transform_1, window_bounds = array<i64: 1, 6, 52, 128>}, {transform_indices = @transform_2, window_bounds = array<i64: 1, 6, 52, 128>}, {pipeline_mode = #tpu.pipeline_mode<synchronous>, transform_indices = @transform_3, window_bounds = array<i64: 3, 3, 128, 128>}, {transform_indices = @transform_4, window_bounds = array<i64: 1, 6, 16, 128>}, {transform_indices = @transform_5, window_bounds = array<i64: 1, 1, 2, 128>}]} {
    %cst = arith.constant 0.000000e+00 : f32
    %0 = vector.broadcast %cst : f32 to vector<96x128xf32>
    %c0 = arith.constant 0 : index
    %c0_0 = arith.constant 0 : index
    %1 = vector.load %arg8[%c0, %c0_0] : memref<96x128xf32, #tpu.memory_space<vmem>>, vector<96x128xf32>
    tpu.vector_store %arg8[%c0, %c0_0], %0 {strides = array<i32>} : memref<96x128xf32, #tpu.memory_space<vmem>>, vector<96x128xf32>,
    %c0_1 = arith.constant 0 : index
    %c0_2 = arith.constant 0 : index
    %c6 = arith.constant 6 : index
    %c0_3 = arith.constant 0 : index
    %2 = vector.load %arg2[%c0_1, %c0_2, %c6, %c0_3] : memref<1x6x52x128xbf16, #tpu.memory_space<vmem>>, vector<1x6x16x128xbf16>
    %3 = vector.shape_cast %2 : vector<1x6x16x128xbf16> to vector<6x16x128xbf16>
    %c0_4 = arith.constant 0 : index
    %c0_5 = arith.constant 0 : index
    %4 = vector.load %arg8[%c0_4, %c0_5] : memref<96x128xf32, #tpu.memory_space<vmem>>, vector<96x128xf32>
    %5 = vector.shape_cast %3 : vector<6x16x128xbf16> to vector<96x128xbf16>
    %c0_6 = arith.constant 0 : index
    %c0_7 = arith.constant 0 : index
    %c0_8 = arith.constant 0 : index
    %c0_9 = arith.constant 0 : index
    %6 = vector.load %arg5[%c0_6, %c0_7, %c0_8, %c0_9] : memref<3x3x128x128xbf16, #tpu.memory_space<vmem>>, vector<1x1x128x128xbf16>
    %7 = vector.shape_cast %6 : vector<1x1x128x128xbf16> to vector<128x128xbf16>
    %cst_10 = arith.constant dense<0.000000e+00> : vector<96x128xf32>
    %8 = tpu.matmul %5, %7, %cst_10 {dimension_numbers = #tpu.dot_dimension_numbers<[1], [0], [0], [1], [0, 0, 1, 1], [], []>} : vector<96x128xbf16>, vector<128x128xbf16>, vector<96x128xf32> -> vector<96x128xf32>
    %9 = arith.addf %4, %8 : vector<96x128xf32>
    %c0_11 = arith.constant 0 : index
    %c0_12 = arith.constant 0 : index
    %10 = vector.load %arg8[%c0_11, %c0_12] : memref<96x128xf32, #tpu.memory_space<vmem>>, vector<96x128xf32>
    tpu.vector_store %arg8[%c0_11, %c0_12], %9 {strides = array<i32>} : memref<96x128xf32, #tpu.memory_space<vmem>>, vector<96x128xf32>,
    %c0_13 = arith.constant 0 : index
    %c0_14 = arith.constant 0 : index
    %c18 = arith.constant 18 : index
    %c0_15 = arith.constant 0 : index
    %11 = vector.load %arg2[%c0_13, %c0_14, %c18, %c0_15] : memref<1x6x52x128xbf16, #tpu.memory_space<vmem>>, vector<1x6x16x128xbf16>
    %12 = vector.shape_cast %11 : vector<1x6x16x128xbf16> to vector<6x16x128xbf16>
    %c0_16 = arith.constant 0 : index
    %c0_17 = arith.constant 0 : index
    %13 = vector.load %arg8[%c0_16, %c0_17] : memref<96x128xf32, #tpu.memory_space<vmem>>, vector<96x128xf32>
    %14 = vector.shape_cast %12 : vector<6x16x128xbf16> to vector<96x128xbf16>
    %c0_18 = arith.constant 0 : index
    %c1 = arith.constant 1 : index
    %c0_19 = arith.constant 0 : index
    %c0_20 = arith.constant 0 : index
    %15 = vector.load %arg5[%c0_18, %c1, %c0_19, %c0_20] : memref<3x3x128x128xbf16, #tpu.memory_space<vmem>>, vector<1x1x128x128xbf16>
    %16 = vector.shape_cast %15 : vector<1x1x128x128xbf16> to vector<128x128xbf16>
    %cst_21 = arith.constant dense<0.000000e+00> : vector<96x128xf32>
    %17 = tpu.matmul %14, %16, %cst_21 {dimension_numbers = #tpu.dot_dimension_numbers<[1], [0], [0], [1], [0, 0, 1, 1], [], []>} : vector<96x128xbf16>, vector<128x128xbf16>, vector<96x128xf32> -> vector<96x128xf32>
    %18 = arith.addf %13, %17 : vector<96x128xf32>
    %c0_22 = arith.constant 0 : index
    %c0_23 = arith.constant 0 : index
    %19 = vector.load %arg8[%c0_22, %c0_23] : memref<96x128xf32, #tpu.memory_space<vmem>>, vector<96x128xf32>
    tpu.vector_store %arg8[%c0_22, %c0_23], %18 {strides = array<i32>} : memref<96x128xf32, #tpu.memory_space<vmem>>, vector<96x128xf32>,
    %c0_24 = arith.constant 0 : index
    %c0_25 = arith.constant 0 : index
    %c30 = arith.constant 30 : index
    %c0_26 = arith.constant 0 : index
    %20 = vector.load %arg2[%c0_24, %c0_25, %c30, %c0_26] : memref<1x6x52x128xbf16, #tpu.memory_space<vmem>>, vector<1x6x16x128xbf16>
    %21 = vector.shape_cast %20 : vector<1x6x16x128xbf16> to vector<6x16x128xbf16>
    %c0_27 = arith.constant 0 : index
    %c0_28 = arith.constant 0 : index
    %22 = vector.load %arg8[%c0_27, %c0_28] : memref<96x128xf32, #tpu.memory_space<vmem>>, vector<96x128xf32>
    %23 = vector.shape_cast %21 : vector<6x16x128xbf16> to vector<96x128xbf16>
    %c0_29 = arith.constant 0 : index
    %c2 = arith.constant 2 : index
    %c0_30 = arith.constant 0 : index
    %c0_31 = arith.constant 0 : index
    %24 = vector.load %arg5[%c0_29, %c2, %c0_30, %c0_31] : memref<3x3x128x128xbf16, #tpu.memory_space<vmem>>, vector<1x1x128x128xbf16>
    %25 = vector.shape_cast %24 : vector<1x1x128x128xbf16> to vector<128x128xbf16>
    %cst_32 = arith.constant dense<0.000000e+00> : vector<96x128xf32>
    %26 = tpu.matmul %23, %25, %cst_32 {dimension_numbers = #tpu.dot_dimension_numbers<[1], [0], [0], [1], [0, 0, 1, 1], [], []>} : vector<96x128xbf16>, vector<128x128xbf16>, vector<96x128xf32> -> vector<96x128xf32>
    %27 = arith.addf %22, %26 : vector<96x128xf32>
    %c0_33 = arith.constant 0 : index
    %c0_34 = arith.constant 0 : index
    %28 = vector.load %arg8[%c0_33, %c0_34] : memref<96x128xf32, #tpu.memory_space<vmem>>, vector<96x128xf32>
    tpu.vector_store %arg8[%c0_33, %c0_34], %27 {strides = array<i32>} : memref<96x128xf32, #tpu.memory_space<vmem>>, vector<96x128xf32>,
    %c0_35 = arith.constant 0 : index
    %c0_36 = arith.constant 0 : index
    %c6_37 = arith.constant 6 : index
    %c0_38 = arith.constant 0 : index
    %29 = vector.load %arg3[%c0_35, %c0_36, %c6_37, %c0_38] : memref<1x6x52x128xbf16, #tpu.memory_space<vmem>>, vector<1x6x16x128xbf16>
    %30 = vector.shape_cast %29 : vector<1x6x16x128xbf16> to vector<6x16x128xbf16>
    %c0_39 = arith.constant 0 : index
    %c0_40 = arith.constant 0 : index
    %31 = vector.load %arg8[%c0_39, %c0_40] : memref<96x128xf32, #tpu.memory_space<vmem>>, vector<96x128xf32>
    %32 = vector.shape_cast %30 : vector<6x16x128xbf16> to vector<96x128xbf16>
    %c1_41 = arith.constant 1 : index
    %c0_42 = arith.constant 0 : index
    %c0_43 = arith.constant 0 : index
    %c0_44 = arith.constant 0 : index
    %33 = vector.load %arg5[%c1_41, %c0_42, %c0_43, %c0_44] : memref<3x3x128x128xbf16, #tpu.memory_space<vmem>>, vector<1x1x128x128xbf16>
    %34 = vector.shape_cast %33 : vector<1x1x128x128xbf16> to vector<128x128xbf16>
    %cst_45 = arith.constant dense<0.000000e+00> : vector<96x128xf32>
    %35 = tpu.matmul %32, %34, %cst_45 {dimension_numbers = #tpu.dot_dimension_numbers<[1], [0], [0], [1], [0, 0, 1, 1], [], []>} : vector<96x128xbf16>, vector<128x128xbf16>, vector<96x128xf32> -> vector<96x128xf32>
    %36 = arith.addf %31, %35 : vector<96x128xf32>
    %c0_46 = arith.constant 0 : index
    %c0_47 = arith.constant 0 : index
    %37 = vector.load %arg8[%c0_46, %c0_47] : memref<96x128xf32, #tpu.memory_space<vmem>>, vector<96x128xf32>
    tpu.vector_store %arg8[%c0_46, %c0_47], %36 {strides = array<i32>} : memref<96x128xf32, #tpu.memory_space<vmem>>, vector<96x128xf32>,
    %c0_48 = arith.constant 0 : index
    %c0_49 = arith.constant 0 : index
    %c18_50 = arith.constant 18 : index
    %c0_51 = arith.constant 0 : index
    %38 = vector.load %arg3[%c0_48, %c0_49, %c18_50, %c0_51] : memref<1x6x52x128xbf16, #tpu.memory_space<vmem>>, vector<1x6x16x128xbf16>
    %39 = vector.shape_cast %38 : vector<1x6x16x128xbf16> to vector<6x16x128xbf16>
    %c0_52 = arith.constant 0 : index
    %c0_53 = arith.constant 0 : index
    %40 = vector.load %arg8[%c0_52, %c0_53] : memref<96x128xf32, #tpu.memory_space<vmem>>, vector<96x128xf32>
    %41 = vector.shape_cast %39 : vector<6x16x128xbf16> to vector<96x128xbf16>
    %c1_54 = arith.constant 1 : index
    %c1_55 = arith.constant 1 : index
    %c0_56 = arith.constant 0 : index
    %c0_57 = arith.constant 0 : index
    %42 = vector.load %arg5[%c1_54, %c1_55, %c0_56, %c0_57] : memref<3x3x128x128xbf16, #tpu.memory_space<vmem>>, vector<1x1x128x128xbf16>
    %43 = vector.shape_cast %42 : vector<1x1x128x128xbf16> to vector<128x128xbf16>
    %cst_58 = arith.constant dense<0.000000e+00> : vector<96x128xf32>
    %44 = tpu.matmul %41, %43, %cst_58 {dimension_numbers = #tpu.dot_dimension_numbers<[1], [0], [0], [1], [0, 0, 1, 1], [], []>} : vector<96x128xbf16>, vector<128x128xbf16>, vector<96x128xf32> -> vector<96x128xf32>
    %45 = arith.addf %40, %44 : vector<96x128xf32>
    %c0_59 = arith.constant 0 : index
    %c0_60 = arith.constant 0 : index
    %46 = vector.load %arg8[%c0_59, %c0_60] : memref<96x128xf32, #tpu.memory_space<vmem>>, vector<96x128xf32>
    tpu.vector_store %arg8[%c0_59, %c0_60], %45 {strides = array<i32>} : memref<96x128xf32, #tpu.memory_space<vmem>>, vector<96x128xf32>,
    %c0_61 = arith.constant 0 : index
    %c0_62 = arith.constant 0 : index
    %c30_63 = arith.constant 30 : index
    %c0_64 = arith.constant 0 : index
    %47 = vector.load %arg3[%c0_61, %c0_62, %c30_63, %c0_64] : memref<1x6x52x128xbf16, #tpu.memory_space<vmem>>, vector<1x6x16x128xbf16>
    %48 = vector.shape_cast %47 : vector<1x6x16x128xbf16> to vector<6x16x128xbf16>
    %c0_65 = arith.constant 0 : index
    %c0_66 = arith.constant 0 : index
    %49 = vector.load %arg8[%c0_65, %c0_66] : memref<96x128xf32, #tpu.memory_space<vmem>>, vector<96x128xf32>
    %50 = vector.shape_cast %48 : vector<6x16x128xbf16> to vector<96x128xbf16>
    %c1_67 = arith.constant 1 : index
    %c2_68 = arith.constant 2 : index
    %c0_69 = arith.constant 0 : index
    %c0_70 = arith.constant 0 : index
    %51 = vector.load %arg5[%c1_67, %c2_68, %c0_69, %c0_70] : memref<3x3x128x128xbf16, #tpu.memory_space<vmem>>, vector<1x1x128x128xbf16>
    %52 = vector.shape_cast %51 : vector<1x1x128x128xbf16> to vector<128x128xbf16>
    %cst_71 = arith.constant dense<0.000000e+00> : vector<96x128xf32>
    %53 = tpu.matmul %50, %52, %cst_71 {dimension_numbers = #tpu.dot_dimension_numbers<[1], [0], [0], [1], [0, 0, 1, 1], [], []>} : vector<96x128xbf16>, vector<128x128xbf16>, vector<96x128xf32> -> vector<96x128xf32>
    %54 = arith.addf %49, %53 : vector<96x128xf32>
    %c0_72 = arith.constant 0 : index
    %c0_73 = arith.constant 0 : index
    %55 = vector.load %arg8[%c0_72, %c0_73] : memref<96x128xf32, #tpu.memory_space<vmem>>, vector<96x128xf32>
    tpu.vector_store %arg8[%c0_72, %c0_73], %54 {strides = array<i32>} : memref<96x128xf32, #tpu.memory_space<vmem>>, vector<96x128xf32>,
    %c0_74 = arith.constant 0 : index
    %c0_75 = arith.constant 0 : index
    %c6_76 = arith.constant 6 : index
    %c0_77 = arith.constant 0 : index
    %56 = vector.load %arg4[%c0_74, %c0_75, %c6_76, %c0_77] : memref<1x6x52x128xbf16, #tpu.memory_space<vmem>>, vector<1x6x16x128xbf16>
    %57 = vector.shape_cast %56 : vector<1x6x16x128xbf16> to vector<6x16x128xbf16>
    %c0_78 = arith.constant 0 : index
    %c0_79 = arith.constant 0 : index
    %58 = vector.load %arg8[%c0_78, %c0_79] : memref<96x128xf32, #tpu.memory_space<vmem>>, vector<96x128xf32>
    %59 = vector.shape_cast %57 : vector<6x16x128xbf16> to vector<96x128xbf16>
    %c2_80 = arith.constant 2 : index
    %c0_81 = arith.constant 0 : index
    %c0_82 = arith.constant 0 : index
    %c0_83 = arith.constant 0 : index
    %60 = vector.load %arg5[%c2_80, %c0_81, %c0_82, %c0_83] : memref<3x3x128x128xbf16, #tpu.memory_space<vmem>>, vector<1x1x128x128xbf16>
    %61 = vector.shape_cast %60 : vector<1x1x128x128xbf16> to vector<128x128xbf16>
    %cst_84 = arith.constant dense<0.000000e+00> : vector<96x128xf32>
    %62 = tpu.matmul %59, %61, %cst_84 {dimension_numbers = #tpu.dot_dimension_numbers<[1], [0], [0], [1], [0, 0, 1, 1], [], []>} : vector<96x128xbf16>, vector<128x128xbf16>, vector<96x128xf32> -> vector<96x128xf32>
    %63 = arith.addf %58, %62 : vector<96x128xf32>
    %c0_85 = arith.constant 0 : index
    %c0_86 = arith.constant 0 : index
    %64 = vector.load %arg8[%c0_85, %c0_86] : memref<96x128xf32, #tpu.memory_space<vmem>>, vector<96x128xf32>
    tpu.vector_store %arg8[%c0_85, %c0_86], %63 {strides = array<i32>} : memref<96x128xf32, #tpu.memory_space<vmem>>, vector<96x128xf32>,
    %c0_87 = arith.constant 0 : index
    %c0_88 = arith.constant 0 : index
    %c18_89 = arith.constant 18 : index
    %c0_90 = arith.constant 0 : index
    %65 = vector.load %arg4[%c0_87, %c0_88, %c18_89, %c0_90] : memref<1x6x52x128xbf16, #tpu.memory_space<vmem>>, vector<1x6x16x128xbf16>
    %66 = vector.shape_cast %65 : vector<1x6x16x128xbf16> to vector<6x16x128xbf16>
    %c0_91 = arith.constant 0 : index
    %c0_92 = arith.constant 0 : index
    %67 = vector.load %arg8[%c0_91, %c0_92] : memref<96x128xf32, #tpu.memory_space<vmem>>, vector<96x128xf32>
    %68 = vector.shape_cast %66 : vector<6x16x128xbf16> to vector<96x128xbf16>
    %c2_93 = arith.constant 2 : index
    %c1_94 = arith.constant 1 : index
    %c0_95 = arith.constant 0 : index
    %c0_96 = arith.constant 0 : index
    %69 = vector.load %arg5[%c2_93, %c1_94, %c0_95, %c0_96] : memref<3x3x128x128xbf16, #tpu.memory_space<vmem>>, vector<1x1x128x128xbf16>
    %70 = vector.shape_cast %69 : vector<1x1x128x128xbf16> to vector<128x128xbf16>
    %cst_97 = arith.constant dense<0.000000e+00> : vector<96x128xf32>
    %71 = tpu.matmul %68, %70, %cst_97 {dimension_numbers = #tpu.dot_dimension_numbers<[1], [0], [0], [1], [0, 0, 1, 1], [], []>} : vector<96x128xbf16>, vector<128x128xbf16>, vector<96x128xf32> -> vector<96x128xf32>
    %72 = arith.addf %67, %71 : vector<96x128xf32>
    %c0_98 = arith.constant 0 : index
    %c0_99 = arith.constant 0 : index
    %73 = vector.load %arg8[%c0_98, %c0_99] : memref<96x128xf32, #tpu.memory_space<vmem>>, vector<96x128xf32>
    tpu.vector_store %arg8[%c0_98, %c0_99], %72 {strides = array<i32>} : memref<96x128xf32, #tpu.memory_space<vmem>>, vector<96x128xf32>,
    %c0_100 = arith.constant 0 : index
    %c0_101 = arith.constant 0 : index
    %c30_102 = arith.constant 30 : index
    %c0_103 = arith.constant 0 : index
    %74 = vector.load %arg4[%c0_100, %c0_101, %c30_102, %c0_103] : memref<1x6x52x128xbf16, #tpu.memory_space<vmem>>, vector<1x6x16x128xbf16>
    %75 = vector.shape_cast %74 : vector<1x6x16x128xbf16> to vector<6x16x128xbf16>
    %c0_104 = arith.constant 0 : index
    %c0_105 = arith.constant 0 : index
    %76 = vector.load %arg8[%c0_104, %c0_105] : memref<96x128xf32, #tpu.memory_space<vmem>>, vector<96x128xf32>
    %77 = vector.shape_cast %75 : vector<6x16x128xbf16> to vector<96x128xbf16>
    %c2_106 = arith.constant 2 : index
    %c2_107 = arith.constant 2 : index
    %c0_108 = arith.constant 0 : index
    %c0_109 = arith.constant 0 : index
    %78 = vector.load %arg5[%c2_106, %c2_107, %c0_108, %c0_109] : memref<3x3x128x128xbf16, #tpu.memory_space<vmem>>, vector<1x1x128x128xbf16>
    %79 = vector.shape_cast %78 : vector<1x1x128x128xbf16> to vector<128x128xbf16>
    %cst_110 = arith.constant dense<0.000000e+00> : vector<96x128xf32>
    %80 = tpu.matmul %77, %79, %cst_110 {dimension_numbers = #tpu.dot_dimension_numbers<[1], [0], [0], [1], [0, 0, 1, 1], [], []>} : vector<96x128xbf16>, vector<128x128xbf16>, vector<96x128xf32> -> vector<96x128xf32>
    %81 = arith.addf %76, %80 : vector<96x128xf32>
    %c0_111 = arith.constant 0 : index
    %c0_112 = arith.constant 0 : index
    %82 = vector.load %arg8[%c0_111, %c0_112] : memref<96x128xf32, #tpu.memory_space<vmem>>, vector<96x128xf32>
    tpu.vector_store %arg8[%c0_111, %c0_112], %81 {strides = array<i32>} : memref<96x128xf32, #tpu.memory_space<vmem>>, vector<96x128xf32>,
    %c0_113 = arith.constant 0 : index
    %c0_114 = arith.constant 0 : index
    %83 = vector.load %arg8[%c0_113, %c0_114] : memref<96x128xf32, #tpu.memory_space<vmem>>, vector<96x128xf32>
    %84 = vector.shape_cast %83 : vector<96x128xf32> to vector<6x16x128xf32>
    %85 = tpu.iota {dimensions = array<i32: 0>} : vector<6x1x1xi32>
    %c6_i32 = arith.constant 6 : i32
    %86 = arith.muli %arg1, %c6_i32 : i32
    %87 = vector.broadcast %86 : i32 to vector<6x1x1xi32>
    %88 = arith.addi %85, %87 : vector<6x1x1xi32>
    %c16_i32 = arith.constant 16 : i32
    %89 = vector.broadcast %c16_i32 : i32 to vector<6x1x1xi32>
    %90 = arith.cmpi slt, %88, %89 : vector<6x1x1xi32>
    %cst_115 = arith.constant 0.000000e+00 : f32
    %91 = vector.shape_cast %90 : vector<6x1x1xi1> to vector<6x1x1xi1>
    %92 = vector.broadcast %91 : vector<6x1x1xi1> to vector<6x16x128xi1>
    %93 = vector.broadcast %cst_115 : f32 to vector<6x16x128xf32>
    %94 = arith.select %92, %84, %93 : vector<6x16x128xi1>, vector<6x16x128xf32>
    %95 = arith.truncf %94 : vector<6x16x128xf32> to vector<6x16x128xbf16>
    %c0_116 = arith.constant 0 : index
    %c0_117 = arith.constant 0 : index
    %c0_118 = arith.constant 0 : index
    %c0_119 = arith.constant 0 : index
    %96 = vector.load %arg6[%c0_116, %c0_117, %c0_118, %c0_119] : memref<1x6x16x128xbf16, #tpu.memory_space<vmem>>, vector<1x6x16x128xbf16>
    %97 = vector.shape_cast %96 : vector<1x6x16x128xbf16> to vector<6x16x128xbf16>
    %98 = vector.shape_cast %95 : vector<6x16x128xbf16> to vector<1x6x16x128xbf16>
    tpu.vector_store %arg6[%c0_116, %c0_117, %c0_118, %c0_119], %98 {strides = array<i32>} : memref<1x6x16x128xbf16, #tpu.memory_space<vmem>>, vector<1x6x16x128xbf16>,
    %99 = vector.shape_cast %94 : vector<6x16x128xf32> to vector<96x128xf32>
    %cst_120 = arith.constant dense<0.000000e+00> : vector<128xf32>
    %100 = vector.multi_reduction <add>, %99, %cst_120 [0] : vector<96x128xf32> to vector<128xf32>
    %101 = vector.shape_cast %100 : vector<128xf32> to vector<1x128xf32>
    %c0_121 = arith.constant 0 : index
    %c0_122 = arith.constant 0 : index
    %c0_123 = arith.constant 0 : index
    %c0_124 = arith.constant 0 : index
    %102 = vector.load %arg7[%c0_121, %c0_122, %c0_123, %c0_124] : memref<1x1x2x128xf32, #tpu.memory_space<vmem>>, vector<1x1x1x128xf32>
    %103 = vector.shape_cast %102 : vector<1x1x1x128xf32> to vector<1x128xf32>
    %104 = vector.shape_cast %101 : vector<1x128xf32> to vector<1x1x1x128xf32>
    tpu.vector_store %arg7[%c0_121, %c0_122, %c0_123, %c0_124], %104 {strides = array<i32>} : memref<1x1x2x128xf32, #tpu.memory_space<vmem>>, vector<1x1x1x128xf32>,
    %105 = arith.mulf %99, %99 : vector<96x128xf32>
    %cst_125 = arith.constant dense<0.000000e+00> : vector<128xf32>
    %106 = vector.multi_reduction <add>, %105, %cst_125 [0] : vector<96x128xf32> to vector<128xf32>
    %107 = vector.shape_cast %106 : vector<128xf32> to vector<1x128xf32>
    %c0_126 = arith.constant 0 : index
    %c0_127 = arith.constant 0 : index
    %c1_128 = arith.constant 1 : index
    %c0_129 = arith.constant 0 : index
    %108 = vector.load %arg7[%c0_126, %c0_127, %c1_128, %c0_129] : memref<1x1x2x128xf32, #tpu.memory_space<vmem>>, vector<1x1x1x128xf32>
    %109 = vector.shape_cast %108 : vector<1x1x1x128xf32> to vector<1x128xf32>
    %110 = vector.shape_cast %107 : vector<1x128xf32> to vector<1x1x1x128xf32>
    tpu.vector_store %arg7[%c0_126, %c0_127, %c1_128, %c0_129], %110 {strides = array<i32>} : memref<1x1x2x128xf32, #tpu.memory_space<vmem>>, vector<1x1x1x128xf32>,
    return
  }
  func.func @transform_0(%arg0: i32, %arg1: i32) -> (i32, i32, i32, i32) {
    %c1_i32 = arith.constant 1 : i32
    %0 = arith.addi %arg1, %c1_i32 : i32
    %c0_i32 = arith.constant 0 : i32
    %c0_i32_0 = arith.constant 0 : i32
    %c0_i32_1 = arith.constant 0 : i32
    return %arg0, %0, %c0_i32, %c0_i32_0 : i32, i32, i32, i32
  }
  func.func @transform_1(%arg0: i32, %arg1: i32) -> (i32, i32, i32, i32) {
    %c3_i32 = arith.constant 3 : i32
    %0 = arith.addi %arg1, %c3_i32 : i32
    %c0_i32 = arith.constant 0 : i32
    %c0_i32_0 = arith.constant 0 : i32
    %c0_i32_1 = arith.constant 0 : i32
    return %arg0, %0, %c0_i32, %c0_i32_0 : i32, i32, i32, i32
  }
  func.func @transform_2(%arg0: i32, %arg1: i32) -> (i32, i32, i32, i32) {
    %c5_i32 = arith.constant 5 : i32
    %0 = arith.addi %arg1, %c5_i32 : i32
    %c0_i32 = arith.constant 0 : i32
    %c0_i32_0 = arith.constant 0 : i32
    %c0_i32_1 = arith.constant 0 : i32
    return %arg0, %0, %c0_i32, %c0_i32_0 : i32, i32, i32, i32
  }
  func.func @transform_3(%arg0: i32, %arg1: i32) -> (i32, i32, i32, i32) {
    %c0_i32 = arith.constant 0 : i32
    %c0_i32_0 = arith.constant 0 : i32
    %c0_i32_1 = arith.constant 0 : i32
    %c0_i32_2 = arith.constant 0 : i32
    %c0_i32_3 = arith.constant 0 : i32
    return %c0_i32, %c0_i32_0, %c0_i32_1, %c0_i32_2 : i32, i32, i32, i32
  }
  func.func @transform_4(%arg0: i32, %arg1: i32) -> (i32, i32, i32, i32) {
    %c0_i32 = arith.constant 0 : i32
    %c0_i32_0 = arith.constant 0 : i32
    %c0_i32_1 = arith.constant 0 : i32
    return %arg0, %arg1, %c0_i32, %c0_i32_0 : i32, i32, i32, i32
  }
  func.func @transform_5(%arg0: i32, %arg1: i32) -> (i32, i32, i32, i32) {
    %c0_i32 = arith.constant 0 : i32
    %c0_i32_0 = arith.constant 0 : i32
    %c0_i32_1 = arith.constant 0 : i32
    return %arg0, %arg1, %c0_i32, %c0_i32_0 : i32, i32, i32, i32
  }
}

module attributes {stable_mosaic.version = 11 : i64} {
  func.func @_dil_conv_kernel(%arg0: i32, %arg1: i32, %arg2: memref<1x6x52x128xbf16, #tpu.memory_space<vmem>>, %arg3: memref<1x6x52x128xbf16, #tpu.memory_space<vmem>>, %arg4: memref<1x6x52x128xbf16, #tpu.memory_space<vmem>>, %arg5: memref<3x3x128x128xbf16, #tpu.memory_space<vmem>>, %arg6: memref<1x6x16x128xbf16, #tpu.memory_space<vmem>>, %arg7: memref<1x1x2x128xf32, #tpu.memory_space<vmem>>, %arg8: memref<96x128xf32, #tpu.memory_space<vmem>>) attributes {dimension_semantics = [#tpu.dimension_semantics<parallel>, #tpu.dimension_semantics<parallel>], iteration_bounds = array<i64: 2, 3>, scalar_prefetch = 0 : i64, scratch_operands = 1 : i64, tpu.core_type = #tpu.core_type<tc>, window_params = [{transform_indices = @transform_0, window_bounds = array<i64: 1, 6, 52, 128>}, {transform_indices = @transform_1, window_bounds = array<i64: 1, 6, 52, 128>}, {transform_indices = @transform_2, window_bounds = array<i64: 1, 6, 52, 128>}, {pipeline_mode = #tpu.pipeline_mode<synchronous>, transform_indices = @transform_3, window_bounds = array<i64: 3, 3, 128, 128>}, {transform_indices = @transform_4, window_bounds = array<i64: 1, 6, 16, 128>}, {transform_indices = @transform_5, window_bounds = array<i64: 1, 1, 2, 128>}]} {
    %cst = arith.constant 0.000000e+00 : f32
    %0 = vector.broadcast %cst : f32 to vector<96x128xf32>
    %c0 = arith.constant 0 : index
    %c0_0 = arith.constant 0 : index
    %1 = vector.load %arg8[%c0, %c0_0] : memref<96x128xf32, #tpu.memory_space<vmem>>, vector<96x128xf32>
    tpu.vector_store %arg8[%c0, %c0_0], %0 {strides = array<i32>} : memref<96x128xf32, #tpu.memory_space<vmem>>, vector<96x128xf32>,
    %c0_1 = arith.constant 0 : index
    %c0_2 = arith.constant 0 : index
    %c0_3 = arith.constant 0 : index
    %c0_4 = arith.constant 0 : index
    %2 = vector.load %arg2[%c0_1, %c0_2, %c0_3, %c0_4] : memref<1x6x52x128xbf16, #tpu.memory_space<vmem>>, vector<1x6x16x128xbf16>
    %3 = vector.shape_cast %2 : vector<1x6x16x128xbf16> to vector<6x16x128xbf16>
    %c0_5 = arith.constant 0 : index
    %c0_6 = arith.constant 0 : index
    %4 = vector.load %arg8[%c0_5, %c0_6] : memref<96x128xf32, #tpu.memory_space<vmem>>, vector<96x128xf32>
    %5 = vector.shape_cast %3 : vector<6x16x128xbf16> to vector<96x128xbf16>
    %c0_7 = arith.constant 0 : index
    %c0_8 = arith.constant 0 : index
    %c0_9 = arith.constant 0 : index
    %c0_10 = arith.constant 0 : index
    %6 = vector.load %arg5[%c0_7, %c0_8, %c0_9, %c0_10] : memref<3x3x128x128xbf16, #tpu.memory_space<vmem>>, vector<1x1x128x128xbf16>
    %7 = vector.shape_cast %6 : vector<1x1x128x128xbf16> to vector<128x128xbf16>
    %cst_11 = arith.constant dense<0.000000e+00> : vector<96x128xf32>
    %8 = tpu.matmul %5, %7, %cst_11 {dimension_numbers = #tpu.dot_dimension_numbers<[1], [0], [0], [1], [0, 0, 1, 1], [], []>} : vector<96x128xbf16>, vector<128x128xbf16>, vector<96x128xf32> -> vector<96x128xf32>
    %9 = arith.addf %4, %8 : vector<96x128xf32>
    %c0_12 = arith.constant 0 : index
    %c0_13 = arith.constant 0 : index
    %10 = vector.load %arg8[%c0_12, %c0_13] : memref<96x128xf32, #tpu.memory_space<vmem>>, vector<96x128xf32>
    tpu.vector_store %arg8[%c0_12, %c0_13], %9 {strides = array<i32>} : memref<96x128xf32, #tpu.memory_space<vmem>>, vector<96x128xf32>,
    %c0_14 = arith.constant 0 : index
    %c0_15 = arith.constant 0 : index
    %c18 = arith.constant 18 : index
    %c0_16 = arith.constant 0 : index
    %11 = vector.load %arg2[%c0_14, %c0_15, %c18, %c0_16] : memref<1x6x52x128xbf16, #tpu.memory_space<vmem>>, vector<1x6x16x128xbf16>
    %12 = vector.shape_cast %11 : vector<1x6x16x128xbf16> to vector<6x16x128xbf16>
    %c0_17 = arith.constant 0 : index
    %c0_18 = arith.constant 0 : index
    %13 = vector.load %arg8[%c0_17, %c0_18] : memref<96x128xf32, #tpu.memory_space<vmem>>, vector<96x128xf32>
    %14 = vector.shape_cast %12 : vector<6x16x128xbf16> to vector<96x128xbf16>
    %c0_19 = arith.constant 0 : index
    %c1 = arith.constant 1 : index
    %c0_20 = arith.constant 0 : index
    %c0_21 = arith.constant 0 : index
    %15 = vector.load %arg5[%c0_19, %c1, %c0_20, %c0_21] : memref<3x3x128x128xbf16, #tpu.memory_space<vmem>>, vector<1x1x128x128xbf16>
    %16 = vector.shape_cast %15 : vector<1x1x128x128xbf16> to vector<128x128xbf16>
    %cst_22 = arith.constant dense<0.000000e+00> : vector<96x128xf32>
    %17 = tpu.matmul %14, %16, %cst_22 {dimension_numbers = #tpu.dot_dimension_numbers<[1], [0], [0], [1], [0, 0, 1, 1], [], []>} : vector<96x128xbf16>, vector<128x128xbf16>, vector<96x128xf32> -> vector<96x128xf32>
    %18 = arith.addf %13, %17 : vector<96x128xf32>
    %c0_23 = arith.constant 0 : index
    %c0_24 = arith.constant 0 : index
    %19 = vector.load %arg8[%c0_23, %c0_24] : memref<96x128xf32, #tpu.memory_space<vmem>>, vector<96x128xf32>
    tpu.vector_store %arg8[%c0_23, %c0_24], %18 {strides = array<i32>} : memref<96x128xf32, #tpu.memory_space<vmem>>, vector<96x128xf32>,
    %c0_25 = arith.constant 0 : index
    %c0_26 = arith.constant 0 : index
    %c36 = arith.constant 36 : index
    %c0_27 = arith.constant 0 : index
    %20 = vector.load %arg2[%c0_25, %c0_26, %c36, %c0_27] : memref<1x6x52x128xbf16, #tpu.memory_space<vmem>>, vector<1x6x16x128xbf16>
    %21 = vector.shape_cast %20 : vector<1x6x16x128xbf16> to vector<6x16x128xbf16>
    %c0_28 = arith.constant 0 : index
    %c0_29 = arith.constant 0 : index
    %22 = vector.load %arg8[%c0_28, %c0_29] : memref<96x128xf32, #tpu.memory_space<vmem>>, vector<96x128xf32>
    %23 = vector.shape_cast %21 : vector<6x16x128xbf16> to vector<96x128xbf16>
    %c0_30 = arith.constant 0 : index
    %c2 = arith.constant 2 : index
    %c0_31 = arith.constant 0 : index
    %c0_32 = arith.constant 0 : index
    %24 = vector.load %arg5[%c0_30, %c2, %c0_31, %c0_32] : memref<3x3x128x128xbf16, #tpu.memory_space<vmem>>, vector<1x1x128x128xbf16>
    %25 = vector.shape_cast %24 : vector<1x1x128x128xbf16> to vector<128x128xbf16>
    %cst_33 = arith.constant dense<0.000000e+00> : vector<96x128xf32>
    %26 = tpu.matmul %23, %25, %cst_33 {dimension_numbers = #tpu.dot_dimension_numbers<[1], [0], [0], [1], [0, 0, 1, 1], [], []>} : vector<96x128xbf16>, vector<128x128xbf16>, vector<96x128xf32> -> vector<96x128xf32>
    %27 = arith.addf %22, %26 : vector<96x128xf32>
    %c0_34 = arith.constant 0 : index
    %c0_35 = arith.constant 0 : index
    %28 = vector.load %arg8[%c0_34, %c0_35] : memref<96x128xf32, #tpu.memory_space<vmem>>, vector<96x128xf32>
    tpu.vector_store %arg8[%c0_34, %c0_35], %27 {strides = array<i32>} : memref<96x128xf32, #tpu.memory_space<vmem>>, vector<96x128xf32>,
    %c0_36 = arith.constant 0 : index
    %c0_37 = arith.constant 0 : index
    %c0_38 = arith.constant 0 : index
    %c0_39 = arith.constant 0 : index
    %29 = vector.load %arg3[%c0_36, %c0_37, %c0_38, %c0_39] : memref<1x6x52x128xbf16, #tpu.memory_space<vmem>>, vector<1x6x16x128xbf16>
    %30 = vector.shape_cast %29 : vector<1x6x16x128xbf16> to vector<6x16x128xbf16>
    %c0_40 = arith.constant 0 : index
    %c0_41 = arith.constant 0 : index
    %31 = vector.load %arg8[%c0_40, %c0_41] : memref<96x128xf32, #tpu.memory_space<vmem>>, vector<96x128xf32>
    %32 = vector.shape_cast %30 : vector<6x16x128xbf16> to vector<96x128xbf16>
    %c1_42 = arith.constant 1 : index
    %c0_43 = arith.constant 0 : index
    %c0_44 = arith.constant 0 : index
    %c0_45 = arith.constant 0 : index
    %33 = vector.load %arg5[%c1_42, %c0_43, %c0_44, %c0_45] : memref<3x3x128x128xbf16, #tpu.memory_space<vmem>>, vector<1x1x128x128xbf16>
    %34 = vector.shape_cast %33 : vector<1x1x128x128xbf16> to vector<128x128xbf16>
    %cst_46 = arith.constant dense<0.000000e+00> : vector<96x128xf32>
    %35 = tpu.matmul %32, %34, %cst_46 {dimension_numbers = #tpu.dot_dimension_numbers<[1], [0], [0], [1], [0, 0, 1, 1], [], []>} : vector<96x128xbf16>, vector<128x128xbf16>, vector<96x128xf32> -> vector<96x128xf32>
    %36 = arith.addf %31, %35 : vector<96x128xf32>
    %c0_47 = arith.constant 0 : index
    %c0_48 = arith.constant 0 : index
    %37 = vector.load %arg8[%c0_47, %c0_48] : memref<96x128xf32, #tpu.memory_space<vmem>>, vector<96x128xf32>
    tpu.vector_store %arg8[%c0_47, %c0_48], %36 {strides = array<i32>} : memref<96x128xf32, #tpu.memory_space<vmem>>, vector<96x128xf32>,
    %c0_49 = arith.constant 0 : index
    %c0_50 = arith.constant 0 : index
    %c18_51 = arith.constant 18 : index
    %c0_52 = arith.constant 0 : index
    %38 = vector.load %arg3[%c0_49, %c0_50, %c18_51, %c0_52] : memref<1x6x52x128xbf16, #tpu.memory_space<vmem>>, vector<1x6x16x128xbf16>
    %39 = vector.shape_cast %38 : vector<1x6x16x128xbf16> to vector<6x16x128xbf16>
    %c0_53 = arith.constant 0 : index
    %c0_54 = arith.constant 0 : index
    %40 = vector.load %arg8[%c0_53, %c0_54] : memref<96x128xf32, #tpu.memory_space<vmem>>, vector<96x128xf32>
    %41 = vector.shape_cast %39 : vector<6x16x128xbf16> to vector<96x128xbf16>
    %c1_55 = arith.constant 1 : index
    %c1_56 = arith.constant 1 : index
    %c0_57 = arith.constant 0 : index
    %c0_58 = arith.constant 0 : index
    %42 = vector.load %arg5[%c1_55, %c1_56, %c0_57, %c0_58] : memref<3x3x128x128xbf16, #tpu.memory_space<vmem>>, vector<1x1x128x128xbf16>
    %43 = vector.shape_cast %42 : vector<1x1x128x128xbf16> to vector<128x128xbf16>
    %cst_59 = arith.constant dense<0.000000e+00> : vector<96x128xf32>
    %44 = tpu.matmul %41, %43, %cst_59 {dimension_numbers = #tpu.dot_dimension_numbers<[1], [0], [0], [1], [0, 0, 1, 1], [], []>} : vector<96x128xbf16>, vector<128x128xbf16>, vector<96x128xf32> -> vector<96x128xf32>
    %45 = arith.addf %40, %44 : vector<96x128xf32>
    %c0_60 = arith.constant 0 : index
    %c0_61 = arith.constant 0 : index
    %46 = vector.load %arg8[%c0_60, %c0_61] : memref<96x128xf32, #tpu.memory_space<vmem>>, vector<96x128xf32>
    tpu.vector_store %arg8[%c0_60, %c0_61], %45 {strides = array<i32>} : memref<96x128xf32, #tpu.memory_space<vmem>>, vector<96x128xf32>,
    %c0_62 = arith.constant 0 : index
    %c0_63 = arith.constant 0 : index
    %c36_64 = arith.constant 36 : index
    %c0_65 = arith.constant 0 : index
    %47 = vector.load %arg3[%c0_62, %c0_63, %c36_64, %c0_65] : memref<1x6x52x128xbf16, #tpu.memory_space<vmem>>, vector<1x6x16x128xbf16>
    %48 = vector.shape_cast %47 : vector<1x6x16x128xbf16> to vector<6x16x128xbf16>
    %c0_66 = arith.constant 0 : index
    %c0_67 = arith.constant 0 : index
    %49 = vector.load %arg8[%c0_66, %c0_67] : memref<96x128xf32, #tpu.memory_space<vmem>>, vector<96x128xf32>
    %50 = vector.shape_cast %48 : vector<6x16x128xbf16> to vector<96x128xbf16>
    %c1_68 = arith.constant 1 : index
    %c2_69 = arith.constant 2 : index
    %c0_70 = arith.constant 0 : index
    %c0_71 = arith.constant 0 : index
    %51 = vector.load %arg5[%c1_68, %c2_69, %c0_70, %c0_71] : memref<3x3x128x128xbf16, #tpu.memory_space<vmem>>, vector<1x1x128x128xbf16>
    %52 = vector.shape_cast %51 : vector<1x1x128x128xbf16> to vector<128x128xbf16>
    %cst_72 = arith.constant dense<0.000000e+00> : vector<96x128xf32>
    %53 = tpu.matmul %50, %52, %cst_72 {dimension_numbers = #tpu.dot_dimension_numbers<[1], [0], [0], [1], [0, 0, 1, 1], [], []>} : vector<96x128xbf16>, vector<128x128xbf16>, vector<96x128xf32> -> vector<96x128xf32>
    %54 = arith.addf %49, %53 : vector<96x128xf32>
    %c0_73 = arith.constant 0 : index
    %c0_74 = arith.constant 0 : index
    %55 = vector.load %arg8[%c0_73, %c0_74] : memref<96x128xf32, #tpu.memory_space<vmem>>, vector<96x128xf32>
    tpu.vector_store %arg8[%c0_73, %c0_74], %54 {strides = array<i32>} : memref<96x128xf32, #tpu.memory_space<vmem>>, vector<96x128xf32>,
    %c0_75 = arith.constant 0 : index
    %c0_76 = arith.constant 0 : index
    %c0_77 = arith.constant 0 : index
    %c0_78 = arith.constant 0 : index
    %56 = vector.load %arg4[%c0_75, %c0_76, %c0_77, %c0_78] : memref<1x6x52x128xbf16, #tpu.memory_space<vmem>>, vector<1x6x16x128xbf16>
    %57 = vector.shape_cast %56 : vector<1x6x16x128xbf16> to vector<6x16x128xbf16>
    %c0_79 = arith.constant 0 : index
    %c0_80 = arith.constant 0 : index
    %58 = vector.load %arg8[%c0_79, %c0_80] : memref<96x128xf32, #tpu.memory_space<vmem>>, vector<96x128xf32>
    %59 = vector.shape_cast %57 : vector<6x16x128xbf16> to vector<96x128xbf16>
    %c2_81 = arith.constant 2 : index
    %c0_82 = arith.constant 0 : index
    %c0_83 = arith.constant 0 : index
    %c0_84 = arith.constant 0 : index
    %60 = vector.load %arg5[%c2_81, %c0_82, %c0_83, %c0_84] : memref<3x3x128x128xbf16, #tpu.memory_space<vmem>>, vector<1x1x128x128xbf16>
    %61 = vector.shape_cast %60 : vector<1x1x128x128xbf16> to vector<128x128xbf16>
    %cst_85 = arith.constant dense<0.000000e+00> : vector<96x128xf32>
    %62 = tpu.matmul %59, %61, %cst_85 {dimension_numbers = #tpu.dot_dimension_numbers<[1], [0], [0], [1], [0, 0, 1, 1], [], []>} : vector<96x128xbf16>, vector<128x128xbf16>, vector<96x128xf32> -> vector<96x128xf32>
    %63 = arith.addf %58, %62 : vector<96x128xf32>
    %c0_86 = arith.constant 0 : index
    %c0_87 = arith.constant 0 : index
    %64 = vector.load %arg8[%c0_86, %c0_87] : memref<96x128xf32, #tpu.memory_space<vmem>>, vector<96x128xf32>
    tpu.vector_store %arg8[%c0_86, %c0_87], %63 {strides = array<i32>} : memref<96x128xf32, #tpu.memory_space<vmem>>, vector<96x128xf32>,
    %c0_88 = arith.constant 0 : index
    %c0_89 = arith.constant 0 : index
    %c18_90 = arith.constant 18 : index
    %c0_91 = arith.constant 0 : index
    %65 = vector.load %arg4[%c0_88, %c0_89, %c18_90, %c0_91] : memref<1x6x52x128xbf16, #tpu.memory_space<vmem>>, vector<1x6x16x128xbf16>
    %66 = vector.shape_cast %65 : vector<1x6x16x128xbf16> to vector<6x16x128xbf16>
    %c0_92 = arith.constant 0 : index
    %c0_93 = arith.constant 0 : index
    %67 = vector.load %arg8[%c0_92, %c0_93] : memref<96x128xf32, #tpu.memory_space<vmem>>, vector<96x128xf32>
    %68 = vector.shape_cast %66 : vector<6x16x128xbf16> to vector<96x128xbf16>
    %c2_94 = arith.constant 2 : index
    %c1_95 = arith.constant 1 : index
    %c0_96 = arith.constant 0 : index
    %c0_97 = arith.constant 0 : index
    %69 = vector.load %arg5[%c2_94, %c1_95, %c0_96, %c0_97] : memref<3x3x128x128xbf16, #tpu.memory_space<vmem>>, vector<1x1x128x128xbf16>
    %70 = vector.shape_cast %69 : vector<1x1x128x128xbf16> to vector<128x128xbf16>
    %cst_98 = arith.constant dense<0.000000e+00> : vector<96x128xf32>
    %71 = tpu.matmul %68, %70, %cst_98 {dimension_numbers = #tpu.dot_dimension_numbers<[1], [0], [0], [1], [0, 0, 1, 1], [], []>} : vector<96x128xbf16>, vector<128x128xbf16>, vector<96x128xf32> -> vector<96x128xf32>
    %72 = arith.addf %67, %71 : vector<96x128xf32>
    %c0_99 = arith.constant 0 : index
    %c0_100 = arith.constant 0 : index
    %73 = vector.load %arg8[%c0_99, %c0_100] : memref<96x128xf32, #tpu.memory_space<vmem>>, vector<96x128xf32>
    tpu.vector_store %arg8[%c0_99, %c0_100], %72 {strides = array<i32>} : memref<96x128xf32, #tpu.memory_space<vmem>>, vector<96x128xf32>,
    %c0_101 = arith.constant 0 : index
    %c0_102 = arith.constant 0 : index
    %c36_103 = arith.constant 36 : index
    %c0_104 = arith.constant 0 : index
    %74 = vector.load %arg4[%c0_101, %c0_102, %c36_103, %c0_104] : memref<1x6x52x128xbf16, #tpu.memory_space<vmem>>, vector<1x6x16x128xbf16>
    %75 = vector.shape_cast %74 : vector<1x6x16x128xbf16> to vector<6x16x128xbf16>
    %c0_105 = arith.constant 0 : index
    %c0_106 = arith.constant 0 : index
    %76 = vector.load %arg8[%c0_105, %c0_106] : memref<96x128xf32, #tpu.memory_space<vmem>>, vector<96x128xf32>
    %77 = vector.shape_cast %75 : vector<6x16x128xbf16> to vector<96x128xbf16>
    %c2_107 = arith.constant 2 : index
    %c2_108 = arith.constant 2 : index
    %c0_109 = arith.constant 0 : index
    %c0_110 = arith.constant 0 : index
    %78 = vector.load %arg5[%c2_107, %c2_108, %c0_109, %c0_110] : memref<3x3x128x128xbf16, #tpu.memory_space<vmem>>, vector<1x1x128x128xbf16>
    %79 = vector.shape_cast %78 : vector<1x1x128x128xbf16> to vector<128x128xbf16>
    %cst_111 = arith.constant dense<0.000000e+00> : vector<96x128xf32>
    %80 = tpu.matmul %77, %79, %cst_111 {dimension_numbers = #tpu.dot_dimension_numbers<[1], [0], [0], [1], [0, 0, 1, 1], [], []>} : vector<96x128xbf16>, vector<128x128xbf16>, vector<96x128xf32> -> vector<96x128xf32>
    %81 = arith.addf %76, %80 : vector<96x128xf32>
    %c0_112 = arith.constant 0 : index
    %c0_113 = arith.constant 0 : index
    %82 = vector.load %arg8[%c0_112, %c0_113] : memref<96x128xf32, #tpu.memory_space<vmem>>, vector<96x128xf32>
    tpu.vector_store %arg8[%c0_112, %c0_113], %81 {strides = array<i32>} : memref<96x128xf32, #tpu.memory_space<vmem>>, vector<96x128xf32>,
    %c0_114 = arith.constant 0 : index
    %c0_115 = arith.constant 0 : index
    %83 = vector.load %arg8[%c0_114, %c0_115] : memref<96x128xf32, #tpu.memory_space<vmem>>, vector<96x128xf32>
    %84 = vector.shape_cast %83 : vector<96x128xf32> to vector<6x16x128xf32>
    %85 = tpu.iota {dimensions = array<i32: 0>} : vector<6x1x1xi32>
    %c6_i32 = arith.constant 6 : i32
    %86 = arith.muli %arg1, %c6_i32 : i32
    %87 = vector.broadcast %86 : i32 to vector<6x1x1xi32>
    %88 = arith.addi %85, %87 : vector<6x1x1xi32>
    %c16_i32 = arith.constant 16 : i32
    %89 = vector.broadcast %c16_i32 : i32 to vector<6x1x1xi32>
    %90 = arith.cmpi slt, %88, %89 : vector<6x1x1xi32>
    %cst_116 = arith.constant 0.000000e+00 : f32
    %91 = vector.shape_cast %90 : vector<6x1x1xi1> to vector<6x1x1xi1>
    %92 = vector.broadcast %91 : vector<6x1x1xi1> to vector<6x16x128xi1>
    %93 = vector.broadcast %cst_116 : f32 to vector<6x16x128xf32>
    %94 = arith.select %92, %84, %93 : vector<6x16x128xi1>, vector<6x16x128xf32>
    %95 = arith.truncf %94 : vector<6x16x128xf32> to vector<6x16x128xbf16>
    %c0_117 = arith.constant 0 : index
    %c0_118 = arith.constant 0 : index
    %c0_119 = arith.constant 0 : index
    %c0_120 = arith.constant 0 : index
    %96 = vector.load %arg6[%c0_117, %c0_118, %c0_119, %c0_120] : memref<1x6x16x128xbf16, #tpu.memory_space<vmem>>, vector<1x6x16x128xbf16>
    %97 = vector.shape_cast %96 : vector<1x6x16x128xbf16> to vector<6x16x128xbf16>
    %98 = vector.shape_cast %95 : vector<6x16x128xbf16> to vector<1x6x16x128xbf16>
    tpu.vector_store %arg6[%c0_117, %c0_118, %c0_119, %c0_120], %98 {strides = array<i32>} : memref<1x6x16x128xbf16, #tpu.memory_space<vmem>>, vector<1x6x16x128xbf16>,
    %99 = vector.shape_cast %94 : vector<6x16x128xf32> to vector<96x128xf32>
    %cst_121 = arith.constant dense<0.000000e+00> : vector<128xf32>
    %100 = vector.multi_reduction <add>, %99, %cst_121 [0] : vector<96x128xf32> to vector<128xf32>
    %101 = vector.shape_cast %100 : vector<128xf32> to vector<1x128xf32>
    %c0_122 = arith.constant 0 : index
    %c0_123 = arith.constant 0 : index
    %c0_124 = arith.constant 0 : index
    %c0_125 = arith.constant 0 : index
    %102 = vector.load %arg7[%c0_122, %c0_123, %c0_124, %c0_125] : memref<1x1x2x128xf32, #tpu.memory_space<vmem>>, vector<1x1x1x128xf32>
    %103 = vector.shape_cast %102 : vector<1x1x1x128xf32> to vector<1x128xf32>
    %104 = vector.shape_cast %101 : vector<1x128xf32> to vector<1x1x1x128xf32>
    tpu.vector_store %arg7[%c0_122, %c0_123, %c0_124, %c0_125], %104 {strides = array<i32>} : memref<1x1x2x128xf32, #tpu.memory_space<vmem>>, vector<1x1x1x128xf32>,
    %105 = arith.mulf %99, %99 : vector<96x128xf32>
    %cst_126 = arith.constant dense<0.000000e+00> : vector<128xf32>
    %106 = vector.multi_reduction <add>, %105, %cst_126 [0] : vector<96x128xf32> to vector<128xf32>
    %107 = vector.shape_cast %106 : vector<128xf32> to vector<1x128xf32>
    %c0_127 = arith.constant 0 : index
    %c0_128 = arith.constant 0 : index
    %c1_129 = arith.constant 1 : index
    %c0_130 = arith.constant 0 : index
    %108 = vector.load %arg7[%c0_127, %c0_128, %c1_129, %c0_130] : memref<1x1x2x128xf32, #tpu.memory_space<vmem>>, vector<1x1x1x128xf32>
    %109 = vector.shape_cast %108 : vector<1x1x1x128xf32> to vector<1x128xf32>
    %110 = vector.shape_cast %107 : vector<1x128xf32> to vector<1x1x1x128xf32>
    tpu.vector_store %arg7[%c0_127, %c0_128, %c1_129, %c0_130], %110 {strides = array<i32>} : memref<1x1x2x128xf32, #tpu.memory_space<vmem>>, vector<1x1x1x128xf32>,
    return
  }
  func.func @transform_0(%arg0: i32, %arg1: i32) -> (i32, i32, i32, i32) {
    %c0_i32 = arith.constant 0 : i32
    %0 = arith.addi %arg1, %c0_i32 : i32
    %c0_i32_0 = arith.constant 0 : i32
    %c0_i32_1 = arith.constant 0 : i32
    %c0_i32_2 = arith.constant 0 : i32
    return %arg0, %0, %c0_i32_0, %c0_i32_1 : i32, i32, i32, i32
  }
  func.func @transform_1(%arg0: i32, %arg1: i32) -> (i32, i32, i32, i32) {
    %c3_i32 = arith.constant 3 : i32
    %0 = arith.addi %arg1, %c3_i32 : i32
    %c0_i32 = arith.constant 0 : i32
    %c0_i32_0 = arith.constant 0 : i32
    %c0_i32_1 = arith.constant 0 : i32
    return %arg0, %0, %c0_i32, %c0_i32_0 : i32, i32, i32, i32
  }
  func.func @transform_2(%arg0: i32, %arg1: i32) -> (i32, i32, i32, i32) {
    %c6_i32 = arith.constant 6 : i32
    %0 = arith.addi %arg1, %c6_i32 : i32
    %c0_i32 = arith.constant 0 : i32
    %c0_i32_0 = arith.constant 0 : i32
    %c0_i32_1 = arith.constant 0 : i32
    return %arg0, %0, %c0_i32, %c0_i32_0 : i32, i32, i32, i32
  }
  func.func @transform_3(%arg0: i32, %arg1: i32) -> (i32, i32, i32, i32) {
    %c0_i32 = arith.constant 0 : i32
    %c0_i32_0 = arith.constant 0 : i32
    %c0_i32_1 = arith.constant 0 : i32
    %c0_i32_2 = arith.constant 0 : i32
    %c0_i32_3 = arith.constant 0 : i32
    return %c0_i32, %c0_i32_0, %c0_i32_1, %c0_i32_2 : i32, i32, i32, i32
  }
  func.func @transform_4(%arg0: i32, %arg1: i32) -> (i32, i32, i32, i32) {
    %c0_i32 = arith.constant 0 : i32
    %c0_i32_0 = arith.constant 0 : i32
    %c0_i32_1 = arith.constant 0 : i32
    return %arg0, %arg1, %c0_i32, %c0_i32_0 : i32, i32, i32, i32
  }
  func.func @transform_5(%arg0: i32, %arg1: i32) -> (i32, i32, i32, i32) {
    %c0_i32 = arith.constant 0 : i32
    %c0_i32_0 = arith.constant 0 : i32
    %c0_i32_1 = arith.constant 0 : i32
    return %arg0, %arg1, %c0_i32, %c0_i32_0 : i32, i32, i32, i32
  }
}

module attributes {stable_mosaic.version = 11 : i64} {
  func.func @_final_proj_kernel(%arg0: i32, %arg1: i32, %arg2: memref<1x18x16x128xbf16, #tpu.memory_space<vmem>>, %arg3: memref<1x18x16x128xbf16, #tpu.memory_space<vmem>>, %arg4: memref<1x18x16x128xbf16, #tpu.memory_space<vmem>>, %arg5: memref<1x18x16x128xbf16, #tpu.memory_space<vmem>>, %arg6: memref<4x128xf32, #tpu.memory_space<vmem>>, %arg7: memref<4x128xf32, #tpu.memory_space<vmem>>, %arg8: memref<4x128x128xbf16, #tpu.memory_space<vmem>>, %arg9: memref<1x1x128xf32, #tpu.memory_space<vmem>>, %arg10: memref<1x18x16x128xf32, #tpu.memory_space<vmem>>, %arg11: memref<1x1x2x128xf32, #tpu.memory_space<vmem>>, %arg12: memref<288x128xf32, #tpu.memory_space<vmem>>) attributes {dimension_semantics = [#tpu.dimension_semantics<parallel>, #tpu.dimension_semantics<parallel>], iteration_bounds = array<i64: 2, 1>, scalar_prefetch = 0 : i64, scratch_operands = 1 : i64, tpu.core_type = #tpu.core_type<tc>, window_params = [{transform_indices = @transform_0, window_bounds = array<i64: 1, 18, 16, 128>}, {transform_indices = @transform_1, window_bounds = array<i64: 1, 18, 16, 128>}, {transform_indices = @transform_2, window_bounds = array<i64: 1, 18, 16, 128>}, {transform_indices = @transform_3, window_bounds = array<i64: 1, 18, 16, 128>}, {pipeline_mode = #tpu.pipeline_mode<synchronous>, transform_indices = @transform_4, window_bounds = array<i64: 4, 128>}, {pipeline_mode = #tpu.pipeline_mode<synchronous>, transform_indices = @transform_5, window_bounds = array<i64: 4, 128>}, {pipeline_mode = #tpu.pipeline_mode<synchronous>, transform_indices = @transform_6, window_bounds = array<i64: 4, 128, 128>}, {transform_indices = @transform_7, window_bounds = array<i64: 1, 1, 128>}, {transform_indices = @transform_8, window_bounds = array<i64: 1, 18, 16, 128>}, {transform_indices = @transform_9, window_bounds = array<i64: 1, 1, 2, 128>}]} {
    %c0 = arith.constant 0 : index
    %c0_0 = arith.constant 0 : index
    %c0_1 = arith.constant 0 : index
    %0 = vector.load %arg9[%c0, %c0_0, %c0_1] : memref<1x1x128xf32, #tpu.memory_space<vmem>>, vector<1x1x128xf32>
    %1 = vector.shape_cast %0 : vector<1x1x128xf32> to vector<1x128xf32>
    %2 = vector.shape_cast %1 : vector<1x128xf32> to vector<1x128xf32>
    %3 = vector.broadcast %2 : vector<1x128xf32> to vector<288x128xf32>
    %c0_2 = arith.constant 0 : index
    %c0_3 = arith.constant 0 : index
    %4 = vector.load %arg12[%c0_2, %c0_3] : memref<288x128xf32, #tpu.memory_space<vmem>>, vector<288x128xf32>
    tpu.vector_store %arg12[%c0_2, %c0_3], %3 {strides = array<i32>} : memref<288x128xf32, #tpu.memory_space<vmem>>, vector<288x128xf32>,
    %c0_4 = arith.constant 0 : index
    %c0_5 = arith.constant 0 : index
    %5 = vector.load %arg6[%c0_4, %c0_5] : memref<4x128xf32, #tpu.memory_space<vmem>>, vector<4x128xf32>
    %c0_6 = arith.constant 0 : index
    %c0_7 = arith.constant 0 : index
    %6 = vector.load %arg7[%c0_6, %c0_7] : memref<4x128xf32, #tpu.memory_space<vmem>>, vector<4x128xf32>
    %c0_8 = arith.constant 0 : index
    %c0_9 = arith.constant 0 : index
    %c0_10 = arith.constant 0 : index
    %c0_11 = arith.constant 0 : index
    %7 = vector.load %arg2[%c0_8, %c0_9, %c0_10, %c0_11] : memref<1x18x16x128xbf16, #tpu.memory_space<vmem>>, vector<1x18x16x128xbf16>
    %8 = vector.shape_cast %7 : vector<1x18x16x128xbf16> to vector<18x16x128xbf16>
    %9 = vector.shape_cast %8 : vector<18x16x128xbf16> to vector<288x128xbf16>
    %10 = arith.extf %9 : vector<288x128xbf16> to vector<288x128xf32>
    %11 = vector.extract_strided_slice %5 {offsets = [0, 0], sizes = [1, 128], strides = [1, 1]} : vector<4x128xf32> to vector<1x128xf32>
    %12 = vector.broadcast %11 : vector<1x128xf32> to vector<288x128xf32>
    %13 = arith.mulf %10, %12 : vector<288x128xf32>
    %14 = vector.extract_strided_slice %6 {offsets = [0, 0], sizes = [1, 128], strides = [1, 1]} : vector<4x128xf32> to vector<1x128xf32>
    %15 = vector.broadcast %14 : vector<1x128xf32> to vector<288x128xf32>
    %16 = arith.addf %13, %15 : vector<288x128xf32>
    %cst = arith.constant 0.000000e+00 : f32
    %17 = vector.broadcast %cst : f32 to vector<288x128xf32>
    %18 = arith.maximumf %16, %17 : vector<288x128xf32>
    %c0_12 = arith.constant 0 : index
    %c0_13 = arith.constant 0 : index
    %19 = vector.load %arg12[%c0_12, %c0_13] : memref<288x128xf32, #tpu.memory_space<vmem>>, vector<288x128xf32>
    %20 = arith.truncf %18 : vector<288x128xf32> to vector<288x128xbf16>
    %c0_14 = arith.constant 0 : index
    %c0_15 = arith.constant 0 : index
    %c0_16 = arith.constant 0 : index
    %21 = vector.load %arg8[%c0_14, %c0_15, %c0_16] : memref<4x128x128xbf16, #tpu.memory_space<vmem>>, vector<1x128x128xbf16>
    %22 = vector.shape_cast %21 : vector<1x128x128xbf16> to vector<128x128xbf16>
    %cst_17 = arith.constant dense<0.000000e+00> : vector<288x128xf32>
    %23 = tpu.matmul %20, %22, %cst_17 {dimension_numbers = #tpu.dot_dimension_numbers<[1], [0], [0], [1], [0, 0, 1, 1], [], []>} : vector<288x128xbf16>, vector<128x128xbf16>, vector<288x128xf32> -> vector<288x128xf32>
    %24 = arith.addf %19, %23 : vector<288x128xf32>
    %c0_18 = arith.constant 0 : index
    %c0_19 = arith.constant 0 : index
    %25 = vector.load %arg12[%c0_18, %c0_19] : memref<288x128xf32, #tpu.memory_space<vmem>>, vector<288x128xf32>
    tpu.vector_store %arg12[%c0_18, %c0_19], %24 {strides = array<i32>} : memref<288x128xf32, #tpu.memory_space<vmem>>, vector<288x128xf32>,
    %c0_20 = arith.constant 0 : index
    %c0_21 = arith.constant 0 : index
    %c0_22 = arith.constant 0 : index
    %c0_23 = arith.constant 0 : index
    %26 = vector.load %arg3[%c0_20, %c0_21, %c0_22, %c0_23] : memref<1x18x16x128xbf16, #tpu.memory_space<vmem>>, vector<1x18x16x128xbf16>
    %27 = vector.shape_cast %26 : vector<1x18x16x128xbf16> to vector<18x16x128xbf16>
    %28 = vector.shape_cast %27 : vector<18x16x128xbf16> to vector<288x128xbf16>
    %29 = arith.extf %28 : vector<288x128xbf16> to vector<288x128xf32>
    %30 = vector.extract_strided_slice %5 {offsets = [1, 0], sizes = [1, 128], strides = [1, 1]} : vector<4x128xf32> to vector<1x128xf32>
    %31 = vector.broadcast %30 : vector<1x128xf32> to vector<288x128xf32>
    %32 = arith.mulf %29, %31 : vector<288x128xf32>
    %33 = vector.extract_strided_slice %6 {offsets = [1, 0], sizes = [1, 128], strides = [1, 1]} : vector<4x128xf32> to vector<1x128xf32>
    %34 = vector.broadcast %33 : vector<1x128xf32> to vector<288x128xf32>
    %35 = arith.addf %32, %34 : vector<288x128xf32>
    %cst_24 = arith.constant 0.000000e+00 : f32
    %36 = vector.broadcast %cst_24 : f32 to vector<288x128xf32>
    %37 = arith.maximumf %35, %36 : vector<288x128xf32>
    %c0_25 = arith.constant 0 : index
    %c0_26 = arith.constant 0 : index
    %38 = vector.load %arg12[%c0_25, %c0_26] : memref<288x128xf32, #tpu.memory_space<vmem>>, vector<288x128xf32>
    %39 = arith.truncf %37 : vector<288x128xf32> to vector<288x128xbf16>
    %c1 = arith.constant 1 : index
    %c0_27 = arith.constant 0 : index
    %c0_28 = arith.constant 0 : index
    %40 = vector.load %arg8[%c1, %c0_27, %c0_28] : memref<4x128x128xbf16, #tpu.memory_space<vmem>>, vector<1x128x128xbf16>
    %41 = vector.shape_cast %40 : vector<1x128x128xbf16> to vector<128x128xbf16>
    %cst_29 = arith.constant dense<0.000000e+00> : vector<288x128xf32>
    %42 = tpu.matmul %39, %41, %cst_29 {dimension_numbers = #tpu.dot_dimension_numbers<[1], [0], [0], [1], [0, 0, 1, 1], [], []>} : vector<288x128xbf16>, vector<128x128xbf16>, vector<288x128xf32> -> vector<288x128xf32>
    %43 = arith.addf %38, %42 : vector<288x128xf32>
    %c0_30 = arith.constant 0 : index
    %c0_31 = arith.constant 0 : index
    %44 = vector.load %arg12[%c0_30, %c0_31] : memref<288x128xf32, #tpu.memory_space<vmem>>, vector<288x128xf32>
    tpu.vector_store %arg12[%c0_30, %c0_31], %43 {strides = array<i32>} : memref<288x128xf32, #tpu.memory_space<vmem>>, vector<288x128xf32>,
    %c0_32 = arith.constant 0 : index
    %c0_33 = arith.constant 0 : index
    %c0_34 = arith.constant 0 : index
    %c0_35 = arith.constant 0 : index
    %45 = vector.load %arg4[%c0_32, %c0_33, %c0_34, %c0_35] : memref<1x18x16x128xbf16, #tpu.memory_space<vmem>>, vector<1x18x16x128xbf16>
    %46 = vector.shape_cast %45 : vector<1x18x16x128xbf16> to vector<18x16x128xbf16>
    %47 = vector.shape_cast %46 : vector<18x16x128xbf16> to vector<288x128xbf16>
    %48 = arith.extf %47 : vector<288x128xbf16> to vector<288x128xf32>
    %49 = vector.extract_strided_slice %5 {offsets = [2, 0], sizes = [1, 128], strides = [1, 1]} : vector<4x128xf32> to vector<1x128xf32>
    %50 = vector.broadcast %49 : vector<1x128xf32> to vector<288x128xf32>
    %51 = arith.mulf %48, %50 : vector<288x128xf32>
    %52 = vector.extract_strided_slice %6 {offsets = [2, 0], sizes = [1, 128], strides = [1, 1]} : vector<4x128xf32> to vector<1x128xf32>
    %53 = vector.broadcast %52 : vector<1x128xf32> to vector<288x128xf32>
    %54 = arith.addf %51, %53 : vector<288x128xf32>
    %cst_36 = arith.constant 0.000000e+00 : f32
    %55 = vector.broadcast %cst_36 : f32 to vector<288x128xf32>
    %56 = arith.maximumf %54, %55 : vector<288x128xf32>
    %c0_37 = arith.constant 0 : index
    %c0_38 = arith.constant 0 : index
    %57 = vector.load %arg12[%c0_37, %c0_38] : memref<288x128xf32, #tpu.memory_space<vmem>>, vector<288x128xf32>
    %58 = arith.truncf %56 : vector<288x128xf32> to vector<288x128xbf16>
    %c2 = arith.constant 2 : index
    %c0_39 = arith.constant 0 : index
    %c0_40 = arith.constant 0 : index
    %59 = vector.load %arg8[%c2, %c0_39, %c0_40] : memref<4x128x128xbf16, #tpu.memory_space<vmem>>, vector<1x128x128xbf16>
    %60 = vector.shape_cast %59 : vector<1x128x128xbf16> to vector<128x128xbf16>
    %cst_41 = arith.constant dense<0.000000e+00> : vector<288x128xf32>
    %61 = tpu.matmul %58, %60, %cst_41 {dimension_numbers = #tpu.dot_dimension_numbers<[1], [0], [0], [1], [0, 0, 1, 1], [], []>} : vector<288x128xbf16>, vector<128x128xbf16>, vector<288x128xf32> -> vector<288x128xf32>
    %62 = arith.addf %57, %61 : vector<288x128xf32>
    %c0_42 = arith.constant 0 : index
    %c0_43 = arith.constant 0 : index
    %63 = vector.load %arg12[%c0_42, %c0_43] : memref<288x128xf32, #tpu.memory_space<vmem>>, vector<288x128xf32>
    tpu.vector_store %arg12[%c0_42, %c0_43], %62 {strides = array<i32>} : memref<288x128xf32, #tpu.memory_space<vmem>>, vector<288x128xf32>,
    %c0_44 = arith.constant 0 : index
    %c0_45 = arith.constant 0 : index
    %c0_46 = arith.constant 0 : index
    %c0_47 = arith.constant 0 : index
    %64 = vector.load %arg5[%c0_44, %c0_45, %c0_46, %c0_47] : memref<1x18x16x128xbf16, #tpu.memory_space<vmem>>, vector<1x18x16x128xbf16>
    %65 = vector.shape_cast %64 : vector<1x18x16x128xbf16> to vector<18x16x128xbf16>
    %66 = vector.shape_cast %65 : vector<18x16x128xbf16> to vector<288x128xbf16>
    %67 = arith.extf %66 : vector<288x128xbf16> to vector<288x128xf32>
    %68 = vector.extract_strided_slice %5 {offsets = [3, 0], sizes = [1, 128], strides = [1, 1]} : vector<4x128xf32> to vector<1x128xf32>
    %69 = vector.broadcast %68 : vector<1x128xf32> to vector<288x128xf32>
    %70 = arith.mulf %67, %69 : vector<288x128xf32>
    %71 = vector.extract_strided_slice %6 {offsets = [3, 0], sizes = [1, 128], strides = [1, 1]} : vector<4x128xf32> to vector<1x128xf32>
    %72 = vector.broadcast %71 : vector<1x128xf32> to vector<288x128xf32>
    %73 = arith.addf %70, %72 : vector<288x128xf32>
    %cst_48 = arith.constant 0.000000e+00 : f32
    %74 = vector.broadcast %cst_48 : f32 to vector<288x128xf32>
    %75 = arith.maximumf %73, %74 : vector<288x128xf32>
    %c0_49 = arith.constant 0 : index
    %c0_50 = arith.constant 0 : index
    %76 = vector.load %arg12[%c0_49, %c0_50] : memref<288x128xf32, #tpu.memory_space<vmem>>, vector<288x128xf32>
    %77 = arith.truncf %75 : vector<288x128xf32> to vector<288x128xbf16>
    %c3 = arith.constant 3 : index
    %c0_51 = arith.constant 0 : index
    %c0_52 = arith.constant 0 : index
    %78 = vector.load %arg8[%c3, %c0_51, %c0_52] : memref<4x128x128xbf16, #tpu.memory_space<vmem>>, vector<1x128x128xbf16>
    %79 = vector.shape_cast %78 : vector<1x128x128xbf16> to vector<128x128xbf16>
    %cst_53 = arith.constant dense<0.000000e+00> : vector<288x128xf32>
    %80 = tpu.matmul %77, %79, %cst_53 {dimension_numbers = #tpu.dot_dimension_numbers<[1], [0], [0], [1], [0, 0, 1, 1], [], []>} : vector<288x128xbf16>, vector<128x128xbf16>, vector<288x128xf32> -> vector<288x128xf32>
    %81 = arith.addf %76, %80 : vector<288x128xf32>
    %c0_54 = arith.constant 0 : index
    %c0_55 = arith.constant 0 : index
    %82 = vector.load %arg12[%c0_54, %c0_55] : memref<288x128xf32, #tpu.memory_space<vmem>>, vector<288x128xf32>
    tpu.vector_store %arg12[%c0_54, %c0_55], %81 {strides = array<i32>} : memref<288x128xf32, #tpu.memory_space<vmem>>, vector<288x128xf32>,
    %c0_56 = arith.constant 0 : index
    %c0_57 = arith.constant 0 : index
    %83 = vector.load %arg12[%c0_56, %c0_57] : memref<288x128xf32, #tpu.memory_space<vmem>>, vector<288x128xf32>
    %84 = vector.shape_cast %83 : vector<288x128xf32> to vector<18x16x128xf32>
    %85 = tpu.iota {dimensions = array<i32: 0>} : vector<18x1x1xi32>
    %c18_i32 = arith.constant 18 : i32
    %86 = arith.muli %arg1, %c18_i32 : i32
    %87 = vector.broadcast %86 : i32 to vector<18x1x1xi32>
    %88 = arith.addi %85, %87 : vector<18x1x1xi32>
    %c16_i32 = arith.constant 16 : i32
    %89 = vector.broadcast %c16_i32 : i32 to vector<18x1x1xi32>
    %90 = arith.cmpi slt, %88, %89 : vector<18x1x1xi32>
    %cst_58 = arith.constant 0.000000e+00 : f32
    %91 = vector.shape_cast %90 : vector<18x1x1xi1> to vector<18x1x1xi1>
    %92 = vector.broadcast %91 : vector<18x1x1xi1> to vector<18x16x128xi1>
    %93 = vector.broadcast %cst_58 : f32 to vector<18x16x128xf32>
    %94 = arith.select %92, %84, %93 : vector<18x16x128xi1>, vector<18x16x128xf32>
    %c0_59 = arith.constant 0 : index
    %c0_60 = arith.constant 0 : index
    %c0_61 = arith.constant 0 : index
    %c0_62 = arith.constant 0 : index
    %95 = vector.load %arg10[%c0_59, %c0_60, %c0_61, %c0_62] : memref<1x18x16x128xf32, #tpu.memory_space<vmem>>, vector<1x18x16x128xf32>
    %96 = vector.shape_cast %95 : vector<1x18x16x128xf32> to vector<18x16x128xf32>
    %97 = vector.shape_cast %94 : vector<18x16x128xf32> to vector<1x18x16x128xf32>
    tpu.vector_store %arg10[%c0_59, %c0_60, %c0_61, %c0_62], %97 {strides = array<i32>} : memref<1x18x16x128xf32, #tpu.memory_space<vmem>>, vector<1x18x16x128xf32>,
    %98 = vector.shape_cast %94 : vector<18x16x128xf32> to vector<288x128xf32>
    %cst_63 = arith.constant dense<0.000000e+00> : vector<128xf32>
    %99 = vector.multi_reduction <add>, %98, %cst_63 [0] : vector<288x128xf32> to vector<128xf32>
    %100 = vector.shape_cast %99 : vector<128xf32> to vector<1x128xf32>
    %c0_64 = arith.constant 0 : index
    %c0_65 = arith.constant 0 : index
    %c0_66 = arith.constant 0 : index
    %c0_67 = arith.constant 0 : index
    %101 = vector.load %arg11[%c0_64, %c0_65, %c0_66, %c0_67] : memref<1x1x2x128xf32, #tpu.memory_space<vmem>>, vector<1x1x1x128xf32>
    %102 = vector.shape_cast %101 : vector<1x1x1x128xf32> to vector<1x128xf32>
    %103 = vector.shape_cast %100 : vector<1x128xf32> to vector<1x1x1x128xf32>
    tpu.vector_store %arg11[%c0_64, %c0_65, %c0_66, %c0_67], %103 {strides = array<i32>} : memref<1x1x2x128xf32, #tpu.memory_space<vmem>>, vector<1x1x1x128xf32>,
    %104 = arith.mulf %98, %98 : vector<288x128xf32>
    %cst_68 = arith.constant dense<0.000000e+00> : vector<128xf32>
    %105 = vector.multi_reduction <add>, %104, %cst_68 [0] : vector<288x128xf32> to vector<128xf32>
    %106 = vector.shape_cast %105 : vector<128xf32> to vector<1x128xf32>
    %c0_69 = arith.constant 0 : index
    %c0_70 = arith.constant 0 : index
    %c1_71 = arith.constant 1 : index
    %c0_72 = arith.constant 0 : index
    %107 = vector.load %arg11[%c0_69, %c0_70, %c1_71, %c0_72] : memref<1x1x2x128xf32, #tpu.memory_space<vmem>>, vector<1x1x1x128xf32>
    %108 = vector.shape_cast %107 : vector<1x1x1x128xf32> to vector<1x128xf32>
    %109 = vector.shape_cast %106 : vector<1x128xf32> to vector<1x1x1x128xf32>
    tpu.vector_store %arg11[%c0_69, %c0_70, %c1_71, %c0_72], %109 {strides = array<i32>} : memref<1x1x2x128xf32, #tpu.memory_space<vmem>>, vector<1x1x1x128xf32>,
    return
  }
  func.func @transform_0(%arg0: i32, %arg1: i32) -> (i32, i32, i32, i32) {
    %c0_i32 = arith.constant 0 : i32
    %c0_i32_0 = arith.constant 0 : i32
    %c0_i32_1 = arith.constant 0 : i32
    return %arg0, %arg1, %c0_i32, %c0_i32_0 : i32, i32, i32, i32
  }
  func.func @transform_1(%arg0: i32, %arg1: i32) -> (i32, i32, i32, i32) {
    %c0_i32 = arith.constant 0 : i32
    %c0_i32_0 = arith.constant 0 : i32
    %c0_i32_1 = arith.constant 0 : i32
    return %arg0, %arg1, %c0_i32, %c0_i32_0 : i32, i32, i32, i32
  }
  func.func @transform_2(%arg0: i32, %arg1: i32) -> (i32, i32, i32, i32) {
    %c0_i32 = arith.constant 0 : i32
    %c0_i32_0 = arith.constant 0 : i32
    %c0_i32_1 = arith.constant 0 : i32
    return %arg0, %arg1, %c0_i32, %c0_i32_0 : i32, i32, i32, i32
  }
  func.func @transform_3(%arg0: i32, %arg1: i32) -> (i32, i32, i32, i32) {
    %c0_i32 = arith.constant 0 : i32
    %c0_i32_0 = arith.constant 0 : i32
    %c0_i32_1 = arith.constant 0 : i32
    return %arg0, %arg1, %c0_i32, %c0_i32_0 : i32, i32, i32, i32
  }
  func.func @transform_4(%arg0: i32, %arg1: i32) -> (i32, i32) {
    %c0_i32 = arith.constant 0 : i32
    %c0_i32_0 = arith.constant 0 : i32
    %c0_i32_1 = arith.constant 0 : i32
    return %c0_i32, %c0_i32_0 : i32, i32
  }
  func.func @transform_5(%arg0: i32, %arg1: i32) -> (i32, i32) {
    %c0_i32 = arith.constant 0 : i32
    %c0_i32_0 = arith.constant 0 : i32
    %c0_i32_1 = arith.constant 0 : i32
    return %c0_i32, %c0_i32_0 : i32, i32
  }
  func.func @transform_6(%arg0: i32, %arg1: i32) -> (i32, i32, i32) {
    %c0_i32 = arith.constant 0 : i32
    %c0_i32_0 = arith.constant 0 : i32
    %c0_i32_1 = arith.constant 0 : i32
    %c0_i32_2 = arith.constant 0 : i32
    return %c0_i32, %c0_i32_0, %c0_i32_1 : i32, i32, i32
  }
  func.func @transform_7(%arg0: i32, %arg1: i32) -> (i32, i32, i32) {
    %c0_i32 = arith.constant 0 : i32
    %c0_i32_0 = arith.constant 0 : i32
    %c0_i32_1 = arith.constant 0 : i32
    return %arg0, %c0_i32, %c0_i32_0 : i32, i32, i32
  }
  func.func @transform_8(%arg0: i32, %arg1: i32) -> (i32, i32, i32, i32) {
    %c0_i32 = arith.constant 0 : i32
    %c0_i32_0 = arith.constant 0 : i32
    %c0_i32_1 = arith.constant 0 : i32
    return %arg0, %arg1, %c0_i32, %c0_i32_0 : i32, i32, i32, i32
  }
  func.func @transform_9(%arg0: i32, %arg1: i32) -> (i32, i32, i32, i32) {
    %c0_i32 = arith.constant 0 : i32
    %c0_i32_0 = arith.constant 0 : i32
    %c0_i32_1 = arith.constant 0 : i32
    return %arg0, %arg1, %c0_i32, %c0_i32_0 : i32, i32, i32, i32
  }
}

</mosaic_0001>

<bundles_post_ra>
// kernel: asspmy_forward.6
= control target key start
LH: loop header
LB: loop body
LE: loop exit
PB: predicated region body
PF: predicated region fallthrough
CT: control target
= control target key end

     0   :  { %s4197_s18 = smov 0   ;;  %s4199_s19 = smov 0   ;;  %s4820_s0 = inlined_call_operand.vmem [shape: bf16[2,54,52,128], index: 0, kind: input, shape index: {}, may-alias: {0,1,2}]   ;;  %s4821_s1 = inlined_call_operand.vmem [shape: bf16[2,54,52,128], index: 1, kind: input, shape index: {}, may-alias: {0,1,2}]   ;;  %s4822_s2 = inlined_call_operand.vmem [shape: bf16[2,54,52,128], index: 2, kind: input, shape index: {}, may-alias: {0,1,2}]   ;;  %s4823_s3 = inlined_call_operand.vmem [shape: bf16[3,3,128,128], index: 3, kind: input, shape index: {}]   ;;  %s4824_s4 = inlined_call_operand.vmem [shape: bf16[2,18,16,128], index: 4, kind: output, shape index: {0}]   ;;  %s4825_s5 = inlined_call_operand.vmem [shape: f32[2,3,2,128], index: 5, kind: output, shape index: {1}]  }
   0x1   :  { %s4201_s20 = smov 0   ;;  %s4203_s21 = smov 0  }
   0x2   :  { %s4205_s22 = smov 0  }
   0x3 LB: > { %s25_s23 = sadd.s32 1, %s4157_s20  ;;  %s28_s24 = sadd.s32 1, %s4161_s21  ;;  %s4165_s22 = sphi %s4205_s22, %s16_s22   ;;  %s4161_s21 = sphi %s4203_s21, %s4833_s21   ;;  %s4157_s20 = sphi %s4201_s20, %s4832_s20   ;;  %s4153_s19 = sphi %s4199_s19, %s4831_s19   ;;  %s4149_s18 = sphi %s4197_s18, %s4830_s18  }
   0x4   : > { %p26_p0 = scmp.ge.s32.totalorder %s25_s23, 3  ;;  %p3143_p1 = scmp.ge.s32.totalorder %s4165_s22, 1 }
   0x5   : > { %p258_p2 = scmp.lt.s32.totalorder %s4165_s22, 7 }
   0x6   : > { %s4835_s23 = smov (%p26_p0, %s25_s23), 0  ;;  %s4837_s24 = smov (!%p26_p0, %s28_s24), %s4161_s21 }
   0x7   : > { %p259_p3 = pnand %p3143_p1, %p258_p2  ;;  %p30_p4 = scmp.ge.s32.totalorder %s4837_s24, 2 }
   0x8   : > { %v4037_v0 = vld [vmem:[%s4823_s3] sm:$0xff] (!%p259_p3)   ;;  %s4233_s27 = smul.u32 (!%p259_p3), 6, %s4149_s18  ;;  %p327_p5 = scmp.lt.s32.totalorder (!%p259_p3), %s4153_s19, 1  ;;  %v4039_v2 = vld [vmem:[%s4823_s3 + $0x8] sm:$0xff] (!%p259_p3)   ;;  %v4041_v4 = vld [vmem:[%s4823_s3 + $0x10] sm:$0xff] (!%p259_p3)   ;;  %vm672_vm0 = vcmask (!%p259_p3), 1042432  }
   0x9   : > { %s4839_s24 = smov (%p30_p4, %s4837_s24), 0  ;;  %262 = sbr.rel (%p259_p3) target bundleno = 426 (0x1aa), region = 36 }
   0xa   : > { %v4038_v1 = vld [vmem:[%s4823_s3 + $0x100] sm:$0xff] (!%p259_p3)   ;;  %3627 = vmatprep.subr.bf16.mxu1 (!%p259_p3), %v4037_v0  ;;  %p329_p6 = scmp.lt.s32.totalorder (!%p259_p3), %s4233_s27, 53  ;;  %v4040_v3 = vld [vmem:[%s4823_s3 + $0x108] sm:$0xff] (!%p259_p3)   ;;  %v4042_v5 = vld [vmem:[%s4823_s3 + $0x110] sm:$0xff] (!%p259_p3)   ;;  %s337_s16 = sadd.s32 (!%p259_p3), 3, %s4149_s18  ;;  %vm673_vm1 = vcmask (!%p259_p3), 1046532  }
   0xb   : > { %3739 = vmatprep.subr.bf16.mxu0 (!%p259_p3), %v4038_v1  ;;  %3628 = vmatpush3.bf16.msra.mxu1 (!%p259_p3), %v4037_v0  ;;  %v4043_v6 = vld [vmem:[%s4823_s3 + $0x18] sm:$0xff] (!%p259_p3)   ;;  %s338_s28 = smul.u32 (!%p259_p3), 6, %s337_s16  ;;  %v4045_v8 = vld [vmem:[%s4823_s3 + $0x20] sm:$0xff] (!%p259_p3)   ;;  %v4047_v10 = vld [vmem:[%s4823_s3 + $0x28] sm:$0xff] (!%p259_p3)   ;;  %s350_s29 = sadd.s32 (!%p259_p3), 6, %s4149_s18  ;;  %vm959_vm3 = vcmask (!%p259_p3), 1041408  }
   0xc   : > { %3740 = vmatpush3.bf16.msra.mxu0 (!%p259_p3), %v4038_v1  ;;  %3629 = vmatprep.subr.bf16.mxu1 (!%p259_p3), %v4039_v2  ;;  %v4044_v7 = vld [vmem:[%s4823_s3 + $0x118] sm:$0xff] (!%p259_p3)   ;;  %v4046_v9 = vld [vmem:[%s4823_s3 + $0x120] sm:$0xff] (!%p259_p3)   ;;  %v4048_v12 = vld [vmem:[%s4823_s3 + $0x128] sm:$0xff] (!%p259_p3)   ;;  %s4330_s9 = smul.u32 (!%p259_p3), 6, %s350_s29  ;;  %vm960_vm4 = vcmask (!%p259_p3), 1045508   ;;  %p366_p9 = scmp.lt.s32.totalorder (!%p259_p3), %s4233_s27, 17 }
   0xd   : > { %3741 = vmatprep.subr.bf16.mxu0 (!%p259_p3), %v4040_v3  ;;  %p341_p7 = scmp.lt.s32.totalorder (!%p259_p3), %s338_s28, 53  ;;  %vm4289_vm2 = vmor (!%p259_p3), %vm672_vm0, %vm673_vm1  ;;  %v4049_v17 = vld [vmem:[%s4823_s3 + $0x30] sm:$0xff] (!%p259_p3)   ;;  %v4051_v27 = vld [vmem:[%s4823_s3 + $0x38] sm:$0xff] (!%p259_p3)   ;;  %p376_p10 = scmp.lt.s32.totalorder (!%p259_p3), %s4149_s18, 2 }
   0xe   : > { %v4050_v21 = vld [vmem:[%s4823_s3 + $0x130] sm:$0xff] (!%p259_p3)   ;;  %v4052_v32 = vld [vmem:[%s4823_s3 + $0x138] sm:$0xff] (!%p259_p3)   ;;  %v4054_v35 = vld [vmem:[%s4823_s3 + $0x40] sm:$0xff] (!%p259_p3)   ;;  %p354_p8 = scmp.lt.s32.totalorder (!%p259_p3), %s4330_s9, 53 }
   0xf   : > { %3630 = vmatpush3.bf16.msra.mxu1 (!%p259_p3), %v4039_v2  ;;  %v4055_v36 = vld [vmem:[%s4823_s3 + $0x140] sm:$0xff] (!%p259_p3)   ;;  %v4057_v40 = vld [vmem:[%s4823_s3 + $0x48] sm:$0xff] (!%p259_p3)   ;;  %v4059_v53 = vld [vmem:[%s4823_s3 + $0x50] sm:$0xff] (!%p259_p3)  }
  0x10   : > { %s4841_s19 = smov (!%p327_p5, %s4153_s19), 1  ;;  %3742 = vmatpush3.bf16.msra.mxu0 %v4040_v3  ;;  %3631 = vmatprep.subr.bf16.mxu1 %v4041_v4  ;;  %s4843_s28 = smov (!%p341_p7, %s338_s28), 53  ;;  %v4058_v42 = vld [vmem:[%s4823_s3 + $0x148] sm:$0xff]   ;;  %v4060_v60 = vld [vmem:[%s4823_s3 + $0x150] sm:$0xff]   ;;  %v4061_v62 = vld [vmem:[%s4823_s3 + $0x58] sm:$0xff]  }
  0x11   : > { %s330_s11 = scalar_select %p329_p6, %s4233_s27, 53  ;;  %3743 = vmatprep.subr.bf16.mxu0 %v4042_v5  ;;  %v4062_v2 = vld [vmem:[%s4823_s3 + $0x158] sm:$0xff]   ;;  %vm4402_vm5 = vmor %vm959_vm3, %vm960_vm4 }
  0x12   : > { %s4255_s14 = smul.u32 378, %s4841_s19  ;;  %s4845_s9 = smov (!%p354_p8, %s4330_s9), 53 }
  0x13   : > { %s3991_s15 = smul.u32 7, %s330_s11  ;;  %3632 = vmatpush3.bf16.msra.mxu1 %v4041_v4  ;;  %s4847_s18 = smov (!%p376_p10, %s4149_s18), 2 }
  0x14   : > { %3744 = vmatpush3.bf16.msra.mxu0 %v4042_v5  ;;  %3633 = vmatprep.subr.bf16.mxu1 %v4043_v6  ;;  %s3993_s17 = smul.u32 7, %s4843_s28 }
  0x15   : > { %s333_s26 = sadd.s32 %s4255_s14, %s3991_s15  ;;  %3745 = vmatprep.subr.bf16.mxu0 %v4044_v7  ;;  %s3995_s7 = smul.u32 36, %s4841_s19 }
  0x16   : > { %s3144_s6 = sshll.u32 %s333_s26, 2  ;;  %s345_s25 = sadd.s32 %s3993_s17, %s4255_s14 }
  0x17   : > { %s4274_s13 = scalar_lea.vmem %s4820_s0, %s3144_s6  ;;  %3634 = vmatpush3.bf16.msra.mxu1 %v4043_v6  ;;  %s3145_s30 = sshll.u32 %s345_s25, 2 }
  0x18   : > { %3746 = vmatpush3.bf16.msra.mxu0 %v4044_v7  ;;  %3635 = vmatprep.subr.bf16.mxu1 %v4045_v8  ;;  %v4053_v11 = vld [vmem:[%s4274_s13] sm:$0xff]   ;;  %s4287_s8 = scalar_lea.vmem %s4821_s1, %s3145_s30  ;;  %v4063_v48 = vld [vmem:[%s4274_s13 + $0x38] sm:$0xff]   ;;  %s3994_s17 = smul.u32 7, %s4845_s9 }
  0x19   : > { %3747 = vmatprep.subr.bf16.mxu0 %v4046_v9  ;;  %3643 = vmatprep.mubr.bf16.mxu1 %v4053_v11  ;;  %v1428_v14 = vld [vmem:[%s4287_s8 + $0x8] sm:$0xe]  ;;  %v1429_v15 = vld [vmem:[%s4287_s8 + $0xc] sm:$0xf]  ;;  %v1430_v16 = vld [vmem:[%s4287_s8 + $0x10] sm:$0x1] }
  0x1a   : > { %v3266_v18 = vrot.slane %v1428_v14, 9  ;;  %v1478_v19 = vrot.slane %v1429_v15, 5  ;;  %v1481_v20 = vrot.slane %v1430_v16, 5  ;;  %v1431_v22 = vld [vmem:[%s4287_s8 + $0x24] sm:$0xe]  ;;  %v4056_v39 = vld [vmem:[%s4274_s13 + $0x1c] sm:$0xff]   ;;  %s4439_s11 = sadd.s32 %s3994_s17, %s4255_s14 }
  0x1b   : > { %3636 = vmatpush3.bf16.msra.mxu1 %v4045_v8  ;;  %v1432_v25 = vld [vmem:[%s4287_s8 + $0x28] sm:$0xf]  ;;  %v1433_v26 = vld [vmem:[%s4287_s8 + $0x2c] sm:$0x1]  ;;  %v3267_v30 = vrot.slane %v1431_v22, 9  ;;  %v4066_v63 = vld [vmem:[%s4274_s13 + $0x54] sm:$0xff]  }
  0x1c   : > { %3748 = vmatpush3.bf16.msra.mxu0 %v4046_v9  ;;  %3637 = vmatprep.subr.bf16.mxu1 %v4047_v10  ;;  %v1479_v23 = vsel %vm4289_vm2, %v3266_v18, %v1478_v19  ;;  %v1480_v24 = vrot.slane %v1478_v19, 4  ;;  %v1485_v28 = vrot.slane %v1432_v25, 5  ;;  %v1488_v31 = vrot.slane %v1433_v26, 5  ;;  %v1434_v43 = vld [vmem:[%s4287_s8 + $0x40] sm:$0xe]  ;;  %v4069_v8 = vld [vmem:[%s4274_s13 + $0x70] sm:$0xff]  }
  0x1d   : > { %3749 = vmatprep.subr.bf16.mxu0 %v4048_v12  ;;  %v1435_v44 = vld [vmem:[%s4287_s8 + $0x44] sm:$0xf]  ;;  %v1436_v45 = vld [vmem:[%s4287_s8 + $0x48] sm:$0x1]  ;;  %v3268_v46 = vrot.slane %v1434_v43, 9  ;;  %v4072_v26 = vld [vmem:[%s4274_s13 + $0x8c] sm:$0xff]  }
  0x1e   : > { %v1482_v29 = vsel %vm4289_vm2, %v1480_v24, %v1481_v20  ;;  %v1487_v34 = vrot.slane %v1485_v28, 4  ;;  %v1486_v37 = vsel %vm4289_vm2, %v3267_v30, %v1485_v28  ;;  %v1492_v47 = vrot.slane %v1435_v44, 5  ;;  %v1437_v52 = vld [vmem:[%s4287_s8 + $0x5c] sm:$0xe]  ;;  %v1438_v54 = vld [vmem:[%s4287_s8 + $0x60] sm:$0xf] }
  0x1f   : > { %3638 = vmatpush3.bf16.msra.mxu1 %v4047_v10  ;;  %v3288_v33 = vcombine.low %v1479_v23, %v1482_v29  ;;  %v1495_v49 = vrot.slane %v1436_v45, 5  ;;  %v1439_v55 = vld [vmem:[%s4287_s8 + $0x64] sm:$0x1]  ;;  %v3269_v56 = vrot.slane %v1437_v52, 9  ;;  %v1499_v58 = vrot.slane %v1438_v54, 5  ;;  %v4067_v24 = vld [vmem:[%s4823_s3 + $0x68] sm:$0xff]  }
  0x20   : > { %3750 = vmatpush3.bf16.msra.mxu0 %v4048_v12  ;;  %3639 = vmatprep.subr.bf16.mxu1 %v4049_v17  ;;  %v1489_v38 = vsel %vm4289_vm2, %v1487_v34, %v1488_v31  ;;  %v1493_v50 = vsel %vm4289_vm2, %v3268_v46, %v1492_v47  ;;  %v1494_v51 = vrot.slane %v1492_v47, 4  ;;  %v1502_v59 = vrot.slane %v1439_v55, 5  ;;  %v1440_v4 = vld [vmem:[%s4287_s8 + $0x78] sm:$0xe]  ;;  %v1441_v5 = vld [vmem:[%s4287_s8 + $0x7c] sm:$0xf] }
  0x21   : > { %3751 = vmatprep.subr.bf16.mxu0 %v4050_v21  ;;  %3755 = vmatprep.mubr.bf16.mxu0 %v3288_v33  ;;  %v3289_v41 = vcombine.low %v1486_v37, %v1489_v38  ;;  %v1500_v0 = vsel %vm4289_vm2, %v3269_v56, %v1499_v58  ;;  %v1501_v1 = vrot.slane %v1499_v58, 4  ;;  %v1442_v6 = vld [vmem:[%s4287_s8 + $0x80] sm:$0x1]  ;;  %v3270_v9 = vrot.slane %v1440_v4, 9  ;;  %v1443_v16 = vld [vmem:[%s4287_s8 + $0x94] sm:$0xe] }
  0x22   : > { %v1496_v57 = vsel %vm4289_vm2, %v1494_v51, %v1495_v49  ;;  %v1506_v10 = vrot.slane %v1441_v5, 5  ;;  %v1509_v11 = vrot.slane %v1442_v6, 5  ;;  %v4064_v12 = vld [vmem:[%s4823_s3 + $0x60] sm:$0xff]   ;;  %v1445_v18 = vld [vmem:[%s4287_s8 + $0x9c] sm:$0x1]  ;;  %v3271_v19 = vrot.slane %v1443_v16, 9 }
  0x23   : > { %3640 = vmatpush3.bf16.msra.mxu1 %v4049_v17  ;;  %v3290_v61 = vcombine.low %v1493_v50, %v1496_v57  ;;  %v1503_v3 = vsel %vm4289_vm2, %v1501_v1, %v1502_v59  ;;  %v1444_v17 = vld [vmem:[%s4287_s8 + $0x98] sm:$0xf]  ;;  %v1516_v23 = vrot.slane %v1445_v18, 5  ;;  %v624_v29 = vld [vmem:[%s4274_s13 + $0x8] sm:$0xe]  ;;  %v4070_v46 = vld [vmem:[%s4823_s3 + $0x70] sm:$0xff]  }
  0x24   : > { %3752 = vmatpush3.bf16.msra.mxu0 %v4050_v21  ;;  %3641 = vmatprep.subr.bf16.mxu1 %v4051_v27  ;;  %v3291_v7 = vcombine.low %v1500_v0, %v1503_v3  ;;  %v1507_v14 = vsel %vm4289_vm2, %v3270_v9, %v1506_v10  ;;  %v1508_v15 = vrot.slane %v1506_v10, 4  ;;  %v1513_v20 = vrot.slane %v1444_v17, 5  ;;  %v4065_v21 = vld [vmem:[%s4823_s3 + $0x160] sm:$0xff]   ;;  %v4068_v30 = vld [vmem:[%s4823_s3 + $0x168] sm:$0xff]   ;;  %v4071_v49 = vld [vmem:[%s4823_s3 + $0x170] sm:$0xff]   ;;  %s3146_s14 = sshll.u32 %s4439_s11, 2 }
  0x25   : > { %3753 = vmatprep.subr.bf16.mxu0 %v4052_v32  ;;  %v625_v31 = vld [vmem:[%s4274_s13 + $0xc] sm:$0xf]  ;;  %v3164_v33 = vrot.slane %v624_v29, 9  ;;  %v1716_v59 = vld [vmem:[%s4287_s8 + $0x30] sm:$0xf]  ;;  %v4074_v6 = vld [vmem:[%s4823_s3 + $0x178] sm:$0xff]   ;;  %s4541_s28 = scalar_lea.vmem %s4822_s2, %s3146_s14 }
  0x26   : > { %v1510_v22 = vsel %vm4289_vm2, %v1508_v15, %v1509_v11  ;;  %v1515_v28 = vrot.slane %v1513_v20, 4  ;;  %v629_v54 = vld [vmem:[%s4274_s13 + $0x2c] sm:$0x1]  ;;  %v1715_v58 = vld [vmem:[%s4287_s8 + $0x2c] sm:$0xc]  ;;  %v1769_v0 = vrot.slane %v1716_v59, 6 }
  0x27   : > { %3642 = vmatpush3.bf16.msra.mxu1 %v4051_v27  ;;  %v3292_v25 = vcombine.low %v1507_v14, %v1510_v22  ;;  %v1514_v27 = vsel %vm4289_vm2, %v3271_v19, %v1513_v20  ;;  %v3303_v3 = vrot.slane %v1715_v58, 10  ;;  %v4075_v9 = vld [vmem:[%s4823_s3 + $0x80] sm:$0xff]   ;;  %v632_v16 = vld [vmem:[%s4274_s13 + $0x48] sm:$0x1]  ;;  %v1718_v22 = vld [vmem:[%s4287_s8 + $0x48] sm:$0xc] }
  0x28   : > { %3754 = vmatpush3.bf16.msra.mxu0 %v4052_v32  ;;  %3655 = vmatprep.subr.bf16.mxu1 %v4054_v35  ;;  %v626_v32 = vld [vmem:[%s4274_s13 + $0x10] sm:$0x1]  ;;  %v1517_v34 = vsel %vm4289_vm2, %v1515_v28, %v1516_v23  ;;  %v1771_v4 = vrot.slane %v1769_v0, 4  ;;  %v4076_v14 = vld [vmem:[%s4823_s3 + $0x180] sm:$0xff]   ;;  %v694_v20 = vrot.slane %v632_v16, 5  ;;  %v3304_v28 = vrot.slane %v1718_v22, 10 }
  0x29   : > { %3767 = vmatprep.subr.bf16.mxu0 %v4055_v36  ;;  %v3293_v38 = vcombine.low %v1514_v27, %v1517_v34  ;;  %v1770_v10 = vsel %vm4402_vm5, %v3303_v3, %v1769_v0  ;;  %v631_v15 = vld [vmem:[%s4274_s13 + $0x44] sm:$0xf]  ;;  %v1719_v23 = vld [vmem:[%s4287_s8 + $0x4c] sm:$0xf]  ;;  %v636_v58 = vld [vmem:[%s4274_s13 + $0x78] sm:$0xe] }
  0x2a   : > { %3644 = vmatmul.mubr.bf16.vlgmr.msra.gmra.mrb[0].mxu1 %v4056_v39  ;;  %v1712_v39 = vld [vmem:[%s4287_s8 + $0x10] sm:$0xc]  ;;  %v691_v19 = vrot.slane %v631_v15, 5  ;;  %v1776_v29 = vrot.slane %v1719_v23, 6  ;;  %v4082_v59 = vld [vmem:[%s4823_s3 + $0x198] sm:$0xff]   ;;  %s3996_s14 = smul.u32 3, %s4841_s19 }
  0x2b   : > { %3656 = vmatpush3.bf16.msra.mxu1 %v4054_v35  ;;  %3756 = vmatmul.mubr.bf16.vlgmr.msra.gmra.mrb[0].mxu0 %v3289_v41  ;;  %v677_v35 = vrot.slane %v625_v31, 5  ;;  %v1714_v41 = vld [vmem:[%s4287_s8 + $0x18] sm:$0x3]  ;;  %v3302_v44 = vrot.slane %v1712_v39, 10  ;;  %v635_v39 = vld [vmem:[%s4274_s13 + $0x64] sm:$0x1] }
  0x2c   : > { %3768 = vmatpush3.bf16.msra.mxu0 %v4055_v36  ;;  %3657 = vmatprep.subr.bf16.mxu1 %v4057_v40  ;;  %v680_v36 = vrot.slane %v626_v32, 5  ;;  %v1765_v47 = vrot.slane %v1714_v41, 6  ;;  %v693_v27 = vrot.slane %v691_v19, 4  ;;  %v633_v32 = vld [vmem:[%s4274_s13 + $0x5c] sm:$0xe]  ;;  %v4080_v41 = vld [vmem:[%s4823_s3 + $0x190] sm:$0xff]   ;;  %s379_s9 = sadd.s32 %s3996_s14, %s4847_s18 }
  0x2d   : > { %3769 = vmatprep.subr.bf16.mxu0 %v4058_v42  ;;  %3647 = vmatprep.mubr.bf16.mxu1 %v4063_v48  ;;  %v679_v43 = vrot.slane %v677_v35, 4  ;;  %v627_v48 = vld [vmem:[%s4274_s13 + $0x24] sm:$0xe]  ;;  %v639_v16 = vld [vmem:[%s4274_s13 + $0x94] sm:$0xe]  ;;  %s3149_s16 = sshll.u32 %s379_s9, 1 }
  0x2e   : > { %3759 = vmatprep.mubr.bf16.mxu0 %v3290_v61  ;;  %v3165_v56 = vrot.slane %v627_v48, 9  ;;  %v695_v34 = vsel %vm4289_vm2, %v693_v27, %v694_v20  ;;  %v1723_v48 = vld [vmem:[%s4287_s8 + $0x6c] sm:$0x3]  ;;  %v640_v20 = vld [vmem:[%s4274_s13 + $0x98] sm:$0xf]  ;;  %v3169_v22 = vrot.slane %v639_v16, 9 }
  0x2f   : > { %3658 = vmatpush3.bf16.msra.mxu1 %v4057_v40  ;;  %v1713_v40 = vld [vmem:[%s4287_s8 + $0x14] sm:$0xf]  ;;  %v681_v50 = vsel %vm4289_vm2, %v679_v43, %v680_v36  ;;  %v1778_v36 = vrot.slane %v1776_v29, 4  ;;  %v1728_v27 = vld [vmem:[%s4287_s8 + $0xa0] sm:$0xf]  ;;  %v4096_v16 = vld [vmem:[%s4823_s3 + $0x1c8] sm:$0xff]  }
  0x30   : > { %3770 = vmatpush3.bf16.msra.mxu0 %v4058_v42  ;;  %3659 = vmatprep.subr.bf16.mxu1 %v4059_v53  ;;  %v678_v42 = vsel %vm4289_vm2, %v3164_v33, %v677_v35  ;;  %v1762_v45 = vrot.slane %v1713_v40, 6  ;;  %v4079_v33 = vld [vmem:[%s4823_s3 + $0x90] sm:$0xff]   ;;  %v1777_v35 = vsel %vm4402_vm5, %v3304_v28, %v1776_v29  ;;  %v3167_v40 = vrot.slane %v633_v32, 9  ;;  %v1729_v29 = vld [vmem:[%s4287_s8 + $0xa4] sm:$0x3] }
  0x31   : > { %3771 = vmatprep.subr.bf16.mxu0 %v4060_v60  ;;  %v3186_v55 = vcombine.low %v678_v42, %v681_v50 }
  0x32   : > { %3648 = vmatmul.mubr.bf16.gmra.mrb[4].mxu1 %v4066_v63  ;;  %v1763_v51 = vsel %vm4402_vm5, %v3302_v44, %v1762_v45  ;;  %v1764_v52 = vrot.slane %v1762_v45, 4  ;;  %v1717_v63 = vld [vmem:[%s4287_s8 + $0x34] sm:$0x3]  ;;  %v701_v44 = vrot.slane %v635_v39, 5  ;;  %v1721_v45 = vld [vmem:[%s4287_s8 + $0x64] sm:$0xc] }
  0x33   : > { %3660 = vmatpush3.bf16.msra.mxu1 %v4059_v53  ;;  %3760 = vmatmul.mubr.bf16.gmra.mrb[4].mxu0 %v3291_v7  ;;  %v628_v53 = vld [vmem:[%s4274_s13 + $0x28] sm:$0xf]  ;;  %v1772_v5 = vrot.slane %v1717_v63, 6  ;;  %v3168_v63 = vrot.slane %v636_v58, 9  ;;  %v916_v58 = vld [vmem:[%s4274_s13 + $0x34] sm:$0x3] }
  0x34   : > { %3772 = vmatpush3.bf16.msra.mxu0 %v4060_v60  ;;  %3661 = vmatprep.subr.bf16.mxu1 %v4061_v62  ;;  %v684_v57 = vrot.slane %v628_v53, 5  ;;  %v4073_v60 = vld [vmem:[%s4823_s3 + $0x78] sm:$0xff]   ;;  %v1766_v61 = vsel %vm4402_vm5, %v1764_v52, %v1765_v47 }
  0x35   : > { %3773 = vmatprep.subr.bf16.mxu0 %v4062_v2  ;;  %3651 = vmatprep.mubr.bf16.mxu1 %v4069_v8  ;;  %v3324_v1 = vcombine.low %v1763_v51, %v1766_v61  ;;  %v1773_v11 = vsel %vm4402_vm5, %v1771_v4, %v1772_v5  ;;  %v637_v61 = vld [vmem:[%s4274_s13 + $0x7c] sm:$0xf]  ;;  %v1724_v5 = vld [vmem:[%s4287_s8 + $0x80] sm:$0xc] }
  0x36   : > { %3763 = vmatprep.mubr.bf16.mxu0 %v3292_v25  ;;  %v685_v7 = vsel %vm4289_vm2, %v3165_v56, %v684_v57  ;;  %v4077_v25 = vld [vmem:[%s4823_s3 + $0x88] sm:$0xff]  }
  0x37   : > { %3662 = vmatpush3.bf16.msra.mxu1 %v4061_v62  ;;  %v687_v62 = vrot.slane %v629_v54, 5  ;;  %v1786_v54 = vrot.slane %v1723_v48, 6 }
  0x38   : > { %3774 = vmatpush3.bf16.msra.mxu0 %v4062_v2  ;;  %3663 = vmatprep.subr.bf16.mxu1 %v4064_v12  ;;  %v686_v2 = vrot.slane %v684_v57, 4 }
  0x39   : > { %3775 = vmatprep.subr.bf16.mxu0 %v4065_v21 }
  0x3a   : > { %3652 = vmatmul.mubr.bf16.gmra.mrb[8].mxu1 %v4072_v26  ;;  %v688_v8 = vsel %vm4289_vm2, %v686_v2, %v687_v62  ;;  %v638_v62 = vld [vmem:[%s4274_s13 + $0x80] sm:$0x1]  ;;  %v705_v2 = vrot.slane %v637_v61, 5 }
  0x3b   : > { %3664 = vmatpush3.bf16.msra.mxu1 %v4064_v12  ;;  %3764 = vmatmul.mubr.bf16.gmra.mrb[8].mxu0 %v3293_v38  ;;  %v630_v12 = vld [vmem:[%s4274_s13 + $0x40] sm:$0xe]  ;;  %v3187_v18 = vcombine.low %v685_v7, %v688_v8  ;;  %v708_v3 = vrot.slane %v638_v62, 5  ;;  %v1726_v7 = vld [vmem:[%s4287_s8 + $0x88] sm:$0x3]  ;;  %v974_v62 = vrot.slane %v916_v58, 6 }
  0x3c   : > { %3776 = vmatpush3.bf16.msra.mxu0 %v4065_v21  ;;  %3665 = vmatprep.subr.bf16.mxu1 %v4067_v24  ;;  %v3166_v17 = vrot.slane %v630_v12, 9  ;;  %v3325_v21 = vcombine.low %v1770_v10, %v1773_v11  ;;  %v634_v38 = vld [vmem:[%s4274_s13 + $0x60] sm:$0xf]  ;;  %v707_v10 = vrot.slane %v705_v2, 4  ;;  %v3306_v11 = vrot.slane %v1724_v5, 10 }
  0x3d   : > { %3777 = vmatprep.subr.bf16.mxu0 %v4068_v30  ;;  %3671 = vmatprep.mubr.bf16.mxu1 %v3186_v55  ;;  %v698_v43 = vrot.slane %v634_v38, 5  ;;  %v4081_v55 = vld [vmem:[%s4823_s3 + $0x98] sm:$0xff]   ;;  %v4083_v8 = vld [vmem:[%s4823_s3 + $0xa0] sm:$0xff]   ;;  %v1793_v15 = vrot.slane %v1726_v7, 6 }
  0x3e   : > { %3783 = vmatprep.mubr.bf16.mxu0 %v3324_v1  ;;  %v692_v26 = vsel %vm4289_vm2, %v3166_v17, %v691_v19  ;;  %v709_v17 = vsel %vm4289_vm2, %v707_v10, %v708_v3  ;;  %v4091_v3 = vld [vmem:[%s4823_s3 + $0xc0] sm:$0xff]  }
  0x3f   : > { %3666 = vmatpush3.bf16.msra.mxu1 %v4067_v24  ;;  %v1720_v24 = vld [vmem:[%s4287_s8 + $0x50] sm:$0x3]  ;;  %v3188_v42 = vcombine.low %v692_v26, %v695_v34  ;;  %v699_v52 = vsel %vm4289_vm2, %v3167_v40, %v698_v43  ;;  %v700_v53 = vrot.slane %v698_v43, 4  ;;  %v1727_v26 = vld [vmem:[%s4287_s8 + $0x9c] sm:$0xc] }
  0x40   : > { %3778 = vmatpush3.bf16.msra.mxu0 %v4068_v30  ;;  %3667 = vmatprep.subr.bf16.mxu1 %v4070_v46  ;;  %v4078_v30 = vld [vmem:[%s4823_s3 + $0x188] sm:$0xff]   ;;  %v1779_v31 = vrot.slane %v1720_v24, 6  ;;  %v712_v24 = vrot.slane %v640_v20, 5  ;;  %v911_v40 = vld [vmem:[%s4274_s13 + $0x10] sm:$0xc]  ;;  %v4094_v7 = vld [vmem:[%s4541_s28 + $0x1c] sm:$0xff]  }
  0x41   : > { %3779 = vmatprep.subr.bf16.mxu0 %v4071_v49  ;;  %v912_v43 = vld [vmem:[%s4274_s13 + $0x14] sm:$0xf] }
  0x42   : > { %v1780_v47 = vsel %vm4402_vm5, %v1778_v36, %v1779_v31  ;;  %v1797_v31 = vrot.slane %v1728_v27, 6  ;;  %v714_v34 = vrot.slane %v712_v24, 4  ;;  %v4085_v36 = vld [vmem:[%s4823_s3 + $0xa8] sm:$0xff]   ;;  %v4101_v27 = vld [vmem:[%s4541_s28 + $0x38] sm:$0xff]  }
  0x43   : > { %3668 = vmatpush3.bf16.msra.mxu1 %v4070_v46  ;;  %v1722_v46 = vld [vmem:[%s4287_s8 + $0x68] sm:$0xf]  ;;  %v3326_v51 = vcombine.low %v1777_v35, %v1780_v47  ;;  %v1800_v35 = vrot.slane %v1729_v29, 6 }
  0x44   : > { %3780 = vmatpush3.bf16.msra.mxu0 %v4071_v49  ;;  %3669 = vmatprep.subr.bf16.mxu1 %v4073_v60  ;;  %v3305_v49 = vrot.slane %v1721_v45, 10  ;;  %v1783_v50 = vrot.slane %v1722_v46, 6  ;;  %v1799_v39 = vrot.slane %v1797_v31, 4  ;;  %v3200_v45 = vrot.slane %v911_v40, 10  ;;  %v4087_v46 = vld [vmem:[%s4823_s3 + $0xb0] sm:$0xff]   ;;  %v4100_v40 = vld [vmem:[%s4823_s3 + $0x1d8] sm:$0xff]  }
  0x45   : > { %3781 = vmatprep.subr.bf16.mxu0 %v4074_v6 }
  0x46   : > { %v1784_v56 = vsel %vm4402_vm5, %v3305_v49, %v1783_v50  ;;  %v1785_v57 = vrot.slane %v1783_v50, 4  ;;  %v1801_v48 = vsel %vm4402_vm5, %v1799_v39, %v1800_v35  ;;  %v964_v49 = vrot.slane %v912_v43, 6  ;;  %v924_v39 = vld [vmem:[%s4274_s13 + $0x84] sm:$0xf] }
  0x47   : > { %3670 = vmatpush3.bf16.msra.mxu1 %v4073_v60  ;;  %v702_v60 = vsel %vm4289_vm2, %v700_v53, %v701_v44  ;;  %v913_v44 = vld [vmem:[%s4274_s13 + $0x18] sm:$0x3]  ;;  %v4088_v53 = vld [vmem:[%s4823_s3 + $0x1b0] sm:$0xff]   ;;  %v992_v43 = vrot.slane %v924_v39, 6  ;;  %v4114_v39 = vld [vmem:[%s4287_s8 + $0x1c] sm:$0xff]  }
  0x48   : > { %3782 = vmatpush3.bf16.msra.mxu0 %v4074_v6  ;;  %3683 = vmatprep.subr.bf16.mxu1 %v4075_v9  ;;  %v3189_v0 = vcombine.low %v699_v52, %v702_v60  ;;  %v1787_v1 = vsel %vm4402_vm5, %v1785_v57, %v1786_v54  ;;  %v1725_v6 = vld [vmem:[%s4287_s8 + $0x84] sm:$0xf]  ;;  %v967_v50 = vrot.slane %v913_v44, 6  ;;  %v965_v54 = vsel %vm4402_vm5, %v3200_v45, %v964_v49  ;;  %v915_v57 = vld [vmem:[%s4274_s13 + $0x30] sm:$0xf] }
  0x49   : > { %3795 = vmatprep.subr.bf16.mxu0 %v4076_v14  ;;  %v3327_v4 = vcombine.low %v1784_v56, %v1787_v1  ;;  %v1790_v12 = vrot.slane %v1725_v6, 6  ;;  %v4092_v52 = vld [vmem:[%s4541_s28] sm:$0xff]   ;;  %v914_v56 = vld [vmem:[%s4274_s13 + $0x2c] sm:$0xc]  ;;  %v971_v61 = vrot.slane %v915_v57, 6  ;;  %v4107_v45 = vld [vmem:[%s4541_s28 + $0x70] sm:$0xff]  }
  0x4a   : > { %3672 = vmatmul.mubr.bf16.vlgmr.msra.gmra.mrb[0].mxu1 %v3187_v18  ;;  %v3201_v60 = vrot.slane %v914_v56, 10  ;;  %v4093_v6 = vld [vmem:[%s4823_s3 + $0x1c0] sm:$0xff]  }
  0x4b   : > { %3684 = vmatpush3.bf16.msra.mxu1 %v4075_v9  ;;  %3784 = vmatmul.mubr.bf16.vlgmr.msra.gmra.mrb[0].mxu0 %v3325_v21  ;;  %v706_v9 = vsel %vm4289_vm2, %v3168_v63, %v705_v2  ;;  %v1791_v18 = vsel %vm4402_vm5, %v3306_v11, %v1790_v12  ;;  %v1792_v19 = vrot.slane %v1790_v12, 4  ;;  %v641_v21 = vld [vmem:[%s4274_s13 + $0x9c] sm:$0x1]  ;;  %v973_v1 = vrot.slane %v971_v61, 4  ;;  %v4095_v11 = vld [vmem:[%s4823_s3 + $0xc8] sm:$0xff]  }
  0x4c   : > { %3796 = vmatpush3.bf16.msra.mxu0 %v4076_v14  ;;  %3685 = vmatprep.subr.bf16.mxu1 %v4077_v25  ;;  %v4084_v14 = vld [vmem:[%s4823_s3 + $0x1a0] sm:$0xff]   ;;  %v3190_v23 = vcombine.low %v706_v9, %v709_v17  ;;  %v4090_v2 = vld [vmem:[%s4823_s3 + $0x1b8] sm:$0xff]   ;;  %v918_v9 = vld [vmem:[%s4274_s13 + $0x4c] sm:$0xf] }
  0x4d   : > { %3797 = vmatprep.subr.bf16.mxu0 %v4078_v30  ;;  %3675 = vmatprep.mubr.bf16.mxu1 %v3188_v42  ;;  %v1794_v28 = vsel %vm4402_vm5, %v1792_v19, %v1793_v15  ;;  %v975_v5 = vsel %vm4402_vm5, %v973_v1, %v974_v62  ;;  %v919_v12 = vld [vmem:[%s4274_s13 + $0x50] sm:$0x3]  ;;  %v978_v15 = vrot.slane %v918_v9, 6  ;;  %v4106_v62 = vld [vmem:[%s4823_s3 + $0x1e8] sm:$0xff]   ;;  %v4113_v1 = vld [vmem:[%s4287_s8] sm:$0xff]  }
  0x4e   : > { %3787 = vmatprep.mubr.bf16.mxu0 %v3326_v51  ;;  %v3328_v32 = vcombine.low %v1791_v18, %v1794_v28  ;;  %v981_v17 = vrot.slane %v919_v12, 6  ;;  %v920_v18 = vld [vmem:[%s4274_s13 + $0x64] sm:$0xc]  ;;  %v2231_v12 = vld [vmem:[%s4541_s28 + $0x2c] sm:$0x1] }
  0x4f   : > { %3686 = vmatpush3.bf16.msra.mxu1 %v4077_v25  ;;  %v715_v25 = vrot.slane %v641_v21, 5  ;;  %v980_v20 = vrot.slane %v978_v15, 4  ;;  %v921_v21 = vld [vmem:[%s4274_s13 + $0x68] sm:$0xf] }
  0x50   : > { %3798 = vmatpush3.bf16.msra.mxu0 %v4078_v30  ;;  %3687 = vmatprep.subr.bf16.mxu1 %v4079_v33  ;;  %v3307_v30 = vrot.slane %v1727_v26, 10 }
  0x51   : > { %3799 = vmatprep.subr.bf16.mxu0 %v4080_v41  ;;  %v716_v42 = vsel %vm4289_vm2, %v714_v34, %v715_v25  ;;  %v982_v26 = vsel %vm4402_vm5, %v980_v20, %v981_v17  ;;  %v4099_v34 = vld [vmem:[%s4823_s3 + $0xd8] sm:$0xff]  }
  0x52   : > { %3676 = vmatmul.mubr.bf16.gmra.mrb[4].mxu1 %v3189_v0  ;;  %v1798_v38 = vsel %vm4402_vm5, %v3307_v30, %v1797_v31  ;;  %v4089_v0 = vld [vmem:[%s4823_s3 + $0xb8] sm:$0xff]   ;;  %v4097_v31 = vld [vmem:[%s4823_s3 + $0xd0] sm:$0xff]  }
  0x53   : > { %3688 = vmatpush3.bf16.msra.mxu1 %v4079_v33  ;;  %3788 = vmatmul.mubr.bf16.gmra.mrb[4].mxu0 %v3327_v4  ;;  %v713_v33 = vsel %vm4289_vm2, %v3169_v22, %v712_v24  ;;  %v3329_v51 = vcombine.low %v1798_v38, %v1801_v48  ;;  %v972_v4 = vsel %vm4402_vm5, %v3201_v60, %v971_v61  ;;  %v922_v22 = vld [vmem:[%s4274_s13 + $0x6c] sm:$0x3]  ;;  %v985_v24 = vrot.slane %v921_v21, 6  ;;  %v923_v38 = vld [vmem:[%s4274_s13 + $0x80] sm:$0xc] }
  0x54   : > { %3800 = vmatpush3.bf16.msra.mxu0 %v4080_v41  ;;  %3689 = vmatprep.subr.bf16.mxu1 %v4081_v55  ;;  %v4086_v41 = vld [vmem:[%s4823_s3 + $0x1a8] sm:$0xff]   ;;  %v3191_v47 = vcombine.low %v713_v33, %v716_v42  ;;  %v3223_v10 = vcombine.low %v972_v4, %v975_v5  ;;  %v988_v25 = vrot.slane %v922_v22, 6  ;;  %v3204_v42 = vrot.slane %v923_v38, 10  ;;  %v2228_v4 = vld [vmem:[%s4541_s28 + $0x10] sm:$0x1]  ;;  %v4115_v38 = vld [vmem:[%s4823_s3 + $0x200] sm:$0xff]  }
  0x55   : > { %3801 = vmatprep.subr.bf16.mxu0 %v4082_v59  ;;  %3679 = vmatprep.mubr.bf16.mxu1 %v3190_v23  ;;  %v3203_v23 = vrot.slane %v920_v18, 10  ;;  %v987_v30 = vrot.slane %v985_v24, 4  ;;  %v994_v48 = vrot.slane %v992_v43, 4  ;;  %v4105_v60 = vld [vmem:[%s4823_s3 + $0xe8] sm:$0xff]   ;;  %v2286_v21 = vrot.slane %v2231_v12, 5 }
  0x56   : > { %3791 = vmatprep.mubr.bf16.mxu0 %v3328_v32  ;;  %v4098_v32 = vld [vmem:[%s4823_s3 + $0x1d0] sm:$0xff]   ;;  %v2232_v22 = vld [vmem:[%s4541_s28 + $0x40] sm:$0xe]  ;;  %v2517_v12 = vld [vmem:[%s4541_s28 + $0x4c] sm:$0xf] }
  0x57   : > { %3690 = vmatpush3.bf16.msra.mxu1 %v4081_v55  ;;  %v966_v55 = vrot.slane %v964_v49, 4  ;;  %v986_v29 = vsel %vm4402_vm5, %v3203_v23, %v985_v24  ;;  %v989_v33 = vsel %vm4402_vm5, %v987_v30, %v988_v25  ;;  %v927_v49 = vld [vmem:[%s4274_s13 + $0xa0] sm:$0xf]  ;;  %v2233_v23 = vld [vmem:[%s4541_s28 + $0x44] sm:$0xf]  ;;  %v4111_v24 = vld [vmem:[%s4823_s3 + $0xf8] sm:$0xff]  }
  0x58   : > { %3802 = vmatpush3.bf16.msra.mxu0 %v4082_v59  ;;  %3691 = vmatprep.subr.bf16.mxu1 %v4083_v8  ;;  %v3225_v35 = vcombine.low %v986_v29, %v989_v33  ;;  %v2234_v25 = vld [vmem:[%s4541_s28 + $0x48] sm:$0x1]  ;;  %v2235_v30 = vld [vmem:[%s4541_s28 + $0x5c] sm:$0xe] }
  0x59   : > { %3803 = vmatprep.subr.bf16.mxu0 %v4084_v14  ;;  %v968_v59 = vsel %vm4402_vm5, %v966_v55, %v967_v50  ;;  %v928_v50 = vld [vmem:[%s4274_s13 + $0xa4] sm:$0x3]  ;;  %v2293_v29 = vrot.slane %v2234_v25, 5 }
  0x5a   : > { %3680 = vmatmul.mubr.bf16.gmra.mrb[8].mxu1 %v3191_v47  ;;  %v3222_v63 = vcombine.low %v965_v54, %v968_v59  ;;  %v993_v47 = vsel %vm4402_vm5, %v3204_v42, %v992_v43  ;;  %v4102_v55 = vld [vmem:[%s4823_s3 + $0xe0] sm:$0xff]   ;;  %v2238_v43 = vld [vmem:[%s4541_s28 + $0x78] sm:$0xe] }
  0x5b   : > { %3692 = vmatpush3.bf16.msra.mxu1 %v4083_v8  ;;  %3792 = vmatmul.mubr.bf16.gmra.mrb[8].mxu0 %v3329_v51  ;;  %v917_v8 = vld [vmem:[%s4274_s13 + $0x48] sm:$0xc]  ;;  %v4104_v59 = vld [vmem:[%s4823_s3 + $0x1e0] sm:$0xff]  }
  0x5c   : > { %3804 = vmatpush3.bf16.msra.mxu0 %v4084_v14  ;;  %3693 = vmatprep.subr.bf16.mxu1 %v4085_v36  ;;  %v3202_v14 = vrot.slane %v917_v8, 10  ;;  %v2229_v8 = vld [vmem:[%s4541_s28 + $0x24] sm:$0xe] }
  0x5d   : > { %3805 = vmatprep.subr.bf16.mxu0 %v4086_v41  ;;  %3811 = vmatprep.mubr.bf16.mxu0 %v4092_v52  ;;  %v999_v52 = vrot.slane %v927_v49, 6 }
  0x5e   : > { %3699 = vmatprep.mubr.bf16.mxu1 %v3222_v63  ;;  %v979_v19 = vsel %vm4402_vm5, %v3202_v14, %v978_v15  ;;  %v4108_v14 = vld [vmem:[%s4823_s3 + $0xf0] sm:$0xff]  }
  0x5f   : > { %3694 = vmatpush3.bf16.msra.mxu1 %v4085_v36  ;;  %v3224_v28 = vcombine.low %v979_v19, %v982_v26  ;;  %v4103_v36 = vld [vmem:[%s4541_s28 + $0x54] sm:$0xff]   ;;  %v1001_v58 = vrot.slane %v999_v52, 4  ;;  %v3369_v19 = vrot.slane %v2229_v8, 9  ;;  %v2290_v26 = vrot.slane %v2233_v23, 5  ;;  %v2510_v8 = vld [vmem:[%s4541_s28 + $0x10] sm:$0xc] }
  0x60   : > { %3806 = vmatpush3.bf16.msra.mxu0 %v4086_v41  ;;  %3695 = vmatprep.subr.bf16.mxu1 %v4087_v46  ;;  %v925_v41 = vld [vmem:[%s4274_s13 + $0x88] sm:$0x3] }
  0x61   : > { %3807 = vmatprep.subr.bf16.mxu0 %v4088_v53  ;;  %v995_v44 = vrot.slane %v925_v41, 6  ;;  %v3371_v41 = vrot.slane %v2235_v30, 9 }
  0x63   : > { %3696 = vmatpush3.bf16.msra.mxu1 %v4087_v46  ;;  %v926_v46 = vld [vmem:[%s4274_s13 + $0x9c] sm:$0xc]  ;;  %v996_v54 = vsel %vm4402_vm5, %v994_v48, %v995_v44  ;;  %v2240_v48 = vld [vmem:[%s4541_s28 + $0x80] sm:$0x1] }
  0x64   : > { %3808 = vmatpush3.bf16.msra.mxu0 %v4088_v53  ;;  %3697 = vmatprep.subr.bf16.mxu1 %v4089_v0  ;;  %v3205_v51 = vrot.slane %v926_v46, 10  ;;  %v1002_v53 = vrot.slane %v928_v50, 6  ;;  %v3226_v56 = vcombine.low %v993_v47, %v996_v54  ;;  %v2239_v44 = vld [vmem:[%s4541_s28 + $0x7c] sm:$0xf]  ;;  %v4116_v50 = vld [vmem:[%s4823_s3 + $0x208] sm:$0xff]  }
  0x65   : > { %3809 = vmatprep.subr.bf16.mxu0 %v4090_v2  ;;  %v2304_v49 = vrot.slane %v2239_v44, 5  ;;  %v2241_v54 = vld [vmem:[%s4541_s28 + $0x94] sm:$0xe]  ;;  %v2519_v44 = vld [vmem:[%s4541_s28 + $0x64] sm:$0xc] }
  0x66   : > { %v1000_v57 = vsel %vm4402_vm5, %v3205_v51, %v999_v52  ;;  %v1003_v61 = vsel %vm4402_vm5, %v1001_v58, %v1002_v53  ;;  %v4117_v51 = vld [vmem:[%s4287_s8 + $0x38] sm:$0xff]   ;;  %v3372_v52 = vrot.slane %v2238_v43, 9  ;;  %v2307_v53 = vrot.slane %v2240_v48, 5  ;;  %v4125_v43 = vld [vmem:[%s4823_s3 + $0x230] sm:$0xff]   ;;  %v2524_v48 = vld [vmem:[%s4541_s28 + $0x88] sm:$0x3] }
  0x67   : > { %3698 = vmatpush3.bf16.msra.mxu1 %v4089_v0  ;;  %v3227_v63 = vcombine.low %v1000_v57, %v1003_v61  ;;  %v4109_v0 = vld [vmem:[%s4541_s28 + $0x8c] sm:$0xff]   ;;  %v2243_v57 = vld [vmem:[%s4541_s28 + $0x9c] sm:$0x1] }
  0x68   : > { %3810 = vmatpush3.bf16.msra.mxu0 %v4090_v2  ;;  %3711 = vmatprep.subr.bf16.mxu1 %v4091_v3  ;;  %v2226_v2 = vld [vmem:[%s4541_s28 + $0x8] sm:$0xe] }
  0x69   : > { %3823 = vmatprep.subr.bf16.mxu0 %v4093_v6  ;;  %v3368_v5 = vrot.slane %v2226_v2, 9  ;;  %v3373_v2 = vrot.slane %v2241_v54, 9 }
  0x6a   : > { %3700 = vmatmul.mubr.bf16.vlgmr.msra.gmra.mrb[0].mxu1 %v3223_v10 }
  0x6b   : > { %3712 = vmatpush3.bf16.msra.mxu1 %v4091_v3  ;;  %3812 = vmatmul.mubr.bf16.vlgmr.msra.gmra.mrb[0].mxu0 %v4094_v7  ;;  %v2227_v3 = vld [vmem:[%s4541_s28 + $0xc] sm:$0xf]  ;;  %v2279_v7 = vrot.slane %v2228_v4, 5  ;;  %v2511_v4 = vld [vmem:[%s4541_s28 + $0x14] sm:$0xf] }
  0x6c   : > { %3824 = vmatpush3.bf16.msra.mxu0 %v4093_v6  ;;  %3713 = vmatprep.subr.bf16.mxu1 %v4095_v11  ;;  %v2276_v6 = vrot.slane %v2227_v3, 5  ;;  %v2314_v3 = vrot.slane %v2243_v57, 5 }
  0x6d   : > { %3825 = vmatprep.subr.bf16.mxu0 %v4096_v16  ;;  %3703 = vmatprep.mubr.bf16.mxu1 %v3224_v28  ;;  %v3370_v28 = vrot.slane %v2232_v22, 9 }
  0x6e   : > { %3815 = vmatprep.mubr.bf16.mxu0 %v4101_v27  ;;  %v2277_v9 = vsel %vm4289_vm2, %v3368_v5, %v2276_v6  ;;  %v2278_v10 = vrot.slane %v2276_v6, 4  ;;  %v4112_v27 = vld [vmem:[%s4823_s3 + $0x1f8] sm:$0xff]   ;;  %v2305_v5 = vsel %vm4289_vm2, %v3372_v52, %v2304_v49  ;;  %v3407_v52 = vrot.slane %v2519_v44, 10 }
  0x6f   : > { %3714 = vmatpush3.bf16.msra.mxu1 %v4095_v11  ;;  %v2230_v11 = vld [vmem:[%s4541_s28 + $0x28] sm:$0xf] }
  0x70   : > { %3826 = vmatpush3.bf16.msra.mxu0 %v4096_v16  ;;  %3715 = vmatprep.subr.bf16.mxu1 %v4097_v31  ;;  %v2283_v15 = vrot.slane %v2230_v11, 5  ;;  %v4110_v16 = vld [vmem:[%s4823_s3 + $0x1f0] sm:$0xff]   ;;  %v2280_v17 = vsel %vm4289_vm2, %v2278_v10, %v2279_v7  ;;  %v2560_v10 = vrot.slane %v2511_v4, 6  ;;  %v2516_v11 = vld [vmem:[%s4541_s28 + $0x48] sm:$0xc] }
  0x71   : > { %3827 = vmatprep.subr.bf16.mxu0 %v4098_v32  ;;  %v3390_v18 = vcombine.low %v2277_v9, %v2280_v17  ;;  %v2512_v9 = vld [vmem:[%s4541_s28 + $0x18] sm:$0x3]  ;;  %v2527_v4 = vld [vmem:[%s4541_s28 + $0xa4] sm:$0x3] }
  0x72   : > { %3704 = vmatmul.mubr.bf16.gmra.mrb[4].mxu1 %v3225_v35  ;;  %v2285_v20 = vrot.slane %v2283_v15, 4  ;;  %v2284_v33 = vsel %vm4289_vm2, %v3369_v19, %v2283_v15  ;;  %v2292_v35 = vrot.slane %v2290_v26, 4  ;;  %v4121_v15 = vld [vmem:[%s4287_s8 + $0x70] sm:$0xff]   ;;  %v2562_v19 = vrot.slane %v2560_v10, 4 }
  0x73   : > { %3716 = vmatpush3.bf16.msra.mxu1 %v4097_v31  ;;  %3816 = vmatmul.mubr.bf16.gmra.mrb[4].mxu0 %v4103_v36  ;;  %v2236_v31 = vld [vmem:[%s4541_s28 + $0x60] sm:$0xf] }
  0x74   : > { %3828 = vmatpush3.bf16.msra.mxu0 %v4098_v32  ;;  %3717 = vmatprep.subr.bf16.mxu1 %v4099_v34  ;;  %v2237_v32 = vld [vmem:[%s4541_s28 + $0x64] sm:$0x1]  ;;  %v2297_v36 = vrot.slane %v2236_v31, 5  ;;  %v2294_v46 = vsel %vm4289_vm2, %v2292_v35, %v2293_v29 }
  0x75   : > { %3829 = vmatprep.subr.bf16.mxu0 %v4100_v40  ;;  %3819 = vmatprep.mubr.bf16.mxu0 %v4107_v45  ;;  %v2300_v42 = vrot.slane %v2237_v32, 5  ;;  %v2291_v45 = vsel %vm4289_vm2, %v3370_v28, %v2290_v26  ;;  %v4123_v26 = vld [vmem:[%s4823_s3 + $0x220] sm:$0xff]   ;;  %v4124_v32 = vld [vmem:[%s4823_s3 + $0x228] sm:$0xff]  }
  0x76   : > { %3707 = vmatprep.mubr.bf16.mxu1 %v3226_v56  ;;  %v2299_v47 = vrot.slane %v2297_v36, 4  ;;  %v3392_v56 = vcombine.low %v2291_v45, %v2294_v46  ;;  %v2298_v58 = vsel %vm4289_vm2, %v3371_v41, %v2297_v36  ;;  %v2523_v36 = vld [vmem:[%s4541_s28 + $0x84] sm:$0xf]  ;;  %v2521_v45 = vld [vmem:[%s4541_s28 + $0x6c] sm:$0x3] }
  0x77   : > { %3718 = vmatpush3.bf16.msra.mxu1 %v4099_v34  ;;  %v2287_v34 = vsel %vm4289_vm2, %v2285_v20, %v2286_v21  ;;  %v2563_v20 = vrot.slane %v2512_v9, 6  ;;  %v3406_v21 = vrot.slane %v2516_v11, 10  ;;  %v2588_v46 = vrot.slane %v2523_v36, 6 }
  0x78   : > { %3830 = vmatpush3.bf16.msra.mxu0 %v4100_v40  ;;  %3719 = vmatprep.subr.bf16.mxu1 %v4102_v55  ;;  %v3391_v40 = vcombine.low %v2284_v33, %v2287_v34  ;;  %v2514_v33 = vld [vmem:[%s4541_s28 + $0x30] sm:$0xf]  ;;  %v2520_v34 = vld [vmem:[%s4541_s28 + $0x68] sm:$0xf]  ;;  %v2584_v54 = vrot.slane %v2521_v45, 6 }
  0x79   : > { %3831 = vmatprep.subr.bf16.mxu0 %v4104_v59  ;;  %v2564_v29 = vsel %vm4402_vm5, %v2562_v19, %v2563_v20  ;;  %v2567_v41 = vrot.slane %v2514_v33, 6  ;;  %v2590_v57 = vrot.slane %v2588_v46, 4 }
  0x7a   : > { %3708 = vmatmul.mubr.bf16.gmra.mrb[8].mxu1 %v3227_v63  ;;  %v4118_v63 = vld [vmem:[%s4287_s8 + $0x54] sm:$0xff]  }
  0x7b   : > { %3720 = vmatpush3.bf16.msra.mxu1 %v4102_v55  ;;  %3820 = vmatmul.mubr.bf16.gmra.mrb[8].mxu0 %v4109_v0  ;;  %v2242_v55 = vld [vmem:[%s4541_s28 + $0x98] sm:$0xf] }
  0x7c   : > { %3832 = vmatpush3.bf16.msra.mxu0 %v4104_v59  ;;  %3721 = vmatprep.subr.bf16.mxu1 %v4105_v60  ;;  %v2301_v59 = vsel %vm4289_vm2, %v2299_v47, %v2300_v42  ;;  %v2311_v61 = vrot.slane %v2242_v55, 5  ;;  %v2581_v42 = vrot.slane %v2520_v34, 6  ;;  %v2522_v47 = vld [vmem:[%s4541_s28 + $0x80] sm:$0xc]  ;;  %v4126_v55 = vld [vmem:[%s4823_s3 + $0x238] sm:$0xff]  }
  0x7d   : > { %3833 = vmatprep.subr.bf16.mxu0 %v4106_v62  ;;  %3727 = vmatprep.mubr.bf16.mxu1 %v4113_v1  ;;  %v3393_v0 = vcombine.low %v2298_v58, %v2301_v59  ;;  %v4120_v1 = vld [vmem:[%s4823_s3 + $0x218] sm:$0xff]   ;;  %v2591_v58 = vrot.slane %v2524_v48, 6  ;;  %v2526_v59 = vld [vmem:[%s4541_s28 + $0xa0] sm:$0xf] }
  0x7e   : > { %3839 = vmatprep.mubr.bf16.mxu0 %v3390_v18  ;;  %v2313_v7 = vrot.slane %v2311_v61, 4  ;;  %v3404_v18 = vrot.slane %v2510_v8, 10 }
  0x7f   : > { %3722 = vmatpush3.bf16.msra.mxu1 %v4105_v60  ;;  %v2306_v60 = vrot.slane %v2304_v49, 4 }
  0x80   : > { %3834 = vmatpush3.bf16.msra.mxu0 %v4106_v62  ;;  %3723 = vmatprep.subr.bf16.mxu1 %v4108_v14  ;;  %v4119_v62 = vld [vmem:[%s4823_s3 + $0x210] sm:$0xff]   ;;  %v2315_v25 = vsel %vm4289_vm2, %v2313_v7, %v2314_v3  ;;  %v2561_v28 = vsel %vm4402_vm5, %v3404_v18, %v2560_v10  ;;  %v2525_v3 = vld [vmem:[%s4541_s28 + $0x9c] sm:$0xc]  ;;  %v2598_v10 = vrot.slane %v2527_v4, 6 }
  0x81   : > { %3835 = vmatprep.subr.bf16.mxu0 %v4110_v16  ;;  %v2308_v6 = vsel %vm4289_vm2, %v2306_v60, %v2307_v53  ;;  %v3426_v35 = vcombine.low %v2561_v28, %v2564_v29  ;;  %v2583_v53 = vrot.slane %v2581_v42, 4  ;;  %v3409_v8 = vrot.slane %v2525_v3, 10 }
  0x82   : > { %v3394_v17 = vcombine.low %v2305_v5, %v2308_v6 }
  0x83   : > { %3724 = vmatpush3.bf16.msra.mxu1 %v4108_v14  ;;  %v2518_v14 = vld [vmem:[%s4541_s28 + $0x50] sm:$0x3] }
  0x84   : > { %3836 = vmatpush3.bf16.msra.mxu0 %v4110_v16  ;;  %3725 = vmatprep.subr.bf16.mxu1 %v4111_v24  ;;  %v2574_v16 = vrot.slane %v2517_v12, 6  ;;  %v2577_v23 = vrot.slane %v2518_v14, 6 }
  0x85   : > { %3837 = vmatprep.subr.bf16.mxu0 %v4112_v27 }
  0x86   : > { %v2576_v22 = vrot.slane %v2574_v16, 4  ;;  %v2575_v30 = vsel %vm4402_vm5, %v3406_v21, %v2574_v16 }
  0x87   : > { %3726 = vmatpush3.bf16.msra.mxu1 %v4111_v24  ;;  %v2312_v24 = vsel %vm4289_vm2, %v3373_v2, %v2311_v61  ;;  %v2592_v2 = vsel %vm4402_vm5, %v2590_v57, %v2591_v58 }
  0x88   : > { %3838 = vmatpush3.bf16.msra.mxu0 %v4112_v27  ;;  %3879 = vmatprep.subr.bf16.mxu1 %v4115_v38  ;;  %v4122_v27 = vld [vmem:[%s4287_s8 + $0x8c] sm:$0xff]   ;;  %v3395_v13 = vcombine.low %v2312_v24, %v2315_v25  ;;  %v2578_v31 = vsel %vm4402_vm5, %v2576_v22, %v2577_v23  ;;  %s381_s8 = scalar_lea.vmem %s4825_s5, %s3149_s16 }
  0x89   : > { %3851 = vmatprep.subr.bf16.mxu0 %v4115_v38 }
  0x8a   : > { %3728 = vmatmul.mubr.bf16.vlgmr.msra.gmra.mrb[0].mxu1 %v4114_v39  ;;  %v2513_v39 = vld [vmem:[%s4541_s28 + $0x2c] sm:$0xc] }
  0x8b   : > { %3840 = vmatmul.mubr.bf16.vlgmr.msra.gmra.mrb[0].mxu0 %v3391_v40  ;;  %3887 = vmatpush3.bf16.msra.mxu1 %v4115_v38  ;;  %v2515_v40 = vld [vmem:[%s4541_s28 + $0x34] sm:$0x3]  ;;  %v3405_v49 = vrot.slane %v2513_v39, 10  ;;  %s367_s28 = scalar_select %p366_p9, %s4233_s27, 17 }
  0x8c   : > { %3852 = vmatpush3.bf16.msra.mxu0 %v4115_v38  ;;  %3880 = vmatprep.subr.bf16.mxu1 %v4116_v50  ;;  %v3428_v38 = vcombine.low %v2575_v30, %v2578_v31 }
  0x8d   : > { %3853 = vmatprep.subr.bf16.mxu0 %v4116_v50  ;;  %3731 = vmatprep.mubr.bf16.mxu1 %v4117_v51  ;;  %v2569_v51 = vrot.slane %v2567_v41, 4  ;;  %v2568_v60 = vsel %vm4402_vm5, %v3405_v49, %v2567_v41  ;;  %s3147_s13 = sshll.u32 %s367_s28, 1 }
  0x8e   : > { %3843 = vmatprep.mubr.bf16.mxu0 %v3392_v56  ;;  %v3408_v56 = vrot.slane %v2522_v47, 10  ;;  %s370_s10 = sadd.s32 %s3995_s7, %s3147_s13 }
  0x8f   : > { %3888 = vmatpush3.bf16.msra.mxu1 %v4116_v50  ;;  %s3148_s12 = sshll.u32 %s370_s10, 2 }
  0x90   : > { %3854 = vmatpush3.bf16.msra.mxu0 %v4116_v50  ;;  %3881 = vmatprep.subr.bf16.mxu1 %v4119_v62  ;;  %v2570_v50 = vrot.slane %v2515_v40, 6  ;;  %s4781_s11 = scalar_lea.vmem %s4824_s4, %s3148_s12 }
  0x91   : > { %3855 = vmatprep.subr.bf16.mxu0 %v4119_v62 }
  0x92   : > { %3732 = vmatmul.mubr.bf16.gmra.mrb[4].mxu1 %v4118_v63  ;;  %v2571_v61 = vsel %vm4402_vm5, %v2569_v51, %v2570_v50  ;;  %v2585_v63 = vsel %vm4402_vm5, %v2583_v53, %v2584_v54 }
  0x93   : > { %3844 = vmatmul.mubr.bf16.gmra.mrb[4].mxu0 %v3393_v0  ;;  %3889 = vmatpush3.bf16.msra.mxu1 %v4119_v62  ;;  %v2595_v0 = vrot.slane %v2526_v59, 6  ;;  %v3427_v5 = vcombine.low %v2568_v60, %v2571_v61 }
  0x94   : > { %3856 = vmatpush3.bf16.msra.mxu0 %v4119_v62  ;;  %3882 = vmatprep.subr.bf16.mxu1 %v4120_v1  ;;  %v2582_v62 = vsel %vm4402_vm5, %v3407_v52, %v2581_v42  ;;  %v2807_v42 = vstv %s4233_s27 }
  0x95   : > { %3857 = vmatprep.subr.bf16.mxu0 %v4120_v1  ;;  %3735 = vmatprep.mubr.bf16.mxu1 %v4121_v15  ;;  %v3429_v6 = vcombine.low %v2582_v62, %v2585_v63  ;;  %v2597_v9 = vrot.slane %v2595_v0, 4  ;;  %v2596_v11 = vsel %vm4402_vm5, %v3409_v8, %v2595_v0  ;;  %v2808_v44 = vadd.s32 1, %v2807_v42 }
  0x96   : > { %3847 = vmatprep.mubr.bf16.mxu0 %v3394_v17  ;;  %v2809_v49 = vadd.s32 2, %v2807_v42  ;;  %vm2813_vm8 = vcmp.lt.s32.totalorder %v2807_v42, 16  ;;  %v2812_v60 = vadd.s32 5, %v2807_v42 }
  0x97   : > { %3890 = vmatpush3.bf16.msra.mxu1 %v4120_v1  ;;  %v2599_v12 = vsel %vm4402_vm5, %v2597_v9, %v2598_v10  ;;  %vm2814_vm7 = vcmp.lt.s32.totalorder %v2808_v44, 16 }
  0x98   : > { %3858 = vmatpush3.bf16.msra.mxu0 %v4120_v1  ;;  %3883 = vmatprep.subr.bf16.mxu1 %v4123_v26  ;;  %v2589_v1 = vsel %vm4402_vm5, %v3408_v56, %v2588_v46  ;;  %v3431_v14 = vcombine.low %v2596_v11, %v2599_v12  ;;  %vm2815_vm9 = vcmp.lt.s32.totalorder %v2809_v49, 16  ;;  %vm2818_vm10 = vcmp.lt.s32.totalorder %v2812_v60, 16 }
  0x99   : > { %3859 = vmatprep.subr.bf16.mxu0 %v4123_v26  ;;  %v3430_v7 = vcombine.low %v2589_v1, %v2592_v2 }
  0x9a   : > { %3736 = vmatmul.mubr.bf16.gmra.mrb[8].mxu1 %v4122_v27 }
  0x9b   : > { %3848 = vmatmul.mubr.bf16.gmra.mrb[8].mxu0 %v3395_v13  ;;  %3891 = vmatpush3.bf16.msra.mxu1 %v4123_v26 }
  0x9c   : > { %3860 = vmatpush3.bf16.msra.mxu0 %v4123_v26  ;;  %3884 = vmatprep.subr.bf16.mxu1 %v4124_v32 }
  0x9d   : > { %3861 = vmatprep.subr.bf16.mxu0 %v4124_v32  ;;  %3867 = vmatprep.mubr.bf16.mxu0 %v3426_v35 }
  0x9e   : > { %3871 = vmatprep.mubr.bf16.mxu1 %v3428_v38 }
  0x9f   : > { %3892 = vmatpush3.bf16.msra.mxu1 %v4124_v32 }
  0xa0   : > { %3862 = vmatpush3.bf16.msra.mxu0 %v4124_v32  ;;  %3885 = vmatprep.subr.bf16.mxu1 %v4125_v43 }
  0xa1   : > { %3863 = vmatprep.subr.bf16.mxu0 %v4125_v43 }
  0xa3   : > { %3893 = vmatpush3.bf16.msra.mxu1 %v4125_v43 }
  0xa4   : > { %3864 = vmatpush3.bf16.msra.mxu0 %v4125_v43  ;;  %3886 = vmatprep.subr.bf16.mxu1 %v4126_v55  ;;  %v2810_v43 = vadd.s32 3, %v2807_v42 }
  0xa5   : > { %3865 = vmatprep.subr.bf16.mxu0 %v4126_v55 }
  0xa6   : > { %vm2816_vm6 = vcmp.lt.s32.totalorder %v2810_v43, 16 }
  0xa7   : > { %3894 = vmatpush3.bf16.msra.mxu1 %v4126_v55 }
  0xa8   : > { %3866 = vmatpush3.bf16.msra.mxu0 %v4126_v55 }
  0xaa   : > { %3872 = vmatmul.mubr.bf16.vlgmr.msra.gmra.mrb[12].mxu1 %v3429_v6  ;;  %v2811_v6 = vadd.s32 4, %v2807_v42 }
  0xab   : > { %3868 = vmatmul.mubr.bf16.vlgmr.msra.gmra.mrb[0].mxu0 %v3427_v5  ;;  %3875 = vmatprep.mubr.bf16.mxu1 %v3430_v7 }
  0xac   : > { %vm2817_vm11 = vcmp.lt.s32.totalorder %v2811_v6, 16 }
  0xb2   : > { %3876 = vmatmul.mubr.bf16.gmra.mrb[16].mxu1 %v3431_v14 }
 0x15d   : > { %v3729_v15 = vpop.f32.mrb[0].mxu1 }
 0x15e   : > { %v1357_v16 = vpop.f32.mrb[1].mxu1 }
 0x15f   : > { %v3730_v17 = vpop.f32.mrb[2].mxu1 }
 0x160   : > { %v1360_v18 = vpop.f32.mrb[3].mxu1 }
 0x165   : > { %v3733_v19 = vpop.f32.mrb[4].mxu1 }
 0x166   : > { %v3845_v20 = vpop.f32.mrb[4].mxu0  ;;  %v1373_v21 = vpop.f32.mrb[5].mxu1 }
 0x167   : > { %v3899_v22 = vadd.f32 %v3845_v20, %v3733_v19  ;;  %v2455_v23 = vpop.f32.mrb[5].mxu0  ;;  %v3734_v24 = vpop.f32.mrb[6].mxu1 }
 0x168   : > { %v3901_v25 = vadd.f32 %v2455_v23, %v1373_v21  ;;  %v3846_v26 = vpop.f32.mrb[6].mxu0  ;;  %v1376_v27 = vpop.f32.mrb[7].mxu1 }
 0x169   : > { %v3903_v28 = vadd.f32 %v3846_v26, %v3734_v24  ;;  %v2458_v37 = vpop.f32.mrb[7].mxu0 }
 0x16a   : > { %v3905_v29 = vadd.f32 %v2458_v37, %v1376_v27 }
 0x16d   : > { %v3737_v13 = vpop.f32.mrb[8].mxu1 }
 0x16e   : > { %v3849_v30 = vpop.f32.mrb[8].mxu0  ;;  %v1389_v31 = vpop.f32.mrb[9].mxu1 }
 0x16f   : > { %v3907_v32 = vadd.f32 %v3849_v30, %v3737_v13  ;;  %v2471_v33 = vpop.f32.mrb[9].mxu0  ;;  %v3738_v34 = vpop.f32.mrb[10].mxu1 }
 0x170   : > { %v3909_v35 = vadd.f32 %v2471_v33, %v1389_v31  ;;  %v3850_v36 = vpop.f32.mrb[10].mxu0  ;;  %v1392_v38 = vpop.f32.mrb[11].mxu1 }
 0x171   : > { %v3911_v39 = vadd.f32 %v3850_v36, %v3738_v34  ;;  %v2474_v40 = vpop.f32.mrb[11].mxu0 }
 0x172   : > { %v4772_v41 = vadd.f32 %v2474_v40, %v1392_v38 }
 0x17d   : > { %v3873_v45 = vpop.f32.mrb[12].mxu1 }
 0x17e   : > { %v3869_v46 = vpop.f32.mrb[0].mxu0  ;;  %v3900_v47 = vadd.f32 %v3899_v22, %v3873_v45  ;;  %v2739_v48 = vpop.f32.mrb[13].mxu1 }
 0x17f   : > { %v3895_v50 = vadd.f32 %v3869_v46, %v3729_v15  ;;  %v2723_v51 = vpop.f32.mrb[1].mxu0  ;;  %v3902_v52 = vadd.f32 %v3901_v25, %v2739_v48  ;;  %v3874_v53 = vpop.f32.mrb[14].mxu1 }
 0x180   : > { %v3896_v54 = vadd.f32 %v2723_v51, %v1357_v16  ;;  %v3870_v55 = vpop.f32.mrb[2].mxu0  ;;  %v3904_v56 = vadd.f32 %v3903_v28, %v3874_v53  ;;  %v2742_v57 = vpop.f32.mrb[15].mxu1  ;;  %v2837_v61 = vsel %vm2816_vm6, %v3900_v47, 0.0 }
 0x181   : > { %v3897_v58 = vadd.f32 %v3870_v55, %v3730_v17  ;;  %v2726_v59 = vpop.f32.mrb[3].mxu0  ;;  %v2833_v63 = vsel %vm2814_vm7, %v3895_v50, 0.0  ;;  %v3906_v5 = vadd.f32 %v3905_v29, %v2742_v57  ;;  %v2835_v7 = vsel %vm2815_vm9, %v3902_v52, 0.0 }
 0x182   : > { %v2838_v62 = vsel %vm2816_vm6, %v3904_v56, 0.0  ;;  %v2831_v0 = vsel %vm2813_vm8, %v3896_v54, 0.0  ;;  %v3898_v4 = vadd.f32 %v2726_v59, %v1360_v18  ;;  %v2923_v23 = vmul.f32 %v2833_v63, %v2833_v63 }
 0x183   : > { %v2834_v1 = vsel %vm2814_vm7, %v3897_v58, 0.0  ;;  %v3484_v2 = vpack.c.bf16 %v2838_v62, %v2837_v61  ;;  %v2921_v9 = vmul.f32 %v2831_v0, %v2831_v0  ;;  %v2836_v11 = vsel %vm2815_vm9, %v3906_v5, 0.0 }
 0x184   : > { %v3474_v3 = vpack.c.bf16 %v2834_v1, %v2833_v63  ;;  %v2832_v10 = vsel %vm2813_vm8, %v3898_v4, 0.0  ;;  %v3479_v18 = vpack.c.bf16 %v2836_v11, %v2835_v7  ;;  %v2924_v37 = vmul.f32 %v2834_v1, %v2834_v1 }
 0x185   : > { %3498 = vst [vmem:[%s4781_s11 + $0x18] sm:$0xff] %v3484_v2   ;;  %v3877_v8 = vpop.f32.mrb[16].mxu1  ;;  %v3469_v15 = vpack.c.bf16 %v2832_v10, %v2831_v0  ;;  %v2903_v16 = vadd.f32 %v2832_v10, %v2831_v0  ;;  %v2922_v17 = vmul.f32 %v2832_v10, %v2832_v10  ;;  %v2925_v33 = vmul.f32 %v2835_v7, %v2835_v7 }
 0x186   : > { %3496 = vst [vmem:[%s4781_s11 + $0x8] sm:$0xff] %v3474_v3   ;;  %v3908_v12 = vadd.f32 %v3907_v32, %v3877_v8  ;;  %v2755_v14 = vpop.f32.mrb[17].mxu1  ;;  %3497 = vst [vmem:[%s4781_s11 + $0x10] sm:$0xff] %v3479_v18   ;;  %v2928_v44 = vmul.f32 %v2838_v62, %v2838_v62 }
 0x187   : > { %v3878_v19 = vpop.f32.mrb[18].mxu1  ;;  %v3910_v20 = vadd.f32 %v3909_v35, %v2755_v14  ;;  %3470 = vst [vmem:[%s4781_s11] sm:$0xff] %v3469_v15   ;;  %v2904_v24 = vadd.f32 %v2903_v16, %v2833_v63  ;;  %v2933_v25 = vadd.f32 %v2922_v17, %v2921_v9 }
 0x188   : > { %v3912_v21 = vadd.f32 %v3911_v39, %v3878_v19  ;;  %v2758_v22 = vpop.f32.mrb[19].mxu1  ;;  %v2841_v27 = vsel %vm2818_vm10, %v3908_v12, 0.0  ;;  %v2926_v39 = vmul.f32 %v2836_v11, %v2836_v11 }
 0x189   : > { %v3914_v26 = vadd.f32 %v4772_v41, %v2758_v22  ;;  %v2934_v29 = vadd.f32 %v2933_v25, %v2923_v23  ;;  %v2905_v13 = vadd.f32 %v2904_v24, %v2834_v1  ;;  %v2839_v31 = vsel %vm2817_vm11, %v3910_v20, 0.0 }
 0x18a   : > { %v2842_v28 = vsel %vm2818_vm10, %v3912_v21, 0.0  ;;  %v2927_v41 = vmul.f32 %v2837_v61, %v2837_v61  ;;  %v2929_v48 = vmul.f32 %v2839_v31, %v2839_v31  ;;  %v2931_v53 = vmul.f32 %v2841_v27, %v2841_v27 }
 0x18b   : > { %v3494_v30 = vpack.c.bf16 %v2842_v28, %v2841_v27  ;;  %v2840_v32 = vsel %vm2817_vm11, %v3914_v26, 0.0  ;;  %v2906_v34 = vadd.f32 %v2905_v13, %v2835_v7  ;;  %v2935_v35 = vadd.f32 %v2934_v29, %v2924_v37 }
 0x18c   : > { %v3489_v36 = vpack.c.bf16 %v2840_v32, %v2839_v31  ;;  %v2930_v52 = vmul.f32 %v2840_v32, %v2840_v32  ;;  %v2932_v56 = vmul.f32 %v2842_v28, %v2842_v28 }
 0x18d   : > { %3500 = vst [vmem:[%s4781_s11 + $0x28] sm:$0xff] %v3494_v30   ;;  %v2907_v38 = vadd.f32 %v2906_v34, %v2836_v11  ;;  %v2936_v40 = vadd.f32 %v2935_v35, %v2925_v33 }
 0x18e   : > { %3499 = vst [vmem:[%s4781_s11 + $0x20] sm:$0xff] %v3489_v36  }
 0x18f   : > { %v2908_v42 = vadd.f32 %v2907_v38, %v2837_v61  ;;  %v2937_v43 = vadd.f32 %v2936_v40, %v2926_v39 }
 0x191   : > { %v2938_v45 = vadd.f32 %v2937_v43, %v2927_v41  ;;  %v2909_v46 = vadd.f32 %v2908_v42, %v2838_v62 }
 0x193   : > { %v2910_v47 = vadd.f32 %v2909_v46, %v2839_v31  ;;  %v2939_v49 = vadd.f32 %v2938_v45, %v2928_v44 }
 0x195   : > { %v2940_v50 = vadd.f32 %v2939_v49, %v2929_v48  ;;  %v2911_v51 = vadd.f32 %v2910_v47, %v2840_v32 }
 0x197   : > { %v2912_v54 = vadd.f32 %v2911_v51, %v2841_v27  ;;  %v2941_v55 = vadd.f32 %v2940_v50, %v2930_v52 }
 0x199   : > { %v2913_v57 = vadd.f32 %v2912_v54, %v2842_v28  ;;  %v2942_v58 = vadd.f32 %v2941_v55, %v2931_v53 }
 0x19b   : > { %v2914_v59 = vrot.slane %v2913_v57, 4  ;;  %v2943_v60 = vadd.f32 %v2942_v58, %v2932_v56 }
 0x19d   : > { %v2915_v61 = vadd.f32 %v2914_v59, %v2913_v57  ;;  %v2944_v63 = vrot.slane %v2943_v60, 4 }
 0x19f   : > { %v2916_v62 = vrot.slane %v2915_v61, 2  ;;  %v2945_v0 = vadd.f32 %v2944_v63, %v2943_v60 }
 0x1a1   : > { %v2917_v1 = vadd.f32 %v2916_v62, %v2915_v61  ;;  %v2946_v2 = vrot.slane %v2945_v0, 2 }
 0x1a3   : > { %v2918_v3 = vrot.slane %v2917_v1, 1  ;;  %v2947_v4 = vadd.f32 %v2946_v2, %v2945_v0 }
 0x1a5   : > { %v2919_v5 = vadd.f32 %v2918_v3, %v2917_v1  ;;  %v2948_v6 = vrot.slane %v2947_v4, 1 }
 0x1a7   : > { %2920 = vst [vmem:[%s381_s8] sm:$0x1] %v2919_v5  ;;  %v2949_v7 = vadd.f32 %v2948_v6, %v2947_v4 }
 0x1a9   : > { %2950 = vst [vmem:[%s381_s8 + $0x1] sm:$0x1] %v2949_v7 }
 0x1aa PF: > { %s16_s22 = sadd.s32 1, %s4165_s22   ;;  %s4830_s18 = smov %s4157_s20 }
 0x1ab   : > { %p13_p11 = scmp.ge.s32.totalorder %s16_s22, 8   ;;  %s4831_s19 = smov %s4161_s21 }
 0x1ac   : > { %s4832_s20 = smov %s4835_s23  ;;  %s4833_s21 = smov %s4839_s24 }
 0x1ad   :  { %15 = sbr.rel (!%p13_p11) target bundleno = 3 (0x3), region = 92 }

// kernel: asspmy_forward.5
= control target key start
LH: loop header
LB: loop body
LE: loop exit
PB: predicated region body
PF: predicated region fallthrough
CT: control target
= control target key end

     0   :  { %s4366_s18 = smov 0   ;;  %s4368_s19 = smov 0   ;;  %s5084_s0 = inlined_call_operand.vmem [shape: bf16[2,54,52,128], index: 0, kind: input, shape index: {}, may-alias: {0,1,2}]   ;;  %s5085_s1 = inlined_call_operand.vmem [shape: bf16[2,54,52,128], index: 1, kind: input, shape index: {}, may-alias: {0,1,2}]   ;;  %s5086_s2 = inlined_call_operand.vmem [shape: bf16[2,54,52,128], index: 2, kind: input, shape index: {}, may-alias: {0,1,2}]   ;;  %s5087_s3 = inlined_call_operand.vmem [shape: bf16[3,3,128,128], index: 3, kind: input, shape index: {}]   ;;  %s5088_s4 = inlined_call_operand.vmem [shape: bf16[2,18,16,128], index: 4, kind: output, shape index: {0}]   ;;  %s5089_s5 = inlined_call_operand.vmem [shape: f32[2,3,2,128], index: 5, kind: output, shape index: {1}]  }
   0x1   :  { %s4370_s20 = smov 0   ;;  %s4372_s21 = smov 0  }
   0x2   :  { %s4374_s22 = smov 0  }
   0x3 LB: > { %s25_s23 = sadd.s32 1, %s4326_s20  ;;  %s28_s24 = sadd.s32 1, %s4330_s21  ;;  %s4334_s22 = sphi %s4374_s22, %s16_s22   ;;  %s4330_s21 = sphi %s4372_s21, %s5097_s21   ;;  %s4326_s20 = sphi %s4370_s20, %s5096_s20   ;;  %s4322_s19 = sphi %s4368_s19, %s5095_s19   ;;  %s4318_s18 = sphi %s4366_s18, %s5094_s18  }
   0x4   : > { %p26_p0 = scmp.ge.s32.totalorder %s25_s23, 3  ;;  %p3312_p1 = scmp.ge.s32.totalorder %s4334_s22, 1 }
   0x5   : > { %p262_p2 = scmp.lt.s32.totalorder %s4334_s22, 7 }
   0x6   : > { %s5099_s23 = smov (%p26_p0, %s25_s23), 0  ;;  %s5101_s24 = smov (!%p26_p0, %s28_s24), %s4330_s21 }
   0x7   : > { %p263_p3 = pnand %p3312_p1, %p262_p2  ;;  %p30_p4 = scmp.ge.s32.totalorder %s5101_s24, 2 }
   0x8   : > { %v4224_v0 = vld [vmem:[%s5087_s3] sm:$0xff] (!%p263_p3)   ;;  %s331_s27 = sadd.s32 (!%p263_p3), 1, %s4318_s18  ;;  %v4226_v2 = vld [vmem:[%s5087_s3 + $0x8] sm:$0xff] (!%p263_p3)   ;;  %p333_p5 = scmp.lt.s32.totalorder (!%p263_p3), %s4322_s19, 1  ;;  %v4228_v4 = vld [vmem:[%s5087_s3 + $0x10] sm:$0xff] (!%p263_p3)   ;;  %vm450_vm0 = vcmask (!%p263_p3), 1040384  }
   0x9   : > { %s5103_s24 = smov (%p30_p4, %s5101_s24), 0  ;;  %266 = sbr.rel (%p263_p3) target bundleno = 426 (0x1aa), region = 36 }
   0xa   : > { %v4225_v1 = vld [vmem:[%s5087_s3 + $0x100] sm:$0xff] (!%p263_p3)   ;;  %s332_s30 = smul.u32 (!%p263_p3), 6, %s331_s27  ;;  %3814 = vmatprep.subr.bf16.mxu1 (!%p263_p3), %v4224_v0  ;;  %v4227_v3 = vld [vmem:[%s5087_s3 + $0x108] sm:$0xff] (!%p263_p3)   ;;  %v4229_v5 = vld [vmem:[%s5087_s3 + $0x110] sm:$0xff] (!%p263_p3)   ;;  %s344_s29 = sadd.s32 (!%p263_p3), 3, %s4318_s18  ;;  %vm451_vm1 = vcmask (!%p263_p3), 1044484  }
   0xb   : > { %3926 = vmatprep.subr.bf16.mxu0 (!%p263_p3), %v4225_v1  ;;  %3815 = vmatpush3.bf16.msra.mxu1 (!%p263_p3), %v4224_v0  ;;  %v4230_v6 = vld [vmem:[%s5087_s3 + $0x18] sm:$0xff] (!%p263_p3)   ;;  %v4232_v8 = vld [vmem:[%s5087_s3 + $0x20] sm:$0xff] (!%p263_p3)   ;;  %v4234_v10 = vld [vmem:[%s5087_s3 + $0x28] sm:$0xff] (!%p263_p3)   ;;  %vm736_vm3 = vcmask (!%p263_p3), 1042432   ;;  %vm737_vm4 = vcmask (!%p263_p3), 1046532   ;;  %s357_s7 = sadd.s32 (!%p263_p3), 5, %s4318_s18 }
   0xc   : > { %p335_p6 = scmp.lt.s32.totalorder (!%p263_p3), %s332_s30, 53  ;;  %3927 = vmatpush3.bf16.msra.mxu0 (!%p263_p3), %v4225_v1  ;;  %3816 = vmatprep.subr.bf16.mxu1 (!%p263_p3), %v4226_v2  ;;  %v4231_v7 = vld [vmem:[%s5087_s3 + $0x118] sm:$0xff] (!%p263_p3)   ;;  %v4233_v9 = vld [vmem:[%s5087_s3 + $0x120] sm:$0xff] (!%p263_p3)   ;;  %v4235_v14 = vld [vmem:[%s5087_s3 + $0x128] sm:$0xff] (!%p263_p3)   ;;  %s4670_s16 = smul.u32 (!%p263_p3), 6, %s357_s7 }
   0xd   : > { %3928 = vmatprep.subr.bf16.mxu0 (!%p263_p3), %v4227_v3  ;;  %vm4450_vm2 = vmor (!%p263_p3), %vm450_vm0, %vm451_vm1  ;;  %v4236_v19 = vld [vmem:[%s5087_s3 + $0x30] sm:$0xff] (!%p263_p3)   ;;  %v4238_v28 = vld [vmem:[%s5087_s3 + $0x38] sm:$0xff] (!%p263_p3)   ;;  %p383_p10 = scmp.lt.s32.totalorder (!%p263_p3), %s4318_s18, 2 }
   0xe   : > { %v4237_v25 = vld [vmem:[%s5087_s3 + $0x130] sm:$0xff] (!%p263_p3)   ;;  %v4239_v30 = vld [vmem:[%s5087_s3 + $0x138] sm:$0xff] (!%p263_p3)   ;;  %vm4476_vm5 = vmor (!%p263_p3), %vm736_vm3, %vm737_vm4  ;;  %p361_p8 = scmp.lt.s32.totalorder (!%p263_p3), %s4670_s16, 53 }
   0xf   : > { %3817 = vmatpush3.bf16.msra.mxu1 (!%p263_p3), %v4226_v2  ;;  %v4240_v42 = vld [vmem:[%s5087_s3 + $0x40] sm:$0xff] (!%p263_p3)   ;;  %v4242_v57 = vld [vmem:[%s5087_s3 + $0x48] sm:$0xff] (!%p263_p3)   ;;  %v4294_v31 = vld [vmem:[%s5087_s3 + $0x230] sm:$0xff] (!%p263_p3)  }
  0x10   : > { %s5105_s19 = smov (!%p333_p5, %s4322_s19), 1  ;;  %s5107_s30 = smov (!%p335_p6, %s332_s30), 53  ;;  %3929 = vmatpush3.bf16.msra.mxu0 %v4227_v3  ;;  %3818 = vmatprep.subr.bf16.mxu1 %v4228_v4  ;;  %v4241_v50 = vld [vmem:[%s5087_s3 + $0x140] sm:$0xff]   ;;  %v4243_v1 = vld [vmem:[%s5087_s3 + $0x148] sm:$0xff]  }
  0x11   : > { %s4420_s14 = smul.u32 378, %s5105_s19  ;;  %3930 = vmatprep.subr.bf16.mxu0 %v4229_v5  ;;  %s5111_s16 = smov (!%p361_p8, %s4670_s16), 53 }
  0x12   : > { %s4178_s15 = smul.u32 7, %s5107_s30 }
  0x13   : > { %3819 = vmatpush3.bf16.msra.mxu1 %v4228_v4  ;;  %s345_s30 = smul.u32 6, %s344_s29 }
  0x14   : > { %s339_s27 = sadd.s32 %s4420_s14, %s4178_s15  ;;  %3931 = vmatpush3.bf16.msra.mxu0 %v4229_v5  ;;  %3820 = vmatprep.subr.bf16.mxu1 %v4230_v6  ;;  %s4181_s26 = smul.u32 7, %s5111_s16 }
  0x15   : > { %s3313_s28 = sshll.u32 %s339_s27, 2  ;;  %3932 = vmatprep.subr.bf16.mxu0 %v4231_v7  ;;  %p348_p7 = scmp.lt.s32.totalorder %s345_s30, 53 }
  0x16   : > { %s4439_s12 = scalar_lea.vmem %s5084_s0, %s3313_s28  ;;  %s365_s29 = sadd.s32 %s4181_s26, %s4420_s14 }
  0x17   : > { %3821 = vmatpush3.bf16.msra.mxu1 %v4230_v6  ;;  %v402_v11 = vld [vmem:[%s4439_s12] sm:$0x8]  ;;  %v403_v12 = vld [vmem:[%s4439_s12 + $0x4] sm:$0xf]  ;;  %v404_v13 = vld [vmem:[%s4439_s12 + $0x8] sm:$0x7] }
  0x18   : > { %3933 = vmatpush3.bf16.msra.mxu0 %v4231_v7  ;;  %3822 = vmatprep.subr.bf16.mxu1 %v4232_v8  ;;  %v3319_v16 = vrot.slane %v402_v11, 11  ;;  %v455_v17 = vrot.slane %v403_v12, 7  ;;  %v458_v18 = vrot.slane %v404_v13, 7  ;;  %s5109_s30 = smov (!%p348_p7, %s345_s30), 53  ;;  %v405_v22 = vld [vmem:[%s4439_s12 + $0x1c] sm:$0x8] }
  0x19   : > { %3934 = vmatprep.subr.bf16.mxu0 %v4233_v9  ;;  %s4180_s27 = smul.u32 7, %s5109_s30  ;;  %v406_v23 = vld [vmem:[%s4439_s12 + $0x20] sm:$0xf]  ;;  %v407_v24 = vld [vmem:[%s4439_s12 + $0x24] sm:$0x7]  ;;  %v3320_v32 = vrot.slane %v405_v22, 11 }
  0x1a   : > { %v456_v20 = vsel %vm4450_vm2, %v3319_v16, %v455_v17  ;;  %v457_v21 = vrot.slane %v455_v17, 4  ;;  %v462_v27 = vrot.slane %v406_v23, 7  ;;  %v465_v34 = vrot.slane %v407_v24, 7  ;;  %v408_v58 = vld [vmem:[%s4439_s12 + $0x38] sm:$0x8]  ;;  %v4245_v13 = vld [vmem:[%s5087_s3 + $0x150] sm:$0xff]  }
  0x1b   : > { %3823 = vmatpush3.bf16.msra.mxu1 %v4232_v8  ;;  %s352_s8 = sadd.s32 %s4180_s27, %s4420_s14  ;;  %v409_v59 = vld [vmem:[%s4439_s12 + $0x3c] sm:$0xf]  ;;  %v410_v61 = vld [vmem:[%s4439_s12 + $0x40] sm:$0x7]  ;;  %v3321_v62 = vrot.slane %v408_v58, 11  ;;  %s3315_s7 = sshll.u32 %s365_s29, 2 }
  0x1c   : > { %3935 = vmatpush3.bf16.msra.mxu0 %v4233_v9  ;;  %3824 = vmatprep.subr.bf16.mxu1 %v4234_v10  ;;  %v459_v26 = vsel %vm4450_vm2, %v457_v21, %v458_v18  ;;  %s3314_s10 = sshll.u32 %s352_s8, 2  ;;  %v464_v33 = vrot.slane %v462_v27, 4  ;;  %v463_v43 = vsel %vm4450_vm2, %v3320_v32, %v462_v27  ;;  %v469_v63 = vrot.slane %v409_v59, 7  ;;  %v411_v16 = vld [vmem:[%s4439_s12 + $0x54] sm:$0x8]  ;;  %s4182_s9 = smul.u32 36, %s5105_s19 }
  0x1d   : > { %3936 = vmatprep.subr.bf16.mxu0 %v4235_v14  ;;  %v3325_v29 = vcombine.low %v456_v20, %v459_v26  ;;  %s4483_s15 = scalar_lea.vmem %s5085_s1, %s3314_s10  ;;  %v472_v2 = vrot.slane %v410_v61, 7  ;;  %v412_v17 = vld [vmem:[%s4439_s12 + $0x58] sm:$0xf]  ;;  %v413_v18 = vld [vmem:[%s4439_s12 + $0x5c] sm:$0x7]  ;;  %v3322_v22 = vrot.slane %v411_v16, 11  ;;  %s4765_s10 = scalar_lea.vmem %s5086_s2, %s3315_s7 }
  0x1e   : > { %v1543_v35 = vld [vmem:[%s4483_s15 + $0x8] sm:$0xe]  ;;  %v1544_v36 = vld [vmem:[%s4483_s15 + $0xc] sm:$0xf]  ;;  %v1545_v37 = vld [vmem:[%s4483_s15 + $0x10] sm:$0x1]  ;;  %v466_v44 = vsel %vm4450_vm2, %v464_v33, %v465_v34  ;;  %v470_v5 = vsel %vm4450_vm2, %v3321_v62, %v469_v63 }
  0x1f   : > { %3825 = vmatpush3.bf16.msra.mxu1 %v4234_v10  ;;  %3830 = vmatprep.mubr.bf16.mxu1 %v3325_v29  ;;  %v3447_v38 = vrot.slane %v1543_v35, 9  ;;  %v1593_v39 = vrot.slane %v1544_v36, 5  ;;  %v1596_v40 = vrot.slane %v1545_v37, 5  ;;  %v1546_v41 = vld [vmem:[%s4483_s15 + $0x24] sm:$0xe]  ;;  %v3326_v54 = vcombine.low %v463_v43, %v466_v44  ;;  %v4244_v10 = vld [vmem:[%s5087_s3 + $0x50] sm:$0xff]  }
  0x20   : > { %3937 = vmatpush3.bf16.msra.mxu0 %v4235_v14  ;;  %3826 = vmatprep.subr.bf16.mxu1 %v4236_v19  ;;  %v1547_v45 = vld [vmem:[%s4483_s15 + $0x28] sm:$0xf]  ;;  %v1548_v46 = vld [vmem:[%s4483_s15 + $0x2c] sm:$0x1]  ;;  %v3448_v47 = vrot.slane %v1546_v41, 9  ;;  %v471_v6 = vrot.slane %v469_v63, 4 }
  0x21   : > { %3938 = vmatprep.subr.bf16.mxu0 %v4237_v25  ;;  %v1594_v48 = vsel %vm4476_vm5, %v3447_v38, %v1593_v39  ;;  %v1595_v49 = vrot.slane %v1593_v39, 4  ;;  %v1600_v51 = vrot.slane %v1547_v45, 5  ;;  %v1603_v52 = vrot.slane %v1548_v46, 5  ;;  %v1549_v3 = vld [vmem:[%s4483_s15 + $0x40] sm:$0xe]  ;;  %v4246_v33 = vld [vmem:[%s5087_s3 + $0x58] sm:$0xff]  }
  0x22   : > { %v1550_v7 = vld [vmem:[%s4483_s15 + $0x44] sm:$0xf]  ;;  %v1551_v8 = vld [vmem:[%s4483_s15 + $0x48] sm:$0x1]  ;;  %v3449_v9 = vrot.slane %v1549_v3, 9  ;;  %v473_v14 = vsel %vm4450_vm2, %v471_v6, %v472_v2  ;;  %v479_v26 = vrot.slane %v413_v18, 7 }
  0x23   : > { %3827 = vmatpush3.bf16.msra.mxu1 %v4236_v19  ;;  %v1597_v53 = vsel %vm4476_vm5, %v1595_v49, %v1596_v40  ;;  %v1601_v55 = vsel %vm4476_vm5, %v3448_v47, %v1600_v51  ;;  %v1602_v56 = vrot.slane %v1600_v51, 4  ;;  %v1607_v11 = vrot.slane %v1550_v7, 5  ;;  %v1552_v23 = vld [vmem:[%s4483_s15 + $0x5c] sm:$0xe]  ;;  %v1553_v24 = vld [vmem:[%s4483_s15 + $0x60] sm:$0xf] }
  0x24   : > { %3939 = vmatpush3.bf16.msra.mxu0 %v4237_v25  ;;  %3828 = vmatprep.subr.bf16.mxu1 %v4238_v28  ;;  %v3469_v60 = vcombine.low %v1594_v48, %v1597_v53  ;;  %v1610_v12 = vrot.slane %v1551_v8, 5  ;;  %v3327_v19 = vcombine.low %v470_v5, %v473_v14  ;;  %v476_v25 = vrot.slane %v412_v17, 7  ;;  %v1554_v27 = vld [vmem:[%s4483_s15 + $0x64] sm:$0x1]  ;;  %v4247_v37 = vld [vmem:[%s5087_s3 + $0x158] sm:$0xff]   ;;  %v4251_v14 = vld [vmem:[%s5087_s3 + $0x168] sm:$0xff]  }
  0x25   : > { %3940 = vmatprep.subr.bf16.mxu0 %v4239_v30  ;;  %v1604_v0 = vsel %vm4476_vm5, %v1602_v56, %v1603_v52  ;;  %v1608_v20 = vsel %vm4476_vm5, %v3449_v9, %v1607_v11  ;;  %v1609_v21 = vrot.slane %v1607_v11, 4  ;;  %v1614_v29 = vrot.slane %v1553_v24, 5  ;;  %v414_v40 = vld [vmem:[%s4439_s12 + $0x70] sm:$0x8]  ;;  %v415_v41 = vld [vmem:[%s4439_s12 + $0x74] sm:$0xf] }
  0x26   : > { %3942 = vmatprep.mubr.bf16.mxu0 %v3469_v60  ;;  %v3470_v4 = vcombine.low %v1601_v55, %v1604_v0  ;;  %v1617_v32 = vrot.slane %v1554_v27, 5  ;;  %v477_v35 = vsel %vm4450_vm2, %v3322_v22, %v476_v25  ;;  %v478_v36 = vrot.slane %v476_v25, 4  ;;  %v416_v43 = vld [vmem:[%s4439_s12 + $0x78] sm:$0x7]  ;;  %v4248_v46 = vld [vmem:[%s5087_s3 + $0x60] sm:$0xff]   ;;  %v4250_v11 = vld [vmem:[%s5087_s3 + $0x68] sm:$0xff]  }
  0x27   : > { %3829 = vmatpush3.bf16.msra.mxu1 %v4238_v28  ;;  %v3450_v28 = vrot.slane %v1552_v23, 9  ;;  %v1616_v39 = vrot.slane %v1614_v29, 4  ;;  %v3323_v44 = vrot.slane %v414_v40, 11  ;;  %v483_v45 = vrot.slane %v415_v41, 7  ;;  %v4249_v51 = vld [vmem:[%s5087_s3 + $0x160] sm:$0xff]   ;;  %v4254_v40 = vld [vmem:[%s5087_s3 + $0x78] sm:$0xff]  }
  0x28   : > { %3941 = vmatpush3.bf16.msra.mxu0 %v4239_v30  ;;  %3842 = vmatprep.subr.bf16.mxu1 %v4240_v42  ;;  %v1611_v30 = vsel %vm4476_vm5, %v1609_v21, %v1610_v12  ;;  %v486_v49 = vrot.slane %v416_v43, 7  ;;  %v1556_v55 = vld [vmem:[%s4483_s15 + $0x7c] sm:$0xf]  ;;  %v1557_v56 = vld [vmem:[%s4483_s15 + $0x80] sm:$0x1]  ;;  %s4183_s28 = smul.u32 3, %s5105_s19 }
  0x29   : > { %3954 = vmatprep.subr.bf16.mxu0 %v4241_v50  ;;  %v3471_v34 = vcombine.low %v1608_v20, %v1611_v30  ;;  %v1615_v38 = vsel %vm4476_vm5, %v3450_v28, %v1614_v29  ;;  %v1618_v48 = vsel %vm4476_vm5, %v1616_v39, %v1617_v32  ;;  %v484_v53 = vsel %vm4450_vm2, %v3323_v44, %v483_v45  ;;  %v417_v61 = vld [vmem:[%s4439_s12 + $0x8c] sm:$0x8]  ;;  %v418_v62 = vld [vmem:[%s4439_s12 + $0x90] sm:$0xf]  ;;  %v419_v63 = vld [vmem:[%s4439_s12 + $0x94] sm:$0x7] }
  0x2a   : > { %3831 = vmatmul.mubr.bf16.vlgmr.msra.gmra.mrb[0].mxu1 %v3326_v54  ;;  %v3472_v52 = vcombine.low %v1615_v38, %v1618_v48  ;;  %v485_v54 = vrot.slane %v483_v45, 4  ;;  %v1621_v58 = vrot.slane %v1556_v55, 5  ;;  %v1624_v59 = vrot.slane %v1557_v56, 5  ;;  %v1559_v5 = vld [vmem:[%s4483_s15 + $0x98] sm:$0xf]  ;;  %v4253_v28 = vld [vmem:[%s5087_s3 + $0x170] sm:$0xff]  }
  0x2b   : > { %3843 = vmatpush3.bf16.msra.mxu1 %v4240_v42  ;;  %3943 = vmatmul.mubr.bf16.vlgmr.msra.gmra.mrb[0].mxu0 %v3470_v4  ;;  %v480_v42 = vsel %vm4450_vm2, %v478_v36, %v479_v26  ;;  %v3324_v3 = vrot.slane %v417_v61, 11  ;;  %v1558_v4 = vld [vmem:[%s4483_s15 + $0x94] sm:$0xe]  ;;  %v490_v6 = vrot.slane %v418_v62, 7  ;;  %v493_v7 = vrot.slane %v419_v63, 7  ;;  %v4255_v43 = vld [vmem:[%s5087_s3 + $0x178] sm:$0xff]  }
  0x2c   : > { %3955 = vmatpush3.bf16.msra.mxu0 %v4241_v50  ;;  %3844 = vmatprep.subr.bf16.mxu1 %v4242_v57  ;;  %v3328_v47 = vcombine.low %v477_v35, %v480_v42  ;;  %v1555_v50 = vld [vmem:[%s4483_s15 + $0x78] sm:$0xe]  ;;  %v487_v60 = vsel %vm4450_vm2, %v485_v54, %v486_v49  ;;  %v1623_v2 = vrot.slane %v1621_v58, 4  ;;  %v1560_v8 = vld [vmem:[%s4483_s15 + $0x9c] sm:$0x1]  ;;  %v3452_v9 = vrot.slane %v1558_v4, 9 }
  0x2d   : > { %3956 = vmatprep.subr.bf16.mxu0 %v4243_v1  ;;  %3834 = vmatprep.mubr.bf16.mxu1 %v3327_v19  ;;  %v3329_v0 = vcombine.low %v484_v53, %v487_v60  ;;  %v491_v17 = vsel %vm4450_vm2, %v3324_v3, %v490_v6  ;;  %v492_v18 = vrot.slane %v490_v6, 4  ;;  %v4252_v19 = vld [vmem:[%s5087_s3 + $0x70] sm:$0xff]   ;;  %v688_v22 = vld [vmem:[%s4439_s12 + $0x8] sm:$0xe]  ;;  %v689_v23 = vld [vmem:[%s4439_s12 + $0xc] sm:$0xf] }
  0x2e   : > { %3946 = vmatprep.mubr.bf16.mxu0 %v3471_v34  ;;  %v1625_v12 = vsel %vm4476_vm5, %v1623_v2, %v1624_v59  ;;  %v690_v25 = vld [vmem:[%s4439_s12 + $0x10] sm:$0x1]  ;;  %v3339_v26 = vrot.slane %v688_v22, 9  ;;  %v741_v27 = vrot.slane %v689_v23, 5  ;;  %v1829_v38 = vld [vmem:[%s4483_s15 + $0x14] sm:$0x7] }
  0x2f   : > { %3845 = vmatpush3.bf16.msra.mxu1 %v4242_v57  ;;  %v3451_v57 = vrot.slane %v1555_v50, 9  ;;  %v494_v24 = vsel %vm4450_vm2, %v492_v18, %v493_v7  ;;  %v744_v32 = vrot.slane %v690_v25, 5  ;;  %v1880_v42 = vrot.slane %v1829_v38, 7  ;;  %v691_v45 = vld [vmem:[%s4439_s12 + $0x24] sm:$0xe]  ;;  %v4261_v25 = vld [vmem:[%s5087_s3 + $0x190] sm:$0xff]  }
  0x30   : > { %3957 = vmatpush3.bf16.msra.mxu0 %v4243_v1  ;;  %3846 = vmatprep.subr.bf16.mxu1 %v4244_v10  ;;  %v3330_v29 = vcombine.low %v491_v17, %v494_v24  ;;  %v742_v35 = vsel %vm4476_vm5, %v3339_v26, %v741_v27  ;;  %v743_v36 = vrot.slane %v741_v27, 4  ;;  %v1831_v53 = vld [vmem:[%s4483_s15 + $0x2c] sm:$0xf]  ;;  %v1832_v56 = vld [vmem:[%s4483_s15 + $0x30] sm:$0x7]  ;;  %v4257_v3 = vld [vmem:[%s5087_s3 + $0x180] sm:$0xff]  }
  0x31   : > { %3958 = vmatprep.subr.bf16.mxu0 %v4245_v13  ;;  %v1622_v1 = vsel %vm4476_vm5, %v3451_v57, %v1621_v58  ;;  %v1884_v58 = vrot.slane %v1831_v53, 7  ;;  %v1887_v60 = vrot.slane %v1832_v56, 7  ;;  %v1833_v17 = vld [vmem:[%s4483_s15 + $0x44] sm:$0x8]  ;;  %v1834_v18 = vld [vmem:[%s4483_s15 + $0x48] sm:$0xf] }
  0x32   : > { %3835 = vmatmul.mubr.bf16.gmra.mrb[4].mxu1 %v3328_v47  ;;  %v3473_v16 = vcombine.low %v1622_v1, %v1625_v12  ;;  %v745_v44 = vsel %vm4476_vm5, %v743_v36, %v744_v32  ;;  %v693_v47 = vld [vmem:[%s4439_s12 + $0x2c] sm:$0x1]  ;;  %v3485_v23 = vrot.slane %v1833_v17, 11  ;;  %v1891_v24 = vrot.slane %v1834_v18, 7  ;;  %v698_v32 = vld [vmem:[%s4439_s12 + $0x60] sm:$0xf] }
  0x33   : > { %3847 = vmatpush3.bf16.msra.mxu1 %v4244_v10  ;;  %3947 = vmatmul.mubr.bf16.gmra.mrb[4].mxu0 %v3472_v52  ;;  %v1628_v10 = vrot.slane %v1559_v5, 5  ;;  %v3361_v48 = vcombine.low %v742_v35, %v745_v44  ;;  %v1830_v52 = vld [vmem:[%s4483_s15 + $0x28] sm:$0x8]  ;;  %v751_v55 = vrot.slane %v693_v47, 5  ;;  %v1886_v2 = vrot.slane %v1884_v58, 4 }
  0x34   : > { %3959 = vmatpush3.bf16.msra.mxu0 %v4245_v13  ;;  %3848 = vmatprep.subr.bf16.mxu1 %v4246_v33  ;;  %v1631_v13 = vrot.slane %v1560_v8, 5  ;;  %v3484_v57 = vrot.slane %v1830_v52, 11  ;;  %v4258_v8 = vld [vmem:[%s5087_s3 + $0x88] sm:$0xff]   ;;  %v699_v35 = vld [vmem:[%s4439_s12 + $0x64] sm:$0x1] }
  0x35   : > { %3960 = vmatprep.subr.bf16.mxu0 %v4247_v37  ;;  %3838 = vmatprep.mubr.bf16.mxu1 %v3329_v0  ;;  %v1629_v20 = vsel %vm4476_vm5, %v3452_v9, %v1628_v10  ;;  %v1630_v21 = vrot.slane %v1628_v10, 4  ;;  %v4256_v0 = vld [vmem:[%s5087_s3 + $0x80] sm:$0xff]   ;;  %v1888_v6 = vsel %vm4450_vm2, %v1886_v2, %v1887_v60  ;;  %v4259_v12 = vld [vmem:[%s5087_s3 + $0x188] sm:$0xff]  }
  0x36   : > { %3950 = vmatprep.mubr.bf16.mxu0 %v3473_v16  ;;  %v1885_v1 = vsel %vm4450_vm2, %v3484_v57, %v1884_v58  ;;  %v694_v9 = vld [vmem:[%s4439_s12 + $0x40] sm:$0xe]  ;;  %v695_v10 = vld [vmem:[%s4439_s12 + $0x44] sm:$0xf]  ;;  %v1835_v22 = vld [vmem:[%s4483_s15 + $0x4c] sm:$0x7] }
  0x37   : > { %3849 = vmatpush3.bf16.msra.mxu1 %v4246_v33  ;;  %v1632_v30 = vsel %vm4476_vm5, %v1630_v21, %v1631_v13  ;;  %v1827_v33 = vld [vmem:[%s4483_s15 + $0xc] sm:$0x8]  ;;  %v3506_v7 = vcombine.low %v1885_v1, %v1888_v6  ;;  %v3341_v13 = vrot.slane %v694_v9, 9  ;;  %v1894_v26 = vrot.slane %v1835_v22, 7  ;;  %v1836_v38 = vld [vmem:[%s4483_s15 + $0x60] sm:$0x8] }
  0x38   : > { %3961 = vmatpush3.bf16.msra.mxu0 %v4247_v37  ;;  %3850 = vmatprep.subr.bf16.mxu1 %v4248_v46  ;;  %v3474_v34 = vcombine.low %v1629_v20, %v1632_v30  ;;  %v1828_v37 = vld [vmem:[%s4483_s15 + $0x10] sm:$0xf]  ;;  %v3483_v39 = vrot.slane %v1827_v33, 11  ;;  %v697_v30 = vld [vmem:[%s4439_s12 + $0x5c] sm:$0xe]  ;;  %v3486_v44 = vrot.slane %v1836_v38, 11 }
  0x39   : > { %3962 = vmatprep.subr.bf16.mxu0 %v4249_v51  ;;  %v1877_v41 = vrot.slane %v1828_v37, 7  ;;  %v4262_v33 = vld [vmem:[%s5087_s3 + $0x98] sm:$0xff]   ;;  %v3342_v36 = vrot.slane %v697_v30, 9  ;;  %v762_v37 = vrot.slane %v698_v32, 5  ;;  %v702_v57 = vld [vmem:[%s4439_s12 + $0x80] sm:$0x1] }
  0x3a   : > { %3839 = vmatmul.mubr.bf16.gmra.mrb[8].mxu1 %v3330_v29  ;;  %v1893_v29 = vrot.slane %v1891_v24, 4  ;;  %v4265_v60 = vld [vmem:[%s5087_s3 + $0x1a0] sm:$0xff]   ;;  %v4266_v6 = vld [vmem:[%s5087_s3 + $0xa8] sm:$0xff]   ;;  %v4269_v30 = vld [vmem:[%s5087_s3 + $0x1b0] sm:$0xff]  }
  0x3b   : > { %3851 = vmatpush3.bf16.msra.mxu1 %v4248_v46  ;;  %3951 = vmatmul.mubr.bf16.gmra.mrb[8].mxu0 %v3474_v34  ;;  %v692_v46 = vld [vmem:[%s4439_s12 + $0x28] sm:$0xf]  ;;  %v1878_v49 = vsel %vm4450_vm2, %v3483_v39, %v1877_v41  ;;  %v1879_v50 = vrot.slane %v1877_v41, 4  ;;  %v4263_v39 = vld [vmem:[%s5087_s3 + $0x198] sm:$0xff]   ;;  %v765_v41 = vrot.slane %v699_v35, 5  ;;  %v764_v47 = vrot.slane %v762_v37, 4 }
  0x3c   : > { %3963 = vmatpush3.bf16.msra.mxu0 %v4249_v51  ;;  %3852 = vmatprep.subr.bf16.mxu1 %v4250_v11  ;;  %v3340_v51 = vrot.slane %v691_v45, 9  ;;  %v748_v54 = vrot.slane %v692_v46, 5  ;;  %v763_v46 = vsel %vm4476_vm5, %v3342_v36, %v762_v37  ;;  %v4267_v9 = vld [vmem:[%s5087_s3 + $0x1a8] sm:$0xff]   ;;  %v976_v37 = vld [vmem:[%s4439_s12 + $0x10] sm:$0xf] }
  0x3d   : > { %3964 = vmatprep.subr.bf16.mxu0 %v4251_v14  ;;  %3858 = vmatprep.mubr.bf16.mxu1 %v3361_v48  ;;  %v1881_v59 = vsel %vm4450_vm2, %v1879_v50, %v1880_v42  ;;  %v1837_v42 = vld [vmem:[%s4483_s15 + $0x64] sm:$0xf]  ;;  %v975_v36 = vld [vmem:[%s4439_s12 + $0xc] sm:$0x8] }
  0x3e   : > { %v3505_v61 = vcombine.low %v1878_v49, %v1881_v59  ;;  %v749_v62 = vsel %vm4476_vm5, %v3340_v51, %v748_v54  ;;  %v750_v63 = vrot.slane %v748_v54, 4  ;;  %v1898_v48 = vrot.slane %v1837_v42, 7  ;;  %v4264_v50 = vld [vmem:[%s5087_s3 + $0xa0] sm:$0xff]   ;;  %v700_v54 = vld [vmem:[%s4439_s12 + $0x78] sm:$0xe] }
  0x3f   : > { %3853 = vmatpush3.bf16.msra.mxu1 %v4250_v11  ;;  %v696_v11 = vld [vmem:[%s4439_s12 + $0x48] sm:$0x1]  ;;  %v766_v51 = vsel %vm4476_vm5, %v764_v47, %v765_v41  ;;  %v3343_v58 = vrot.slane %v700_v54, 9  ;;  %v1025_v41 = vrot.slane %v976_v37, 7 }
  0x40   : > { %3965 = vmatpush3.bf16.msra.mxu0 %v4251_v14  ;;  %3854 = vmatprep.subr.bf16.mxu1 %v4252_v19  ;;  %v752_v4 = vsel %vm4476_vm5, %v750_v63, %v751_v55  ;;  %v755_v14 = vrot.slane %v695_v10, 5  ;;  %v758_v16 = vrot.slane %v696_v11, 5  ;;  %v1899_v52 = vsel %vm4450_vm2, %v3486_v44, %v1898_v48  ;;  %v701_v55 = vld [vmem:[%s4439_s12 + $0x7c] sm:$0xf]  ;;  %v703_v11 = vld [vmem:[%s4439_s12 + $0x94] sm:$0xe] }
  0x41   : > { %3966 = vmatprep.subr.bf16.mxu0 %v4253_v28  ;;  %3970 = vmatprep.mubr.bf16.mxu0 %v3505_v61  ;;  %v3362_v5 = vcombine.low %v749_v62, %v752_v4  ;;  %v1900_v53 = vrot.slane %v1898_v48, 4  ;;  %v3364_v56 = vcombine.low %v763_v46, %v766_v51  ;;  %v769_v59 = vrot.slane %v701_v55, 5  ;;  %v1839_v63 = vld [vmem:[%s4483_s15 + $0x7c] sm:$0x8]  ;;  %v1841_v4 = vld [vmem:[%s4483_s15 + $0x84] sm:$0x7] }
  0x42   : > { %v756_v20 = vsel %vm4476_vm5, %v3341_v13, %v755_v14  ;;  %v757_v21 = vrot.slane %v755_v14, 4  ;;  %v772_v62 = vrot.slane %v702_v57, 5  ;;  %v705_v13 = vld [vmem:[%s4439_s12 + $0x9c] sm:$0x1]  ;;  %v3344_v18 = vrot.slane %v703_v11, 9 }
  0x43   : > { %3855 = vmatpush3.bf16.msra.mxu1 %v4252_v19  ;;  %v4260_v19 = vld [vmem:[%s5087_s3 + $0x90] sm:$0xff]   ;;  %v770_v1 = vsel %vm4476_vm5, %v3343_v58, %v769_v59  ;;  %v771_v2 = vrot.slane %v769_v59, 4  ;;  %v779_v22 = vrot.slane %v705_v13, 5  ;;  %v1027_v47 = vrot.slane %v1025_v41, 4  ;;  %v978_v48 = vld [vmem:[%s4439_s12 + $0x28] sm:$0x8] }
  0x44   : > { %3967 = vmatpush3.bf16.msra.mxu0 %v4253_v28  ;;  %3856 = vmatprep.subr.bf16.mxu1 %v4254_v40  ;;  %v759_v27 = vsel %vm4476_vm5, %v757_v21, %v758_v16  ;;  %v1892_v28 = vsel %vm4450_vm2, %v3485_v23, %v1891_v24  ;;  %v1844_v23 = vld [vmem:[%s4483_s15 + $0xa0] sm:$0x7]  ;;  %v980_v51 = vld [vmem:[%s4439_s12 + $0x30] sm:$0x7]  ;;  %v2111_v59 = vld [vmem:[%s4765_s10] sm:$0x8] }
  0x45   : > { %3968 = vmatprep.subr.bf16.mxu0 %v4255_v43  ;;  %v3363_v34 = vcombine.low %v756_v20, %v759_v27  ;;  %v773_v10 = vsel %vm4476_vm5, %v771_v2, %v772_v62  ;;  %v1843_v20 = vld [vmem:[%s4483_s15 + $0x9c] sm:$0xf]  ;;  %v4272_v58 = vld [vmem:[%s5087_s3 + $0xc0] sm:$0xff]  }
  0x46   : > { %v3365_v14 = vcombine.low %v770_v1, %v773_v10 }
  0x47   : > { %3857 = vmatpush3.bf16.msra.mxu1 %v4254_v40  ;;  %v1895_v40 = vsel %vm4450_vm2, %v1893_v29, %v1894_v26  ;;  %v4268_v26 = vld [vmem:[%s5087_s3 + $0xb0] sm:$0xff]  }
  0x48   : > { %3969 = vmatpush3.bf16.msra.mxu0 %v4255_v43  ;;  %3870 = vmatprep.subr.bf16.mxu1 %v4256_v0  ;;  %v1838_v43 = vld [vmem:[%s4483_s15 + $0x68] sm:$0x7]  ;;  %v3507_v45 = vcombine.low %v1892_v28, %v1895_v40  ;;  %v1915_v28 = vrot.slane %v1844_v23, 7  ;;  %v3375_v40 = vrot.slane %v975_v36, 11  ;;  %v983_v23 = vld [vmem:[%s4439_s12 + $0x4c] sm:$0x7] }
  0x49   : > { %3982 = vmatprep.subr.bf16.mxu0 %v4257_v3  ;;  %v1901_v49 = vrot.slane %v1838_v43, 7 }
  0x4a   : > { %3859 = vmatmul.mubr.bf16.vlgmr.msra.gmra.mrb[0].mxu1 %v3362_v5  ;;  %v3487_v5 = vrot.slane %v1839_v63, 11  ;;  %v1026_v46 = vsel %vm4450_vm2, %v3375_v40, %v1025_v41  ;;  %v3519_v63 = vrot.slane %v2111_v59, 11  ;;  %v4277_v40 = vld [vmem:[%s5087_s3 + $0x1d0] sm:$0xff]   ;;  %v985_v41 = vld [vmem:[%s4439_s12 + $0x64] sm:$0xf] }
  0x4b   : > { %3871 = vmatpush3.bf16.msra.mxu1 %v4256_v0  ;;  %3971 = vmatmul.mubr.bf16.vlgmr.msra.gmra.mrb[0].mxu0 %v3506_v7  ;;  %v1902_v61 = vsel %vm4450_vm2, %v1900_v53, %v1901_v49  ;;  %v4270_v49 = vld [vmem:[%s5087_s3 + $0xb8] sm:$0xff]  }
  0x4c   : > { %3983 = vmatpush3.bf16.msra.mxu0 %v4257_v3  ;;  %3872 = vmatprep.subr.bf16.mxu1 %v4258_v8  ;;  %v3508_v0 = vcombine.low %v1899_v52, %v1902_v61  ;;  %v1840_v3 = vld [vmem:[%s4483_s15 + $0x80] sm:$0xf]  ;;  %v3376_v52 = vrot.slane %v978_v48, 11  ;;  %v4271_v53 = vld [vmem:[%s5087_s3 + $0x1b8] sm:$0xff]   ;;  %v2113_v61 = vld [vmem:[%s4765_s10 + $0x8] sm:$0x7] }
  0x4d   : > { %3984 = vmatprep.subr.bf16.mxu0 %v4259_v12  ;;  %3862 = vmatprep.mubr.bf16.mxu1 %v3363_v34  ;;  %v1905_v7 = vrot.slane %v1840_v3, 7  ;;  %v2164_v1 = vrot.slane %v2113_v61, 7  ;;  %v2114_v3 = vld [vmem:[%s4765_s10 + $0x1c] sm:$0x8] }
  0x4e   : > { %3974 = vmatprep.mubr.bf16.mxu0 %v3507_v45  ;;  %v4278_v48 = vld [vmem:[%s5087_s3 + $0xd8] sm:$0xff]  }
  0x4f   : > { %3873 = vmatpush3.bf16.msra.mxu1 %v4258_v8  ;;  %v1908_v8 = vrot.slane %v1841_v4, 7  ;;  %v1906_v16 = vsel %vm4450_vm2, %v3487_v5, %v1905_v7  ;;  %v1907_v17 = vrot.slane %v1905_v7, 4  ;;  %v4273_v4 = vld [vmem:[%s5087_s3 + $0x1c0] sm:$0xff]   ;;  %v3520_v7 = vrot.slane %v2114_v3, 11  ;;  %v987_v3 = vld [vmem:[%s4439_s12 + $0x7c] sm:$0x8] }
  0x50   : > { %3985 = vmatpush3.bf16.msra.mxu0 %v4259_v12  ;;  %3874 = vmatprep.subr.bf16.mxu1 %v4260_v19  ;;  %v704_v12 = vld [vmem:[%s4439_s12 + $0x98] sm:$0xf]  ;;  %v2115_v5 = vld [vmem:[%s4765_s10 + $0x20] sm:$0xf] }
  0x51   : > { %3986 = vmatprep.subr.bf16.mxu0 %v4261_v25  ;;  %v776_v21 = vrot.slane %v704_v12, 5  ;;  %v1909_v27 = vsel %vm4450_vm2, %v1907_v17, %v1908_v8  ;;  %v2168_v11 = vrot.slane %v2115_v5, 7  ;;  %v4281_v5 = vld [vmem:[%s5087_s3 + $0x1e0] sm:$0xff]  }
  0x52   : > { %3863 = vmatmul.mubr.bf16.gmra.mrb[4].mxu1 %v3364_v56  ;;  %v3509_v29 = vcombine.low %v1906_v16, %v1909_v27  ;;  %v1035_v56 = vrot.slane %v980_v51, 7  ;;  %v2120_v51 = vld [vmem:[%s4765_s10 + $0x54] sm:$0x8] }
  0x53   : > { %3875 = vmatpush3.bf16.msra.mxu1 %v4260_v19  ;;  %3975 = vmatmul.mubr.bf16.gmra.mrb[4].mxu0 %v3508_v0  ;;  %v1842_v19 = vld [vmem:[%s4483_s15 + $0x98] sm:$0x8]  ;;  %v777_v32 = vsel %vm4476_vm5, %v3344_v18, %v776_v21  ;;  %v2169_v16 = vsel %vm4450_vm2, %v3520_v7, %v2168_v11  ;;  %v2170_v17 = vrot.slane %v2168_v11, 4  ;;  %v4274_v18 = vld [vmem:[%s5087_s3 + $0xc8] sm:$0xff]   ;;  %v3379_v7 = vrot.slane %v987_v3, 11 }
  0x54   : > { %3987 = vmatpush3.bf16.msra.mxu0 %v4261_v25  ;;  %3876 = vmatprep.subr.bf16.mxu1 %v4262_v33  ;;  %v3488_v24 = vrot.slane %v1842_v19, 11  ;;  %v1912_v25 = vrot.slane %v1843_v20, 7  ;;  %v1262_v3 = vld [vmem:[%s4483_s15 + $0x1c] sm:$0x8] }
  0x55   : > { %3988 = vmatprep.subr.bf16.mxu0 %v4263_v39  ;;  %3866 = vmatprep.mubr.bf16.mxu1 %v3365_v14 }
  0x56   : > { %v1913_v34 = vsel %vm4450_vm2, %v3488_v24, %v1912_v25  ;;  %v1914_v35 = vrot.slane %v1912_v25, 4  ;;  %3978 = vmatprep.mubr.bf16.mxu0 %v3509_v29  ;;  %v4275_v25 = vld [vmem:[%s5087_s3 + $0x1c8] sm:$0xff]   ;;  %v2117_v29 = vld [vmem:[%s4765_s10 + $0x38] sm:$0x8] }
  0x57   : > { %3877 = vmatpush3.bf16.msra.mxu1 %v4262_v33  ;;  %v778_v33 = vrot.slane %v776_v21, 4  ;;  %v981_v21 = vld [vmem:[%s4439_s12 + $0x44] sm:$0x8] }
  0x58   : > { %3989 = vmatpush3.bf16.msra.mxu0 %v4263_v39  ;;  %3878 = vmatprep.subr.bf16.mxu1 %v4264_v50  ;;  %v977_v39 = vld [vmem:[%s4439_s12 + $0x14] sm:$0x7]  ;;  %v1916_v43 = vsel %vm4450_vm2, %v1914_v35, %v1915_v28  ;;  %v1042_v28 = vrot.slane %v983_v23, 7 }
  0x59   : > { %3990 = vmatprep.subr.bf16.mxu0 %v4265_v60  ;;  %v780_v38 = vsel %vm4476_vm5, %v778_v33, %v779_v22  ;;  %v1028_v44 = vrot.slane %v977_v39, 7  ;;  %v3510_v45 = vcombine.low %v1913_v34, %v1916_v43  ;;  %v982_v22 = vld [vmem:[%s4439_s12 + $0x48] sm:$0xf]  ;;  %v2119_v33 = vld [vmem:[%s4765_s10 + $0x40] sm:$0x7]  ;;  %v3521_v34 = vrot.slane %v2117_v29, 11 }
  0x5a   : > { %v3366_v42 = vcombine.low %v777_v32, %v780_v38  ;;  %v1039_v27 = vrot.slane %v982_v22, 7  ;;  %v2118_v32 = vld [vmem:[%s4765_s10 + $0x3c] sm:$0xf]  ;;  %v2178_v38 = vrot.slane %v2119_v33, 7  ;;  %v984_v39 = vld [vmem:[%s4439_s12 + $0x60] sm:$0x8] }
  0x5b   : > { %3879 = vmatpush3.bf16.msra.mxu1 %v4264_v50  ;;  %v979_v50 = vld [vmem:[%s4439_s12 + $0x2c] sm:$0xf]  ;;  %v1029_v54 = vsel %vm4450_vm2, %v1027_v47, %v1028_v44  ;;  %3979 = vmatmul.mubr.bf16.gmra.mrb[8].mxu0 %v3510_v45  ;;  %v2175_v37 = vrot.slane %v2118_v32, 7  ;;  %v3378_v43 = vrot.slane %v984_v39, 11  ;;  %v1046_v47 = vrot.slane %v985_v41, 7 }
  0x5c   : > { %3991 = vmatpush3.bf16.msra.mxu0 %v4265_v60  ;;  %3880 = vmatprep.subr.bf16.mxu1 %v4266_v6  ;;  %v1032_v55 = vrot.slane %v979_v50, 7  ;;  %v3397_v57 = vcombine.low %v1026_v46, %v1029_v54  ;;  %v2112_v60 = vld [vmem:[%s4765_s10 + $0x4] sm:$0xf]  ;;  %v1041_v36 = vrot.slane %v1039_v27, 4  ;;  %v4282_v22 = vld [vmem:[%s5087_s3 + $0xe8] sm:$0xff]  }
  0x5d   : > { %3992 = vmatprep.subr.bf16.mxu0 %v4267_v9  ;;  %3867 = vmatmul.mubr.bf16.gmra.mrb[8].mxu1 %v3366_v42  ;;  %v2161_v0 = vrot.slane %v2112_v60, 7  ;;  %v986_v42 = vld [vmem:[%s4439_s12 + $0x68] sm:$0x7]  ;;  %v2176_v45 = vsel %vm4450_vm2, %v3521_v34, %v2175_v37  ;;  %v2177_v46 = vrot.slane %v2175_v37, 4  ;;  %v2127_v37 = vld [vmem:[%s4765_s10 + $0x90] sm:$0xf] }
  0x5e   : > { %v1033_v62 = vsel %vm4450_vm2, %v3376_v52, %v1032_v55  ;;  %v1034_v2 = vrot.slane %v1032_v55, 4  ;;  %3886 = vmatprep.mubr.bf16.mxu1 %v3397_v57  ;;  %v1043_v44 = vsel %vm4450_vm2, %v1041_v36, %v1042_v28  ;;  %v1049_v50 = vrot.slane %v986_v42, 7  ;;  %v2121_v52 = vld [vmem:[%s4765_s10 + $0x58] sm:$0xf]  ;;  %v2122_v57 = vld [vmem:[%s4765_s10 + $0x5c] sm:$0x7] }
  0x5f   : > { %3881 = vmatpush3.bf16.msra.mxu1 %v4266_v6  ;;  %v2116_v6 = vld [vmem:[%s4765_s10 + $0x24] sm:$0x7]  ;;  %v2162_v8 = vsel %vm4450_vm2, %v3519_v63, %v2161_v0  ;;  %v2179_v54 = vsel %vm4450_vm2, %v2177_v46, %v2178_v38  ;;  %v1047_v55 = vsel %vm4450_vm2, %v3378_v43, %v1046_v47  ;;  %v2182_v60 = vrot.slane %v2121_v52, 7  ;;  %v4283_v32 = vld [vmem:[%s5087_s3 + $0x1e8] sm:$0xff]   ;;  %v2128_v39 = vld [vmem:[%s4765_s10 + $0x94] sm:$0x7] }
  0x60   : > { %3993 = vmatpush3.bf16.msra.mxu0 %v4267_v9  ;;  %3882 = vmatprep.subr.bf16.mxu1 %v4268_v26  ;;  %v2163_v9 = vrot.slane %v2161_v0, 4  ;;  %v1036_v10 = vsel %vm4450_vm2, %v1034_v2, %v1035_v56  ;;  %v2171_v13 = vrot.slane %v2116_v6, 7  ;;  %v1048_v56 = vrot.slane %v1046_v47, 4  ;;  %v4280_v0 = vld [vmem:[%s5087_s3 + $0xe0] sm:$0xff]   ;;  %v2126_v36 = vld [vmem:[%s4765_s10 + $0x8c] sm:$0x8] }
  0x61   : > { %3994 = vmatprep.subr.bf16.mxu0 %v4269_v30  ;;  %v3398_v12 = vcombine.low %v1033_v62, %v1036_v10  ;;  %v3543_v59 = vcombine.low %v2176_v45, %v2179_v54  ;;  %v2185_v61 = vrot.slane %v2122_v57, 7  ;;  %v2184_v2 = vrot.slane %v2182_v60, 4  ;;  %v989_v6 = vld [vmem:[%s4439_s12 + $0x84] sm:$0x7] }
  0x62   : > { %v2165_v14 = vsel %vm4450_vm2, %v2163_v9, %v2164_v1  ;;  %v2172_v20 = vsel %vm4450_vm2, %v2170_v17, %v2171_v13  ;;  %v1050_v62 = vsel %vm4450_vm2, %v1048_v56, %v1049_v50  ;;  %v2123_v9 = vld [vmem:[%s4765_s10 + $0x70] sm:$0x8]  ;;  %v1056_v11 = vrot.slane %v989_v6, 7  ;;  %v2125_v13 = vld [vmem:[%s4765_s10 + $0x78] sm:$0x7] }
  0x63   : > { %3883 = vmatpush3.bf16.msra.mxu1 %v4268_v26  ;;  %v3541_v19 = vcombine.low %v2162_v8, %v2165_v14  ;;  %v3542_v24 = vcombine.low %v2169_v16, %v2172_v20  ;;  %v3377_v26 = vrot.slane %v981_v21, 11  ;;  %v3400_v63 = vcombine.low %v1047_v55, %v1050_v62  ;;  %v990_v20 = vld [vmem:[%s4439_s12 + $0x98] sm:$0x8]  ;;  %v991_v21 = vld [vmem:[%s4439_s12 + $0x9c] sm:$0xf] }
  0x64   : > { %3995 = vmatpush3.bf16.msra.mxu0 %v4269_v30  ;;  %3884 = vmatprep.subr.bf16.mxu1 %v4270_v49  ;;  %v4276_v30 = vld [vmem:[%s5087_s3 + $0xd0] sm:$0xff]   ;;  %v2186_v10 = vsel %vm4450_vm2, %v2184_v2, %v2185_v61  ;;  %v3523_v14 = vrot.slane %v2123_v9, 11  ;;  %v2192_v23 = vrot.slane %v2125_v13, 7  ;;  %v2196_v41 = vrot.slane %v2127_v37, 7  ;;  %v1259_v50 = vld [vmem:[%s4483_s15] sm:$0x8] }
  0x65   : > { %3996 = vmatprep.subr.bf16.mxu0 %v4271_v53  ;;  %3998 = vmatprep.mubr.bf16.mxu0 %v3541_v19  ;;  %v1040_v35 = vsel %vm4450_vm2, %v3377_v26, %v1039_v27  ;;  %v1060_v26 = vrot.slane %v991_v21, 7  ;;  %v2199_v45 = vrot.slane %v2128_v39, 7  ;;  %v3411_v54 = vrot.slane %v1259_v50, 11  ;;  %v2395_v56 = vld [vmem:[%s4765_s10 + $0x8] sm:$0xe]  ;;  %v4286_v62 = vld [vmem:[%s5087_s3 + $0xf8] sm:$0xff]  }
  0x66   : > { %v3555_v61 = vrot.slane %v2395_v56, 9  ;;  %v1264_v6 = vld [vmem:[%s4483_s15 + $0x24] sm:$0x7]  ;;  %v2399_v13 = vld [vmem:[%s4765_s10 + $0x28] sm:$0xf] }
  0x67   : > { %3885 = vmatpush3.bf16.msra.mxu1 %v4270_v49  ;;  %v3399_v49 = vcombine.low %v1040_v35, %v1043_v44  ;;  %v1062_v35 = vrot.slane %v1060_v26, 4  ;;  %v4284_v44 = vld [vmem:[%s5087_s3 + $0xf0] sm:$0xff]   ;;  %v2401_v37 = vld [vmem:[%s4765_s10 + $0x40] sm:$0xe] }
  0x68   : > { %3997 = vmatpush3.bf16.msra.mxu0 %v4271_v53  ;;  %3898 = vmatprep.subr.bf16.mxu1 %v4272_v58  ;;  %v4279_v53 = vld [vmem:[%s5087_s3 + $0x1d8] sm:$0xff]  }
  0x69   : > { %4010 = vmatprep.subr.bf16.mxu0 %v4273_v4 }
  0x6a   : > { %3887 = vmatmul.mubr.bf16.vlgmr.msra.gmra.mrb[0].mxu1 %v3398_v12  ;;  %v2124_v12 = vld [vmem:[%s4765_s10 + $0x74] sm:$0xf] }
  0x6b   : > { %3899 = vmatpush3.bf16.msra.mxu1 %v4272_v58  ;;  %3999 = vmatmul.mubr.bf16.vlgmr.msra.gmra.mrb[0].mxu0 %v3542_v24  ;;  %v3522_v58 = vrot.slane %v2120_v51, 11  ;;  %v2189_v19 = vrot.slane %v2124_v12, 7  ;;  %v992_v24 = vld [vmem:[%s4439_s12 + $0xa0] sm:$0x7]  ;;  %v1260_v51 = vld [vmem:[%s4483_s15 + $0x4] sm:$0xf] }
  0x6c   : > { %3900 = vmatprep.subr.bf16.mxu1 %v4274_v18  ;;  %4011 = vmatpush3.bf16.msra.mxu0 %v4273_v4  ;;  %v988_v4 = vld [vmem:[%s4439_s12 + $0x80] sm:$0xf]  ;;  %v1309_v55 = vrot.slane %v1260_v51, 7  ;;  %v2398_v12 = vld [vmem:[%s4765_s10 + $0x24] sm:$0xe] }
  0x6d   : > { %4012 = vmatprep.subr.bf16.mxu0 %v4275_v25  ;;  %3890 = vmatprep.mubr.bf16.mxu1 %v3399_v49  ;;  %v2183_v1 = vsel %vm4450_vm2, %v3522_v58, %v2182_v60  ;;  %v1053_v8 = vrot.slane %v988_v4, 7  ;;  %v2190_v28 = vsel %vm4450_vm2, %v3523_v14, %v2189_v19  ;;  %v2191_v29 = vrot.slane %v2189_v19, 4  ;;  %v4285_v49 = vld [vmem:[%s5087_s3 + $0x1f0] sm:$0xff]   ;;  %v4287_v4 = vld [vmem:[%s5087_s3 + $0x1f8] sm:$0xff]  }
  0x6e   : > { %4002 = vmatprep.mubr.bf16.mxu0 %v3543_v59  ;;  %v3544_v16 = vcombine.low %v2183_v1, %v2186_v10  ;;  %v2396_v59 = vld [vmem:[%s4765_s10 + $0xc] sm:$0xf]  ;;  %v2397_v60 = vld [vmem:[%s4765_s10 + $0x10] sm:$0x1]  ;;  %v2452_v19 = vrot.slane %v2399_v13, 5 }
  0x6f   : > { %3901 = vmatpush3.bf16.msra.mxu1 %v4274_v18  ;;  %v1054_v17 = vsel %vm4450_vm2, %v3379_v7, %v1053_v8  ;;  %v1055_v18 = vrot.slane %v1053_v8, 4  ;;  %v2193_v38 = vsel %vm4450_vm2, %v2191_v29, %v2192_v23  ;;  %v2445_v1 = vrot.slane %v2396_v59, 5  ;;  %v1265_v29 = vld [vmem:[%s4483_s15 + $0x38] sm:$0x8] }
  0x70   : > { %3902 = vmatprep.subr.bf16.mxu1 %v4276_v30  ;;  %4013 = vmatpush3.bf16.msra.mxu0 %v4275_v25  ;;  %v3380_v25 = vrot.slane %v990_v20, 11  ;;  %v3545_v42 = vcombine.low %v2190_v28, %v2193_v38  ;;  %v2448_v2 = vrot.slane %v2397_v60, 5  ;;  %v3412_v7 = vrot.slane %v1262_v3, 11  ;;  %v4288_v20 = vld [vmem:[%s5087_s3 + $0x200] sm:$0xff]  }
  0x71   : > { %4014 = vmatprep.subr.bf16.mxu0 %v4277_v40  ;;  %v1057_v27 = vsel %vm4450_vm2, %v1055_v18, %v1056_v11  ;;  %v2446_v9 = vsel %vm4476_vm5, %v3555_v61, %v2445_v1  ;;  %v2447_v10 = vrot.slane %v2445_v1, 4  ;;  %v3556_v18 = vrot.slane %v2398_v12, 9  ;;  %v2402_v38 = vld [vmem:[%s4765_s10 + $0x44] sm:$0xf]  ;;  %v1273_v12 = vld [vmem:[%s4483_s15 + $0x78] sm:$0x7] }
  0x72   : > { %3891 = vmatmul.mubr.bf16.gmra.mrb[4].mxu1 %v3400_v63  ;;  %v3401_v33 = vcombine.low %v1054_v17, %v1057_v27  ;;  %v1061_v34 = vsel %vm4450_vm2, %v3380_v25, %v1060_v26  ;;  %v1310_v63 = vsel %vm4450_vm2, %v3411_v54, %v1309_v55  ;;  %v2400_v17 = vld [vmem:[%s4765_s10 + $0x2c] sm:$0x1]  ;;  %v2454_v27 = vrot.slane %v2452_v19, 4 }
  0x73   : > { %3903 = vmatpush3.bf16.msra.mxu1 %v4276_v30  ;;  %4003 = vmatmul.mubr.bf16.gmra.mrb[4].mxu0 %v3544_v16  ;;  %v1063_v30 = vrot.slane %v992_v24, 7  ;;  %v1319_v16 = vrot.slane %v1264_v6, 7  ;;  %v2449_v21 = vsel %vm4476_vm5, %v2447_v10, %v2448_v2  ;;  %v2455_v24 = vrot.slane %v2400_v17, 5  ;;  %v4291_v6 = vld [vmem:[%s5087_s3 + $0x218] sm:$0xff]  }
  0x74   : > { %3904 = vmatprep.subr.bf16.mxu1 %v4278_v48  ;;  %4015 = vmatpush3.bf16.msra.mxu0 %v4277_v40  ;;  %v3524_v40 = vrot.slane %v2126_v36, 11  ;;  %v3577_v25 = vcombine.low %v2446_v9, %v2449_v21  ;;  %v2453_v26 = vsel %vm4476_vm5, %v3556_v18, %v2452_v19  ;;  %v2407_v17 = vld [vmem:[%s4765_s10 + $0x78] sm:$0xe]  ;;  %v2408_v18 = vld [vmem:[%s4765_s10 + $0x7c] sm:$0xf] }
  0x75   : > { %4016 = vmatprep.subr.bf16.mxu0 %v4279_v53  ;;  %3894 = vmatprep.mubr.bf16.mxu1 %v3401_v33  ;;  %v1064_v43 = vsel %vm4450_vm2, %v1062_v35, %v1063_v30  ;;  %v1266_v30 = vld [vmem:[%s4483_s15 + $0x3c] sm:$0xf]  ;;  %v3413_v35 = vrot.slane %v1265_v29, 11  ;;  %v3559_v21 = vrot.slane %v2407_v17, 9  ;;  %v1276_v29 = vld [vmem:[%s4483_s15 + $0x94] sm:$0x7] }
  0x76   : > { %v3402_v46 = vcombine.low %v1061_v34, %v1064_v43  ;;  %v2197_v47 = vsel %vm4450_vm2, %v3524_v40, %v2196_v41  ;;  %4006 = vmatprep.mubr.bf16.mxu0 %v3545_v42  ;;  %v2456_v34 = vsel %vm4476_vm5, %v2454_v27, %v2455_v24  ;;  %v1323_v36 = vrot.slane %v1266_v30, 7  ;;  %v4289_v40 = vld [vmem:[%s5087_s3 + $0x208] sm:$0xff]  }
  0x77   : > { %3905 = vmatpush3.bf16.msra.mxu1 %v4278_v48  ;;  %v2198_v48 = vrot.slane %v2196_v41, 4  ;;  %v3578_v39 = vcombine.low %v2453_v26, %v2456_v34  ;;  %v2403_v42 = vld [vmem:[%s4765_s10 + $0x48] sm:$0x1]  ;;  %v3557_v43 = vrot.slane %v2401_v37, 9 }
  0x78   : > { %3906 = vmatprep.subr.bf16.mxu1 %v4280_v0  ;;  %4017 = vmatpush3.bf16.msra.mxu0 %v4279_v53  ;;  %v1261_v53 = vld [vmem:[%s4483_s15 + $0x8] sm:$0x7] }
  0x79   : > { %4018 = vmatprep.subr.bf16.mxu0 %v4281_v5  ;;  %v2200_v52 = vsel %vm4450_vm2, %v2198_v48, %v2199_v45  ;;  %v1312_v58 = vrot.slane %v1261_v53, 7  ;;  %v1324_v45 = vsel %vm4450_vm2, %v3413_v35, %v1323_v36  ;;  %v1268_v48 = vld [vmem:[%s4483_s15 + $0x54] sm:$0x8] }
  0x7a   : > { %3895 = vmatmul.mubr.bf16.gmra.mrb[8].mxu1 %v3402_v46  ;;  %v3546_v57 = vcombine.low %v2197_v47, %v2200_v52  ;;  %v1325_v46 = vrot.slane %v1323_v36, 4  ;;  %v2462_v47 = vrot.slane %v2403_v42, 5  ;;  %v1270_v52 = vld [vmem:[%s4483_s15 + $0x5c] sm:$0x7]  ;;  %v3414_v53 = vrot.slane %v1268_v48, 11  ;;  %v4292_v36 = vld [vmem:[%s5087_s3 + $0x220] sm:$0xff]  }
  0x7b   : > { %3907 = vmatpush3.bf16.msra.mxu1 %v4280_v0  ;;  %v1311_v0 = vrot.slane %v1309_v55, 4  ;;  %v1333_v56 = vrot.slane %v1270_v52, 7  ;;  %v2410_v35 = vld [vmem:[%s4765_s10 + $0x94] sm:$0xe] }
  0x7c   : > { %3908 = vmatprep.subr.bf16.mxu1 %v4282_v22  ;;  %4019 = vmatpush3.bf16.msra.mxu0 %v4281_v5  ;;  %v1263_v5 = vld [vmem:[%s4483_s15 + $0x20] sm:$0xf] }
  0x7d   : > { %4020 = vmatprep.subr.bf16.mxu0 %v4283_v32  ;;  %4007 = vmatmul.mubr.bf16.gmra.mrb[8].mxu0 %v3546_v57  ;;  %v1313_v8 = vsel %vm4450_vm2, %v1311_v0, %v1312_v58  ;;  %v1316_v11 = vrot.slane %v1263_v5, 7  ;;  %v2404_v57 = vld [vmem:[%s4765_s10 + $0x5c] sm:$0xe]  ;;  %v2405_v58 = vld [vmem:[%s4765_s10 + $0x60] sm:$0xf]  ;;  %v4290_v0 = vld [vmem:[%s5087_s3 + $0x210] sm:$0xff]  }
  0x7e   : > { %v3433_v14 = vcombine.low %v1310_v63, %v1313_v8  ;;  %4026 = vmatprep.mubr.bf16.mxu0 %v3577_v25  ;;  %v2406_v63 = vld [vmem:[%s4765_s10 + $0x64] sm:$0x1]  ;;  %v3558_v2 = vrot.slane %v2404_v57, 9  ;;  %v2466_v3 = vrot.slane %v2405_v58, 5 }
  0x7f   : > { %3909 = vmatpush3.bf16.msra.mxu1 %v4282_v22  ;;  %v1317_v22 = vsel %vm4450_vm2, %v3412_v7, %v1316_v11  ;;  %v1318_v23 = vrot.slane %v1316_v11, 4  ;;  %v1271_v7 = vld [vmem:[%s4483_s15 + $0x70] sm:$0x8]  ;;  %v1272_v11 = vld [vmem:[%s4483_s15 + $0x74] sm:$0xf] }
  0x80   : > { %3910 = vmatprep.subr.bf16.mxu1 %v4284_v44  ;;  %4021 = vmatpush3.bf16.msra.mxu0 %v4283_v32  ;;  %v1267_v32 = vld [vmem:[%s4483_s15 + $0x40] sm:$0x7]  ;;  %v2467_v9 = vsel %vm4476_vm5, %v3558_v2, %v2466_v3  ;;  %v2468_v10 = vrot.slane %v2466_v3, 4  ;;  %v3415_v13 = vrot.slane %v1271_v7, 11 }
  0x81   : > { %4022 = vmatprep.subr.bf16.mxu0 %v4285_v49  ;;  %3914 = vmatprep.mubr.bf16.mxu1 %v3433_v14  ;;  %v1320_v28 = vsel %vm4450_vm2, %v1318_v23, %v1319_v16  ;;  %v1326_v41 = vrot.slane %v1267_v32, 7  ;;  %v1337_v14 = vrot.slane %v1272_v11, 7  ;;  %v1340_v16 = vrot.slane %v1273_v12, 7  ;;  %v1274_v23 = vld [vmem:[%s4483_s15 + $0x8c] sm:$0x8] }
  0x82   : > { %v3434_v33 = vcombine.low %v1317_v22, %v1320_v28  ;;  %v2473_v22 = vrot.slane %v2408_v18, 5  ;;  %v1275_v28 = vld [vmem:[%s4483_s15 + $0x90] sm:$0xf]  ;;  %v2688_v11 = vld [vmem:[%s4765_s10 + $0x60] sm:$0x8] }
  0x83   : > { %3911 = vmatpush3.bf16.msra.mxu1 %v4284_v44  ;;  %v2459_v44 = vrot.slane %v2402_v38, 5  ;;  %v1327_v55 = vsel %vm4450_vm2, %v1325_v46, %v1326_v41  ;;  %v1338_v25 = vsel %vm4450_vm2, %v3415_v13, %v1337_v14  ;;  %v1339_v26 = vrot.slane %v1337_v14, 4  ;;  %v2689_v14 = vld [vmem:[%s4765_s10 + $0x64] sm:$0xf] }
  0x84   : > { %3912 = vmatprep.subr.bf16.mxu1 %v4286_v62  ;;  %4023 = vmatpush3.bf16.msra.mxu0 %v4285_v49  ;;  %v1269_v49 = vld [vmem:[%s4483_s15 + $0x58] sm:$0xf]  ;;  %v3435_v59 = vcombine.low %v1324_v45, %v1327_v55  ;;  %v2474_v30 = vsel %vm4476_vm5, %v3559_v21, %v2473_v22  ;;  %v2475_v32 = vrot.slane %v2473_v22, 4  ;;  %v1344_v34 = vrot.slane %v1275_v28, 7  ;;  %v2680_v55 = vld [vmem:[%s4765_s10 + $0x10] sm:$0xf] }
  0x85   : > { %4024 = vmatprep.subr.bf16.mxu0 %v4287_v4  ;;  %v2460_v50 = vsel %vm4476_vm5, %v3557_v43, %v2459_v44  ;;  %v2461_v51 = vrot.slane %v2459_v44, 4  ;;  %v1330_v54 = vrot.slane %v1269_v49, 7  ;;  %v1341_v37 = vsel %vm4450_vm2, %v1339_v26, %v1340_v16  ;;  %v2690_v16 = vld [vmem:[%s4765_s10 + $0x68] sm:$0x7]  ;;  %v2692_v21 = vld [vmem:[%s4765_s10 + $0x80] sm:$0xf] }
  0x86   : > { %v1347_v38 = vrot.slane %v1276_v29, 7  ;;  %v3560_v41 = vrot.slane %v2410_v35, 9  ;;  %v3437_v42 = vcombine.low %v1338_v25, %v1341_v37  ;;  %v1346_v45 = vrot.slane %v1344_v34, 4  ;;  %v4295_v22 = vld [vmem:[%s5087_s3 + $0x238] sm:$0xff]   ;;  %v2693_v26 = vld [vmem:[%s4765_s10 + $0x84] sm:$0x7] }
  0x87   : > { %3913 = vmatpush3.bf16.msra.mxu1 %v4286_v62  ;;  %v2463_v60 = vsel %vm4476_vm5, %v2461_v51, %v2462_v47  ;;  %v1331_v61 = vsel %vm4450_vm2, %v3414_v53, %v1330_v54  ;;  %v1332_v62 = vrot.slane %v1330_v54, 4  ;;  %v4293_v53 = vld [vmem:[%s5087_s3 + $0x228] sm:$0xff]   ;;  %v2753_v25 = vrot.slane %v2690_v16, 7 }
  0x88   : > { %4066 = vmatprep.subr.bf16.mxu1 %v4288_v20  ;;  %4025 = vmatpush3.bf16.msra.mxu0 %v4287_v4  ;;  %v3579_v1 = vcombine.low %v2460_v50, %v2463_v60  ;;  %v2469_v4 = vrot.slane %v2406_v63, 5  ;;  %v1348_v49 = vsel %vm4450_vm2, %v1346_v45, %v1347_v38  ;;  %v2679_v54 = vld [vmem:[%s4765_s10 + $0xc] sm:$0x8]  ;;  %v2757_v28 = vrot.slane %v2692_v21, 7 }
  0x89   : > { %4038 = vmatprep.subr.bf16.mxu0 %v4288_v20  ;;  %v1334_v5 = vsel %vm4450_vm2, %v1332_v62, %v1333_v56  ;;  %v2681_v56 = vld [vmem:[%s4765_s10 + $0x14] sm:$0x7]  ;;  %v3591_v57 = vrot.slane %v2679_v54, 11  ;;  %v2686_v62 = vld [vmem:[%s4765_s10 + $0x48] sm:$0xf]  ;;  %v2760_v29 = vrot.slane %v2693_v26, 7 }
  0x8a   : > { %3915 = vmatmul.mubr.bf16.vlgmr.msra.gmra.mrb[0].mxu1 %v3434_v33  ;;  %v3436_v8 = vcombine.low %v1331_v61, %v1334_v5  ;;  %v2470_v19 = vsel %vm4476_vm5, %v2468_v10, %v2469_v4  ;;  %v3416_v33 = vrot.slane %v1274_v23, 11  ;;  %v2732_v60 = vrot.slane %v2681_v56, 7  ;;  %v2685_v61 = vld [vmem:[%s4765_s10 + $0x44] sm:$0x8]  ;;  %v2684_v10 = vld [vmem:[%s4765_s10 + $0x30] sm:$0x7] }
  0x8b   : > { %4074 = vmatpush3.bf16.msra.mxu1 %v4288_v20  ;;  %4027 = vmatmul.mubr.bf16.vlgmr.msra.gmra.mrb[0].mxu0 %v3578_v39  ;;  %v3580_v24 = vcombine.low %v2467_v9, %v2470_v19  ;;  %v2411_v39 = vld [vmem:[%s4765_s10 + $0x98] sm:$0xf]  ;;  %v2743_v2 = vrot.slane %v2686_v62, 7  ;;  %v2682_v9 = vld [vmem:[%s4765_s10 + $0x28] sm:$0x8]  ;;  %v3594_v19 = vrot.slane %v2688_v11, 11 }
  0x8c   : > { %4067 = vmatprep.subr.bf16.mxu1 %v4289_v40  ;;  %4039 = vmatpush3.bf16.msra.mxu0 %v4288_v20  ;;  %v2409_v20 = vld [vmem:[%s4765_s10 + $0x80] sm:$0x1]  ;;  %v1345_v44 = vsel %vm4450_vm2, %v3416_v33, %v1344_v34  ;;  %v2480_v47 = vrot.slane %v2411_v39, 5  ;;  %v2739_v34 = vrot.slane %v2684_v10, 7  ;;  %v2759_v37 = vrot.slane %v2757_v28, 4 }
  0x8d   : > { %4040 = vmatprep.subr.bf16.mxu0 %v4289_v40  ;;  %3918 = vmatprep.mubr.bf16.mxu1 %v3435_v59  ;;  %v2476_v27 = vrot.slane %v2409_v20, 5  ;;  %v3438_v50 = vcombine.low %v1345_v44, %v1348_v49  ;;  %v2729_v59 = vrot.slane %v2680_v55, 7  ;;  %v2691_v20 = vld [vmem:[%s4765_s10 + $0x7c] sm:$0x8] }
  0x8e   : > { %4030 = vmatprep.mubr.bf16.mxu0 %v3579_v1  ;;  %v2481_v51 = vsel %vm4476_vm5, %v3560_v41, %v2480_v47  ;;  %v2482_v52 = vrot.slane %v2480_v47, 4  ;;  %v3593_v1 = vrot.slane %v2685_v61, 11  ;;  %v2694_v41 = vld [vmem:[%s4765_s10 + $0x98] sm:$0x8] }
  0x8f   : > { %4075 = vmatpush3.bf16.msra.mxu1 %v4289_v40  ;;  %v2477_v43 = vsel %vm4476_vm5, %v2475_v32, %v2476_v27  ;;  %v2730_v3 = vsel %vm4450_vm2, %v3591_v57, %v2729_v59  ;;  %v2731_v4 = vrot.slane %v2729_v59, 4  ;;  %v3595_v27 = vrot.slane %v2691_v20, 11 }
  0x90   : > { %4068 = vmatprep.subr.bf16.mxu1 %v4290_v0  ;;  %4041 = vmatpush3.bf16.msra.mxu0 %v4289_v40  ;;  %v2412_v40 = vld [vmem:[%s4765_s10 + $0x9c] sm:$0x1]  ;;  %v3581_v46 = vcombine.low %v2474_v30, %v2477_v43  ;;  %v2744_v7 = vsel %vm4450_vm2, %v3593_v1, %v2743_v2  ;;  %v3592_v32 = vrot.slane %v2682_v9, 11  ;;  %v2761_v43 = vsel %vm4450_vm2, %v2759_v37, %v2760_v29 }
  0x91   : > { %4042 = vmatprep.subr.bf16.mxu0 %v4290_v0  ;;  %v2483_v48 = vrot.slane %v2412_v40, 5  ;;  %v2733_v12 = vsel %vm4450_vm2, %v2731_v4, %v2732_v60  ;;  %v2695_v30 = vld [vmem:[%s4765_s10 + $0x9c] sm:$0xf]  ;;  %v2758_v40 = vsel %vm4450_vm2, %v3595_v27, %v2757_v28 }
  0x92   : > { %3919 = vmatmul.mubr.bf16.gmra.mrb[4].mxu1 %v3436_v8  ;;  %v2745_v8 = vrot.slane %v2743_v2, 4  ;;  %v3613_v17 = vcombine.low %v2730_v3, %v2733_v12  ;;  %v2764_v38 = vrot.slane %v2695_v30, 7  ;;  %v3617_v47 = vcombine.low %v2758_v40, %v2761_v43 }
  0x93   : > { %4076 = vmatpush3.bf16.msra.mxu1 %v4290_v0  ;;  %4031 = vmatmul.mubr.bf16.gmra.mrb[4].mxu0 %v3580_v24  ;;  %v2484_v58 = vsel %vm4476_vm5, %v2482_v52, %v2483_v48  ;;  %v2750_v24 = vrot.slane %v2689_v14, 7  ;;  %v3596_v48 = vrot.slane %v2694_v41, 11 }
  0x94   : > { %4069 = vmatprep.subr.bf16.mxu1 %v4291_v6  ;;  %4043 = vmatpush3.bf16.msra.mxu0 %v4290_v0  ;;  %v3582_v63 = vcombine.low %v2481_v51, %v2484_v58  ;;  %v2687_v0 = vld [vmem:[%s4765_s10 + $0x4c] sm:$0x7]  ;;  %v2766_v49 = vrot.slane %v2764_v38, 4 }
  0x95   : > { %4044 = vmatprep.subr.bf16.mxu0 %v4291_v6  ;;  %3922 = vmatprep.mubr.bf16.mxu1 %v3437_v42  ;;  %v2746_v5 = vrot.slane %v2687_v0, 7  ;;  %v2752_v35 = vrot.slane %v2750_v24, 4  ;;  %v2696_v42 = vld [vmem:[%s4765_s10 + $0xa0] sm:$0x7]  ;;  %v2765_v52 = vsel %vm4450_vm2, %v3596_v48, %v2764_v38 }
  0x96   : > { %4034 = vmatprep.mubr.bf16.mxu0 %v3581_v46 }
  0x97   : > { %4077 = vmatpush3.bf16.msra.mxu1 %v4291_v6  ;;  %v2747_v18 = vsel %vm4450_vm2, %v2745_v8, %v2746_v5  ;;  %v2754_v39 = vsel %vm4450_vm2, %v2752_v35, %v2753_v25 }
  0x98   : > { %4070 = vmatprep.subr.bf16.mxu1 %v4292_v36  ;;  %4045 = vmatpush3.bf16.msra.mxu0 %v4291_v6  ;;  %v2683_v6 = vld [vmem:[%s4765_s10 + $0x2c] sm:$0xf]  ;;  %v3615_v23 = vcombine.low %v2744_v7, %v2747_v18  ;;  %s370_s10 = smul.u32 6, %s4318_s18  ;;  %s5113_s18 = smov (!%p383_p10, %s4318_s18), 2 }
  0x99   : > { %4046 = vmatprep.subr.bf16.mxu0 %v4292_v36  ;;  %v2736_v13 = vrot.slane %v2683_v6, 7  ;;  %s386_s12 = sadd.s32 %s4183_s28, %s5113_s18 }
  0x9a   : > { %3923 = vmatmul.mubr.bf16.gmra.mrb[8].mxu1 %v3438_v50  ;;  %v2767_v50 = vrot.slane %v2696_v42, 7  ;;  %p373_p9 = scmp.lt.s32.totalorder %s370_s10, 17  ;;  %v2976_v18 = vstv %s370_s10  ;;  %s3318_s29 = sshll.u32 %s386_s12, 1 }
  0x9b   : > { %4078 = vmatpush3.bf16.msra.mxu1 %v4292_v36  ;;  %4035 = vmatmul.mubr.bf16.gmra.mrb[8].mxu0 %v3582_v63  ;;  %v2738_v33 = vrot.slane %v2736_v13, 4  ;;  %v2737_v44 = vsel %vm4450_vm2, %v3592_v32, %v2736_v13  ;;  %v2978_v21 = vadd.s32 2, %v2976_v18  ;;  %vm2982_vm7 = vcmp.lt.s32.totalorder %v2976_v18, 16  ;;  %s388_s6 = scalar_lea.vmem %s5089_s5, %s3318_s29 }
  0x9c   : > { %4071 = vmatprep.subr.bf16.mxu1 %v4293_v53  ;;  %4047 = vmatpush3.bf16.msra.mxu0 %v4292_v36  ;;  %v2751_v36 = vsel %vm4450_vm2, %v3594_v19, %v2750_v24  ;;  %s374_s14 = scalar_select %p373_p9, %s370_s10, 17  ;;  %v2979_v19 = vadd.s32 3, %v2976_v18  ;;  %v2980_v42 = vadd.s32 4, %v2976_v18 }
  0x9d   : > { %4048 = vmatprep.subr.bf16.mxu0 %v4293_v53  ;;  %4054 = vmatprep.mubr.bf16.mxu0 %v3613_v17  ;;  %v2740_v45 = vsel %vm4450_vm2, %v2738_v33, %v2739_v34  ;;  %v3616_v46 = vcombine.low %v2751_v36, %v2754_v39  ;;  %vm2984_vm8 = vcmp.lt.s32.totalorder %v2978_v21, 16  ;;  %v2981_v34 = vadd.s32 5, %v2976_v18 }
  0x9e   : > { %4058 = vmatprep.mubr.bf16.mxu1 %v3615_v23  ;;  %v3614_v51 = vcombine.low %v2737_v44, %v2740_v45  ;;  %s3316_s11 = sshll.u32 %s374_s14, 1  ;;  %vm2985_vm6 = vcmp.lt.s32.totalorder %v2979_v19, 16  ;;  %vm2986_vm11 = vcmp.lt.s32.totalorder %v2980_v42, 16 }
  0x9f   : > { %4079 = vmatpush3.bf16.msra.mxu1 %v4293_v53  ;;  %s377_s13 = sadd.s32 %s4182_s9, %s3316_s11  ;;  %vm2987_vm10 = vcmp.lt.s32.totalorder %v2981_v34, 16 }
  0xa0   : > { %4072 = vmatprep.subr.bf16.mxu1 %v4294_v31  ;;  %4049 = vmatpush3.bf16.msra.mxu0 %v4293_v53  ;;  %v2768_v53 = vsel %vm4450_vm2, %v2766_v49, %v2767_v50  ;;  %s3317_s17 = sshll.u32 %s377_s13, 2 }
  0xa1   : > { %4050 = vmatprep.subr.bf16.mxu0 %v4294_v31  ;;  %v3618_v54 = vcombine.low %v2765_v52, %v2768_v53  ;;  %s5046_s27 = scalar_lea.vmem %s5088_s4, %s3317_s17 }
  0xa3   : > { %4080 = vmatpush3.bf16.msra.mxu1 %v4294_v31 }
  0xa4   : > { %4073 = vmatprep.subr.bf16.mxu1 %v4295_v22  ;;  %4051 = vmatpush3.bf16.msra.mxu0 %v4294_v31 }
  0xa5   : > { %4052 = vmatprep.subr.bf16.mxu0 %v4295_v22 }
  0xa7   : > { %4081 = vmatpush3.bf16.msra.mxu1 %v4295_v22 }
  0xa8   : > { %4053 = vmatpush3.bf16.msra.mxu0 %v4295_v22  ;;  %v2977_v22 = vadd.s32 1, %v2976_v18 }
  0xaa   : > { %4059 = vmatmul.mubr.bf16.vlgmr.msra.gmra.mrb[12].mxu1 %v3616_v46  ;;  %vm2983_vm9 = vcmp.lt.s32.totalorder %v2977_v22, 16 }
  0xab   : > { %4062 = vmatprep.mubr.bf16.mxu1 %v3617_v47  ;;  %4055 = vmatmul.mubr.bf16.vlgmr.msra.gmra.mrb[0].mxu0 %v3614_v51 }
  0xb2   : > { %4063 = vmatmul.mubr.bf16.gmra.mrb[16].mxu1 %v3618_v54 }
 0x15d   : > { %v3916_v55 = vpop.f32.mrb[0].mxu1 }
 0x15e   : > { %v1472_v56 = vpop.f32.mrb[1].mxu1 }
 0x15f   : > { %v3917_v57 = vpop.f32.mrb[2].mxu1 }
 0x160   : > { %v5036_v58 = vpop.f32.mrb[3].mxu1 }
 0x165   : > { %v3920_v59 = vpop.f32.mrb[4].mxu1 }
 0x166   : > { %v1488_v60 = vpop.f32.mrb[5].mxu1  ;;  %v4032_v61 = vpop.f32.mrb[4].mxu0 }
 0x167   : > { %v3921_v62 = vpop.f32.mrb[6].mxu1  ;;  %v4086_v63 = vadd.f32 %v4032_v61, %v3920_v59  ;;  %v2624_v0 = vpop.f32.mrb[5].mxu0 }
 0x168   : > { %v1491_v1 = vpop.f32.mrb[7].mxu1  ;;  %v4088_v2 = vadd.f32 %v2624_v0, %v1488_v60  ;;  %v4033_v31 = vpop.f32.mrb[6].mxu0 }
 0x169   : > { %v4090_v15 = vadd.f32 %v4033_v31, %v3921_v62  ;;  %v2627_v3 = vpop.f32.mrb[7].mxu0 }
 0x16a   : > { %v4092_v4 = vadd.f32 %v2627_v3, %v1491_v1 }
 0x16d   : > { %v3924_v5 = vpop.f32.mrb[8].mxu1 }
 0x16e   : > { %v1504_v6 = vpop.f32.mrb[9].mxu1  ;;  %v4036_v8 = vpop.f32.mrb[8].mxu0 }
 0x16f   : > { %v3925_v7 = vpop.f32.mrb[10].mxu1  ;;  %v4094_v10 = vadd.f32 %v4036_v8, %v3924_v5  ;;  %v2640_v11 = vpop.f32.mrb[9].mxu0 }
 0x170   : > { %v1507_v9 = vpop.f32.mrb[11].mxu1  ;;  %v4096_v12 = vadd.f32 %v2640_v11, %v1504_v6  ;;  %v4037_v13 = vpop.f32.mrb[10].mxu0 }
 0x171   : > { %v4098_v14 = vadd.f32 %v4037_v13, %v3925_v7  ;;  %v2643_v16 = vpop.f32.mrb[11].mxu0 }
 0x172   : > { %v5039_v17 = vadd.f32 %v2643_v16, %v1507_v9 }
 0x17d   : > { %v4060_v20 = vpop.f32.mrb[12].mxu1 }
 0x17e   : > { %v4087_v23 = vadd.f32 %v4086_v63, %v4060_v20  ;;  %v2908_v24 = vpop.f32.mrb[13].mxu1  ;;  %v4056_v27 = vpop.f32.mrb[0].mxu0 }
 0x17f   : > { %v4089_v25 = vadd.f32 %v4088_v2, %v2908_v24  ;;  %v4061_v26 = vpop.f32.mrb[14].mxu1  ;;  %v4082_v30 = vadd.f32 %v4056_v27, %v3916_v55  ;;  %v2892_v32 = vpop.f32.mrb[1].mxu0 }
 0x180   : > { %v4091_v28 = vadd.f32 %v4090_v15, %v4061_v26  ;;  %v2911_v29 = vpop.f32.mrb[15].mxu1  ;;  %v3006_v35 = vsel %vm2985_vm6, %v4087_v23, 0.0  ;;  %v4083_v36 = vadd.f32 %v2892_v32, %v1472_v56  ;;  %v4057_v37 = vpop.f32.mrb[2].mxu0 }
 0x181   : > { %v4093_v33 = vadd.f32 %v4092_v4, %v2911_v29  ;;  %v4084_v39 = vadd.f32 %v4057_v37, %v3917_v57  ;;  %v2895_v41 = vpop.f32.mrb[3].mxu0  ;;  %v3004_v44 = vsel %vm2984_vm8, %v4089_v25, 0.0  ;;  %v3002_v47 = vsel %vm2983_vm9, %v4082_v30, 0.0 }
 0x182   : > { %v3007_v38 = vsel %vm2985_vm6, %v4091_v28, 0.0  ;;  %v3000_v43 = vsel %vm2982_vm7, %v4083_v36, 0.0  ;;  %v4085_v45 = vadd.f32 %v2895_v41, %v5036_v58  ;;  %v3092_v63 = vmul.f32 %v3002_v47, %v3002_v47 }
 0x183   : > { %v3671_v40 = vpack.c.bf16 %v3007_v38, %v3006_v35  ;;  %v3005_v46 = vsel %vm2984_vm8, %v4093_v33, 0.0  ;;  %v3003_v48 = vsel %vm2983_vm9, %v4084_v39, 0.0  ;;  %v3090_v51 = vmul.f32 %v3000_v43, %v3000_v43 }
 0x184   : > { %v3666_v49 = vpack.c.bf16 %v3005_v46, %v3004_v44  ;;  %v3661_v52 = vpack.c.bf16 %v3003_v48, %v3002_v47  ;;  %v3001_v53 = vsel %vm2982_vm7, %v4085_v45, 0.0  ;;  %v3093_v3 = vmul.f32 %v3003_v48, %v3003_v48 }
 0x185   : > { %3685 = vst [vmem:[%s5046_s27 + $0x18] sm:$0xff] %v3671_v40   ;;  %v4064_v50 = vpop.f32.mrb[16].mxu1  ;;  %v3656_v56 = vpack.c.bf16 %v3001_v53, %v3000_v43  ;;  %v3072_v57 = vadd.f32 %v3001_v53, %v3000_v43  ;;  %v3091_v58 = vmul.f32 %v3001_v53, %v3001_v53  ;;  %v3094_v9 = vmul.f32 %v3004_v44, %v3004_v44 }
 0x186   : > { %v4095_v54 = vadd.f32 %v4094_v10, %v4064_v50  ;;  %v2924_v55 = vpop.f32.mrb[17].mxu1  ;;  %3684 = vst [vmem:[%s5046_s27 + $0x10] sm:$0xff] %v3666_v49   ;;  %3683 = vst [vmem:[%s5046_s27 + $0x8] sm:$0xff] %v3661_v52   ;;  %v3096_v18 = vmul.f32 %v3006_v35, %v3006_v35  ;;  %v3097_v20 = vmul.f32 %v3007_v38, %v3007_v38 }
 0x187   : > { %v4097_v59 = vadd.f32 %v4096_v12, %v2924_v55  ;;  %v4065_v60 = vpop.f32.mrb[18].mxu1  ;;  %3657 = vst [vmem:[%s5046_s27] sm:$0xff] %v3656_v56   ;;  %v3073_v0 = vadd.f32 %v3072_v57, %v3002_v47  ;;  %v3102_v1 = vadd.f32 %v3091_v58, %v3090_v51 }
 0x188   : > { %v4099_v61 = vadd.f32 %v4098_v14, %v4065_v60  ;;  %v2927_v62 = vpop.f32.mrb[19].mxu1  ;;  %v3010_v2 = vsel %vm2987_vm10, %v4095_v54, 0.0  ;;  %v3095_v14 = vmul.f32 %v3005_v46, %v3005_v46 }
 0x189   : > { %v4101_v15 = vadd.f32 %v5039_v17, %v2927_v62  ;;  %v3103_v4 = vadd.f32 %v3102_v1, %v3092_v63  ;;  %v3074_v5 = vadd.f32 %v3073_v0, %v3003_v48  ;;  %v3008_v7 = vsel %vm2986_vm11, %v4097_v59, 0.0 }
 0x18a   : > { %v3011_v31 = vsel %vm2987_vm10, %v4099_v61, 0.0  ;;  %v3098_v24 = vmul.f32 %v3008_v7, %v3008_v7  ;;  %v3100_v29 = vmul.f32 %v3010_v2, %v3010_v2 }
 0x18b   : > { %v3681_v6 = vpack.c.bf16 %v3011_v31, %v3010_v2  ;;  %v3009_v8 = vsel %vm2986_vm11, %v4101_v15, 0.0  ;;  %v3075_v10 = vadd.f32 %v3074_v5, %v3004_v44  ;;  %v3104_v11 = vadd.f32 %v3103_v4, %v3093_v3 }
 0x18c   : > { %v3676_v12 = vpack.c.bf16 %v3009_v8, %v3008_v7  ;;  %v3099_v28 = vmul.f32 %v3009_v8, %v3009_v8  ;;  %v3101_v33 = vmul.f32 %v3011_v31, %v3011_v31 }
 0x18d   : > { %3687 = vst [vmem:[%s5046_s27 + $0x28] sm:$0xff] %v3681_v6   ;;  %v3076_v13 = vadd.f32 %v3075_v10, %v3005_v46  ;;  %v3105_v16 = vadd.f32 %v3104_v11, %v3094_v9 }
 0x18e   : > { %3686 = vst [vmem:[%s5046_s27 + $0x20] sm:$0xff] %v3676_v12  }
 0x18f   : > { %v3077_v19 = vadd.f32 %v3076_v13, %v3006_v35  ;;  %v3106_v17 = vadd.f32 %v3105_v16, %v3095_v14 }
 0x191   : > { %v3107_v21 = vadd.f32 %v3106_v17, %v3096_v18  ;;  %v3078_v22 = vadd.f32 %v3077_v19, %v3007_v38 }
 0x193   : > { %v3079_v23 = vadd.f32 %v3078_v22, %v3008_v7  ;;  %v3108_v25 = vadd.f32 %v3107_v21, %v3097_v20 }
 0x195   : > { %v3109_v26 = vadd.f32 %v3108_v25, %v3098_v24  ;;  %v3080_v27 = vadd.f32 %v3079_v23, %v3009_v8 }
 0x197   : > { %v3081_v30 = vadd.f32 %v3080_v27, %v3010_v2  ;;  %v3110_v32 = vadd.f32 %v3109_v26, %v3099_v28 }
 0x199   : > { %v3082_v34 = vadd.f32 %v3081_v30, %v3011_v31  ;;  %v3111_v35 = vadd.f32 %v3110_v32, %v3100_v29 }
 0x19b   : > { %v3083_v36 = vrot.slane %v3082_v34, 4  ;;  %v3112_v37 = vadd.f32 %v3111_v35, %v3101_v33 }
 0x19d   : > { %v3084_v39 = vadd.f32 %v3083_v36, %v3082_v34  ;;  %v3113_v40 = vrot.slane %v3112_v37, 4 }
 0x19f   : > { %v3085_v38 = vrot.slane %v3084_v39, 2  ;;  %v3114_v41 = vadd.f32 %v3113_v40, %v3112_v37 }
 0x1a1   : > { %v3086_v42 = vadd.f32 %v3085_v38, %v3084_v39  ;;  %v3115_v43 = vrot.slane %v3114_v41, 2 }
 0x1a3   : > { %v3087_v44 = vrot.slane %v3086_v42, 1  ;;  %v3116_v45 = vadd.f32 %v3115_v43, %v3114_v41 }
 0x1a5   : > { %v3088_v46 = vadd.f32 %v3087_v44, %v3086_v42  ;;  %v3117_v47 = vrot.slane %v3116_v45, 1 }
 0x1a7   : > { %3089 = vst [vmem:[%s388_s6] sm:$0x1] %v3088_v46  ;;  %v3118_v48 = vadd.f32 %v3117_v47, %v3116_v45 }
 0x1a9   : > { %3119 = vst [vmem:[%s388_s6 + $0x1] sm:$0x1] %v3118_v48 }
 0x1aa PF: > { %s16_s22 = sadd.s32 1, %s4334_s22   ;;  %s5094_s18 = smov %s4326_s20 }
 0x1ab   : > { %p13_p11 = scmp.ge.s32.totalorder %s16_s22, 8   ;;  %s5095_s19 = smov %s4330_s21 }
 0x1ac   : > { %s5096_s20 = smov %s5099_s23  ;;  %s5097_s21 = smov %s5103_s24 }
 0x1ad   :  { %15 = sbr.rel (!%p13_p11) target bundleno = 3 (0x3), region = 92 }

// kernel: asspmy_forward.4
= control target key start
LH: loop header
LB: loop body
LE: loop exit
PB: predicated region body
PF: predicated region fallthrough
CT: control target
= control target key end

     0   :  { %s4919_s27 = smov 0   ;;  %s4921_s28 = smov 0   ;;  %s5669_s0 = inlined_call_operand.vmem [shape: bf16[2,54,52,128], index: 0, kind: input, shape index: {}, may-alias: {0,1,2}]   ;;  %s5670_s1 = inlined_call_operand.vmem [shape: bf16[2,54,52,128], index: 1, kind: input, shape index: {}, may-alias: {0,1,2}]   ;;  %s5671_s2 = inlined_call_operand.vmem [shape: bf16[2,54,52,128], index: 2, kind: input, shape index: {}, may-alias: {0,1,2}]   ;;  %s5672_s3 = inlined_call_operand.vmem [shape: bf16[3,3,128,128], index: 3, kind: input, shape index: {}]   ;;  %s5673_s4 = inlined_call_operand.vmem [shape: bf16[128,128], index: 4, kind: input, shape index: {}]   ;;  %s5674_s5 = inlined_call_operand.vmem [shape: bf16[2,18,16,128], index: 5, kind: output, shape index: {0}]   ;;  %s5675_s6 = inlined_call_operand.vmem [shape: f32[2,3,2,128], index: 6, kind: output, shape index: {1}]   ;;  %s5676_s7 = inlined_call_operand.vmem [shape: bf16[2,18,16,128], index: 7, kind: output, shape index: {2}]   ;;  %s5677_s8 = inlined_call_operand.vmem [shape: f32[2,3,2,128], index: 8, kind: output, shape index: {3}]  }
   0x1   :  { %s4923_s29 = smov 0   ;;  %s4925_s30 = smov 0  }
   0x2   :  { %s4927_s9 = smov 0  }
   0x3 LB: > { %s28_s10 = sadd.s32 1, %s4864_s29  ;;  %s31_s11 = sadd.s32 1, %s4868_s30  ;;  %s4872_s9 = sphi %s4927_s9, %s19_s9   ;;  %s4868_s30 = sphi %s4925_s30, %s5685_s30   ;;  %s4864_s29 = sphi %s4923_s29, %s5684_s29   ;;  %s4860_s28 = sphi %s4921_s28, %s5683_s28   ;;  %s4856_s27 = sphi %s4919_s27, %s5682_s27  }
   0x4   : > { %p29_p0 = scmp.ge.s32.totalorder %s28_s10, 3  ;;  %p3734_p1 = scmp.ge.s32.totalorder %s4872_s9, 1 }
   0x5   : > { %p345_p2 = scmp.lt.s32.totalorder %s4872_s9, 7 }
   0x6   : > { %s5687_s10 = smov (%p29_p0, %s28_s10), 0  ;;  %s5689_s11 = smov (!%p29_p0, %s31_s11), %s4868_s30 }
   0x7   : > { %p346_p3 = pnand %p3734_p1, %p345_p2  ;;  %p33_p4 = scmp.ge.s32.totalorder %s5689_s11, 2 }
   0x8   : > { %v4736_v0 = vld [vmem:[%s5672_s3] sm:$0xff] (!%p346_p3)   ;;  %s438_s14 = sadd.s32 (!%p346_p3), 2, %s4856_s27  ;;  %v4738_v2 = vld [vmem:[%s5672_s3 + $0x8] sm:$0xff] (!%p346_p3)   ;;  %p440_p5 = scmp.lt.s32.totalorder (!%p346_p3), %s4860_s28, 1  ;;  %v4740_v4 = vld [vmem:[%s5672_s3 + $0x10] sm:$0xff] (!%p346_p3)   ;;  %vm576_vm0 = vcmask (!%p346_p3), 1041408  }
   0x9   : > { %s5691_s11 = smov (%p33_p4, %s5689_s11), 0  ;;  %349 = sbr.rel (%p346_p3) target bundleno = 429 (0x1ad), region = 40 }
   0xa   : > { %v4737_v1 = vld [vmem:[%s5672_s3 + $0x100] sm:$0xff] (!%p346_p3)   ;;  %s439_s17 = smul.u32 (!%p346_p3), 6, %s438_s14  ;;  %4314 = vmatprep.subr.bf16.mxu1 (!%p346_p3), %v4736_v0  ;;  %v4739_v3 = vld [vmem:[%s5672_s3 + $0x108] sm:$0xff] (!%p346_p3)   ;;  %v4741_v5 = vld [vmem:[%s5672_s3 + $0x110] sm:$0xff] (!%p346_p3)   ;;  %s451_s15 = sadd.s32 (!%p346_p3), 3, %s4856_s27  ;;  %vm577_vm1 = vcmask (!%p346_p3), 1045508  }
   0xb   : > { %4426 = vmatprep.subr.bf16.mxu0 (!%p346_p3), %v4737_v1  ;;  %4315 = vmatpush3.bf16.msra.mxu1 (!%p346_p3), %v4736_v0  ;;  %v4742_v6 = vld [vmem:[%s5672_s3 + $0x18] sm:$0xff] (!%p346_p3)   ;;  %s452_s20 = smul.u32 (!%p346_p3), 6, %s451_s15  ;;  %v4744_v8 = vld [vmem:[%s5672_s3 + $0x20] sm:$0xff] (!%p346_p3)   ;;  %v4746_v10 = vld [vmem:[%s5672_s3 + $0x28] sm:$0xff] (!%p346_p3)   ;;  %vm862_vm3 = vcmask (!%p346_p3), 1042432   ;;  %vm863_vm4 = vcmask (!%p346_p3), 1046532  }
   0xc   : > { %p442_p6 = scmp.lt.s32.totalorder (!%p346_p3), %s439_s17, 53  ;;  %4427 = vmatpush3.bf16.msra.mxu0 (!%p346_p3), %v4737_v1  ;;  %4316 = vmatprep.subr.bf16.mxu1 (!%p346_p3), %v4738_v2  ;;  %v4743_v7 = vld [vmem:[%s5672_s3 + $0x118] sm:$0xff] (!%p346_p3)   ;;  %v4745_v9 = vld [vmem:[%s5672_s3 + $0x120] sm:$0xff] (!%p346_p3)   ;;  %v4747_v14 = vld [vmem:[%s5672_s3 + $0x128] sm:$0xff] (!%p346_p3)   ;;  %s464_s23 = sadd.s32 (!%p346_p3), 4, %s4856_s27 }
   0xd   : > { %4428 = vmatprep.subr.bf16.mxu0 (!%p346_p3), %v4739_v3  ;;  %p455_p7 = scmp.lt.s32.totalorder (!%p346_p3), %s452_s20, 53  ;;  %vm5004_vm2 = vmor (!%p346_p3), %vm576_vm0, %vm577_vm1  ;;  %v4748_v19 = vld [vmem:[%s5672_s3 + $0x30] sm:$0xff] (!%p346_p3)   ;;  %v4750_v36 = vld [vmem:[%s5672_s3 + $0x38] sm:$0xff] (!%p346_p3)   ;;  %p490_p10 = scmp.lt.s32.totalorder (!%p346_p3), %s4856_s27, 2 }
   0xe   : > { %vm5018_vm5 = vmor (!%p346_p3), %vm862_vm3, %vm863_vm4  ;;  %v4749_v26 = vld [vmem:[%s5672_s3 + $0x130] sm:$0xff] (!%p346_p3)   ;;  %v4751_v42 = vld [vmem:[%s5672_s3 + $0x138] sm:$0xff] (!%p346_p3)  }
   0xf   : > { %4317 = vmatpush3.bf16.msra.mxu1 (!%p346_p3), %v4738_v2  ;;  %v4752_v49 = vld [vmem:[%s5672_s3 + $0x40] sm:$0xff] (!%p346_p3)   ;;  %v4754_v63 = vld [vmem:[%s5672_s3 + $0x48] sm:$0xff] (!%p346_p3)  }
  0x10   : > { %s5693_s28 = smov (!%p440_p5, %s4860_s28), 1  ;;  %s5695_s17 = smov (!%p442_p6, %s439_s17), 53  ;;  %4429 = vmatpush3.bf16.msra.mxu0 %v4739_v3  ;;  %4318 = vmatprep.subr.bf16.mxu1 %v4740_v4  ;;  %v4753_v52 = vld [vmem:[%s5672_s3 + $0x140] sm:$0xff]  }
  0x11   : > { %s4973_s26 = smul.u32 378, %s5693_s28  ;;  %4430 = vmatprep.subr.bf16.mxu0 %v4741_v5  ;;  %s5697_s20 = smov (!%p455_p7, %s452_s20), 53 }
  0x12   : > { %s4690_s12 = smul.u32 7, %s5695_s17 }
  0x13   : > { %4319 = vmatpush3.bf16.msra.mxu1 %v4740_v4  ;;  %s4692_s16 = smul.u32 7, %s5697_s20 }
  0x14   : > { %s446_s19 = sadd.s32 %s4973_s26, %s4690_s12  ;;  %4431 = vmatpush3.bf16.msra.mxu0 %v4741_v5  ;;  %4320 = vmatprep.subr.bf16.mxu1 %v4742_v6  ;;  %v4755_v5 = vld [vmem:[%s5672_s3 + $0x148] sm:$0xff]   ;;  %s465_s17 = smul.u32 6, %s464_s23 }
  0x15   : > { %s3735_s21 = sshll.u32 %s446_s19, 2  ;;  %4432 = vmatprep.subr.bf16.mxu0 %v4743_v7  ;;  %s4694_s20 = smul.u32 36, %s5693_s28 }
  0x16   : > { %s4989_s25 = scalar_lea.vmem %s5669_s0, %s3735_s21  ;;  %s459_s21 = sadd.s32 %s4692_s16, %s4973_s26 }
  0x17   : > { %4321 = vmatpush3.bf16.msra.mxu1 %v4742_v6  ;;  %v528_v11 = vld [vmem:[%s4989_s25 + $0x4] sm:$0xc]  ;;  %v529_v12 = vld [vmem:[%s4989_s25 + $0x8] sm:$0xf]  ;;  %v530_v13 = vld [vmem:[%s4989_s25 + $0xc] sm:$0x3] }
  0x18   : > { %4433 = vmatpush3.bf16.msra.mxu0 %v4743_v7  ;;  %4322 = vmatprep.subr.bf16.mxu1 %v4744_v8  ;;  %v3744_v16 = vrot.slane %v528_v11, 10  ;;  %v581_v17 = vrot.slane %v529_v12, 6  ;;  %v584_v18 = vrot.slane %v530_v13, 6  ;;  %s3736_s22 = sshll.u32 %s459_s21, 2  ;;  %v531_v31 = vld [vmem:[%s4989_s25 + $0x20] sm:$0xc] }
  0x19   : > { %4434 = vmatprep.subr.bf16.mxu0 %v4745_v9  ;;  %s5014_s12 = scalar_lea.vmem %s5670_s1, %s3736_s22  ;;  %v532_v33 = vld [vmem:[%s4989_s25 + $0x24] sm:$0xf]  ;;  %v533_v34 = vld [vmem:[%s4989_s25 + $0x28] sm:$0x3]  ;;  %v3745_v35 = vrot.slane %v531_v31, 10  ;;  %v4756_v11 = vld [vmem:[%s5672_s3 + $0x50] sm:$0xff]  }
  0x1a   : > { %v582_v20 = vsel %vm5004_vm2, %v3744_v16, %v581_v17  ;;  %v583_v21 = vrot.slane %v581_v17, 4  ;;  %v1615_v23 = vld [vmem:[%s5014_s12 + $0x8] sm:$0xe]  ;;  %v1616_v24 = vld [vmem:[%s5014_s12 + $0xc] sm:$0xf]  ;;  %v588_v39 = vrot.slane %v532_v33, 6 }
  0x1b   : > { %4323 = vmatpush3.bf16.msra.mxu1 %v4744_v8  ;;  %v1617_v25 = vld [vmem:[%s5014_s12 + $0x10] sm:$0x1]  ;;  %v3866_v28 = vrot.slane %v1615_v23, 9  ;;  %v1665_v29 = vrot.slane %v1616_v24, 5  ;;  %v591_v40 = vrot.slane %v533_v34, 6  ;;  %p468_p8 = scmp.lt.s32.totalorder %s465_s17, 53 }
  0x1c   : > { %4435 = vmatpush3.bf16.msra.mxu0 %v4745_v9  ;;  %4324 = vmatprep.subr.bf16.mxu1 %v4746_v10  ;;  %v585_v27 = vsel %vm5004_vm2, %v583_v21, %v584_v18  ;;  %v1668_v30 = vrot.slane %v1617_v25, 5  ;;  %v1618_v41 = vld [vmem:[%s5014_s12 + $0x24] sm:$0xe]  ;;  %v1619_v43 = vld [vmem:[%s5014_s12 + $0x28] sm:$0xf]  ;;  %v590_v47 = vrot.slane %v588_v39, 4  ;;  %v589_v53 = vsel %vm5004_vm2, %v3745_v35, %v588_v39 }
  0x1d   : > { %4436 = vmatprep.subr.bf16.mxu0 %v4747_v14  ;;  %v3750_v32 = vcombine.low %v582_v20, %v585_v27  ;;  %v1666_v37 = vsel %vm5018_vm5, %v3866_v28, %v1665_v29  ;;  %v1667_v38 = vrot.slane %v1665_v29, 4  ;;  %v1620_v44 = vld [vmem:[%s5014_s12 + $0x2c] sm:$0x1]  ;;  %v3867_v45 = vrot.slane %v1618_v41, 9  ;;  %v534_v59 = vld [vmem:[%s4989_s25 + $0x3c] sm:$0xc] }
  0x1e   : > { %v1672_v48 = vrot.slane %v1619_v43, 5  ;;  %v1675_v51 = vrot.slane %v1620_v44, 5  ;;  %v592_v54 = vsel %vm5004_vm2, %v590_v47, %v591_v40  ;;  %v535_v60 = vld [vmem:[%s4989_s25 + $0x40] sm:$0xf]  ;;  %v536_v61 = vld [vmem:[%s4989_s25 + $0x44] sm:$0x3] }
  0x1f   : > { %4325 = vmatpush3.bf16.msra.mxu1 %v4746_v10  ;;  %4330 = vmatprep.mubr.bf16.mxu1 %v3750_v32  ;;  %v1669_v46 = vsel %vm5018_vm5, %v1667_v38, %v1668_v30  ;;  %v3751_v58 = vcombine.low %v589_v53, %v592_v54  ;;  %v3746_v0 = vrot.slane %v534_v59, 10  ;;  %v595_v1 = vrot.slane %v535_v60, 6  ;;  %v1621_v3 = vld [vmem:[%s5014_s12 + $0x40] sm:$0xe]  ;;  %v1622_v4 = vld [vmem:[%s5014_s12 + $0x44] sm:$0xf] }
  0x20   : > { %4437 = vmatpush3.bf16.msra.mxu0 %v4747_v14  ;;  %4326 = vmatprep.subr.bf16.mxu1 %v4748_v19  ;;  %v3888_v50 = vcombine.low %v1666_v37, %v1669_v46  ;;  %v1674_v55 = vrot.slane %v1672_v48, 4  ;;  %v1673_v56 = vsel %vm5018_vm5, %v3867_v45, %v1672_v48  ;;  %v598_v2 = vrot.slane %v536_v61, 6  ;;  %v1623_v8 = vld [vmem:[%s5014_s12 + $0x48] sm:$0x1]  ;;  %v4757_v13 = vld [vmem:[%s5672_s3 + $0x150] sm:$0xff]   ;;  %v4758_v35 = vld [vmem:[%s5672_s3 + $0x58] sm:$0xff]  }
  0x21   : > { %4438 = vmatprep.subr.bf16.mxu0 %v4749_v26  ;;  %v596_v6 = vsel %vm5004_vm2, %v3746_v0, %v595_v1  ;;  %v597_v7 = vrot.slane %v595_v1, 4  ;;  %v3868_v9 = vrot.slane %v1621_v3, 9  ;;  %v1679_v10 = vrot.slane %v1622_v4, 5  ;;  %v537_v18 = vld [vmem:[%s4989_s25 + $0x58] sm:$0xc]  ;;  %v4760_v47 = vld [vmem:[%s5672_s3 + $0x60] sm:$0xff]  }
  0x22   : > { %4442 = vmatprep.mubr.bf16.mxu0 %v3888_v50  ;;  %v1676_v57 = vsel %vm5018_vm5, %v1674_v55, %v1675_v51  ;;  %v1682_v12 = vrot.slane %v1623_v8, 5  ;;  %v539_v21 = vld [vmem:[%s4989_s25 + $0x60] sm:$0x3]  ;;  %v3747_v23 = vrot.slane %v537_v18, 10  ;;  %v1624_v25 = vld [vmem:[%s5014_s12 + $0x5c] sm:$0xe] }
  0x23   : > { %4327 = vmatpush3.bf16.msra.mxu1 %v4748_v19  ;;  %v3889_v62 = vcombine.low %v1673_v56, %v1676_v57  ;;  %v599_v14 = vsel %vm5004_vm2, %v597_v7, %v598_v2  ;;  %v1680_v16 = vsel %vm5018_vm5, %v3868_v9, %v1679_v10  ;;  %v1681_v17 = vrot.slane %v1679_v10, 4  ;;  %v538_v19 = vld [vmem:[%s4989_s25 + $0x5c] sm:$0xf]  ;;  %v1625_v28 = vld [vmem:[%s5014_s12 + $0x60] sm:$0xf]  ;;  %s5699_s17 = smov (!%p468_p8, %s465_s17), 53 }
  0x24   : > { %4439 = vmatpush3.bf16.msra.mxu0 %v4749_v26  ;;  %4328 = vmatprep.subr.bf16.mxu1 %v4750_v36  ;;  %v3752_v20 = vcombine.low %v596_v6, %v599_v14  ;;  %v602_v24 = vrot.slane %v538_v19, 6  ;;  %v605_v27 = vrot.slane %v539_v21, 6  ;;  %v1626_v29 = vld [vmem:[%s5014_s12 + $0x64] sm:$0x1]  ;;  %v3869_v30 = vrot.slane %v1624_v25, 9  ;;  %v4759_v37 = vld [vmem:[%s5672_s3 + $0x158] sm:$0xff]  }
  0x25   : > { %4440 = vmatprep.subr.bf16.mxu0 %v4751_v42  ;;  %v1683_v26 = vsel %vm5018_vm5, %v1681_v17, %v1682_v12  ;;  %v1686_v34 = vrot.slane %v1625_v28, 5  ;;  %v540_v41 = vld [vmem:[%s4989_s25 + $0x74] sm:$0xc]  ;;  %v542_v44 = vld [vmem:[%s4989_s25 + $0x7c] sm:$0x3]  ;;  %v4761_v51 = vld [vmem:[%s5672_s3 + $0x160] sm:$0xff]  }
  0x26   : > { %v3890_v31 = vcombine.low %v1680_v16, %v1683_v26  ;;  %v603_v32 = vsel %vm5004_vm2, %v3747_v23, %v602_v24  ;;  %v604_v33 = vrot.slane %v602_v24, 4  ;;  %v3748_v45 = vrot.slane %v540_v41, 10  ;;  %v1627_v50 = vld [vmem:[%s5014_s12 + $0x78] sm:$0xe]  ;;  %v1628_v55 = vld [vmem:[%s5014_s12 + $0x7c] sm:$0xf] }
  0x27   : > { %4329 = vmatpush3.bf16.msra.mxu1 %v4750_v36  ;;  %v1689_v36 = vrot.slane %v1626_v29, 5  ;;  %v1687_v39 = vsel %vm5018_vm5, %v3869_v30, %v1686_v34  ;;  %v1688_v40 = vrot.slane %v1686_v34, 4  ;;  %v1629_v56 = vld [vmem:[%s5014_s12 + $0x80] sm:$0x1]  ;;  %v3870_v57 = vrot.slane %v1627_v50, 9  ;;  %v4763_v14 = vld [vmem:[%s5672_s3 + $0x168] sm:$0xff]  }
  0x28   : > { %4441 = vmatpush3.bf16.msra.mxu0 %v4751_v42  ;;  %4342 = vmatprep.subr.bf16.mxu1 %v4752_v49  ;;  %v606_v38 = vsel %vm5004_vm2, %v604_v33, %v605_v27  ;;  %v541_v42 = vld [vmem:[%s4989_s25 + $0x78] sm:$0xf]  ;;  %v1696_v59 = vrot.slane %v1629_v56, 5  ;;  %v543_v61 = vld [vmem:[%s4989_s25 + $0x90] sm:$0xc]  ;;  %s4693_s21 = smul.u32 7, %s5699_s17 }
  0x29   : > { %4454 = vmatprep.subr.bf16.mxu0 %v4753_v52  ;;  %v3753_v43 = vcombine.low %v603_v32, %v606_v38  ;;  %v609_v46 = vrot.slane %v541_v42, 6  ;;  %v1690_v48 = vsel %vm5018_vm5, %v1688_v40, %v1689_v36  ;;  %v3749_v3 = vrot.slane %v543_v61, 10  ;;  %v1630_v4 = vld [vmem:[%s5014_s12 + $0x94] sm:$0xe]  ;;  %v1632_v8 = vld [vmem:[%s5014_s12 + $0x9c] sm:$0x1] }
  0x2a   : > { %4331 = vmatmul.mubr.bf16.vlgmr.msra.gmra.mrb[0].mxu1 %v3751_v58  ;;  %v1693_v58 = vrot.slane %v1628_v55, 5  ;;  %v3871_v9 = vrot.slane %v1630_v4, 9  ;;  %v4764_v19 = vld [vmem:[%s5672_s3 + $0x70] sm:$0xff]   ;;  %v814_v23 = vld [vmem:[%s4989_s25 + $0x8] sm:$0xe]  ;;  %s5225_s13 = sadd.s32 %s4693_s21, %s4973_s26  ;;  %s4695_s16 = smul.u32 3, %s5693_s28 }
  0x2b   : > { %4343 = vmatpush3.bf16.msra.mxu1 %v4752_v49  ;;  %4443 = vmatmul.mubr.bf16.vlgmr.msra.gmra.mrb[0].mxu0 %v3889_v62  ;;  %v612_v49 = vrot.slane %v542_v44, 6  ;;  %v610_v53 = vsel %vm5004_vm2, %v3748_v45, %v609_v46  ;;  %v611_v54 = vrot.slane %v609_v46, 4  ;;  %v544_v62 = vld [vmem:[%s4989_s25 + $0x94] sm:$0xf]  ;;  %v815_v24 = vld [vmem:[%s4989_s25 + $0xc] sm:$0xf] }
  0x2c   : > { %4455 = vmatpush3.bf16.msra.mxu0 %v4753_v52  ;;  %4344 = vmatprep.subr.bf16.mxu1 %v4754_v63  ;;  %v3891_v52 = vcombine.low %v1687_v39, %v1690_v48  ;;  %v1694_v1 = vsel %vm5018_vm5, %v3870_v57, %v1693_v58  ;;  %v1695_v2 = vrot.slane %v1693_v58, 4  ;;  %v616_v6 = vrot.slane %v544_v62, 6  ;;  %v816_v26 = vld [vmem:[%s4989_s25 + $0x10] sm:$0x1]  ;;  %v818_v38 = vld [vmem:[%s4989_s25 + $0x28] sm:$0xf] }
  0x2d   : > { %4456 = vmatprep.subr.bf16.mxu0 %v4755_v5  ;;  %4334 = vmatprep.mubr.bf16.mxu1 %v3752_v20  ;;  %v613_v60 = vsel %vm5004_vm2, %v611_v54, %v612_v49  ;;  %v3764_v27 = vrot.slane %v814_v23, 9  ;;  %v867_v28 = vrot.slane %v815_v24, 5  ;;  %v4765_v29 = vld [vmem:[%s5672_s3 + $0x170] sm:$0xff]   ;;  %v870_v32 = vrot.slane %v816_v26, 5  ;;  %v819_v40 = vld [vmem:[%s4989_s25 + $0x2c] sm:$0x1] }
  0x2e   : > { %4446 = vmatprep.mubr.bf16.mxu0 %v3890_v31  ;;  %v3754_v0 = vcombine.low %v610_v53, %v613_v60  ;;  %v1697_v12 = vsel %vm5018_vm5, %v1695_v2, %v1696_v59  ;;  %v617_v17 = vsel %vm5004_vm2, %v3749_v3, %v616_v6  ;;  %v618_v18 = vrot.slane %v616_v6, 4  ;;  %v4769_v36 = vld [vmem:[%s5014_s12 + $0xc] sm:$0xff]   ;;  %v4767_v46 = vld [vmem:[%s5672_s3 + $0x178] sm:$0xff]   ;;  %v4768_v48 = vld [vmem:[%s5672_s3 + $0x80] sm:$0xff]   ;;  %s3737_s15 = sshll.u32 %s5225_s13, 2 }
  0x2f   : > { %4345 = vmatpush3.bf16.msra.mxu1 %v4754_v63  ;;  %v545_v63 = vld [vmem:[%s4989_s25 + $0x98] sm:$0x3]  ;;  %v3892_v16 = vcombine.low %v1694_v1, %v1697_v12  ;;  %v868_v34 = vsel %vm5018_vm5, %v3764_v27, %v867_v28  ;;  %v874_v42 = vrot.slane %v818_v38, 5  ;;  %v877_v45 = vrot.slane %v819_v40, 5  ;;  %v4772_v54 = vld [vmem:[%s5672_s3 + $0x88] sm:$0xff]   ;;  %v4774_v2 = vld [vmem:[%s5672_s3 + $0x90] sm:$0xff]   ;;  %s5248_s21 = scalar_lea.vmem %s5671_s2, %s3737_s15 }
  0x30   : > { %4457 = vmatpush3.bf16.msra.mxu0 %v4755_v5  ;;  %4346 = vmatprep.subr.bf16.mxu1 %v4756_v11  ;;  %v1631_v5 = vld [vmem:[%s5014_s12 + $0x98] sm:$0xf]  ;;  %v619_v7 = vrot.slane %v545_v63, 6  ;;  %v820_v55 = vld [vmem:[%s4989_s25 + $0x40] sm:$0xe]  ;;  %v4773_v60 = vld [vmem:[%s5672_s3 + $0x188] sm:$0xff]  }
  0x31   : > { %4458 = vmatprep.subr.bf16.mxu0 %v4757_v13  ;;  %v1700_v10 = vrot.slane %v1631_v5, 5  ;;  %v821_v56 = vld [vmem:[%s4989_s25 + $0x44] sm:$0xf]  ;;  %v822_v57 = vld [vmem:[%s4989_s25 + $0x48] sm:$0x1]  ;;  %v3766_v58 = vrot.slane %v820_v55, 9 }
  0x32   : > { %4335 = vmatmul.mubr.bf16.gmra.mrb[4].mxu1 %v3753_v43  ;;  %v620_v25 = vsel %vm5004_vm2, %v618_v18, %v619_v7  ;;  %v4766_v43 = vld [vmem:[%s5672_s3 + $0x78] sm:$0xff]   ;;  %v881_v59 = vrot.slane %v821_v56, 5  ;;  %v884_v61 = vrot.slane %v822_v57, 5  ;;  %v824_v4 = vld [vmem:[%s4989_s25 + $0x60] sm:$0xf] }
  0x33   : > { %4347 = vmatpush3.bf16.msra.mxu1 %v4756_v11  ;;  %4447 = vmatmul.mubr.bf16.gmra.mrb[4].mxu0 %v3891_v52  ;;  %v4762_v11 = vld [vmem:[%s5672_s3 + $0x68] sm:$0xff]   ;;  %v1701_v20 = vsel %vm5018_vm5, %v3871_v9, %v1700_v10  ;;  %v1702_v21 = vrot.slane %v1700_v10, 4  ;;  %v3755_v30 = vcombine.low %v617_v17, %v620_v25  ;;  %v823_v1 = vld [vmem:[%s4989_s25 + $0x5c] sm:$0xe]  ;;  %v825_v5 = vld [vmem:[%s4989_s25 + $0x64] sm:$0x1] }
  0x34   : > { %4459 = vmatpush3.bf16.msra.mxu0 %v4757_v13  ;;  %4348 = vmatprep.subr.bf16.mxu1 %v4758_v35  ;;  %v1703_v13 = vrot.slane %v1632_v8, 5  ;;  %v4771_v52 = vld [vmem:[%s5014_s12 + $0x28] sm:$0xff]   ;;  %v882_v62 = vsel %vm5018_vm5, %v3766_v58, %v881_v59  ;;  %v883_v63 = vrot.slane %v881_v59, 4  ;;  %v3767_v6 = vrot.slane %v823_v1, 9  ;;  %v4775_v10 = vld [vmem:[%s5672_s3 + $0x190] sm:$0xff]   ;;  %v4788_v59 = vld [vmem:[%s5672_s3 + $0xb8] sm:$0xff]  }
  0x35   : > { %4460 = vmatprep.subr.bf16.mxu0 %v4759_v37  ;;  %4338 = vmatprep.mubr.bf16.mxu1 %v3754_v0  ;;  %v4779_v0 = vld [vmem:[%s5014_s12 + $0x44] sm:$0xff]   ;;  %v888_v8 = vrot.slane %v824_v4, 5  ;;  %v891_v9 = vrot.slane %v825_v5, 5  ;;  %v827_v17 = vld [vmem:[%s4989_s25 + $0x7c] sm:$0xf] }
  0x36   : > { %4450 = vmatprep.mubr.bf16.mxu0 %v3892_v16  ;;  %v1704_v31 = vsel %vm5018_vm5, %v1702_v21, %v1703_v13  ;;  %v885_v3 = vsel %vm5018_vm5, %v883_v63, %v884_v61  ;;  %v826_v16 = vld [vmem:[%s4989_s25 + $0x78] sm:$0xe]  ;;  %v828_v18 = vld [vmem:[%s4989_s25 + $0x80] sm:$0x1]  ;;  %v895_v23 = vrot.slane %v827_v17, 5 }
  0x37   : > { %4349 = vmatpush3.bf16.msra.mxu1 %v4758_v35  ;;  %v3893_v33 = vcombine.low %v1701_v20, %v1704_v31  ;;  %v869_v35 = vrot.slane %v867_v28, 4  ;;  %v3788_v7 = vcombine.low %v882_v62, %v885_v3  ;;  %v889_v12 = vsel %vm5018_vm5, %v3767_v6, %v888_v8  ;;  %v4785_v28 = vld [vmem:[%s5014_s12 + $0x7c] sm:$0xff]   ;;  %v830_v31 = vld [vmem:[%s4989_s25 + $0x98] sm:$0xf]  ;;  %v2133_v58 = vld [vmem:[%s5248_s21 + $0x24] sm:$0xf] }
  0x38   : > { %4461 = vmatpush3.bf16.msra.mxu0 %v4759_v37  ;;  %4350 = vmatprep.subr.bf16.mxu1 %v4760_v47  ;;  %v817_v37 = vld [vmem:[%s4989_s25 + $0x24] sm:$0xe]  ;;  %v890_v13 = vrot.slane %v888_v8, 4  ;;  %v3768_v21 = vrot.slane %v826_v16, 9  ;;  %v898_v24 = vrot.slane %v828_v18, 5  ;;  %v897_v27 = vrot.slane %v895_v23, 4 }
  0x39   : > { %4462 = vmatprep.subr.bf16.mxu0 %v4761_v51  ;;  %v871_v39 = vsel %vm5018_vm5, %v869_v35, %v870_v32  ;;  %v3765_v41 = vrot.slane %v817_v37, 9  ;;  %v902_v35 = vrot.slane %v830_v31, 5  ;;  %v2132_v57 = vld [vmem:[%s5248_s21 + $0x20] sm:$0xc]  ;;  %v2186_v61 = vrot.slane %v2133_v58, 6  ;;  %v4789_v62 = vld [vmem:[%s5672_s3 + $0x1b8] sm:$0xff]  }
  0x3a   : > { %4339 = vmatmul.mubr.bf16.gmra.mrb[8].mxu1 %v3755_v30  ;;  %v3786_v44 = vcombine.low %v868_v34, %v871_v39  ;;  %v892_v20 = vsel %vm5018_vm5, %v890_v13, %v891_v9  ;;  %v896_v26 = vsel %vm5018_vm5, %v3768_v21, %v895_v23  ;;  %v829_v30 = vld [vmem:[%s4989_s25 + $0x94] sm:$0xe]  ;;  %v899_v32 = vsel %vm5018_vm5, %v897_v27, %v898_v24  ;;  %v4791_v4 = vld [vmem:[%s5672_s3 + $0xc0] sm:$0xff]   ;;  %v4793_v8 = vld [vmem:[%s4989_s25 + $0x28] sm:$0xff]  }
  0x3b   : > { %4351 = vmatpush3.bf16.msra.mxu1 %v4760_v47  ;;  %4451 = vmatmul.mubr.bf16.gmra.mrb[8].mxu0 %v3893_v33  ;;  %v876_v47 = vrot.slane %v874_v42, 4  ;;  %v875_v49 = vsel %vm5018_vm5, %v3765_v41, %v874_v42  ;;  %v3789_v25 = vcombine.low %v889_v12, %v892_v20  ;;  %v831_v33 = vld [vmem:[%s4989_s25 + $0x9c] sm:$0x1]  ;;  %v3769_v34 = vrot.slane %v829_v30, 9  ;;  %v4782_v42 = vld [vmem:[%s5672_s3 + $0xa8] sm:$0xff]   ;;  %v4792_v5 = vld [vmem:[%s5672_s3 + $0x1c0] sm:$0xff]  }
  0x3c   : > { %4463 = vmatpush3.bf16.msra.mxu0 %v4761_v51  ;;  %4352 = vmatprep.subr.bf16.mxu1 %v4762_v11  ;;  %v4770_v51 = vld [vmem:[%s5672_s3 + $0x180] sm:$0xff]   ;;  %v3790_v37 = vcombine.low %v896_v26, %v899_v32  ;;  %v905_v38 = vrot.slane %v831_v33, 5  ;;  %v904_v40 = vrot.slane %v902_v35, 4  ;;  %v4787_v41 = vld [vmem:[%s5014_s12 + $0x98] sm:$0xff]   ;;  %v4794_v9 = vld [vmem:[%s5672_s3 + $0xc8] sm:$0xff]  }
  0x3d   : > { %4464 = vmatprep.subr.bf16.mxu0 %v4763_v14  ;;  %4470 = vmatprep.mubr.bf16.mxu0 %v4769_v36  ;;  %v878_v50 = vsel %vm5018_vm5, %v876_v47, %v877_v45  ;;  %v4780_v36 = vld [vmem:[%s5672_s3 + $0x1a0] sm:$0xff]   ;;  %v903_v39 = vsel %vm5018_vm5, %v3769_v34, %v902_v35  ;;  %v4790_v47 = vld [vmem:[%s4989_s25 + $0xc] sm:$0xff]   ;;  %v2135_v12 = vld [vmem:[%s5248_s21 + $0x3c] sm:$0xc] }
  0x3e   : > { %4358 = vmatprep.mubr.bf16.mxu1 %v3786_v44  ;;  %v3787_v53 = vcombine.low %v875_v49, %v878_v50  ;;  %v4783_v44 = vld [vmem:[%s5672_s3 + $0x1a8] sm:$0xff]   ;;  %v2136_v13 = vld [vmem:[%s5248_s21 + $0x40] sm:$0xf]  ;;  %v3934_v16 = vrot.slane %v2135_v12, 10  ;;  %v2138_v20 = vld [vmem:[%s5248_s21 + $0x58] sm:$0xc] }
  0x3f   : > { %4353 = vmatpush3.bf16.msra.mxu1 %v4762_v11  ;;  %v4776_v11 = vld [vmem:[%s5672_s3 + $0x98] sm:$0xff]   ;;  %v2131_v49 = vld [vmem:[%s5248_s21 + $0xc] sm:$0x3]  ;;  %v2193_v17 = vrot.slane %v2136_v13, 6  ;;  %v4800_v18 = vld [vmem:[%s4989_s25 + $0x44] sm:$0xff]   ;;  %v3935_v26 = vrot.slane %v2138_v20, 10 }
  0x40   : > { %4465 = vmatpush3.bf16.msra.mxu0 %v4763_v14  ;;  %4354 = vmatprep.subr.bf16.mxu1 %v4764_v19  ;;  %v4781_v14 = vld [vmem:[%s5014_s12 + $0x60] sm:$0xff]   ;;  %v2139_v24 = vld [vmem:[%s5248_s21 + $0x5c] sm:$0xf]  ;;  %v4797_v31 = vld [vmem:[%s5672_s3 + $0x1d0] sm:$0xff]  }
  0x41   : > { %4466 = vmatprep.subr.bf16.mxu0 %v4765_v29  ;;  %v2194_v21 = vsel %vm5004_vm2, %v3934_v16, %v2193_v17  ;;  %v2195_v23 = vrot.slane %v2193_v17, 4  ;;  %v2200_v27 = vrot.slane %v2139_v24, 6  ;;  %v4798_v35 = vld [vmem:[%s5672_s3 + $0xd8] sm:$0xff]   ;;  %v2413_v13 = vld [vmem:[%s5248_s21 + $0x8] sm:$0xe]  ;;  %v4808_v16 = vld [vmem:[%s5672_s3 + $0xf0] sm:$0xff]  }
  0x42   : > { %v4807_v58 = vld [vmem:[%s4989_s25 + $0x98] sm:$0xff]  }
  0x43   : > { %4355 = vmatpush3.bf16.msra.mxu1 %v4764_v19  ;;  %v4777_v19 = vld [vmem:[%s5672_s3 + $0x198] sm:$0xff]   ;;  %v2201_v33 = vsel %vm5004_vm2, %v3935_v26, %v2200_v27  ;;  %v2202_v34 = vrot.slane %v2200_v27, 4 }
  0x44   : > { %4467 = vmatpush3.bf16.msra.mxu0 %v4765_v29  ;;  %4356 = vmatprep.subr.bf16.mxu1 %v4766_v43  ;;  %v4778_v29 = vld [vmem:[%s5672_s3 + $0xa0] sm:$0xff]  }
  0x45   : > { %4468 = vmatprep.subr.bf16.mxu0 %v4767_v46 }
  0x47   : > { %4357 = vmatpush3.bf16.msra.mxu1 %v4766_v43  ;;  %v906_v43 = vsel %vm5018_vm5, %v904_v40, %v905_v38  ;;  %v4806_v40 = vld [vmem:[%s4989_s25 + $0x7c] sm:$0xff]  }
  0x48   : > { %4469 = vmatpush3.bf16.msra.mxu0 %v4767_v46  ;;  %4370 = vmatprep.subr.bf16.mxu1 %v4768_v48  ;;  %v3791_v45 = vcombine.low %v903_v39, %v906_v43  ;;  %v2129_v46 = vld [vmem:[%s5248_s21 + $0x4] sm:$0xc]  ;;  %v2143_v43 = vld [vmem:[%s5248_s21 + $0x7c] sm:$0x3] }
  0x49   : > { %4482 = vmatprep.subr.bf16.mxu0 %v4770_v51  ;;  %v3932_v50 = vrot.slane %v2129_v46, 10  ;;  %v4802_v46 = vld [vmem:[%s5672_s3 + $0xe0] sm:$0xff]  }
  0x4a   : > { %4359 = vmatmul.mubr.bf16.vlgmr.msra.gmra.mrb[0].mxu1 %v3787_v53  ;;  %v4784_v53 = vld [vmem:[%s5672_s3 + $0xb0] sm:$0xff]  }
  0x4b   : > { %4371 = vmatpush3.bf16.msra.mxu1 %v4768_v48  ;;  %4471 = vmatmul.mubr.bf16.vlgmr.msra.gmra.mrb[0].mxu0 %v4771_v52  ;;  %v2130_v48 = vld [vmem:[%s5248_s21 + $0x8] sm:$0xf]  ;;  %v2182_v52 = vrot.slane %v2131_v49, 6 }
  0x4c   : > { %4483 = vmatpush3.bf16.msra.mxu0 %v4770_v51  ;;  %4372 = vmatprep.subr.bf16.mxu1 %v4772_v54  ;;  %v2179_v51 = vrot.slane %v2130_v48, 6  ;;  %v2144_v48 = vld [vmem:[%s5248_s21 + $0x90] sm:$0xc] }
  0x4d   : > { %4484 = vmatprep.subr.bf16.mxu0 %v4773_v60  ;;  %4474 = vmatprep.mubr.bf16.mxu0 %v4779_v0  ;;  %v3933_v0 = vrot.slane %v2132_v57, 10 }
  0x4e   : > { %4362 = vmatprep.mubr.bf16.mxu1 %v3788_v7  ;;  %v2180_v55 = vsel %vm5004_vm2, %v3932_v50, %v2179_v51  ;;  %v2181_v56 = vrot.slane %v2179_v51, 4  ;;  %v2145_v51 = vld [vmem:[%s5248_s21 + $0x94] sm:$0xf] }
  0x4f   : > { %4373 = vmatpush3.bf16.msra.mxu1 %v4772_v54  ;;  %v4786_v54 = vld [vmem:[%s5672_s3 + $0x1b0] sm:$0xff]   ;;  %v2187_v6 = vsel %vm5004_vm2, %v3933_v0, %v2186_v61  ;;  %v1333_v0 = vld [vmem:[%s5014_s12 + $0xc] sm:$0x3] }
  0x50   : > { %4485 = vmatpush3.bf16.msra.mxu0 %v4773_v60  ;;  %4374 = vmatprep.subr.bf16.mxu1 %v4774_v2  ;;  %v2134_v60 = vld [vmem:[%s5248_s21 + $0x28] sm:$0x3]  ;;  %v2183_v63 = vsel %vm5004_vm2, %v2181_v56, %v2182_v52  ;;  %v2146_v52 = vld [vmem:[%s5248_s21 + $0x98] sm:$0x3]  ;;  %v4803_v56 = vld [vmem:[%s5672_s3 + $0x1e0] sm:$0xff]  }
  0x51   : > { %4486 = vmatprep.subr.bf16.mxu0 %v4775_v10  ;;  %v3954_v1 = vcombine.low %v2180_v55, %v2183_v63  ;;  %v2189_v3 = vrot.slane %v2134_v60, 6  ;;  %v2217_v55 = vrot.slane %v2146_v52, 6  ;;  %v1332_v63 = vld [vmem:[%s5014_s12 + $0x8] sm:$0xf]  ;;  %v1342_v52 = vld [vmem:[%s5014_s12 + $0x60] sm:$0x3] }
  0x52   : > { %4363 = vmatmul.mubr.bf16.gmra.mrb[4].mxu1 %v3789_v25  ;;  %v2140_v25 = vld [vmem:[%s5248_s21 + $0x60] sm:$0x3] }
  0x53   : > { %4375 = vmatpush3.bf16.msra.mxu1 %v4774_v2  ;;  %4475 = vmatmul.mubr.bf16.gmra.mrb[4].mxu0 %v4781_v14  ;;  %v2188_v2 = vrot.slane %v2186_v61, 4  ;;  %v2137_v14 = vld [vmem:[%s5248_s21 + $0x44] sm:$0x3] }
  0x54   : > { %4487 = vmatpush3.bf16.msra.mxu0 %v4775_v10  ;;  %4376 = vmatprep.subr.bf16.mxu1 %v4776_v11 }
  0x55   : > { %4488 = vmatprep.subr.bf16.mxu0 %v4777_v19  ;;  %4478 = vmatprep.mubr.bf16.mxu0 %v4785_v28  ;;  %v2190_v7 = vsel %vm5004_vm2, %v2188_v2, %v2189_v3  ;;  %v2203_v28 = vrot.slane %v2140_v25, 6  ;;  %v1381_v2 = vrot.slane %v1332_v63, 6  ;;  %v1334_v3 = vld [vmem:[%s5014_s12 + $0x20] sm:$0xc] }
  0x56   : > { %4366 = vmatprep.mubr.bf16.mxu1 %v3790_v37  ;;  %v3955_v10 = vcombine.low %v2187_v6, %v2190_v7  ;;  %v4799_v37 = vld [vmem:[%s5672_s3 + $0x1d8] sm:$0xff]   ;;  %v1384_v6 = vrot.slane %v1333_v0, 6  ;;  %v1335_v7 = vld [vmem:[%s5014_s12 + $0x24] sm:$0xf]  ;;  %v3831_v24 = vrot.slane %v1334_v3, 10  ;;  %v1405_v0 = vrot.slane %v1342_v52, 6 }
  0x57   : > { %4377 = vmatpush3.bf16.msra.mxu1 %v4776_v11  ;;  %v4795_v11 = vld [vmem:[%s5672_s3 + $0x1c8] sm:$0xff]   ;;  %v2204_v38 = vsel %vm5004_vm2, %v2202_v34, %v2203_v28  ;;  %v1383_v12 = vrot.slane %v1381_v2, 4  ;;  %v1388_v17 = vrot.slane %v1335_v7, 6 }
  0x58   : > { %4489 = vmatpush3.bf16.msra.mxu0 %v4777_v19  ;;  %4378 = vmatprep.subr.bf16.mxu1 %v4778_v29  ;;  %v2196_v19 = vrot.slane %v2137_v14, 6  ;;  %v3957_v39 = vcombine.low %v2201_v33, %v2204_v38  ;;  %v2414_v14 = vld [vmem:[%s5248_s21 + $0xc] sm:$0xf] }
  0x59   : > { %4490 = vmatprep.subr.bf16.mxu0 %v4780_v36  ;;  %v2463_v20 = vrot.slane %v2414_v14, 5  ;;  %v1390_v33 = vrot.slane %v1388_v17, 4  ;;  %v4815_v3 = vld [vmem:[%s5673_s4 + $0x8] sm:$0xff]  }
  0x5a   : > { %4367 = vmatmul.mubr.bf16.gmra.mrb[8].mxu1 %v3791_v45  ;;  %v2197_v30 = vsel %vm5004_vm2, %v2195_v23, %v2196_v19  ;;  %v3968_v19 = vrot.slane %v2413_v13, 9  ;;  %v1385_v23 = vsel %vm5004_vm2, %v1383_v12, %v1384_v6  ;;  %v1345_v6 = vld [vmem:[%s5014_s12 + $0x7c] sm:$0x3]  ;;  %v2420_v13 = vld [vmem:[%s5248_s21 + $0x44] sm:$0xf] }
  0x5b   : > { %4379 = vmatpush3.bf16.msra.mxu1 %v4778_v29  ;;  %4479 = vmatmul.mubr.bf16.gmra.mrb[8].mxu0 %v4787_v41  ;;  %v4796_v29 = vld [vmem:[%s5672_s3 + $0xd0] sm:$0xff]   ;;  %v3956_v32 = vcombine.low %v2194_v21, %v2197_v30  ;;  %v2416_v30 = vld [vmem:[%s5248_s21 + $0x24] sm:$0xe]  ;;  %v1412_v12 = vrot.slane %v1345_v6, 6  ;;  %v2421_v14 = vld [vmem:[%s5248_s21 + $0x48] sm:$0x1] }
  0x5c   : > { %4491 = vmatpush3.bf16.msra.mxu0 %v4780_v36  ;;  %4380 = vmatprep.subr.bf16.mxu1 %v4782_v42  ;;  %v4801_v36 = vld [vmem:[%s4989_s25 + $0x60] sm:$0xff]   ;;  %v2141_v41 = vld [vmem:[%s5248_s21 + $0x74] sm:$0xc]  ;;  %v2464_v28 = vsel %vm5018_vm5, %v3968_v19, %v2463_v20  ;;  %v3969_v38 = vrot.slane %v2416_v30, 9  ;;  %v2477_v19 = vrot.slane %v2420_v13, 5  ;;  %v4828_v13 = vld [vmem:[%s5248_s21 + $0xc] sm:$0xff]  }
  0x5d   : > { %4492 = vmatprep.subr.bf16.mxu0 %v4783_v44  ;;  %4386 = vmatprep.mubr.bf16.mxu1 %v4790_v47  ;;  %v2210_v47 = vrot.slane %v2143_v43, 6  ;;  %v4809_v21 = vld [vmem:[%s5672_s3 + $0x1f0] sm:$0xff]   ;;  %v4811_v43 = vld [vmem:[%s5672_s3 + $0x1f8] sm:$0xff]  }
  0x5e   : > { %4498 = vmatprep.mubr.bf16.mxu0 %v3954_v1 }
  0x5f   : > { %4381 = vmatpush3.bf16.msra.mxu1 %v4782_v42  ;;  %v2142_v42 = vld [vmem:[%s5248_s21 + $0x78] sm:$0xf] }
  0x60   : > { %4493 = vmatpush3.bf16.msra.mxu0 %v4783_v44  ;;  %4382 = vmatprep.subr.bf16.mxu1 %v4784_v53  ;;  %v3936_v44 = vrot.slane %v2141_v41, 10  ;;  %v2207_v45 = vrot.slane %v2142_v42, 6  ;;  %v1337_v41 = vld [vmem:[%s5014_s12 + $0x3c] sm:$0xc]  ;;  %v1338_v42 = vld [vmem:[%s5014_s12 + $0x40] sm:$0xf] }
  0x61   : > { %4494 = vmatprep.subr.bf16.mxu0 %v4786_v54 }
  0x62   : > { %v2208_v49 = vsel %vm5004_vm2, %v3936_v44, %v2207_v45  ;;  %v2209_v50 = vrot.slane %v2207_v45, 4  ;;  %v1339_v44 = vld [vmem:[%s5014_s12 + $0x44] sm:$0x3]  ;;  %v1395_v45 = vrot.slane %v1338_v42, 6 }
  0x63   : > { %4383 = vmatpush3.bf16.msra.mxu1 %v4784_v53  ;;  %v3937_v53 = vrot.slane %v2144_v48, 10 }
  0x64   : > { %4495 = vmatpush3.bf16.msra.mxu0 %v4786_v54  ;;  %4384 = vmatprep.subr.bf16.mxu1 %v4788_v59  ;;  %v2214_v54 = vrot.slane %v2145_v51, 6  ;;  %v2211_v57 = vsel %vm5004_vm2, %v2209_v50, %v2210_v47  ;;  %v1389_v47 = vsel %vm5004_vm2, %v3831_v24, %v1388_v17  ;;  %v1398_v50 = vrot.slane %v1339_v44, 6  ;;  %v1341_v51 = vld [vmem:[%s5014_s12 + $0x5c] sm:$0xf] }
  0x65   : > { %4496 = vmatprep.subr.bf16.mxu0 %v4789_v62  ;;  %v4818_v44 = vld [vmem:[%s5672_s3 + $0x218] sm:$0xff]  }
  0x66   : > { %v2215_v60 = vsel %vm5004_vm2, %v3937_v53, %v2214_v54  ;;  %v2216_v61 = vrot.slane %v2214_v54, 4  ;;  %v1397_v53 = vrot.slane %v1395_v45, 4  ;;  %v1402_v54 = vrot.slane %v1341_v51, 6  ;;  %v2426_v51 = vld [vmem:[%s5248_s21 + $0x7c] sm:$0xf] }
  0x67   : > { %4385 = vmatpush3.bf16.msra.mxu1 %v4788_v59  ;;  %v3958_v59 = vcombine.low %v2208_v49, %v2211_v57  ;;  %v3832_v49 = vrot.slane %v1337_v41, 10 }
  0x68   : > { %4497 = vmatpush3.bf16.msra.mxu0 %v4789_v62  ;;  %4398 = vmatprep.subr.bf16.mxu1 %v4791_v4  ;;  %v1331_v62 = vld [vmem:[%s5014_s12 + $0x4] sm:$0xc]  ;;  %v1404_v63 = vrot.slane %v1402_v54, 4 }
  0x69   : > { %4510 = vmatprep.subr.bf16.mxu0 %v4792_v5  ;;  %v3830_v1 = vrot.slane %v1331_v62, 10  ;;  %v1399_v62 = vsel %vm5004_vm2, %v1397_v53, %v1398_v50  ;;  %v2425_v50 = vld [vmem:[%s5248_s21 + $0x78] sm:$0xe]  ;;  %v2427_v53 = vld [vmem:[%s5248_s21 + $0x80] sm:$0x1] }
  0x6a   : > { %4387 = vmatmul.mubr.bf16.vlgmr.msra.gmra.mrb[0].mxu1 %v4793_v8  ;;  %v1336_v8 = vld [vmem:[%s5014_s12 + $0x28] sm:$0x3]  ;;  %v1406_v17 = vsel %vm5004_vm2, %v1404_v63, %v1405_v0  ;;  %v4821_v0 = vld [vmem:[%s5673_s4 + $0x20] sm:$0xff]  }
  0x6b   : > { %4399 = vmatpush3.bf16.msra.mxu1 %v4791_v4  ;;  %4499 = vmatmul.mubr.bf16.vlgmr.msra.gmra.mrb[0].mxu0 %v3955_v10  ;;  %v4804_v4 = vld [vmem:[%s5672_s3 + $0xe8] sm:$0xff]   ;;  %v1391_v27 = vrot.slane %v1336_v8, 6 }
  0x6c   : > { %4511 = vmatpush3.bf16.msra.mxu0 %v4792_v5  ;;  %4400 = vmatprep.subr.bf16.mxu1 %v4794_v9  ;;  %v2218_v5 = vsel %vm5004_vm2, %v2216_v61, %v2217_v55  ;;  %v4813_v55 = vld [vmem:[%s5673_s4] sm:$0xff]   ;;  %v1396_v61 = vsel %vm5004_vm2, %v3832_v49, %v1395_v45 }
  0x6d   : > { %4512 = vmatprep.subr.bf16.mxu0 %v4795_v11  ;;  %4390 = vmatprep.mubr.bf16.mxu1 %v4800_v18  ;;  %v3959_v10 = vcombine.low %v2215_v60, %v2218_v5  ;;  %v2415_v18 = vld [vmem:[%s5248_s21 + $0x10] sm:$0x1]  ;;  %v1392_v48 = vsel %vm5004_vm2, %v1390_v33, %v1391_v27  ;;  %v1344_v5 = vld [vmem:[%s5014_s12 + $0x78] sm:$0xf] }
  0x6e   : > { %4502 = vmatprep.mubr.bf16.mxu0 %v3956_v32  ;;  %v2466_v25 = vrot.slane %v2415_v18, 5  ;;  %v2418_v32 = vld [vmem:[%s5248_s21 + $0x2c] sm:$0x1]  ;;  %v1409_v8 = vrot.slane %v1344_v5, 6 }
  0x6f   : > { %4401 = vmatpush3.bf16.msra.mxu1 %v4794_v9  ;;  %v4805_v9 = vld [vmem:[%s5672_s3 + $0x1e8] sm:$0xff]  }
  0x70   : > { %4513 = vmatpush3.bf16.msra.mxu0 %v4795_v11  ;;  %4402 = vmatprep.subr.bf16.mxu1 %v4796_v29  ;;  %v1382_v11 = vsel %vm5004_vm2, %v3830_v1, %v1381_v2  ;;  %v4814_v2 = vld [vmem:[%s5672_s3 + $0x208] sm:$0xff]   ;;  %v1411_v18 = vrot.slane %v1409_v8, 4 }
  0x71   : > { %4514 = vmatprep.subr.bf16.mxu0 %v4797_v31  ;;  %v3852_v26 = vcombine.low %v1382_v11, %v1385_v23  ;;  %v4817_v23 = vld [vmem:[%s5673_s4 + $0x10] sm:$0xff]  }
  0x72   : > { %4391 = vmatmul.mubr.bf16.gmra.mrb[4].mxu1 %v4801_v36  ;;  %v4810_v36 = vld [vmem:[%s5672_s3 + $0xf8] sm:$0xff]   ;;  %v1413_v27 = vsel %vm5004_vm2, %v1411_v18, %v1412_v12 }
  0x73   : > { %4403 = vmatpush3.bf16.msra.mxu1 %v4796_v29  ;;  %4503 = vmatmul.mubr.bf16.gmra.mrb[4].mxu0 %v3957_v39  ;;  %v2465_v29 = vrot.slane %v2463_v20, 4  ;;  %v2480_v20 = vrot.slane %v2421_v14, 5  ;;  %v3084_v14 = vld [vmem:[%s5014_s12 + $0x8] sm:$0xe] }
  0x74   : > { %4515 = vmatpush3.bf16.msra.mxu0 %v4797_v31  ;;  %4404 = vmatprep.subr.bf16.mxu1 %v4798_v35  ;;  %v2417_v31 = vld [vmem:[%s5248_s21 + $0x28] sm:$0xf]  ;;  %v4046_v18 = vrot.slane %v3084_v14, 9 }
  0x75   : > { %4516 = vmatprep.subr.bf16.mxu0 %v4799_v37  ;;  %4394 = vmatprep.mubr.bf16.mxu1 %v4806_v40  ;;  %v2467_v34 = vsel %vm5018_vm5, %v2465_v29, %v2466_v25  ;;  %v2473_v40 = vrot.slane %v2418_v32, 5  ;;  %v1347_v25 = vld [vmem:[%s5014_s12 + $0x94] sm:$0xf]  ;;  %v2479_v29 = vrot.slane %v2477_v19, 4  ;;  %v2423_v32 = vld [vmem:[%s5248_s21 + $0x60] sm:$0xf] }
  0x76   : > { %4506 = vmatprep.mubr.bf16.mxu0 %v3958_v59  ;;  %v4812_v59 = vld [vmem:[%s5672_s3 + $0x200] sm:$0xff]   ;;  %v1416_v30 = vrot.slane %v1347_v25, 6 }
  0x77   : > { %4405 = vmatpush3.bf16.msra.mxu1 %v4798_v35  ;;  %v2470_v35 = vrot.slane %v2417_v31, 5  ;;  %v2422_v31 = vld [vmem:[%s5248_s21 + $0x5c] sm:$0xe]  ;;  %v2481_v41 = vsel %vm5018_vm5, %v2479_v29, %v2480_v20 }
  0x78   : > { %4517 = vmatpush3.bf16.msra.mxu0 %v4799_v37  ;;  %4406 = vmatprep.subr.bf16.mxu1 %v4802_v46  ;;  %v3990_v37 = vcombine.low %v2464_v28, %v2467_v34  ;;  %v4816_v34 = vld [vmem:[%s5672_s3 + $0x210] sm:$0xff]  }
  0x79   : > { %4518 = vmatprep.subr.bf16.mxu0 %v4803_v56  ;;  %v2472_v39 = vrot.slane %v2470_v35, 4 }
  0x7a   : > { %4395 = vmatmul.mubr.bf16.gmra.mrb[8].mxu1 %v4807_v58  ;;  %v3853_v58 = vcombine.low %v1389_v47, %v1392_v48 }
  0x7b   : > { %4407 = vmatpush3.bf16.msra.mxu1 %v4802_v46  ;;  %4507 = vmatmul.mubr.bf16.gmra.mrb[8].mxu0 %v3959_v10  ;;  %v1340_v46 = vld [vmem:[%s5014_s12 + $0x58] sm:$0xc]  ;;  %v2474_v57 = vsel %vm5018_vm5, %v2472_v39, %v2473_v40  ;;  %v3854_v10 = vcombine.low %v1396_v61, %v1399_v62  ;;  %v2430_v62 = vld [vmem:[%s5248_s21 + $0x9c] sm:$0x1] }
  0x7c   : > { %4519 = vmatpush3.bf16.msra.mxu0 %v4803_v56  ;;  %4408 = vmatprep.subr.bf16.mxu1 %v4804_v4  ;;  %v2471_v56 = vsel %vm5018_vm5, %v3969_v38, %v2470_v35  ;;  %v3833_v60 = vrot.slane %v1340_v46, 10  ;;  %v2484_v38 = vrot.slane %v2423_v32, 5  ;;  %v4819_v39 = vld [vmem:[%s5673_s4 + $0x18] sm:$0xff]   ;;  %v1418_v46 = vrot.slane %v1416_v30, 4  ;;  %v3090_v32 = vld [vmem:[%s5014_s12 + $0x40] sm:$0xe] }
  0x7d   : > { %4520 = vmatprep.subr.bf16.mxu0 %v4805_v9  ;;  %4414 = vmatprep.mubr.bf16.mxu1 %v3852_v26  ;;  %v3991_v1 = vcombine.low %v2471_v56, %v2474_v57  ;;  %v1348_v26 = vld [vmem:[%s5014_s12 + $0x98] sm:$0x3]  ;;  %v2428_v56 = vld [vmem:[%s5248_s21 + $0x94] sm:$0xe] }
  0x7e   : > { %4526 = vmatprep.mubr.bf16.mxu0 %v3990_v37  ;;  %v1403_v11 = vsel %vm5004_vm2, %v3833_v60, %v1402_v54  ;;  %v3971_v37 = vrot.slane %v2422_v31, 9  ;;  %v1419_v42 = vrot.slane %v1348_v26, 6  ;;  %v2486_v48 = vrot.slane %v2484_v38, 4  ;;  %v2429_v61 = vld [vmem:[%s5248_s21 + $0x98] sm:$0xf] }
  0x7f   : > { %4409 = vmatpush3.bf16.msra.mxu1 %v4804_v4  ;;  %v1343_v4 = vld [vmem:[%s5014_s12 + $0x74] sm:$0xc]  ;;  %v3855_v33 = vcombine.low %v1403_v11, %v1406_v17  ;;  %v3972_v54 = vrot.slane %v2425_v50, 9  ;;  %v2494_v60 = vrot.slane %v2427_v53, 5  ;;  %v3973_v63 = vrot.slane %v2428_v56, 9 }
  0x80   : > { %4521 = vmatpush3.bf16.msra.mxu0 %v4805_v9  ;;  %4410 = vmatprep.subr.bf16.mxu1 %v4808_v16  ;;  %v3834_v7 = vrot.slane %v1343_v4, 10  ;;  %v2419_v9 = vld [vmem:[%s5248_s21 + $0x40] sm:$0xe]  ;;  %v2485_v47 = vsel %vm5018_vm5, %v3971_v37, %v2484_v38  ;;  %v2498_v15 = vrot.slane %v2429_v61, 5  ;;  %v3086_v17 = vld [vmem:[%s5014_s12 + $0x10] sm:$0x1] }
  0x81   : > { %4522 = vmatprep.subr.bf16.mxu0 %v4809_v21  ;;  %v3125_v20 = vrot.slane %v3086_v17, 5  ;;  %v3088_v26 = vld [vmem:[%s5014_s12 + $0x28] sm:$0xf]  ;;  %v4827_v38 = vld [vmem:[%s5673_s4 + $0x38] sm:$0xff]  }
  0x82   : > { %v1410_v24 = vsel %vm5004_vm2, %v3834_v7, %v1409_v8  ;;  %v2499_v6 = vsel %vm5018_vm5, %v3973_v63, %v2498_v15  ;;  %v2500_v7 = vrot.slane %v2498_v15, 4  ;;  %v4822_v8 = vld [vmem:[%s5672_s3 + $0x228] sm:$0xff]   ;;  %v3129_v29 = vrot.slane %v3088_v26, 5 }
  0x83   : > { %4411 = vmatpush3.bf16.msra.mxu1 %v4808_v16  ;;  %v3970_v16 = vrot.slane %v2419_v9, 9  ;;  %v3856_v40 = vcombine.low %v1410_v24, %v1413_v27  ;;  %v3089_v27 = vld [vmem:[%s5014_s12 + $0x2c] sm:$0x1]  ;;  %v3092_v37 = vld [vmem:[%s5014_s12 + $0x48] sm:$0x1] }
  0x84   : > { %4523 = vmatpush3.bf16.msra.mxu0 %v4809_v21  ;;  %4412 = vmatprep.subr.bf16.mxu1 %v4810_v36  ;;  %v1346_v21 = vld [vmem:[%s5014_s12 + $0x90] sm:$0xc] }
  0x85   : > { %4524 = vmatprep.subr.bf16.mxu0 %v4811_v43  ;;  %v2478_v28 = vsel %vm5018_vm5, %v3970_v16, %v2477_v19  ;;  %v3835_v35 = vrot.slane %v1346_v21, 10  ;;  %v3085_v16 = vld [vmem:[%s5014_s12 + $0xc] sm:$0xf]  ;;  %v3087_v21 = vld [vmem:[%s5014_s12 + $0x24] sm:$0xe] }
  0x86   : > { %v3992_v45 = vcombine.low %v2478_v28, %v2481_v41  ;;  %v3122_v19 = vrot.slane %v3085_v16, 5  ;;  %v4824_v28 = vld [vmem:[%s5672_s3 + $0x230] sm:$0xff]   ;;  %v4047_v31 = vrot.slane %v3087_v21, 9  ;;  %v3139_v41 = vrot.slane %v3092_v37, 5  ;;  %v4832_v16 = vld [vmem:[%s5248_s21 + $0x7c] sm:$0xff]  }
  0x87   : > { %4413 = vmatpush3.bf16.msra.mxu1 %v4810_v36  ;;  %v2424_v36 = vld [vmem:[%s5248_s21 + $0x64] sm:$0x1]  ;;  %v1417_v57 = vsel %vm5004_vm2, %v3835_v35, %v1416_v30  ;;  %v3131_v35 = vrot.slane %v3129_v29, 4 }
  0x88   : > { %4525 = vmatpush3.bf16.msra.mxu0 %v4811_v43  ;;  %4566 = vmatprep.subr.bf16.mxu1 %v4813_v55  ;;  %v2487_v43 = vrot.slane %v2424_v36, 5  ;;  %v3123_v24 = vsel %vm5018_vm5, %v4046_v18, %v3122_v19  ;;  %v3124_v25 = vrot.slane %v3122_v19, 4  ;;  %v3132_v36 = vrot.slane %v3089_v27, 5 }
  0x89   : > { %4538 = vmatprep.subr.bf16.mxu0 %v4812_v59 }
  0x8a   : > { %4415 = vmatmul.mubr.bf16.vlgmr.msra.gmra.mrb[0].mxu1 %v3853_v58  ;;  %v2488_v49 = vsel %vm5018_vm5, %v2486_v48, %v2487_v43  ;;  %v1420_v58 = vsel %vm5004_vm2, %v1418_v46, %v1419_v42  ;;  %v3126_v30 = vsel %vm5018_vm5, %v3124_v25, %v3125_v20  ;;  %v4826_v42 = vld [vmem:[%s5672_s3 + $0x238] sm:$0xff]   ;;  %v3094_v43 = vld [vmem:[%s5014_s12 + $0x60] sm:$0xf]  ;;  %v3133_v46 = vsel %vm5018_vm5, %v3131_v35, %v3132_v36 }
  0x8b   : > { %4527 = vmatmul.mubr.bf16.vlgmr.msra.gmra.mrb[0].mxu0 %v3991_v1  ;;  %4567 = vmatpush3.bf16.msra.mxu1 %v4813_v55  ;;  %v3993_v52 = vcombine.low %v2485_v47, %v2488_v49  ;;  %v2491_v55 = vrot.slane %v2426_v51, 5  ;;  %v3857_v4 = vcombine.low %v1417_v57, %v1420_v58  ;;  %v3093_v47 = vld [vmem:[%s5014_s12 + $0x5c] sm:$0xe]  ;;  %v3143_v48 = vrot.slane %v3094_v43, 5  ;;  %v4829_v57 = vld [vmem:[%s5248_s21 + $0x28] sm:$0xff]  }
  0x8c   : > { %4539 = vmatpush3.bf16.msra.mxu0 %v4812_v59  ;;  %4568 = vmatprep.subr.bf16.mxu1 %v4815_v3  ;;  %v4820_v59 = vld [vmem:[%s5672_s3 + $0x220] sm:$0xff]   ;;  %v3097_v49 = vld [vmem:[%s5014_s12 + $0x7c] sm:$0xf] }
  0x8d   : > { %4540 = vmatprep.subr.bf16.mxu0 %v4814_v2  ;;  %4418 = vmatprep.mubr.bf16.mxu1 %v3854_v10  ;;  %v2492_v1 = vsel %vm5018_vm5, %v3972_v54, %v2491_v55  ;;  %v4823_v10 = vld [vmem:[%s5673_s4 + $0x28] sm:$0xff]   ;;  %v3150_v53 = vrot.slane %v3097_v49, 5  ;;  %v3096_v54 = vld [vmem:[%s5014_s12 + $0x78] sm:$0xe] }
  0x8e   : > { %4530 = vmatprep.mubr.bf16.mxu0 %v3992_v45  ;;  %v3130_v45 = vsel %vm5018_vm5, %v4047_v31, %v3129_v29  ;;  %v4050_v63 = vrot.slane %v3096_v54, 9  ;;  %v4833_v20 = vld [vmem:[%s5248_s21 + $0x98] sm:$0xff]  }
  0x8f   : > { %4569 = vmatpush3.bf16.msra.mxu1 %v4815_v3  ;;  %v2501_v3 = vrot.slane %v2430_v62, 5  ;;  %v4053_v56 = vcombine.low %v3130_v45, %v3133_v46  ;;  %v4830_v62 = vld [vmem:[%s5248_s21 + $0x44] sm:$0xff]  }
  0x90   : > { %4541 = vmatpush3.bf16.msra.mxu0 %v4814_v2  ;;  %4570 = vmatprep.subr.bf16.mxu1 %v4817_v23  ;;  %v2493_v2 = vrot.slane %v2491_v55, 4  ;;  %v3098_v55 = vld [vmem:[%s5014_s12 + $0x80] sm:$0x1] }
  0x91   : > { %4542 = vmatprep.subr.bf16.mxu0 %v4816_v34  ;;  %v2502_v11 = vsel %vm5018_vm5, %v2500_v7, %v2501_v3  ;;  %v3099_v7 = vld [vmem:[%s5014_s12 + $0x94] sm:$0xe] }
  0x92   : > { %4419 = vmatmul.mubr.bf16.gmra.mrb[4].mxu1 %v3855_v33  ;;  %v2495_v5 = vsel %vm5018_vm5, %v2493_v2, %v2494_v60  ;;  %v3995_v12 = vcombine.low %v2499_v6, %v2502_v11  ;;  %v3091_v33 = vld [vmem:[%s5014_s12 + $0x44] sm:$0xf]  ;;  %v3145_v60 = vrot.slane %v3143_v48, 4  ;;  %v3100_v2 = vld [vmem:[%s5014_s12 + $0x98] sm:$0xf] }
  0x93   : > { %4571 = vmatpush3.bf16.msra.mxu1 %v4817_v23  ;;  %4422 = vmatprep.mubr.bf16.mxu1 %v3856_v40  ;;  %v3994_v9 = vcombine.low %v2492_v1, %v2495_v5  ;;  %v4825_v23 = vld [vmem:[%s5673_s4 + $0x30] sm:$0xff]   ;;  %v3136_v40 = vrot.slane %v3091_v33, 5  ;;  %v3153_v1 = vrot.slane %v3098_v55, 5  ;;  %v3151_v5 = vsel %vm5018_vm5, %v4050_v63, %v3150_v53 }
  0x94   : > { %4543 = vmatpush3.bf16.msra.mxu0 %v4816_v34  ;;  %4572 = vmatprep.subr.bf16.mxu1 %v4819_v39  ;;  %v4052_v34 = vcombine.low %v3123_v24, %v3126_v30 }
  0x95   : > { %4544 = vmatprep.subr.bf16.mxu0 %v4818_v44  ;;  %4531 = vmatmul.mubr.bf16.gmra.mrb[4].mxu0 %v3993_v52  ;;  %v3095_v52 = vld [vmem:[%s5014_s12 + $0x64] sm:$0x1] }
  0x96   : > { %4534 = vmatprep.mubr.bf16.mxu0 %v3994_v9  ;;  %v3146_v61 = vrot.slane %v3095_v52, 5 }
  0x97   : > { %4573 = vmatpush3.bf16.msra.mxu1 %v4819_v39  ;;  %v4048_v39 = vrot.slane %v3090_v32, 9 }
  0x98   : > { %4545 = vmatpush3.bf16.msra.mxu0 %v4818_v44  ;;  %4574 = vmatprep.subr.bf16.mxu1 %v4821_v0  ;;  %v3138_v44 = vrot.slane %v3136_v40, 4  ;;  %v3147_v3 = vsel %vm5018_vm5, %v3145_v60, %v3146_v61 }
  0x99   : > { %4546 = vmatprep.subr.bf16.mxu0 %v4820_v59  ;;  %v3137_v50 = vsel %vm5018_vm5, %v4048_v39, %v3136_v40 }
  0x9a   : > { %4423 = vmatmul.mubr.bf16.gmra.mrb[8].mxu1 %v3857_v4  ;;  %v3140_v51 = vsel %vm5018_vm5, %v3138_v44, %v3139_v41  ;;  %v3157_v4 = vrot.slane %v3100_v2, 5 }
  0x9b   : > { %4575 = vmatpush3.bf16.msra.mxu1 %v4821_v0  ;;  %4582 = vmatprep.mubr.bf16.mxu1 %v4052_v34  ;;  %v4054_v58 = vcombine.low %v3137_v50, %v3140_v51  ;;  %v3152_v0 = vrot.slane %v3150_v53, 4 }
  0x9c   : > { %4547 = vmatpush3.bf16.msra.mxu0 %v4820_v59  ;;  %4576 = vmatprep.subr.bf16.mxu1 %v4823_v10  ;;  %v4049_v59 = vrot.slane %v3093_v47, 9 }
  0x9d   : > { %4548 = vmatprep.subr.bf16.mxu0 %v4822_v8  ;;  %4535 = vmatmul.mubr.bf16.gmra.mrb[8].mxu0 %v3995_v12  ;;  %v3154_v6 = vsel %vm5018_vm5, %v3152_v0, %v3153_v1  ;;  %v4051_v12 = vrot.slane %v3099_v7, 9 }
  0x9e   : > { %4554 = vmatprep.mubr.bf16.mxu0 %v4828_v13  ;;  %v3144_v15 = vsel %vm5018_vm5, %v4049_v59, %v3143_v48  ;;  %v4056_v11 = vcombine.low %v3151_v5, %v3154_v6  ;;  %v3159_v13 = vrot.slane %v3157_v4, 4 }
  0x9f   : > { %4577 = vmatpush3.bf16.msra.mxu1 %v4823_v10  ;;  %v4055_v9 = vcombine.low %v3144_v15, %v3147_v3  ;;  %v4831_v10 = vld [vmem:[%s5248_s21 + $0x60] sm:$0xff]   ;;  %v3158_v17 = vsel %vm5018_vm5, %v4051_v12, %v3157_v4 }
  0xa0   : > { %4549 = vmatpush3.bf16.msra.mxu0 %v4822_v8  ;;  %4578 = vmatprep.subr.bf16.mxu1 %v4825_v23  ;;  %v3101_v8 = vld [vmem:[%s5014_s12 + $0x9c] sm:$0x1]  ;;  %s477_s12 = smul.u32 6, %s4856_s27  ;;  %s5701_s27 = smov (!%p490_p10, %s4856_s27), 2 }
  0xa1   : > { %4550 = vmatprep.subr.bf16.mxu0 %v4824_v28  ;;  %v3160_v14 = vrot.slane %v3101_v8, 5  ;;  %s493_s18 = sadd.s32 %s4695_s16, %s5701_s27 }
  0xa2   : > { %p480_p9 = scmp.lt.s32.totalorder %s477_s12, 17  ;;  %v5564_v33 = vstv %s477_s12  ;;  %s3740_s19 = sshll.u32 %s493_s18, 1 }
  0xa3   : > { %4579 = vmatpush3.bf16.msra.mxu1 %v4825_v23  ;;  %v3161_v18 = vsel %vm5018_vm5, %v3159_v13, %v3160_v14  ;;  %v2941_v34 = vadd.s32 1, %v5564_v33  ;;  %v5571_v36 = vadd.s32 3, %v5564_v33  ;;  %v5574_v39 = vadd.s32 2, %v5564_v33 }
  0xa4   : > { %4551 = vmatpush3.bf16.msra.mxu0 %v4824_v28  ;;  %4580 = vmatprep.subr.bf16.mxu1 %v4827_v38  ;;  %v4057_v19 = vcombine.low %v3158_v17, %v3161_v18  ;;  %s481_s21 = scalar_select %p480_p9, %s477_s12, 17  ;;  %vm2946_vm6 = vcmp.lt.s32.totalorder %v5564_v33, 16  ;;  %v5603_v8 = vadd.s32 5, %v5564_v33 }
  0xa5   : > { %4552 = vmatprep.subr.bf16.mxu0 %v4826_v42  ;;  %vm2947_vm7 = vcmp.lt.s32.totalorder %v2941_v34, 16  ;;  %vm2949_vm8 = vcmp.lt.s32.totalorder %v5571_v36, 16  ;;  %vm2948_vm9 = vcmp.lt.s32.totalorder %v5574_v39, 16 }
  0xa6   : > { %s3738_s22 = sshll.u32 %s481_s21, 1  ;;  %vm2951_vm10 = vcmp.lt.s32.totalorder %v5603_v8, 16  ;;  %s514_s21 = scalar_lea.vmem %s5677_s8, %s3740_s19 }
  0xa7   : > { %4581 = vmatpush3.bf16.msra.mxu1 %v4827_v38  ;;  %s5566_s17 = sadd.s32 %s4694_s20, %s3738_s22  ;;  %s495_s22 = scalar_lea.vmem %s5675_s6, %s3740_s19 }
  0xa8   : > { %4553 = vmatpush3.bf16.msra.mxu0 %v4826_v42  ;;  %s3739_s24 = sshll.u32 %s5566_s17, 2 }
  0xa9   : > { %s5582_s14 = scalar_lea.vmem %s5676_s7, %s3739_s24  ;;  %s5595_s25 = scalar_lea.vmem %s5674_s5, %s3739_s24 }
  0xaa   : > { %4583 = vmatmul.mubr.bf16.vlgmr.msra.gmra.mrb[12].mxu1 %v4053_v56 }
  0xab   : > { %4555 = vmatmul.mubr.bf16.vlgmr.msra.gmra.mrb[0].mxu0 %v4829_v57  ;;  %4586 = vmatprep.mubr.bf16.mxu1 %v4054_v58 }
  0xac   : > { %4558 = vmatprep.mubr.bf16.mxu0 %v4830_v62 }
  0xb2   : > { %4587 = vmatmul.mubr.bf16.gmra.mrb[16].mxu1 %v4055_v9 }
  0xb3   : > { %4559 = vmatmul.mubr.bf16.gmra.mrb[4].mxu0 %v4831_v10  ;;  %4590 = vmatprep.mubr.bf16.mxu1 %v4056_v11 }
  0xb4   : > { %4562 = vmatprep.mubr.bf16.mxu0 %v4832_v16 }
  0xba   : > { %4591 = vmatmul.mubr.bf16.gmra.mrb[20].mxu1 %v4057_v19 }
  0xbb   : > { %4563 = vmatmul.mubr.bf16.gmra.mrb[8].mxu0 %v4833_v20 }
 0x15d   : > { %v4416_v21 = vpop.f32.mrb[0].mxu1 }
 0x15e   : > { %v1544_v23 = vpop.f32.mrb[1].mxu1 }
 0x15f   : > { %v4417_v24 = vpop.f32.mrb[2].mxu1 }
 0x160   : > { %v1547_v25 = vpop.f32.mrb[3].mxu1 }
 0x165   : > { %v5546_v26 = vpop.f32.mrb[4].mxu1 }
 0x166   : > { %v5548_v27 = vpop.f32.mrb[5].mxu1 }
 0x167   : > { %v5550_v28 = vpop.f32.mrb[6].mxu1 }
 0x168   : > { %v5552_v29 = vpop.f32.mrb[7].mxu1 }
 0x16d   : > { %v5555_v22 = vpop.f32.mrb[8].mxu1 }
 0x16e   : > { %v5557_v30 = vpop.f32.mrb[9].mxu1 }
 0x16f   : > { %v5559_v31 = vpop.f32.mrb[10].mxu1 }
 0x170   : > { %v5561_v32 = vpop.f32.mrb[11].mxu1 }
 0x17d   : > { %v4584_v35 = vpop.f32.mrb[12].mxu1 }
 0x17e   : > { %v4556_v37 = vpop.f32.mrb[0].mxu0  ;;  %v3284_v38 = vpop.f32.mrb[13].mxu1  ;;  %v3411_v56 = vmul.f32 %v4584_v35, %v4584_v35 }
 0x17f   : > { %v4594_v40 = vadd.f32 %v4556_v37, %v4416_v21  ;;  %v2856_v41 = vpop.f32.mrb[1].mxu0  ;;  %v4585_v42 = vpop.f32.mrb[14].mxu1  ;;  %v3409_v44 = vmul.f32 %v3284_v38, %v3284_v38 }
 0x180   : > { %v4595_v43 = vadd.f32 %v2856_v41, %v1544_v23  ;;  %v4557_v45 = vpop.f32.mrb[2].mxu0  ;;  %v4142_v46 = vpack.c.bf16 %v4585_v42, %v4584_v35  ;;  %v3287_v47 = vpop.f32.mrb[15].mxu1  ;;  %v3412_v4 = vmul.f32 %v4585_v42, %v4585_v42 }
 0x181   : > { %v4596_v48 = vadd.f32 %v4557_v45, %v4417_v24  ;;  %v2859_v49 = vpop.f32.mrb[3].mxu0  ;;  %v4137_v50 = vpack.c.bf16 %v3287_v47, %v3284_v38  ;;  %v3391_v51 = vadd.f32 %v3287_v47, %v3284_v38  ;;  %v3410_v54 = vmul.f32 %v3287_v47, %v3287_v47 }
 0x182   : > { %v2964_v52 = vsel %vm2946_vm6, %v4595_v43, 0.0  ;;  %4169 = vst [vmem:[%s5582_s14 + $0x8] sm:$0xff] %v4142_v46   ;;  %v4597_v53 = vadd.f32 %v2859_v49, %v1547_v25  ;;  %v2966_v55 = vsel %vm2947_vm7, %v4594_v40, 0.0 }
 0x183   : > { %v2967_v57 = vsel %vm2947_vm7, %v4596_v48, 0.0  ;;  %4138 = vst [vmem:[%s5582_s14] sm:$0xff] %v4137_v50   ;;  %v3392_v58 = vadd.f32 %v4584_v35, %v3391_v51  ;;  %v3054_v59 = vmul.f32 %v2964_v52, %v2964_v52  ;;  %v3421_v62 = vadd.f32 %v3410_v54, %v3409_v44 }
 0x184   : > { %v4112_v60 = vpack.c.bf16 %v2967_v57, %v2966_v55  ;;  %v2965_v61 = vsel %vm2946_vm6, %v4597_v53, 0.0  ;;  %v3056_v3 = vmul.f32 %v2966_v55, %v2966_v55  ;;  %v3057_v23 = vmul.f32 %v2967_v57, %v2967_v57 }
 0x185   : > { %v4107_v63 = vpack.c.bf16 %v2965_v61, %v2964_v52  ;;  %v3036_v0 = vadd.f32 %v2965_v61, %v2964_v52  ;;  %v3055_v1 = vmul.f32 %v2965_v61, %v2965_v61  ;;  %v4588_v2 = vpop.f32.mrb[16].mxu1  ;;  %v3393_v15 = vadd.f32 %v4585_v42, %v3392_v58 }
 0x186   : > { %4164 = vst [vmem:[%s5595_s25 + $0x8] sm:$0xff] %v4112_v60   ;;  %v3422_v5 = vadd.f32 %v3421_v62, %v3411_v56  ;;  %v4560_v6 = vpop.f32.mrb[4].mxu0  ;;  %v3300_v7 = vpop.f32.mrb[17].mxu1 }
 0x187   : > { %4108 = vst [vmem:[%s5595_s25] sm:$0xff] %v4107_v63   ;;  %v3037_v9 = vadd.f32 %v3036_v0, %v2966_v55  ;;  %v3066_v10 = vadd.f32 %v3055_v1, %v3054_v59  ;;  %v4598_v11 = vadd.f32 %v4560_v6, %v5546_v26  ;;  %v2872_v12 = vpop.f32.mrb[5].mxu0  ;;  %v3394_v13 = vadd.f32 %v3393_v15, %v3300_v7  ;;  %v4589_v14 = vpop.f32.mrb[18].mxu1 }
 0x188   : > { %v4599_v16 = vadd.f32 %v2872_v12, %v5548_v27  ;;  %v3413_v17 = vmul.f32 %v3300_v7, %v3300_v7  ;;  %v3423_v18 = vadd.f32 %v3422_v5, %v3412_v4  ;;  %v4561_v19 = vpop.f32.mrb[6].mxu0  ;;  %v4152_v20 = vpack.c.bf16 %v4589_v14, %v4588_v2  ;;  %v3303_v21 = vpop.f32.mrb[19].mxu1 }
 0x189   : > { %v3067_v24 = vadd.f32 %v3066_v10, %v3056_v3  ;;  %v3038_v25 = vadd.f32 %v3037_v9, %v2967_v57  ;;  %v4600_v34 = vadd.f32 %v4561_v19, %v5550_v28  ;;  %v2875_v35 = vpop.f32.mrb[7].mxu0  ;;  %v2970_v26 = vsel %vm2949_vm8, %v4598_v11, 0.0 }
 0x18a   : > { %v2968_v37 = vsel %vm2948_vm9, %v4599_v16, 0.0  ;;  %v3424_v38 = vadd.f32 %v3423_v18, %v3413_v17  ;;  %4171 = vst [vmem:[%s5582_s14 + $0x18] sm:$0xff] %v4152_v20   ;;  %v5615_v27 = vadd.s32 4, %v5564_v33  ;;  %v4601_v44 = vadd.f32 %v2875_v35, %v5552_v29 }
 0x18b   : > { %v3039_v40 = vadd.f32 %v3038_v25, %v2968_v37  ;;  %v3058_v41 = vmul.f32 %v2968_v37, %v2968_v37  ;;  %v3068_v42 = vadd.f32 %v3067_v24, %v3057_v23  ;;  %v2971_v28 = vsel %vm2949_vm8, %v4600_v34, 0.0 }
 0x18c   : > { %v4122_v43 = vpack.c.bf16 %v2971_v28, %v2970_v26  ;;  %v4147_v45 = vpack.c.bf16 %v3303_v21, %v3300_v7  ;;  %v3395_v47 = vadd.f32 %v3394_v13, %v3303_v21  ;;  %v3414_v48 = vmul.f32 %v3303_v21, %v3303_v21 }
 0x18d   : > { %v3069_v46 = vadd.f32 %v3068_v42, %v3058_v41  ;;  %v4592_v49 = vpop.f32.mrb[20].mxu1  ;;  %v3060_v50 = vmul.f32 %v2970_v26, %v2970_v26  ;;  %v3415_v33 = vmul.f32 %v4588_v2, %v4588_v2  ;;  %v2969_v51 = vsel %vm2948_vm9, %v4601_v44, 0.0 }
 0x18e   : > { %4166 = vst [vmem:[%s5595_s25 + $0x18] sm:$0xff] %v4122_v43   ;;  %4170 = vst [vmem:[%s5582_s14 + $0x10] sm:$0xff] %v4147_v45   ;;  %v4564_v36 = vpop.f32.mrb[8].mxu0  ;;  %vm2950_vm11 = vcmp.lt.s32.totalorder %v5615_v27, 16  ;;  %v3316_v52 = vpop.f32.mrb[21].mxu1  ;;  %v4117_v29 = vpack.c.bf16 %v2969_v51, %v2968_v37  ;;  %v3040_v53 = vadd.f32 %v3039_v40, %v2969_v51  ;;  %v3059_v54 = vmul.f32 %v2969_v51, %v2969_v51 }
 0x18f   : > { %v3396_v55 = vadd.f32 %v4588_v2, %v3395_v47  ;;  %v2888_v56 = vpop.f32.mrb[9].mxu0  ;;  %v4593_v57 = vpop.f32.mrb[22].mxu1  ;;  %v3416_v58 = vmul.f32 %v4589_v14, %v4589_v14  ;;  %v3425_v59 = vadd.f32 %v3424_v38, %v3414_v48  ;;  %v4602_v60 = vadd.f32 %v4564_v36, %v5555_v22 }
 0x190   : > { %v4603_v61 = vadd.f32 %v2888_v56, %v5557_v30  ;;  %v4565_v39 = vpop.f32.mrb[10].mxu0  ;;  %v3319_v62 = vpop.f32.mrb[23].mxu1  ;;  %4165 = vst [vmem:[%s5595_s25 + $0x10] sm:$0xff] %v4117_v29   ;;  %v3041_v63 = vadd.f32 %v3040_v53, %v2970_v26  ;;  %v3070_v0 = vadd.f32 %v3069_v46, %v3059_v54  ;;  %v3417_v5 = vmul.f32 %v3316_v52, %v3316_v52 }
 0x191   : > { %v3397_v1 = vadd.f32 %v4589_v14, %v3396_v55  ;;  %v4604_v15 = vadd.f32 %v4565_v39, %v5559_v31  ;;  %v2891_v3 = vpop.f32.mrb[11].mxu0  ;;  %v3426_v4 = vadd.f32 %v3425_v59, %v3415_v33  ;;  %v4162_v6 = vpack.c.bf16 %v4593_v57, %v4592_v49 }
 0x192   : > { %v2972_v2 = vsel %vm2950_vm11, %v4603_v61, 0.0  ;;  %v3061_v22 = vmul.f32 %v2971_v28, %v2971_v28  ;;  %v3071_v7 = vadd.f32 %v3070_v0, %v3060_v50  ;;  %v3042_v30 = vadd.f32 %v3041_v63, %v2971_v28 }
 0x193   : > { %v3062_v9 = vmul.f32 %v2972_v2, %v2972_v2  ;;  %v2974_v10 = vsel %vm2951_vm10, %v4602_v60, 0.0  ;;  %v3398_v11 = vadd.f32 %v3397_v1, %v3316_v52  ;;  %v3427_v12 = vadd.f32 %v3426_v4, %v3416_v58  ;;  %4173 = vst [vmem:[%s5582_s14 + $0x28] sm:$0xff] %v4162_v6  }
 0x194   : > { %v2975_v31 = vsel %vm2951_vm10, %v4604_v15, 0.0  ;;  %v3043_v13 = vadd.f32 %v3042_v30, %v2972_v2  ;;  %v3072_v14 = vadd.f32 %v3071_v7, %v3061_v22  ;;  %v4605_v18 = vadd.f32 %v2891_v3, %v5561_v32 }
 0x195   : > { %v4132_v16 = vpack.c.bf16 %v2975_v31, %v2974_v10  ;;  %v3428_v17 = vadd.f32 %v3427_v12, %v3417_v5  ;;  %v4157_v19 = vpack.c.bf16 %v3319_v62, %v3316_v52  ;;  %v3399_v20 = vadd.f32 %v3398_v11, %v3319_v62 }
 0x196   : > { %v3073_v21 = vadd.f32 %v3072_v14, %v3062_v9  ;;  %v3418_v23 = vmul.f32 %v3319_v62, %v3319_v62  ;;  %v3419_v8 = vmul.f32 %v4592_v49, %v4592_v49  ;;  %v2973_v24 = vsel %vm2950_vm11, %v4605_v18, 0.0 }
 0x197   : > { %4168 = vst [vmem:[%s5595_s25 + $0x28] sm:$0xff] %v4132_v16   ;;  %4172 = vst [vmem:[%s5582_s14 + $0x20] sm:$0xff] %v4157_v19   ;;  %v3400_v25 = vadd.f32 %v4592_v49, %v3399_v20  ;;  %v4127_v34 = vpack.c.bf16 %v2973_v24, %v2972_v2  ;;  %v3044_v35 = vadd.f32 %v3043_v13, %v2973_v24 }
 0x198   : > { %v3063_v26 = vmul.f32 %v2973_v24, %v2973_v24  ;;  %v3429_v32 = vadd.f32 %v3428_v17, %v3418_v23  ;;  %v3064_v37 = vmul.f32 %v2974_v10, %v2974_v10  ;;  %v3420_v40 = vmul.f32 %v4593_v57, %v4593_v57 }
 0x199   : > { %v3401_v38 = vadd.f32 %v4593_v57, %v3400_v25  ;;  %4167 = vst [vmem:[%s5595_s25 + $0x20] sm:$0xff] %v4127_v34   ;;  %v3045_v41 = vadd.f32 %v3044_v35, %v2974_v10  ;;  %v3065_v44 = vmul.f32 %v2975_v31, %v2975_v31 }
 0x19a   : > { %v3074_v42 = vadd.f32 %v3073_v21, %v3063_v26  ;;  %v3430_v28 = vadd.f32 %v3429_v32, %v3419_v8 }
 0x19b   : > { %v3402_v43 = vrot.slane %v3401_v38, 4  ;;  %v3046_v27 = vadd.f32 %v3045_v41, %v2975_v31 }
 0x19c   : > { %v3075_v45 = vadd.f32 %v3074_v42, %v3064_v37  ;;  %v3431_v46 = vadd.f32 %v3430_v28, %v3420_v40 }
 0x19d   : > { %v3403_v47 = vadd.f32 %v3402_v43, %v3401_v38  ;;  %v3047_v48 = vrot.slane %v3046_v27, 4 }
 0x19e   : > { %v3076_v49 = vadd.f32 %v3075_v45, %v3065_v44  ;;  %v3432_v50 = vrot.slane %v3431_v46, 4 }
 0x19f   : > { %v3404_v33 = vrot.slane %v3403_v47, 2  ;;  %v3048_v51 = vadd.f32 %v3047_v48, %v3046_v27 }
 0x1a0   : > { %v3077_v36 = vrot.slane %v3076_v49, 4  ;;  %v3433_v52 = vadd.f32 %v3432_v50, %v3431_v46 }
 0x1a1   : > { %v3405_v29 = vadd.f32 %v3404_v33, %v3403_v47  ;;  %v3049_v53 = vrot.slane %v3048_v51, 2 }
 0x1a2   : > { %v3078_v54 = vadd.f32 %v3077_v36, %v3076_v49  ;;  %v3434_v55 = vrot.slane %v3433_v52, 2 }
 0x1a3   : > { %v3406_v56 = vrot.slane %v3405_v29, 1  ;;  %v3050_v57 = vadd.f32 %v3049_v53, %v3048_v51 }
 0x1a4   : > { %v3079_v58 = vrot.slane %v3078_v54, 2  ;;  %v3435_v59 = vadd.f32 %v3434_v55, %v3433_v52 }
 0x1a5   : > { %v3407_v60 = vadd.f32 %v3406_v56, %v3405_v29  ;;  %v3051_v61 = vrot.slane %v3050_v57, 1 }
 0x1a6   : > { %v3080_v39 = vadd.f32 %v3079_v58, %v3078_v54  ;;  %v3436_v62 = vrot.slane %v3435_v59, 1 }
 0x1a7   : > { %3408 = vst [vmem:[%s514_s21] sm:$0x1] %v3407_v60  ;;  %v3052_v63 = vadd.f32 %v3051_v61, %v3050_v57 }
 0x1a8   : > { %v3081_v0 = vrot.slane %v3080_v39, 1  ;;  %v3437_v1 = vadd.f32 %v3436_v62, %v3435_v59 }
 0x1a9   : > { %3053 = vst [vmem:[%s495_s22] sm:$0x1] %v3052_v63 }
 0x1aa   : > { %v3082_v15 = vadd.f32 %v3081_v0, %v3080_v39  ;;  %3438 = vst [vmem:[%s514_s21 + $0x1] sm:$0x1] %v3437_v1 }
 0x1ac   : > { %3083 = vst [vmem:[%s495_s22 + $0x1] sm:$0x1] %v3082_v15 }
 0x1ad PF: > { %s19_s9 = sadd.s32 1, %s4872_s9   ;;  %s5682_s27 = smov %s4864_s29 }
 0x1ae   : > { %p16_p11 = scmp.ge.s32.totalorder %s19_s9, 8   ;;  %s5683_s28 = smov %s4868_s30 }
 0x1af   : > { %s5684_s29 = smov %s5687_s10  ;;  %s5685_s30 = smov %s5691_s11 }
 0x1b0   :  { %18 = sbr.rel (!%p16_p11) target bundleno = 3 (0x3), region = 120 }

// kernel: asspmy_forward.7
= control target key start
LH: loop header
LB: loop body
LE: loop exit
PB: predicated region body
PF: predicated region fallthrough
CT: control target
= control target key end

     0   :  { %s4332_s30 = smov 0   ;;  %s4334_s10 = smov 0   ;;  %s4980_s0 = inlined_call_operand.vmem [shape: bf16[2,18,16,128], index: 0, kind: input, shape index: {}]   ;;  %s4981_s1 = inlined_call_operand.vmem [shape: bf16[2,18,16,128], index: 1, kind: input, shape index: {}]   ;;  %s4982_s2 = inlined_call_operand.vmem [shape: bf16[2,18,16,128], index: 2, kind: input, shape index: {}]   ;;  %s4983_s3 = inlined_call_operand.vmem [shape: bf16[2,18,16,128], index: 3, kind: input, shape index: {}]   ;;  %s4984_s4 = inlined_call_operand.vmem [shape: f32[4,128], index: 4, kind: input, shape index: {}]   ;;  %s4985_s5 = inlined_call_operand.vmem [shape: f32[4,128], index: 5, kind: input, shape index: {}]   ;;  %s4986_s6 = inlined_call_operand.vmem [shape: bf16[4,128,128], index: 6, kind: input, shape index: {}]   ;;  %s4987_s7 = inlined_call_operand.vmem [shape: f32[2,1,128], index: 7, kind: input, shape index: {}]   ;;  %s4988_s8 = inlined_call_operand.vmem [shape: f32[2,18,16,128], index: 8, kind: output, shape index: {0}]   ;;  %s4989_s9 = inlined_call_operand.vmem [shape: f32[2,1,2,128], index: 9, kind: output, shape index: {1}]  }
   0x1   :  { %s4336_s11 = smov 0  }
   0x2 LB: > { %s32_s12 = sadd.s32 1, %s4275_s10  ;;  %p3310_p0 = scmp.ge.s32.totalorder %s4279_s11, 1  ;;  %s4279_s11 = sphi %s4336_s11, %s20_s11   ;;  %s4275_s10 = sphi %s4334_s10, %s4991_s10   ;;  %s4271_s30 = sphi %s4332_s30, %s4990_s30  }
   0x3   : > { %p34_p1 = scmp.ge.s32.totalorder %s32_s12, 2  ;;  %p376_p2 = scmp.lt.s32.totalorder %s4279_s11, 3 }
   0x5   : > { %s4993_s12 = smov (%p34_p1, %s32_s12), 0  ;;  %p377_p3 = pnand %p3310_p0, %p376_p2 }
   0x6   : > { %v4223_v0 = vld [vmem:[%s4986_s6] sm:$0xff] (!%p377_p3)   ;;  %p463_p4 = scmp.lt.s32.totalorder (!%p377_p3), %s4271_s30, 1  ;;  %v4225_v2 = vld [vmem:[%s4986_s6 + $0x8] sm:$0xff] (!%p377_p3)   ;;  %v4227_v4 = vld [vmem:[%s4986_s6 + $0x10] sm:$0xff] (!%p377_p3)   ;;  %v645_v5 = vlaneseq (!%p377_p3) }
   0x7   : > { %380 = sbr.rel (%p377_p3) target bundleno = 416 (0x1a0), region = 52  ;;  %v4224_v1 = vld [vmem:[%s4986_s6 + $0x80] sm:$0xff] (!%p377_p3)   ;;  %3860 = vmatprep.subr.bf16.mxu1 (!%p377_p3), %v4223_v0  ;;  %v4226_v3 = vld [vmem:[%s4986_s6 + $0x88] sm:$0xff] (!%p377_p3)   ;;  %v4228_v6 = vld [vmem:[%s4986_s6 + $0x90] sm:$0xff] (!%p377_p3)  }
   0x8   : > { %3964 = vmatprep.subr.bf16.mxu0 (!%p377_p3), %v4224_v1  ;;  %3861 = vmatpush3.bf16.msra.mxu1 (!%p377_p3), %v4223_v0  ;;  %v4229_v7 = vld [vmem:[%s4986_s6 + $0x18] sm:$0xff] (!%p377_p3)   ;;  %v4373_v8 = vshrl.u32 (!%p377_p3), %v645_v5, 7  ;;  %v4231_v10 = vld [vmem:[%s4986_s6 + $0x20] sm:$0xff] (!%p377_p3)   ;;  %v4233_v13 = vld [vmem:[%s4986_s6 + $0x28] sm:$0xff] (!%p377_p3)  }
   0x9   : > { %3965 = vmatpush3.bf16.msra.mxu0 (!%p377_p3), %v4224_v1  ;;  %3862 = vmatprep.subr.bf16.mxu1 (!%p377_p3), %v4225_v2  ;;  %v4230_v9 = vld [vmem:[%s4986_s6 + $0x98] sm:$0xff] (!%p377_p3)   ;;  %v4232_v11 = vld [vmem:[%s4986_s6 + $0xa0] sm:$0xff] (!%p377_p3)   ;;  %v4234_v15 = vld [vmem:[%s4986_s6 + $0xa8] sm:$0xff] (!%p377_p3)  }
   0xa   : > { %3966 = vmatprep.subr.bf16.mxu0 (!%p377_p3), %v4226_v3  ;;  %v647_v12 = vsub.s32 (!%p377_p3), 0, %v4373_v8  ;;  %v1758_v14 = vsub.s32 (!%p377_p3), 2, %v4373_v8  ;;  %v1202_v16 = vsub.s32 (!%p377_p3), 1, %v4373_v8  ;;  %v4411_v17 = vld [vmem:[%s4984_s4] sm:$0xf] (!%p377_p3)  ;;  %v2314_v20 = vsub.s32 (!%p377_p3), 3, %v4373_v8 }
   0xb   : > { %v4416_v18 = vld [vmem:[%s4985_s5] sm:$0xf] (!%p377_p3)  ;;  %v4235_v36 = vld [vmem:[%s4986_s6 + $0x30] sm:$0xff] (!%p377_p3)   ;;  %v4237_v51 = vld [vmem:[%s4986_s6 + $0x38] sm:$0xff] (!%p377_p3)  }
   0xc   : > { %3863 = vmatpush3.bf16.msra.mxu1 (!%p377_p3), %v4225_v2  ;;  %v4421_v23 = vrot.slane (!%p377_p3), %v4411_v17, %v647_v12  ;;  %v4424_v24 = vrot.slane (!%p377_p3), %v4416_v18, %v647_v12  ;;  %v4429_v29 = vrot.slane (!%p377_p3), %v4411_v17, %v1758_v14  ;;  %v4432_v30 = vrot.slane (!%p377_p3), %v4416_v18, %v1758_v14  ;;  %v4236_v41 = vld [vmem:[%s4986_s6 + $0xb0] sm:$0xff] (!%p377_p3)   ;;  %v4238_v56 = vld [vmem:[%s4986_s6 + $0xb8] sm:$0xff] (!%p377_p3)  }
   0xd   : > { %3967 = vmatpush3.bf16.msra.mxu0 (!%p377_p3), %v4226_v3  ;;  %3864 = vmatprep.subr.bf16.mxu1 (!%p377_p3), %v4227_v4 }
   0xe   : > { %s4995_s30 = smov (!%p463_p4, %s4271_s30), 1  ;;  %3968 = vmatprep.subr.bf16.mxu0 %v4228_v6 }
   0xf   : > { %s4379_s29 = smul.u32 144, %s4995_s30  ;;  %s508_s28 = scalar_lea.vmem %s4987_s7, %s4995_s30 }
  0x10   : > { %3865 = vmatpush3.bf16.msra.mxu1 %v4227_v4  ;;  %s4197_s21 = smul.u32 288, %s4995_s30  ;;  %s3316_s13 = sshll.u32 %s4995_s30, 1 }
  0x11   : > { %3969 = vmatpush3.bf16.msra.mxu0 %v4228_v6  ;;  %3866 = vmatprep.subr.bf16.mxu1 %v4229_v7  ;;  %s4391_s19 = scalar_lea.vmem %s4980_s0, %s4379_s29  ;;  %s4401_s24 = scalar_lea.vmem %s4982_s2, %s4379_s29 }
  0x12   : > { %3970 = vmatprep.subr.bf16.mxu0 %v4230_v9  ;;  %v3401_v19 = vld [vmem:[%s4391_s19] sm:$0xff]   ;;  %v3688_v26 = vld [vmem:[%s4391_s19 + $0x8] sm:$0xff]   ;;  %v3689_v50 = vld [vmem:[%s4391_s19 + $0x10] sm:$0xff]   ;;  %s4659_s15 = scalar_lea.vmem %s4981_s1, %s4379_s29  ;;  %s4674_s16 = scalar_lea.vmem %s4983_s3, %s4379_s29 }
  0x13   : > { %v3402_v21 = vunpack.c.l.bf16 %v3401_v19  ;;  %v3403_v22 = vunpack.c.h.bf16 %v3401_v19  ;;  %v3545_v25 = vld [vmem:[%s4401_s24] sm:$0xff]   ;;  %v3722_v31 = vld [vmem:[%s4401_s24 + $0x8] sm:$0xff]   ;;  %v3406_v34 = vunpack.c.l.bf16 %v3688_v26  ;;  %v3407_v35 = vunpack.c.h.bf16 %v3688_v26  ;;  %v3723_v61 = vld [vmem:[%s4401_s24 + $0x10] sm:$0xff]   ;;  %s4891_s25 = scalar_lea.vmem %s4988_s8, %s4197_s21 }
  0x14   : > { %3867 = vmatpush3.bf16.msra.mxu1 %v4229_v7  ;;  %v3546_v27 = vunpack.c.l.bf16 %v3545_v25  ;;  %v3547_v28 = vunpack.c.h.bf16 %v3545_v25  ;;  %v3550_v39 = vunpack.c.l.bf16 %v3722_v31  ;;  %v3551_v40 = vunpack.c.h.bf16 %v3722_v31  ;;  %v3690_v2 = vld [vmem:[%s4391_s19 + $0x18] sm:$0xff]  }
  0x15   : > { %3971 = vmatpush3.bf16.msra.mxu0 %v4230_v9  ;;  %3868 = vmatprep.subr.bf16.mxu1 %v4231_v10  ;;  %v649_v32 = vmul.f32 %v3402_v21, %v4421_v23  ;;  %v650_v33 = vmul.f32 %v3403_v22, %v4421_v23  ;;  %v651_v44 = vmul.f32 %v3406_v34, %v4421_v23  ;;  %v3410_v1 = vunpack.c.l.bf16 %v3689_v50  ;;  %v3724_v3 = vld [vmem:[%s4401_s24 + $0x18] sm:$0xff]   ;;  %v4240_v22 = vld [vmem:[%s4986_s6 + $0xc0] sm:$0xff]  }
  0x16   : > { %3972 = vmatprep.subr.bf16.mxu0 %v4232_v11  ;;  %v1760_v37 = vmul.f32 %v3546_v27, %v4429_v29  ;;  %v1761_v38 = vmul.f32 %v3547_v28, %v4429_v29  ;;  %v652_v45 = vmul.f32 %v3407_v35, %v4421_v23  ;;  %v1762_v48 = vmul.f32 %v3550_v39, %v4429_v29  ;;  %v3691_v35 = vld [vmem:[%s4391_s19 + $0x20] sm:$0xff]  }
  0x17   : > { %v689_v42 = vadd.f32 %v4424_v24, %v649_v32  ;;  %v690_v43 = vadd.f32 %v4424_v24, %v650_v33  ;;  %v1763_v49 = vmul.f32 %v3551_v40, %v4429_v29  ;;  %v691_v54 = vadd.f32 %v4424_v24, %v651_v44 }
  0x18   : > { %3869 = vmatpush3.bf16.msra.mxu1 %v4231_v10  ;;  %v1800_v46 = vadd.f32 %v4432_v30, %v1760_v37  ;;  %v1801_v47 = vadd.f32 %v4432_v30, %v1761_v38  ;;  %v692_v55 = vadd.f32 %v4424_v24, %v652_v45  ;;  %v1802_v59 = vadd.f32 %v4432_v30, %v1762_v48 }
  0x19   : > { %3973 = vmatpush3.bf16.msra.mxu0 %v4232_v11  ;;  %3870 = vmatprep.subr.bf16.mxu1 %v4233_v13  ;;  %v725_v52 = vmax.f32 %v689_v42, 0.0  ;;  %v726_v53 = vmax.f32 %v690_v43, 0.0  ;;  %v1803_v60 = vadd.f32 %v4432_v30, %v1763_v49  ;;  %v727_v63 = vmax.f32 %v691_v54, 0.0  ;;  %v3725_v49 = vld [vmem:[%s4401_s24 + $0x20] sm:$0xff]   ;;  %v4242_v54 = vld [vmem:[%s4986_s6 + $0xc8] sm:$0xff]  }
  0x1a   : > { %3974 = vmatprep.subr.bf16.mxu0 %v4234_v15  ;;  %v1836_v57 = vmax.f32 %v1800_v46, 0.0  ;;  %v1837_v58 = vmax.f32 %v1801_v47, 0.0  ;;  %v728_v0 = vmax.f32 %v692_v55, 0.0  ;;  %v1838_v5 = vmax.f32 %v1802_v59, 0.0  ;;  %v4241_v47 = vld [vmem:[%s4986_s6 + $0x48] sm:$0xff]  }
  0x1b   : > { %v797_v62 = vpack.c.bf16 %v726_v53, %v725_v52  ;;  %v1839_v6 = vmax.f32 %v1803_v60, 0.0  ;;  %v3411_v7 = vunpack.c.h.bf16 %v3689_v50  ;;  %v653_v10 = vmul.f32 %v3410_v1, %v4421_v23  ;;  %v3692_v55 = vld [vmem:[%s4391_s19 + $0x28] sm:$0xff]   ;;  %v4243_v1 = vld [vmem:[%s4986_s6 + $0x50] sm:$0xff]  }
  0x1c   : > { %3871 = vmatpush3.bf16.msra.mxu1 %v4233_v13  ;;  %v1908_v4 = vpack.c.bf16 %v1837_v58, %v1836_v57  ;;  %v798_v9 = vpack.c.bf16 %v728_v0, %v727_v63  ;;  %v3554_v11 = vunpack.c.l.bf16 %v3723_v61  ;;  %v3555_v12 = vunpack.c.h.bf16 %v3723_v61  ;;  %v4239_v13 = vld [vmem:[%s4986_s6 + $0x40] sm:$0xff]   ;;  %v3726_v60 = vld [vmem:[%s4401_s24 + $0x28] sm:$0xff]  }
  0x1d   : > { %3975 = vmatpush3.bf16.msra.mxu0 %v4234_v15  ;;  %3872 = vmatprep.subr.bf16.mxu1 %v4235_v36  ;;  %v1909_v14 = vpack.c.bf16 %v1839_v6, %v1838_v5  ;;  %v654_v15 = vmul.f32 %v3411_v7, %v4421_v23  ;;  %v3414_v19 = vunpack.c.l.bf16 %v3690_v2  ;;  %v3415_v21 = vunpack.c.h.bf16 %v3690_v2  ;;  %v4244_v6 = vld [vmem:[%s4986_s6 + $0xd0] sm:$0xff]  }
  0x1e   : > { %3976 = vmatprep.subr.bf16.mxu0 %v4236_v41  ;;  %3876 = vmatprep.mubr.bf16.mxu1 %v797_v62  ;;  %v693_v25 = vadd.f32 %v4424_v24, %v653_v10  ;;  %v1764_v26 = vmul.f32 %v3554_v11, %v4429_v29  ;;  %v1765_v27 = vmul.f32 %v3555_v12, %v4429_v29  ;;  %v3558_v28 = vunpack.c.l.bf16 %v3724_v3  ;;  %v3693_v12 = vld [vmem:[%s4391_s19 + $0x30] sm:$0xff]  }
  0x1f   : > { %3980 = vmatprep.mubr.bf16.mxu0 %v1908_v4  ;;  %v694_v31 = vadd.f32 %v4424_v24, %v654_v15  ;;  %v655_v32 = vmul.f32 %v3414_v19, %v4421_v23  ;;  %v656_v33 = vmul.f32 %v3415_v21, %v4421_v23  ;;  %v3559_v34 = vunpack.c.h.bf16 %v3724_v3 }
  0x20   : > { %3873 = vmatpush3.bf16.msra.mxu1 %v4235_v36  ;;  %v729_v36 = vmax.f32 %v693_v25, 0.0  ;;  %v1804_v37 = vadd.f32 %v4432_v30, %v1764_v26  ;;  %v1805_v38 = vadd.f32 %v4432_v30, %v1765_v27  ;;  %v1766_v39 = vmul.f32 %v3558_v28, %v4429_v29  ;;  %v4245_v27 = vld [vmem:[%s4986_s6 + $0x58] sm:$0xff]  }
  0x21   : > { %3977 = vmatpush3.bf16.msra.mxu0 %v4236_v41  ;;  %3874 = vmatprep.subr.bf16.mxu1 %v4237_v51  ;;  %v730_v40 = vmax.f32 %v694_v31, 0.0  ;;  %v695_v41 = vadd.f32 %v4424_v24, %v655_v32  ;;  %v696_v42 = vadd.f32 %v4424_v24, %v656_v33  ;;  %v1767_v43 = vmul.f32 %v3559_v34, %v4429_v29  ;;  %v3727_v34 = vld [vmem:[%s4401_s24 + $0x30] sm:$0xff]  }
  0x22   : > { %3978 = vmatprep.subr.bf16.mxu0 %v4238_v56  ;;  %v1840_v44 = vmax.f32 %v1804_v37, 0.0  ;;  %v1841_v45 = vmax.f32 %v1805_v38, 0.0  ;;  %v1806_v46 = vadd.f32 %v4432_v30, %v1766_v39  ;;  %v3418_v48 = vunpack.c.l.bf16 %v3691_v35 }
  0x23   : > { %v799_v50 = vpack.c.bf16 %v730_v40, %v729_v36  ;;  %v732_v52 = vmax.f32 %v696_v42, 0.0  ;;  %v1807_v53 = vadd.f32 %v4432_v30, %v1767_v43  ;;  %v3419_v58 = vunpack.c.h.bf16 %v3691_v35  ;;  %v4246_v35 = vld [vmem:[%s4986_s6 + $0xd8] sm:$0xff]  }
  0x24   : > { %3875 = vmatpush3.bf16.msra.mxu1 %v4237_v51  ;;  %v731_v51 = vmax.f32 %v695_v41, 0.0  ;;  %v1842_v57 = vmax.f32 %v1806_v46, 0.0  ;;  %v657_v59 = vmul.f32 %v3418_v48, %v4421_v23  ;;  %v3562_v63 = vunpack.c.l.bf16 %v3725_v49 }
  0x25   : > { %3979 = vmatpush3.bf16.msra.mxu0 %v4238_v56  ;;  %3912 = vmatprep.subr.bf16.mxu1 %v4239_v13  ;;  %v1910_v56 = vpack.c.bf16 %v1841_v45, %v1840_v44  ;;  %v1843_v62 = vmax.f32 %v1807_v53, 0.0  ;;  %v3563_v0 = vunpack.c.h.bf16 %v3725_v49  ;;  %v658_v2 = vmul.f32 %v3419_v58, %v4421_v23  ;;  %v3694_v44 = vld [vmem:[%s4391_s19 + $0x38] sm:$0xff]  }
  0x26   : > { %4016 = vmatprep.subr.bf16.mxu0 %v4240_v22  ;;  %v800_v61 = vpack.c.bf16 %v732_v52, %v731_v51  ;;  %v697_v3 = vadd.f32 %v4424_v24, %v657_v59  ;;  %v3422_v4 = vunpack.c.l.bf16 %v3692_v55  ;;  %v3423_v5 = vunpack.c.h.bf16 %v3692_v55  ;;  %v3728_v45 = vld [vmem:[%s4401_s24 + $0x38] sm:$0xff]   ;;  %v4248_v55 = vld [vmem:[%s4986_s6 + $0xe0] sm:$0xff]  }
  0x27   : > { %3877 = vmatmul.mubr.bf16.vlgmr.msra.gmra.mrb[0].mxu1 %v798_v9  ;;  %v1911_v7 = vpack.c.bf16 %v1843_v62, %v1842_v57  ;;  %v1768_v9 = vmul.f32 %v3562_v63, %v4429_v29  ;;  %v1769_v10 = vmul.f32 %v3563_v0, %v4429_v29  ;;  %v3566_v11 = vunpack.c.l.bf16 %v3726_v60  ;;  %v3695_v0 = vld [vmem:[%s4391_s19 + $0x40] sm:$0xff]  }
  0x28   : > { %3981 = vmatmul.mubr.bf16.vlgmr.msra.gmra.mrb[0].mxu0 %v1909_v14  ;;  %3913 = vmatpush3.bf16.msra.mxu1 %v4239_v13  ;;  %v698_v13 = vadd.f32 %v4424_v24, %v658_v2  ;;  %v733_v14 = vmax.f32 %v697_v3, 0.0  ;;  %v659_v15 = vmul.f32 %v3422_v4, %v4421_v23  ;;  %v660_v19 = vmul.f32 %v3423_v5, %v4421_v23  ;;  %v4249_v5 = vld [vmem:[%s4986_s6 + $0x68] sm:$0xff]  }
  0x29   : > { %4017 = vmatpush3.bf16.msra.mxu0 %v4240_v22  ;;  %3880 = vmatprep.mubr.bf16.mxu1 %v799_v50  ;;  %v1808_v21 = vadd.f32 %v4432_v30, %v1768_v9  ;;  %v1809_v22 = vadd.f32 %v4432_v30, %v1769_v10  ;;  %v3567_v25 = vunpack.c.h.bf16 %v3726_v60  ;;  %v1770_v26 = vmul.f32 %v3566_v11, %v4429_v29  ;;  %v4247_v50 = vld [vmem:[%s4986_s6 + $0x60] sm:$0xff]   ;;  %v4250_v11 = vld [vmem:[%s4986_s6 + $0xe8] sm:$0xff]  }
  0x2a   : > { %3984 = vmatprep.mubr.bf16.mxu0 %v1910_v56  ;;  %3914 = vmatprep.subr.bf16.mxu1 %v4241_v47  ;;  %v734_v28 = vmax.f32 %v698_v13, 0.0  ;;  %v699_v31 = vadd.f32 %v4424_v24, %v659_v15  ;;  %v700_v32 = vadd.f32 %v4424_v24, %v660_v19  ;;  %v3426_v33 = vunpack.c.l.bf16 %v3693_v12  ;;  %v3729_v19 = vld [vmem:[%s4401_s24 + $0x40] sm:$0xff]  }
  0x2b   : > { %4018 = vmatprep.subr.bf16.mxu0 %v4242_v54  ;;  %v1844_v36 = vmax.f32 %v1808_v21, 0.0  ;;  %v1845_v37 = vmax.f32 %v1809_v22, 0.0  ;;  %v1771_v38 = vmul.f32 %v3567_v25, %v4429_v29  ;;  %v1810_v39 = vadd.f32 %v4432_v30, %v1770_v26 }
  0x2c   : > { %3915 = vmatpush3.bf16.msra.mxu1 %v4241_v47  ;;  %v801_v40 = vpack.c.bf16 %v734_v28, %v733_v14  ;;  %v735_v41 = vmax.f32 %v699_v31, 0.0  ;;  %v736_v42 = vmax.f32 %v700_v32, 0.0  ;;  %v3427_v43 = vunpack.c.h.bf16 %v3693_v12 }
  0x2d   : > { %4019 = vmatpush3.bf16.msra.mxu0 %v4242_v54  ;;  %3916 = vmatprep.subr.bf16.mxu1 %v4243_v1  ;;  %v1912_v46 = vpack.c.bf16 %v1845_v37, %v1844_v36  ;;  %v1811_v47 = vadd.f32 %v4432_v30, %v1771_v38  ;;  %v1846_v48 = vmax.f32 %v1810_v39, 0.0  ;;  %v661_v49 = vmul.f32 %v3426_v33, %v4421_v23  ;;  %v3696_v33 = vld [vmem:[%s4391_s19 + $0x48] sm:$0xff]  }
  0x2e   : > { %4020 = vmatprep.subr.bf16.mxu0 %v4244_v6  ;;  %v802_v51 = vpack.c.bf16 %v736_v42, %v735_v41  ;;  %v662_v52 = vmul.f32 %v3427_v43, %v4421_v23  ;;  %v3570_v53 = vunpack.c.l.bf16 %v3727_v34  ;;  %v3571_v54 = vunpack.c.h.bf16 %v3727_v34  ;;  %v4251_v34 = vld [vmem:[%s4986_s6 + $0x70] sm:$0xff]   ;;  %v3730_v39 = vld [vmem:[%s4401_s24 + $0x48] sm:$0xff]  }
  0x2f   : > { %3881 = vmatmul.mubr.bf16.gmra.mrb[4].mxu1 %v800_v61  ;;  %v1847_v56 = vmax.f32 %v1811_v47, 0.0  ;;  %v701_v57 = vadd.f32 %v4424_v24, %v661_v49  ;;  %v3430_v58 = vunpack.c.l.bf16 %v3694_v44  ;;  %v3431_v59 = vunpack.c.h.bf16 %v3694_v44 }
  0x30   : > { %3985 = vmatmul.mubr.bf16.gmra.mrb[4].mxu0 %v1911_v7  ;;  %3917 = vmatpush3.bf16.msra.mxu1 %v4243_v1  ;;  %v702_v60 = vadd.f32 %v4424_v24, %v662_v52  ;;  %v1772_v61 = vmul.f32 %v3570_v53, %v4429_v29  ;;  %v1773_v62 = vmul.f32 %v3571_v54, %v4429_v29  ;;  %v3574_v63 = vunpack.c.l.bf16 %v3728_v45  ;;  %v3697_v53 = vld [vmem:[%s4391_s19 + $0x50] sm:$0xff]   ;;  %v4253_v54 = vld [vmem:[%s4986_s6 + $0x78] sm:$0xff]  }
  0x31   : > { %4021 = vmatpush3.bf16.msra.mxu0 %v4244_v6  ;;  %3918 = vmatprep.subr.bf16.mxu1 %v4245_v27  ;;  %v1913_v1 = vpack.c.bf16 %v1847_v56, %v1846_v48  ;;  %v737_v2 = vmax.f32 %v701_v57, 0.0  ;;  %v663_v3 = vmul.f32 %v3430_v58, %v4421_v23  ;;  %v664_v4 = vmul.f32 %v3431_v59, %v4421_v23  ;;  %v4254_v59 = vld [vmem:[%s4986_s6 + $0xf8] sm:$0xff]  }
  0x32   : > { %3884 = vmatprep.mubr.bf16.mxu1 %v801_v40  ;;  %4022 = vmatprep.subr.bf16.mxu0 %v4246_v35  ;;  %v738_v6 = vmax.f32 %v702_v60, 0.0  ;;  %v1812_v7 = vadd.f32 %v4432_v30, %v1772_v61  ;;  %v1813_v9 = vadd.f32 %v4432_v30, %v1773_v62  ;;  %v3575_v10 = vunpack.c.h.bf16 %v3728_v45  ;;  %v4252_v40 = vld [vmem:[%s4986_s6 + $0xf0] sm:$0xff]  }
  0x33   : > { %3988 = vmatprep.mubr.bf16.mxu0 %v1912_v46  ;;  %v703_v12 = vadd.f32 %v4424_v24, %v663_v3  ;;  %v704_v13 = vadd.f32 %v4424_v24, %v664_v4  ;;  %v1774_v14 = vmul.f32 %v3574_v63, %v4429_v29  ;;  %v3434_v15 = vunpack.c.l.bf16 %v3695_v0  ;;  %v3731_v4 = vld [vmem:[%s4401_s24 + $0x50] sm:$0xff]  }
  0x34   : > { %3919 = vmatpush3.bf16.msra.mxu1 %v4245_v27  ;;  %v803_v21 = vpack.c.bf16 %v738_v6, %v737_v2  ;;  %v1848_v22 = vmax.f32 %v1812_v7, 0.0  ;;  %v1849_v25 = vmax.f32 %v1813_v9, 0.0  ;;  %v1775_v26 = vmul.f32 %v3575_v10, %v4429_v29 }
  0x35   : > { %4023 = vmatpush3.bf16.msra.mxu0 %v4246_v35  ;;  %3920 = vmatprep.subr.bf16.mxu1 %v4247_v50  ;;  %v739_v27 = vmax.f32 %v703_v12, 0.0  ;;  %v740_v28 = vmax.f32 %v704_v13, 0.0  ;;  %v1814_v31 = vadd.f32 %v4432_v30, %v1774_v14  ;;  %v3435_v32 = vunpack.c.h.bf16 %v3695_v0  ;;  %v3698_v14 = vld [vmem:[%s4391_s19 + $0x58] sm:$0xff]  }
  0x36   : > { %4024 = vmatprep.subr.bf16.mxu0 %v4248_v55  ;;  %v1914_v35 = vpack.c.bf16 %v1849_v25, %v1848_v22  ;;  %v1815_v36 = vadd.f32 %v4432_v30, %v1775_v26  ;;  %v665_v37 = vmul.f32 %v3434_v15, %v4421_v23  ;;  %v3578_v38 = vunpack.c.l.bf16 %v3729_v19 }
  0x37   : > { %3885 = vmatmul.mubr.bf16.gmra.mrb[8].mxu1 %v802_v51  ;;  %v804_v41 = vpack.c.bf16 %v740_v28, %v739_v27  ;;  %v1850_v42 = vmax.f32 %v1814_v31, 0.0  ;;  %v666_v43 = vmul.f32 %v3435_v32, %v4421_v23  ;;  %v3579_v44 = vunpack.c.h.bf16 %v3729_v19  ;;  %v3732_v31 = vld [vmem:[%s4401_s24 + $0x58] sm:$0xff]  }
  0x38   : > { %3989 = vmatmul.mubr.bf16.gmra.mrb[8].mxu0 %v1913_v1  ;;  %3921 = vmatpush3.bf16.msra.mxu1 %v4247_v50  ;;  %v1851_v45 = vmax.f32 %v1815_v36, 0.0  ;;  %v705_v46 = vadd.f32 %v4424_v24, %v665_v37  ;;  %v1776_v47 = vmul.f32 %v3578_v38, %v4429_v29  ;;  %v3438_v48 = vunpack.c.l.bf16 %v3696_v33 }
  0x39   : > { %4025 = vmatpush3.bf16.msra.mxu0 %v4248_v55  ;;  %3922 = vmatprep.subr.bf16.mxu1 %v4249_v5  ;;  %v706_v49 = vadd.f32 %v4424_v24, %v666_v43  ;;  %v1777_v50 = vmul.f32 %v3579_v44, %v4429_v29  ;;  %v3439_v51 = vunpack.c.h.bf16 %v3696_v33  ;;  %v3582_v52 = vunpack.c.l.bf16 %v3730_v39 }
  0x3a   : > { %3888 = vmatprep.mubr.bf16.mxu1 %v803_v21  ;;  %4026 = vmatprep.subr.bf16.mxu0 %v4250_v11  ;;  %v1915_v55 = vpack.c.bf16 %v1851_v45, %v1850_v42  ;;  %v741_v56 = vmax.f32 %v705_v46, 0.0  ;;  %v1816_v57 = vadd.f32 %v4432_v30, %v1776_v47  ;;  %v667_v58 = vmul.f32 %v3438_v48, %v4421_v23 }
  0x3b   : > { %3992 = vmatprep.mubr.bf16.mxu0 %v1914_v35  ;;  %v742_v60 = vmax.f32 %v706_v49, 0.0  ;;  %v1817_v61 = vadd.f32 %v4432_v30, %v1777_v50  ;;  %v668_v62 = vmul.f32 %v3439_v51, %v4421_v23  ;;  %v3583_v63 = vunpack.c.h.bf16 %v3730_v39 }
  0x3c   : > { %3923 = vmatpush3.bf16.msra.mxu1 %v4249_v5  ;;  %v1852_v0 = vmax.f32 %v1816_v57, 0.0  ;;  %v707_v1 = vadd.f32 %v4424_v24, %v667_v58  ;;  %v1778_v2 = vmul.f32 %v3582_v52, %v4429_v29  ;;  %v3442_v3 = vunpack.c.l.bf16 %v3697_v53 }
  0x3d   : > { %4027 = vmatpush3.bf16.msra.mxu0 %v4250_v11  ;;  %3924 = vmatprep.subr.bf16.mxu1 %v4251_v34  ;;  %v805_v5 = vpack.c.bf16 %v742_v60, %v741_v56  ;;  %v1853_v6 = vmax.f32 %v1817_v61, 0.0  ;;  %v708_v7 = vadd.f32 %v4424_v24, %v668_v62  ;;  %v1779_v9 = vmul.f32 %v3583_v63, %v4429_v29  ;;  %v3700_v62 = vld [vmem:[%s4391_s19 + $0x68] sm:$0xff]  }
  0x3e   : > { %4028 = vmatprep.subr.bf16.mxu0 %v4252_v40  ;;  %v743_v10 = vmax.f32 %v707_v1, 0.0  ;;  %v1818_v11 = vadd.f32 %v4432_v30, %v1778_v2  ;;  %v3443_v12 = vunpack.c.h.bf16 %v3697_v53  ;;  %v669_v13 = vmul.f32 %v3442_v3, %v4421_v23  ;;  %v3733_v53 = vld [vmem:[%s4401_s24 + $0x60] sm:$0xff]  }
  0x3f   : > { %3889 = vmatmul.mubr.bf16.gmra.mrb[12].mxu1 %v804_v41  ;;  %v1916_v15 = vpack.c.bf16 %v1853_v6, %v1852_v0  ;;  %v744_v19 = vmax.f32 %v708_v7, 0.0  ;;  %v1819_v21 = vadd.f32 %v4432_v30, %v1779_v9  ;;  %v3586_v22 = vunpack.c.l.bf16 %v3731_v4  ;;  %v3734_v7 = vld [vmem:[%s4401_s24 + $0x68] sm:$0xff]  }
  0x40   : > { %3993 = vmatmul.mubr.bf16.gmra.mrb[12].mxu0 %v1915_v55  ;;  %3925 = vmatpush3.bf16.msra.mxu1 %v4251_v34  ;;  %v1854_v25 = vmax.f32 %v1818_v11, 0.0  ;;  %v670_v26 = vmul.f32 %v3443_v12, %v4421_v23  ;;  %v709_v27 = vadd.f32 %v4424_v24, %v669_v13  ;;  %v3587_v28 = vunpack.c.h.bf16 %v3731_v4 }
  0x41   : > { %4029 = vmatpush3.bf16.msra.mxu0 %v4252_v40  ;;  %3926 = vmatprep.subr.bf16.mxu1 %v4253_v54  ;;  %v806_v32 = vpack.c.bf16 %v744_v19, %v743_v10  ;;  %v1855_v33 = vmax.f32 %v1819_v21, 0.0  ;;  %v1780_v34 = vmul.f32 %v3586_v22, %v4429_v29  ;;  %v3446_v35 = vunpack.c.l.bf16 %v3698_v14  ;;  %v3699_v40 = vld [vmem:[%s4391_s19 + $0x60] sm:$0xff]   ;;  %v3701_v21 = vld [vmem:[%s4391_s19 + $0x70] sm:$0xff]  }
  0x42   : > { %4030 = vmatprep.subr.bf16.mxu0 %v4254_v59  ;;  %3892 = vmatprep.mubr.bf16.mxu1 %v805_v5  ;;  %v710_v36 = vadd.f32 %v4424_v24, %v670_v26  ;;  %v745_v37 = vmax.f32 %v709_v27, 0.0  ;;  %v1781_v38 = vmul.f32 %v3587_v28, %v4429_v29  ;;  %v3447_v39 = vunpack.c.h.bf16 %v3698_v14 }
  0x43   : > { %3996 = vmatprep.mubr.bf16.mxu0 %v1916_v15  ;;  %v1917_v41 = vpack.c.bf16 %v1855_v33, %v1854_v25  ;;  %v1820_v42 = vadd.f32 %v4432_v30, %v1780_v34  ;;  %v671_v43 = vmul.f32 %v3446_v35, %v4421_v23  ;;  %v3590_v44 = vunpack.c.l.bf16 %v3732_v31 }
  0x44   : > { %3927 = vmatpush3.bf16.msra.mxu1 %v4253_v54  ;;  %v746_v45 = vmax.f32 %v710_v36, 0.0  ;;  %v1821_v46 = vadd.f32 %v4432_v30, %v1781_v38  ;;  %v672_v47 = vmul.f32 %v3447_v39, %v4421_v23  ;;  %v3591_v48 = vunpack.c.h.bf16 %v3732_v31  ;;  %v3735_v38 = vld [vmem:[%s4401_s24 + $0x70] sm:$0xff]  }
  0x45   : > { %4031 = vmatpush3.bf16.msra.mxu0 %v4254_v59  ;;  %v1856_v49 = vmax.f32 %v1820_v42, 0.0  ;;  %v711_v50 = vadd.f32 %v4424_v24, %v671_v43  ;;  %v1782_v51 = vmul.f32 %v3590_v44, %v4429_v29  ;;  %v3450_v52 = vunpack.c.l.bf16 %v3699_v40 }
  0x46   : > { %v807_v54 = vpack.c.bf16 %v746_v45, %v745_v37  ;;  %v1857_v55 = vmax.f32 %v1821_v46, 0.0  ;;  %v712_v56 = vadd.f32 %v4424_v24, %v672_v47  ;;  %v1783_v57 = vmul.f32 %v3591_v48, %v4429_v29  ;;  %v3702_v47 = vld [vmem:[%s4391_s19 + $0x78] sm:$0xff]  }
  0x47   : > { %3893 = vmatmul.mubr.bf16.gmra.mrb[16].mxu1 %v806_v32  ;;  %v747_v58 = vmax.f32 %v711_v50, 0.0  ;;  %v1822_v59 = vadd.f32 %v4432_v30, %v1782_v51  ;;  %v3451_v60 = vunpack.c.h.bf16 %v3699_v40  ;;  %v673_v61 = vmul.f32 %v3450_v52, %v4421_v23 }
  0x48   : > { %3997 = vmatmul.mubr.bf16.gmra.mrb[16].mxu0 %v1917_v41  ;;  %3896 = vmatprep.mubr.bf16.mxu1 %v807_v54  ;;  %v1918_v63 = vpack.c.bf16 %v1857_v55, %v1856_v49  ;;  %v748_v0 = vmax.f32 %v712_v56, 0.0  ;;  %v1823_v1 = vadd.f32 %v4432_v30, %v1783_v57  ;;  %v3594_v2 = vunpack.c.l.bf16 %v3733_v53  ;;  %v3736_v56 = vld [vmem:[%s4401_s24 + $0x78] sm:$0xff]  }
  0x49   : > { %v1858_v3 = vmax.f32 %v1822_v59, 0.0  ;;  %v674_v4 = vmul.f32 %v3451_v60, %v4421_v23  ;;  %v713_v5 = vadd.f32 %v4424_v24, %v673_v61  ;;  %v3595_v6 = vunpack.c.h.bf16 %v3733_v53 }
  0x4a   : > { %4000 = vmatprep.mubr.bf16.mxu0 %v1918_v63  ;;  %v808_v9 = vpack.c.bf16 %v748_v0, %v747_v58  ;;  %v1859_v10 = vmax.f32 %v1823_v1, 0.0  ;;  %v1784_v11 = vmul.f32 %v3594_v2, %v4429_v29  ;;  %v3454_v12 = vunpack.c.l.bf16 %v3700_v62  ;;  %v3703_v1 = vld [vmem:[%s4391_s19 + $0x80] sm:$0xff]  }
  0x4b   : > { %v714_v13 = vadd.f32 %v4424_v24, %v674_v4  ;;  %v749_v14 = vmax.f32 %v713_v5, 0.0  ;;  %v1785_v15 = vmul.f32 %v3595_v6, %v4429_v29  ;;  %v3455_v19 = vunpack.c.h.bf16 %v3700_v62 }
  0x4c   : > { %v1919_v22 = vpack.c.bf16 %v1859_v10, %v1858_v3  ;;  %v1824_v25 = vadd.f32 %v4432_v30, %v1784_v11  ;;  %v675_v26 = vmul.f32 %v3454_v12, %v4421_v23  ;;  %v3598_v27 = vunpack.c.l.bf16 %v3734_v7 }
  0x4d   : > { %v750_v28 = vmax.f32 %v714_v13, 0.0  ;;  %v1825_v31 = vadd.f32 %v4432_v30, %v1785_v15  ;;  %v676_v32 = vmul.f32 %v3455_v19, %v4421_v23  ;;  %v3599_v33 = vunpack.c.h.bf16 %v3734_v7  ;;  %v3737_v15 = vld [vmem:[%s4401_s24 + $0x80] sm:$0xff]  }
  0x4e   : > { %v1860_v34 = vmax.f32 %v1824_v25, 0.0  ;;  %v715_v35 = vadd.f32 %v4424_v24, %v675_v26  ;;  %v1786_v36 = vmul.f32 %v3598_v27, %v4429_v29  ;;  %v3458_v37 = vunpack.c.l.bf16 %v3701_v21 }
  0x4f   : > { %3897 = vmatmul.mubr.bf16.gmra.mrb[20].mxu1 %v808_v9  ;;  %v809_v39 = vpack.c.bf16 %v750_v28, %v749_v14  ;;  %v1861_v40 = vmax.f32 %v1825_v31, 0.0  ;;  %v716_v41 = vadd.f32 %v4424_v24, %v676_v32  ;;  %v1787_v42 = vmul.f32 %v3599_v33, %v4429_v29  ;;  %v3704_v32 = vld [vmem:[%s4391_s19 + $0x88] sm:$0xff]   ;;  %s526_s19 = scalar_lea.vmem %s4989_s9, %s3316_s13 }
  0x50   : > { %4001 = vmatmul.mubr.bf16.gmra.mrb[20].mxu0 %v1919_v22  ;;  %v751_v43 = vmax.f32 %v715_v35, 0.0  ;;  %v1826_v44 = vadd.f32 %v4432_v30, %v1786_v36  ;;  %v3459_v45 = vunpack.c.h.bf16 %v3701_v21  ;;  %v677_v46 = vmul.f32 %v3458_v37, %v4421_v23 }
  0x51   : > { %3900 = vmatprep.mubr.bf16.mxu1 %v809_v39  ;;  %v1920_v48 = vpack.c.bf16 %v1861_v40, %v1860_v34  ;;  %v752_v49 = vmax.f32 %v716_v41, 0.0  ;;  %v1827_v50 = vadd.f32 %v4432_v30, %v1787_v42  ;;  %v3602_v51 = vunpack.c.l.bf16 %v3735_v38  ;;  %v3738_v41 = vld [vmem:[%s4401_s24 + $0x88] sm:$0xff]  }
  0x52   : > { %v1862_v52 = vmax.f32 %v1826_v44, 0.0  ;;  %v678_v53 = vmul.f32 %v3459_v45, %v4421_v23  ;;  %v717_v54 = vadd.f32 %v4424_v24, %v677_v46  ;;  %v3603_v55 = vunpack.c.h.bf16 %v3735_v38 }
  0x53   : > { %4004 = vmatprep.mubr.bf16.mxu0 %v1920_v48  ;;  %v810_v57 = vpack.c.bf16 %v752_v49, %v751_v43  ;;  %v1863_v58 = vmax.f32 %v1827_v50, 0.0  ;;  %v1788_v59 = vmul.f32 %v3602_v51, %v4429_v29  ;;  %v3462_v60 = vunpack.c.l.bf16 %v3702_v47  ;;  %v3473_v50 = vld [vmem:[%s4659_s15] sm:$0xff]  }
  0x54   : > { %v718_v61 = vadd.f32 %v4424_v24, %v678_v53  ;;  %v753_v62 = vmax.f32 %v717_v54, 0.0  ;;  %v1789_v63 = vmul.f32 %v3603_v55, %v4429_v29  ;;  %v3463_v0 = vunpack.c.h.bf16 %v3702_v47 }
  0x55   : > { %v1921_v2 = vpack.c.bf16 %v1863_v58, %v1862_v52  ;;  %v1828_v3 = vadd.f32 %v4432_v30, %v1788_v59  ;;  %v679_v4 = vmul.f32 %v3462_v60, %v4421_v23  ;;  %v3606_v5 = vunpack.c.l.bf16 %v3736_v56 }
  0x56   : > { %v754_v6 = vmax.f32 %v718_v61, 0.0  ;;  %v1829_v7 = vadd.f32 %v4432_v30, %v1789_v63  ;;  %v680_v9 = vmul.f32 %v3463_v0, %v4421_v23  ;;  %v3607_v10 = vunpack.c.h.bf16 %v3736_v56 }
  0x57   : > { %3901 = vmatmul.mubr.bf16.gmra.mrb[24].mxu1 %v810_v57  ;;  %v1864_v11 = vmax.f32 %v1828_v3, 0.0  ;;  %v719_v12 = vadd.f32 %v4424_v24, %v679_v4  ;;  %v1790_v13 = vmul.f32 %v3606_v5, %v4429_v29  ;;  %v3466_v14 = vunpack.c.l.bf16 %v3703_v1  ;;  %v3617_v3 = vld [vmem:[%s4674_s16] sm:$0xff]  }
  0x58   : > { %4005 = vmatmul.mubr.bf16.gmra.mrb[24].mxu0 %v1921_v2  ;;  %v811_v19 = vpack.c.bf16 %v754_v6, %v753_v62  ;;  %v1865_v21 = vmax.f32 %v1829_v7, 0.0  ;;  %v720_v22 = vadd.f32 %v4424_v24, %v680_v9  ;;  %v1791_v25 = vmul.f32 %v3607_v10, %v4429_v29 }
  0x59   : > { %v755_v26 = vmax.f32 %v719_v12, 0.0  ;;  %v1830_v27 = vadd.f32 %v4432_v30, %v1790_v13  ;;  %v3467_v28 = vunpack.c.h.bf16 %v3703_v1  ;;  %v681_v31 = vmul.f32 %v3466_v14, %v4421_v23 }
  0x5a   : > { %3904 = vmatprep.mubr.bf16.mxu1 %v811_v19  ;;  %v1922_v33 = vpack.c.bf16 %v1865_v21, %v1864_v11  ;;  %v756_v34 = vmax.f32 %v720_v22, 0.0  ;;  %v1831_v35 = vadd.f32 %v4432_v30, %v1791_v25  ;;  %v3610_v36 = vunpack.c.l.bf16 %v3737_v15  ;;  %v4256_v25 = vld [vmem:[%s4985_s5] sm:$0xf] }
  0x5b   : > { %v1866_v37 = vmax.f32 %v1830_v27, 0.0  ;;  %v682_v38 = vmul.f32 %v3467_v28, %v4421_v23  ;;  %v721_v39 = vadd.f32 %v4424_v24, %v681_v31  ;;  %v3611_v40 = vunpack.c.h.bf16 %v3737_v15 }
  0x5c   : > { %4008 = vmatprep.mubr.bf16.mxu0 %v1922_v33  ;;  %v812_v42 = vpack.c.bf16 %v756_v34, %v755_v26  ;;  %v1867_v43 = vmax.f32 %v1831_v35, 0.0  ;;  %v1792_v44 = vmul.f32 %v3610_v36, %v4429_v29  ;;  %v3470_v45 = vunpack.c.l.bf16 %v3704_v32  ;;  %v3706_v34 = vld [vmem:[%s4659_s15 + $0x10] sm:$0xff]  }
  0x5d   : > { %v722_v46 = vadd.f32 %v4424_v24, %v682_v38  ;;  %v757_v47 = vmax.f32 %v721_v39, 0.0  ;;  %v1793_v48 = vmul.f32 %v3611_v40, %v4429_v29  ;;  %v3471_v49 = vunpack.c.h.bf16 %v3704_v32 }
  0x5e   : > { %v1923_v51 = vpack.c.bf16 %v1867_v43, %v1866_v37  ;;  %v1832_v52 = vadd.f32 %v4432_v30, %v1792_v44  ;;  %v683_v53 = vmul.f32 %v3470_v45, %v4421_v23  ;;  %v3614_v54 = vunpack.c.l.bf16 %v3738_v41  ;;  %v3740_v45 = vld [vmem:[%s4674_s16 + $0x10] sm:$0xff]  }
  0x5f   : > { %3905 = vmatmul.mubr.bf16.gmra.mrb[28].mxu1 %v812_v42  ;;  %v758_v55 = vmax.f32 %v722_v46, 0.0  ;;  %v1833_v56 = vadd.f32 %v4432_v30, %v1793_v48  ;;  %v684_v57 = vmul.f32 %v3471_v49, %v4421_v23  ;;  %v3615_v58 = vunpack.c.h.bf16 %v3738_v41 }
  0x60   : > { %4009 = vmatmul.mubr.bf16.gmra.mrb[28].mxu0 %v1923_v51  ;;  %v1868_v59 = vmax.f32 %v1832_v52, 0.0  ;;  %v723_v60 = vadd.f32 %v4424_v24, %v683_v53  ;;  %v1794_v61 = vmul.f32 %v3614_v54, %v4429_v29  ;;  %v3474_v62 = vunpack.c.l.bf16 %v3473_v50  ;;  %v3707_v54 = vld [vmem:[%s4659_s15 + $0x18] sm:$0xff]  }
  0x61   : > { %v813_v63 = vpack.c.bf16 %v758_v55, %v757_v47  ;;  %v1869_v0 = vmax.f32 %v1833_v56, 0.0  ;;  %v724_v1 = vadd.f32 %v4424_v24, %v684_v57  ;;  %v1795_v2 = vmul.f32 %v3615_v58, %v4429_v29  ;;  %v3705_v29 = vld [vmem:[%s4659_s15 + $0x8] sm:$0xff]  }
  0x62   : > { %v759_v4 = vmax.f32 %v723_v60, 0.0  ;;  %v1834_v5 = vadd.f32 %v4432_v30, %v1794_v61  ;;  %v3475_v23 = vunpack.c.h.bf16 %v3473_v50  ;;  %v4687_v6 = vrot.slane %v4411_v17, %v1202_v16 }
  0x63   : > { %3908 = vmatprep.mubr.bf16.mxu1 %v813_v63  ;;  %v1924_v7 = vpack.c.bf16 %v1869_v0, %v1868_v59  ;;  %v760_v9 = vmax.f32 %v724_v1, 0.0  ;;  %v1835_v10 = vadd.f32 %v4432_v30, %v1795_v2  ;;  %v4693_v24 = vrot.slane %v4416_v18, %v1202_v16  ;;  %v4255_v30 = vld [vmem:[%s4984_s4] sm:$0xf]  ;;  %v3739_v18 = vld [vmem:[%s4674_s16 + $0x8] sm:$0xff]   ;;  %v3741_v63 = vld [vmem:[%s4674_s16 + $0x18] sm:$0xff]  }
  0x64   : > { %v1870_v11 = vmax.f32 %v1834_v5, 0.0  ;;  %v1204_v12 = vmul.f32 %v3474_v62, %v4687_v6  ;;  %v1205_v13 = vmul.f32 %v3475_v23, %v4687_v6  ;;  %v3618_v14 = vunpack.c.l.bf16 %v3617_v3 }
  0x65   : > { %4012 = vmatprep.mubr.bf16.mxu0 %v1924_v7  ;;  %v814_v17 = vpack.c.bf16 %v760_v9, %v759_v4  ;;  %v1871_v15 = vmax.f32 %v1835_v10, 0.0  ;;  %v3619_v19 = vunpack.c.h.bf16 %v3617_v3  ;;  %v4703_v16 = vrot.slane %v4255_v30, %v2314_v20  ;;  %v3708_v9 = vld [vmem:[%s4659_s15 + $0x20] sm:$0xff]  }
  0x66   : > { %v1244_v21 = vadd.f32 %v4693_v24, %v1204_v12  ;;  %v1245_v22 = vadd.f32 %v4693_v24, %v1205_v13  ;;  %v4713_v26 = vrot.slane %v4256_v25, %v2314_v20  ;;  %v3478_v27 = vunpack.c.l.bf16 %v3705_v29 }
  0x67   : > { %3909 = vmatmul.mubr.bf16.gmra.mrb[32].mxu1 %v814_v17  ;;  %v1925_v28 = vpack.c.bf16 %v1871_v15, %v1870_v11  ;;  %v2316_v31 = vmul.f32 %v3618_v14, %v4703_v16  ;;  %v2317_v32 = vmul.f32 %v3619_v19, %v4703_v16  ;;  %v3479_v33 = vunpack.c.h.bf16 %v3705_v29 }
  0x68   : > { %v1280_v35 = vmax.f32 %v1244_v21, 0.0  ;;  %v1281_v36 = vmax.f32 %v1245_v22, 0.0  ;;  %v1206_v37 = vmul.f32 %v3478_v27, %v4687_v6  ;;  %v3622_v38 = vunpack.c.l.bf16 %v3739_v18  ;;  %v3742_v22 = vld [vmem:[%s4674_s16 + $0x20] sm:$0xff]  }
  0x69   : > { %4013 = vmatmul.mubr.bf16.gmra.mrb[32].mxu0 %v1925_v28  ;;  %v2356_v8 = vadd.f32 %v4713_v26, %v2316_v31  ;;  %v2357_v20 = vadd.f32 %v4713_v26, %v2317_v32  ;;  %v1207_v39 = vmul.f32 %v3479_v33, %v4687_v6  ;;  %v3623_v40 = vunpack.c.h.bf16 %v3739_v18 }
  0x6a   : > { %v1352_v41 = vpack.c.bf16 %v1281_v36, %v1280_v35  ;;  %v1246_v42 = vadd.f32 %v4693_v24, %v1206_v37  ;;  %v2318_v43 = vmul.f32 %v3622_v38, %v4703_v16  ;;  %v3482_v44 = vunpack.c.l.bf16 %v3706_v34  ;;  %v3709_v36 = vld [vmem:[%s4659_s15 + $0x28] sm:$0xff]  }
  0x6b   : > { %v2392_v46 = vmax.f32 %v2356_v8, 0.0  ;;  %v2393_v47 = vmax.f32 %v2357_v20, 0.0  ;;  %v1247_v48 = vadd.f32 %v4693_v24, %v1207_v39  ;;  %v2319_v49 = vmul.f32 %v3623_v40, %v4703_v16 }
  0x6c   : > { %3928 = vmatprep.mubr.bf16.mxu1 %v1352_v41  ;;  %v1282_v50 = vmax.f32 %v1246_v42, 0.0  ;;  %v2358_v51 = vadd.f32 %v4713_v26, %v2318_v43  ;;  %v3483_v52 = vunpack.c.h.bf16 %v3706_v34  ;;  %v1208_v53 = vmul.f32 %v3482_v44, %v4687_v6  ;;  %v3743_v43 = vld [vmem:[%s4674_s16 + $0x28] sm:$0xff]  }
  0x6d   : > { %v2464_v55 = vpack.c.bf16 %v2393_v47, %v2392_v46  ;;  %v1283_v56 = vmax.f32 %v1247_v48, 0.0  ;;  %v2359_v57 = vadd.f32 %v4713_v26, %v2319_v49  ;;  %v3626_v58 = vunpack.c.l.bf16 %v3740_v45 }
  0x6e   : > { %v2394_v59 = vmax.f32 %v2358_v51, 0.0  ;;  %v1209_v60 = vmul.f32 %v3483_v52, %v4687_v6  ;;  %v1248_v61 = vadd.f32 %v4693_v24, %v1208_v53  ;;  %v3627_v62 = vunpack.c.h.bf16 %v3740_v45  ;;  %v3710_v52 = vld [vmem:[%s4659_s15 + $0x30] sm:$0xff]  }
  0x6f   : > { %4032 = vmatprep.mubr.bf16.mxu0 %v2464_v55  ;;  %v1353_v0 = vpack.c.bf16 %v1283_v56, %v1282_v50  ;;  %v2395_v1 = vmax.f32 %v2359_v57, 0.0  ;;  %v2320_v2 = vmul.f32 %v3626_v58, %v4703_v16  ;;  %v3486_v3 = vunpack.c.l.bf16 %v3707_v54 }
  0x70   : > { %v1249_v4 = vadd.f32 %v4693_v24, %v1209_v60  ;;  %v1284_v5 = vmax.f32 %v1248_v61, 0.0  ;;  %v2321_v23 = vmul.f32 %v3627_v62, %v4703_v16  ;;  %v3487_v7 = vunpack.c.h.bf16 %v3707_v54 }
  0x71   : > { %3929 = vmatmul.mubr.bf16.vlgmr.msra.gmra.mrb[0].mxu1 %v1353_v0  ;;  %v2465_v10 = vpack.c.bf16 %v2395_v1, %v2394_v59  ;;  %v2360_v29 = vadd.f32 %v4713_v26, %v2320_v2  ;;  %v1210_v11 = vmul.f32 %v3486_v3, %v4687_v6  ;;  %v3630_v12 = vunpack.c.l.bf16 %v3741_v63  ;;  %v3744_v1 = vld [vmem:[%s4674_s16 + $0x30] sm:$0xff]  }
  0x72   : > { %v1285_v13 = vmax.f32 %v1249_v4, 0.0  ;;  %v2361_v14 = vadd.f32 %v4713_v26, %v2321_v23  ;;  %v1211_v17 = vmul.f32 %v3487_v7, %v4687_v6  ;;  %v3631_v15 = vunpack.c.h.bf16 %v3741_v63 }
  0x73   : > { %4033 = vmatmul.mubr.bf16.vlgmr.msra.gmra.mrb[0].mxu0 %v2465_v10  ;;  %v2396_v19 = vmax.f32 %v2360_v29, 0.0  ;;  %v1250_v30 = vadd.f32 %v4693_v24, %v1210_v11  ;;  %v2322_v18 = vmul.f32 %v3630_v12, %v4703_v16  ;;  %v3490_v21 = vunpack.c.l.bf16 %v3708_v9  ;;  %v3711_v29 = vld [vmem:[%s4659_s15 + $0x38] sm:$0xff]  }
  0x74   : > { %v1354_v25 = vpack.c.bf16 %v1285_v13, %v1284_v5  ;;  %v2397_v27 = vmax.f32 %v2361_v14, 0.0  ;;  %v1251_v28 = vadd.f32 %v4693_v24, %v1211_v17  ;;  %v2323_v31 = vmul.f32 %v3631_v15, %v4703_v16 }
  0x75   : > { %v1286_v32 = vmax.f32 %v1250_v30, 0.0  ;;  %v2362_v33 = vadd.f32 %v4713_v26, %v2322_v18  ;;  %v3491_v34 = vunpack.c.h.bf16 %v3708_v9  ;;  %v1212_v35 = vmul.f32 %v3490_v21, %v4687_v6  ;;  %v3745_v18 = vld [vmem:[%s4674_s16 + $0x38] sm:$0xff]  }
  0x76   : > { %3932 = vmatprep.mubr.bf16.mxu1 %v1354_v25  ;;  %v2466_v37 = vpack.c.bf16 %v2397_v27, %v2396_v19  ;;  %v1287_v38 = vmax.f32 %v1251_v28, 0.0  ;;  %v2363_v8 = vadd.f32 %v4713_v26, %v2323_v31  ;;  %v3634_v20 = vunpack.c.l.bf16 %v3742_v22 }
  0x77   : > { %v2398_v39 = vmax.f32 %v2362_v33, 0.0  ;;  %v1213_v40 = vmul.f32 %v3491_v34, %v4687_v6  ;;  %v1252_v41 = vadd.f32 %v4693_v24, %v1212_v35  ;;  %v3635_v42 = vunpack.c.h.bf16 %v3742_v22  ;;  %v3712_v34 = vld [vmem:[%s4659_s15 + $0x40] sm:$0xff]  }
  0x78   : > { %4036 = vmatprep.mubr.bf16.mxu0 %v2466_v37  ;;  %v1355_v44 = vpack.c.bf16 %v1287_v38, %v1286_v32  ;;  %v2399_v45 = vmax.f32 %v2363_v8, 0.0  ;;  %v2324_v46 = vmul.f32 %v3634_v20, %v4703_v16  ;;  %v3494_v47 = vunpack.c.l.bf16 %v3709_v36 }
  0x79   : > { %v1253_v48 = vadd.f32 %v4693_v24, %v1213_v40  ;;  %v1288_v49 = vmax.f32 %v1252_v41, 0.0  ;;  %v2325_v50 = vmul.f32 %v3635_v42, %v4703_v16  ;;  %v3495_v51 = vunpack.c.h.bf16 %v3709_v36 }
  0x7a   : > { %3933 = vmatmul.mubr.bf16.gmra.mrb[4].mxu1 %v1355_v44  ;;  %v2467_v53 = vpack.c.bf16 %v2399_v45, %v2398_v39  ;;  %v2364_v54 = vadd.f32 %v4713_v26, %v2324_v46  ;;  %v1214_v55 = vmul.f32 %v3494_v47, %v4687_v6  ;;  %v3638_v56 = vunpack.c.l.bf16 %v3743_v43  ;;  %v3746_v45 = vld [vmem:[%s4674_s16 + $0x40] sm:$0xff]  }
  0x7b   : > { %v1289_v57 = vmax.f32 %v1253_v48, 0.0  ;;  %v2365_v58 = vadd.f32 %v4713_v26, %v2325_v50  ;;  %v1215_v59 = vmul.f32 %v3495_v51, %v4687_v6  ;;  %v3639_v60 = vunpack.c.h.bf16 %v3743_v43 }
  0x7c   : > { %4037 = vmatmul.mubr.bf16.gmra.mrb[4].mxu0 %v2467_v53  ;;  %v2400_v61 = vmax.f32 %v2364_v54, 0.0  ;;  %v1254_v62 = vadd.f32 %v4693_v24, %v1214_v55  ;;  %v2326_v63 = vmul.f32 %v3638_v56, %v4703_v16  ;;  %v3498_v0 = vunpack.c.l.bf16 %v3710_v52  ;;  %v3713_v54 = vld [vmem:[%s4659_s15 + $0x48] sm:$0xff]  }
  0x7d   : > { %v1356_v2 = vpack.c.bf16 %v1289_v57, %v1288_v49  ;;  %v2401_v3 = vmax.f32 %v2365_v58, 0.0  ;;  %v1255_v4 = vadd.f32 %v4693_v24, %v1215_v59  ;;  %v2327_v5 = vmul.f32 %v3639_v60, %v4703_v16 }
  0x7e   : > { %v1290_v23 = vmax.f32 %v1254_v62, 0.0  ;;  %v2366_v7 = vadd.f32 %v4713_v26, %v2326_v63  ;;  %v3499_v9 = vunpack.c.h.bf16 %v3710_v52  ;;  %v1216_v10 = vmul.f32 %v3498_v0, %v4687_v6  ;;  %v3747_v63 = vld [vmem:[%s4674_s16 + $0x48] sm:$0xff]  }
  0x7f   : > { %3936 = vmatprep.mubr.bf16.mxu1 %v1356_v2  ;;  %v2468_v11 = vpack.c.bf16 %v2401_v3, %v2400_v61  ;;  %v1291_v12 = vmax.f32 %v1255_v4, 0.0  ;;  %v2367_v13 = vadd.f32 %v4713_v26, %v2327_v5  ;;  %v3642_v14 = vunpack.c.l.bf16 %v3744_v1 }
  0x80   : > { %v2402_v17 = vmax.f32 %v2366_v7, 0.0  ;;  %v1217_v15 = vmul.f32 %v3499_v9, %v4687_v6  ;;  %v1256_v19 = vadd.f32 %v4693_v24, %v1216_v10  ;;  %v3643_v30 = vunpack.c.h.bf16 %v3744_v1  ;;  %v3714_v9 = vld [vmem:[%s4659_s15 + $0x50] sm:$0xff]  }
  0x81   : > { %4040 = vmatprep.mubr.bf16.mxu0 %v2468_v11  ;;  %v1357_v21 = vpack.c.bf16 %v1291_v12, %v1290_v23  ;;  %v2403_v22 = vmax.f32 %v2367_v13, 0.0  ;;  %v2328_v25 = vmul.f32 %v3642_v14, %v4703_v16  ;;  %v3502_v27 = vunpack.c.l.bf16 %v3711_v29 }
  0x82   : > { %v1257_v28 = vadd.f32 %v4693_v24, %v1217_v15  ;;  %v1292_v31 = vmax.f32 %v1256_v19, 0.0  ;;  %v2329_v32 = vmul.f32 %v3643_v30, %v4703_v16  ;;  %v3503_v33 = vunpack.c.h.bf16 %v3711_v29 }
  0x83   : > { %3937 = vmatmul.mubr.bf16.gmra.mrb[8].mxu1 %v1357_v21  ;;  %v2469_v35 = vpack.c.bf16 %v2403_v22, %v2402_v17  ;;  %v2368_v36 = vadd.f32 %v4713_v26, %v2328_v25  ;;  %v1218_v37 = vmul.f32 %v3502_v27, %v4687_v6  ;;  %v3646_v38 = vunpack.c.l.bf16 %v3745_v18  ;;  %v3748_v22 = vld [vmem:[%s4674_s16 + $0x50] sm:$0xff]  }
  0x84   : > { %v1293_v8 = vmax.f32 %v1257_v28, 0.0  ;;  %v2369_v20 = vadd.f32 %v4713_v26, %v2329_v32  ;;  %v1219_v39 = vmul.f32 %v3503_v33, %v4687_v6  ;;  %v3647_v40 = vunpack.c.h.bf16 %v3745_v18 }
  0x85   : > { %4041 = vmatmul.mubr.bf16.gmra.mrb[8].mxu0 %v2469_v35  ;;  %v2404_v41 = vmax.f32 %v2368_v36, 0.0  ;;  %v1258_v42 = vadd.f32 %v4693_v24, %v1218_v37  ;;  %v2330_v43 = vmul.f32 %v3646_v38, %v4703_v16  ;;  %v3506_v44 = vunpack.c.l.bf16 %v3712_v34  ;;  %v3715_v36 = vld [vmem:[%s4659_s15 + $0x58] sm:$0xff]  }
  0x86   : > { %v1358_v46 = vpack.c.bf16 %v1293_v8, %v1292_v31  ;;  %v2405_v47 = vmax.f32 %v2369_v20, 0.0  ;;  %v1259_v48 = vadd.f32 %v4693_v24, %v1219_v39  ;;  %v2331_v49 = vmul.f32 %v3647_v40, %v4703_v16 }
  0x87   : > { %v1294_v50 = vmax.f32 %v1258_v42, 0.0  ;;  %v2370_v51 = vadd.f32 %v4713_v26, %v2330_v43  ;;  %v3507_v52 = vunpack.c.h.bf16 %v3712_v34  ;;  %v1220_v53 = vmul.f32 %v3506_v44, %v4687_v6  ;;  %v3749_v43 = vld [vmem:[%s4674_s16 + $0x58] sm:$0xff]  }
  0x88   : > { %3940 = vmatprep.mubr.bf16.mxu1 %v1358_v46  ;;  %v2470_v55 = vpack.c.bf16 %v2405_v47, %v2404_v41  ;;  %v1295_v56 = vmax.f32 %v1259_v48, 0.0  ;;  %v2371_v57 = vadd.f32 %v4713_v26, %v2331_v49  ;;  %v3650_v58 = vunpack.c.l.bf16 %v3746_v45 }
  0x89   : > { %v2406_v59 = vmax.f32 %v2370_v51, 0.0  ;;  %v1221_v60 = vmul.f32 %v3507_v52, %v4687_v6  ;;  %v1260_v61 = vadd.f32 %v4693_v24, %v1220_v53  ;;  %v3651_v62 = vunpack.c.h.bf16 %v3746_v45  ;;  %v3716_v52 = vld [vmem:[%s4659_s15 + $0x60] sm:$0xff]  }
  0x8a   : > { %4044 = vmatprep.mubr.bf16.mxu0 %v2470_v55  ;;  %v1359_v0 = vpack.c.bf16 %v1295_v56, %v1294_v50  ;;  %v2407_v1 = vmax.f32 %v2371_v57, 0.0  ;;  %v2332_v2 = vmul.f32 %v3650_v58, %v4703_v16  ;;  %v3510_v3 = vunpack.c.l.bf16 %v3713_v54 }
  0x8b   : > { %v1261_v4 = vadd.f32 %v4693_v24, %v1221_v60  ;;  %v1296_v5 = vmax.f32 %v1260_v61, 0.0  ;;  %v2333_v23 = vmul.f32 %v3651_v62, %v4703_v16  ;;  %v3511_v7 = vunpack.c.h.bf16 %v3713_v54 }
  0x8c   : > { %3941 = vmatmul.mubr.bf16.gmra.mrb[12].mxu1 %v1359_v0  ;;  %v2471_v10 = vpack.c.bf16 %v2407_v1, %v2406_v59  ;;  %v2372_v29 = vadd.f32 %v4713_v26, %v2332_v2  ;;  %v1222_v11 = vmul.f32 %v3510_v3, %v4687_v6  ;;  %v3654_v12 = vunpack.c.l.bf16 %v3747_v63  ;;  %v3750_v1 = vld [vmem:[%s4674_s16 + $0x60] sm:$0xff]  }
  0x8d   : > { %v1297_v13 = vmax.f32 %v1261_v4, 0.0  ;;  %v2373_v14 = vadd.f32 %v4713_v26, %v2333_v23  ;;  %v1223_v17 = vmul.f32 %v3511_v7, %v4687_v6  ;;  %v3655_v15 = vunpack.c.h.bf16 %v3747_v63 }
  0x8e   : > { %4045 = vmatmul.mubr.bf16.gmra.mrb[12].mxu0 %v2471_v10  ;;  %v2408_v19 = vmax.f32 %v2372_v29, 0.0  ;;  %v1262_v30 = vadd.f32 %v4693_v24, %v1222_v11  ;;  %v2334_v18 = vmul.f32 %v3654_v12, %v4703_v16  ;;  %v3514_v21 = vunpack.c.l.bf16 %v3714_v9  ;;  %v3717_v29 = vld [vmem:[%s4659_s15 + $0x68] sm:$0xff]  }
  0x8f   : > { %v1360_v25 = vpack.c.bf16 %v1297_v13, %v1296_v5  ;;  %v2409_v27 = vmax.f32 %v2373_v14, 0.0  ;;  %v1263_v28 = vadd.f32 %v4693_v24, %v1223_v17  ;;  %v2335_v31 = vmul.f32 %v3655_v15, %v4703_v16 }
  0x90   : > { %v1298_v32 = vmax.f32 %v1262_v30, 0.0  ;;  %v2374_v33 = vadd.f32 %v4713_v26, %v2334_v18  ;;  %v3515_v34 = vunpack.c.h.bf16 %v3714_v9  ;;  %v1224_v35 = vmul.f32 %v3514_v21, %v4687_v6  ;;  %v3751_v18 = vld [vmem:[%s4674_s16 + $0x68] sm:$0xff]  }
  0x91   : > { %3944 = vmatprep.mubr.bf16.mxu1 %v1360_v25  ;;  %v2472_v37 = vpack.c.bf16 %v2409_v27, %v2408_v19  ;;  %v1299_v38 = vmax.f32 %v1263_v28, 0.0  ;;  %v2375_v8 = vadd.f32 %v4713_v26, %v2335_v31  ;;  %v3658_v20 = vunpack.c.l.bf16 %v3748_v22 }
  0x92   : > { %v2410_v39 = vmax.f32 %v2374_v33, 0.0  ;;  %v1225_v40 = vmul.f32 %v3515_v34, %v4687_v6  ;;  %v1264_v41 = vadd.f32 %v4693_v24, %v1224_v35  ;;  %v3659_v42 = vunpack.c.h.bf16 %v3748_v22  ;;  %v3718_v34 = vld [vmem:[%s4659_s15 + $0x70] sm:$0xff]  }
  0x93   : > { %4048 = vmatprep.mubr.bf16.mxu0 %v2472_v37  ;;  %v1361_v44 = vpack.c.bf16 %v1299_v38, %v1298_v32  ;;  %v2411_v45 = vmax.f32 %v2375_v8, 0.0  ;;  %v2336_v46 = vmul.f32 %v3658_v20, %v4703_v16  ;;  %v3518_v47 = vunpack.c.l.bf16 %v3715_v36 }
  0x94   : > { %v1265_v48 = vadd.f32 %v4693_v24, %v1225_v40  ;;  %v1300_v49 = vmax.f32 %v1264_v41, 0.0  ;;  %v2337_v50 = vmul.f32 %v3659_v42, %v4703_v16  ;;  %v3519_v51 = vunpack.c.h.bf16 %v3715_v36 }
  0x95   : > { %3945 = vmatmul.mubr.bf16.gmra.mrb[16].mxu1 %v1361_v44  ;;  %v2473_v53 = vpack.c.bf16 %v2411_v45, %v2410_v39  ;;  %v2376_v54 = vadd.f32 %v4713_v26, %v2336_v46  ;;  %v1226_v55 = vmul.f32 %v3518_v47, %v4687_v6  ;;  %v3662_v56 = vunpack.c.l.bf16 %v3749_v43  ;;  %v3752_v45 = vld [vmem:[%s4674_s16 + $0x70] sm:$0xff]  }
  0x96   : > { %v1301_v57 = vmax.f32 %v1265_v48, 0.0  ;;  %v2377_v58 = vadd.f32 %v4713_v26, %v2337_v50  ;;  %v1227_v59 = vmul.f32 %v3519_v51, %v4687_v6  ;;  %v3663_v60 = vunpack.c.h.bf16 %v3749_v43 }
  0x97   : > { %4049 = vmatmul.mubr.bf16.gmra.mrb[16].mxu0 %v2473_v53  ;;  %v2412_v61 = vmax.f32 %v2376_v54, 0.0  ;;  %v1266_v62 = vadd.f32 %v4693_v24, %v1226_v55  ;;  %v2338_v63 = vmul.f32 %v3662_v56, %v4703_v16  ;;  %v3522_v0 = vunpack.c.l.bf16 %v3716_v52  ;;  %v3719_v54 = vld [vmem:[%s4659_s15 + $0x78] sm:$0xff]  }
  0x98   : > { %v1362_v2 = vpack.c.bf16 %v1301_v57, %v1300_v49  ;;  %v2413_v3 = vmax.f32 %v2377_v58, 0.0  ;;  %v1267_v4 = vadd.f32 %v4693_v24, %v1227_v59  ;;  %v2339_v5 = vmul.f32 %v3663_v60, %v4703_v16 }
  0x99   : > { %v1302_v23 = vmax.f32 %v1266_v62, 0.0  ;;  %v2378_v7 = vadd.f32 %v4713_v26, %v2338_v63  ;;  %v3523_v9 = vunpack.c.h.bf16 %v3716_v52  ;;  %v1228_v10 = vmul.f32 %v3522_v0, %v4687_v6  ;;  %v3753_v63 = vld [vmem:[%s4674_s16 + $0x78] sm:$0xff]  }
  0x9a   : > { %3948 = vmatprep.mubr.bf16.mxu1 %v1362_v2  ;;  %v2474_v11 = vpack.c.bf16 %v2413_v3, %v2412_v61  ;;  %v1303_v12 = vmax.f32 %v1267_v4, 0.0  ;;  %v2379_v13 = vadd.f32 %v4713_v26, %v2339_v5  ;;  %v3666_v14 = vunpack.c.l.bf16 %v3750_v1 }
  0x9b   : > { %v2414_v17 = vmax.f32 %v2378_v7, 0.0  ;;  %v1229_v15 = vmul.f32 %v3523_v9, %v4687_v6  ;;  %v1268_v19 = vadd.f32 %v4693_v24, %v1228_v10  ;;  %v3667_v30 = vunpack.c.h.bf16 %v3750_v1  ;;  %v3720_v9 = vld [vmem:[%s4659_s15 + $0x80] sm:$0xff]  }
  0x9c   : > { %4052 = vmatprep.mubr.bf16.mxu0 %v2474_v11  ;;  %v1363_v21 = vpack.c.bf16 %v1303_v12, %v1302_v23  ;;  %v2415_v22 = vmax.f32 %v2379_v13, 0.0  ;;  %v2340_v25 = vmul.f32 %v3666_v14, %v4703_v16  ;;  %v3526_v27 = vunpack.c.l.bf16 %v3717_v29 }
  0x9d   : > { %v1269_v28 = vadd.f32 %v4693_v24, %v1229_v15  ;;  %v1304_v31 = vmax.f32 %v1268_v19, 0.0  ;;  %v2341_v32 = vmul.f32 %v3667_v30, %v4703_v16  ;;  %v3527_v33 = vunpack.c.h.bf16 %v3717_v29 }
  0x9e   : > { %3949 = vmatmul.mubr.bf16.gmra.mrb[20].mxu1 %v1363_v21  ;;  %v2475_v35 = vpack.c.bf16 %v2415_v22, %v2414_v17  ;;  %v2380_v36 = vadd.f32 %v4713_v26, %v2340_v25  ;;  %v1230_v37 = vmul.f32 %v3526_v27, %v4687_v6  ;;  %v3670_v38 = vunpack.c.l.bf16 %v3751_v18  ;;  %v3754_v22 = vld [vmem:[%s4674_s16 + $0x80] sm:$0xff]  }
  0x9f   : > { %v1305_v8 = vmax.f32 %v1269_v28, 0.0  ;;  %v2381_v20 = vadd.f32 %v4713_v26, %v2341_v32  ;;  %v1231_v39 = vmul.f32 %v3527_v33, %v4687_v6  ;;  %v3671_v40 = vunpack.c.h.bf16 %v3751_v18 }
  0xa0   : > { %4053 = vmatmul.mubr.bf16.gmra.mrb[20].mxu0 %v2475_v35  ;;  %v2416_v41 = vmax.f32 %v2380_v36, 0.0  ;;  %v1270_v42 = vadd.f32 %v4693_v24, %v1230_v37  ;;  %v2342_v43 = vmul.f32 %v3670_v38, %v4703_v16  ;;  %v3530_v44 = vunpack.c.l.bf16 %v3718_v34  ;;  %v3721_v36 = vld [vmem:[%s4659_s15 + $0x88] sm:$0xff]  }
  0xa1   : > { %v1364_v46 = vpack.c.bf16 %v1305_v8, %v1304_v31  ;;  %v2417_v47 = vmax.f32 %v2381_v20, 0.0  ;;  %v1271_v48 = vadd.f32 %v4693_v24, %v1231_v39  ;;  %v2343_v49 = vmul.f32 %v3671_v40, %v4703_v16 }
  0xa2   : > { %v1306_v50 = vmax.f32 %v1270_v42, 0.0  ;;  %v2382_v51 = vadd.f32 %v4713_v26, %v2342_v43  ;;  %v3531_v52 = vunpack.c.h.bf16 %v3718_v34  ;;  %v1232_v53 = vmul.f32 %v3530_v44, %v4687_v6  ;;  %v3755_v43 = vld [vmem:[%s4674_s16 + $0x88] sm:$0xff]  }
  0xa3   : > { %3952 = vmatprep.mubr.bf16.mxu1 %v1364_v46  ;;  %v2476_v55 = vpack.c.bf16 %v2417_v47, %v2416_v41  ;;  %v1307_v56 = vmax.f32 %v1271_v48, 0.0  ;;  %v2383_v57 = vadd.f32 %v4713_v26, %v2343_v49  ;;  %v3674_v58 = vunpack.c.l.bf16 %v3752_v45 }
  0xa4   : > { %v2418_v59 = vmax.f32 %v2382_v51, 0.0  ;;  %v1233_v60 = vmul.f32 %v3531_v52, %v4687_v6  ;;  %v1272_v61 = vadd.f32 %v4693_v24, %v1232_v53  ;;  %v3675_v62 = vunpack.c.h.bf16 %v3752_v45 }
  0xa5   : > { %4056 = vmatprep.mubr.bf16.mxu0 %v2476_v55  ;;  %v1365_v0 = vpack.c.bf16 %v1307_v56, %v1306_v50  ;;  %v2419_v1 = vmax.f32 %v2383_v57, 0.0  ;;  %v2344_v2 = vmul.f32 %v3674_v58, %v4703_v16  ;;  %v3534_v3 = vunpack.c.l.bf16 %v3719_v54 }
  0xa6   : > { %v1273_v4 = vadd.f32 %v4693_v24, %v1233_v60  ;;  %v1308_v5 = vmax.f32 %v1272_v61, 0.0  ;;  %v2345_v23 = vmul.f32 %v3675_v62, %v4703_v16  ;;  %v3535_v7 = vunpack.c.h.bf16 %v3719_v54 }
  0xa7   : > { %3953 = vmatmul.mubr.bf16.gmra.mrb[24].mxu1 %v1365_v0  ;;  %v2477_v10 = vpack.c.bf16 %v2419_v1, %v2418_v59  ;;  %v2384_v29 = vadd.f32 %v4713_v26, %v2344_v2  ;;  %v1234_v11 = vmul.f32 %v3534_v3, %v4687_v6  ;;  %v3678_v12 = vunpack.c.l.bf16 %v3753_v63 }
  0xa8   : > { %v1309_v13 = vmax.f32 %v1273_v4, 0.0  ;;  %v2385_v14 = vadd.f32 %v4713_v26, %v2345_v23  ;;  %v1235_v17 = vmul.f32 %v3535_v7, %v4687_v6  ;;  %v3679_v15 = vunpack.c.h.bf16 %v3753_v63 }
  0xa9   : > { %4057 = vmatmul.mubr.bf16.gmra.mrb[24].mxu0 %v2477_v10  ;;  %v2420_v19 = vmax.f32 %v2384_v29, 0.0  ;;  %v1274_v30 = vadd.f32 %v4693_v24, %v1234_v11  ;;  %v2346_v18 = vmul.f32 %v3678_v12, %v4703_v16  ;;  %v3538_v21 = vunpack.c.l.bf16 %v3720_v9 }
  0xaa   : > { %v1366_v25 = vpack.c.bf16 %v1309_v13, %v1308_v5  ;;  %v2421_v27 = vmax.f32 %v2385_v14, 0.0  ;;  %v1275_v28 = vadd.f32 %v4693_v24, %v1235_v17  ;;  %v2347_v31 = vmul.f32 %v3679_v15, %v4703_v16 }
  0xab   : > { %v1310_v32 = vmax.f32 %v1274_v30, 0.0  ;;  %v2386_v33 = vadd.f32 %v4713_v26, %v2346_v18  ;;  %v3539_v34 = vunpack.c.h.bf16 %v3720_v9  ;;  %v1236_v35 = vmul.f32 %v3538_v21, %v4687_v6 }
  0xac   : > { %3956 = vmatprep.mubr.bf16.mxu1 %v1366_v25  ;;  %v2478_v37 = vpack.c.bf16 %v2421_v27, %v2420_v19  ;;  %v1311_v38 = vmax.f32 %v1275_v28, 0.0  ;;  %v2387_v8 = vadd.f32 %v4713_v26, %v2347_v31  ;;  %v3682_v20 = vunpack.c.l.bf16 %v3754_v22  ;;  %v4901_v19 = vld [vmem:[%s508_s28] ss:$0 sm:$0xff] }
  0xad   : > { %v2422_v39 = vmax.f32 %v2386_v33, 0.0  ;;  %v1237_v40 = vmul.f32 %v3539_v34, %v4687_v6  ;;  %v1276_v41 = vadd.f32 %v4693_v24, %v1236_v35  ;;  %v3683_v42 = vunpack.c.h.bf16 %v3754_v22 }
  0xae   : > { %4060 = vmatprep.mubr.bf16.mxu0 %v2478_v37  ;;  %v1367_v44 = vpack.c.bf16 %v1311_v38, %v1310_v32  ;;  %v2423_v45 = vmax.f32 %v2387_v8, 0.0  ;;  %v2348_v46 = vmul.f32 %v3682_v20, %v4703_v16  ;;  %v3542_v47 = vunpack.c.l.bf16 %v3721_v36 }
  0xaf   : > { %v1277_v48 = vadd.f32 %v4693_v24, %v1237_v40  ;;  %v1312_v49 = vmax.f32 %v1276_v41, 0.0  ;;  %v2349_v50 = vmul.f32 %v3683_v42, %v4703_v16  ;;  %v3543_v51 = vunpack.c.h.bf16 %v3721_v36 }
  0xb0   : > { %3957 = vmatmul.mubr.bf16.gmra.mrb[28].mxu1 %v1367_v44  ;;  %v2479_v52 = vpack.c.bf16 %v2423_v45, %v2422_v39  ;;  %v2388_v53 = vadd.f32 %v4713_v26, %v2348_v46  ;;  %v1238_v54 = vmul.f32 %v3542_v47, %v4687_v6  ;;  %v3686_v55 = vunpack.c.l.bf16 %v3755_v43 }
  0xb1   : > { %v1313_v56 = vmax.f32 %v1277_v48, 0.0  ;;  %v2389_v57 = vadd.f32 %v4713_v26, %v2349_v50  ;;  %v1239_v58 = vmul.f32 %v3543_v51, %v4687_v6  ;;  %v3687_v59 = vunpack.c.h.bf16 %v3755_v43 }
  0xb2   : > { %4061 = vmatmul.mubr.bf16.gmra.mrb[28].mxu0 %v2479_v52  ;;  %v2424_v60 = vmax.f32 %v2388_v53, 0.0  ;;  %v1278_v61 = vadd.f32 %v4693_v24, %v1238_v54  ;;  %v2350_v62 = vmul.f32 %v3686_v55, %v4703_v16 }
  0xb3   : > { %v1368_v63 = vpack.c.bf16 %v1313_v56, %v1312_v49  ;;  %v2425_v0 = vmax.f32 %v2389_v57, 0.0  ;;  %v1279_v1 = vadd.f32 %v4693_v24, %v1239_v58  ;;  %v2351_v2 = vmul.f32 %v3687_v59, %v4703_v16 }
  0xb4   : > { %v1314_v3 = vmax.f32 %v1278_v61, 0.0  ;;  %v2390_v4 = vadd.f32 %v4713_v26, %v2350_v62  ;;  %v4281_v24 = vmov 0.0  }
  0xb5   : > { %3960 = vmatprep.mubr.bf16.mxu1 %v1368_v63  ;;  %v2480_v5 = vpack.c.bf16 %v2425_v0, %v2424_v60  ;;  %v1315_v6 = vmax.f32 %v1279_v1, 0.0  ;;  %v2391_v23 = vadd.f32 %v4713_v26, %v2351_v2  ;;  %2973 = vst [vmem:[%s4891_s25 + $0x100] sm:$0xff] %v4281_v24  ;;  %2974 = vst [vmem:[%s4891_s25 + $0x108] sm:$0xff] %v4281_v24 }
  0xb6   : > { %v2426_v7 = vmax.f32 %v2390_v4, 0.0  ;;  %2975 = vst [vmem:[%s4891_s25 + $0x110] sm:$0xff] %v4281_v24  ;;  %2976 = vst [vmem:[%s4891_s25 + $0x118] sm:$0xff] %v4281_v24 }
  0xb7   : > { %4064 = vmatprep.mubr.bf16.mxu0 %v2480_v5  ;;  %v1369_v9 = vpack.c.bf16 %v1315_v6, %v1314_v3  ;;  %v2427_v10 = vmax.f32 %v2391_v23, 0.0 }
  0xb9   : > { %3961 = vmatmul.mubr.bf16.gmra.mrb[36].mxu1 %v1369_v9  ;;  %v2481_v29 = vpack.c.bf16 %v2427_v10, %v2426_v7 }
  0xbb   : > { %4065 = vmatmul.mubr.bf16.gmra.mrb[36].mxu0 %v2481_v29 }
 0x13a   : > { %v3910_v16 = vpop.f32.mrb[32].mxu1 }
 0x13b   : > { %v1041_v26 = vpop.f32.mrb[33].mxu1 }
 0x13c   : > { %v4014_v11 = vpop.f32.mrb[32].mxu0  ;;  %v3911_v12 = vpop.f32.mrb[34].mxu1 }
 0x13d   : > { %v2153_v13 = vpop.f32.mrb[33].mxu0  ;;  %v1044_v14 = vpop.f32.mrb[35].mxu1 }
 0x13e   : > { %v4015_v17 = vpop.f32.mrb[34].mxu0 }
 0x13f   : > { %v2156_v15 = vpop.f32.mrb[35].mxu0 }
 0x144   : > { %v3930_v30 = vpop.f32.mrb[0].mxu1 }
 0x145   : > { %v4068_v18 = vadd.f32 %v3930_v30, %v4901_v19  ;;  %v1469_v21 = vpop.f32.mrb[1].mxu1 }
 0x146   : > { %v4034_v22 = vpop.f32.mrb[0].mxu0  ;;  %v4070_v25 = vadd.f32 %v4901_v19, %v1469_v21  ;;  %v3931_v27 = vpop.f32.mrb[2].mxu1 }
 0x147   : > { %v4069_v28 = vadd.f32 %v4068_v18, %v4034_v22  ;;  %v2581_v31 = vpop.f32.mrb[1].mxu0  ;;  %v4072_v32 = vadd.f32 %v3931_v27, %v4901_v19  ;;  %v1472_v33 = vpop.f32.mrb[3].mxu1 }
 0x148   : > { %v4071_v34 = vadd.f32 %v4070_v25, %v2581_v31  ;;  %v4035_v35 = vpop.f32.mrb[2].mxu0  ;;  %v4074_v36 = vadd.f32 %v4901_v19, %v1472_v33 }
 0x149   : > { %2943 = vst [vmem:[%s4891_s25 + $0x10] sm:$0xff] %v4069_v28  ;;  %v4073_v37 = vadd.f32 %v4072_v32, %v4035_v35  ;;  %v2584_v38 = vpop.f32.mrb[3].mxu0  ;;  %v3021_v42 = vmul.f32 %v4069_v28, %v4069_v28 }
 0x14a   : > { %2941 = vst [vmem:[%s4891_s25] sm:$0xff] %v4071_v34  ;;  %v4075_v8 = vadd.f32 %v4074_v36, %v2584_v38  ;;  %v3019_v20 = vmul.f32 %v4071_v34, %v4071_v34 }
 0x14b   : > { %2944 = vst [vmem:[%s4891_s25 + $0x18] sm:$0xff] %v4073_v37  ;;  %v3022_v47 = vmul.f32 %v4073_v37, %v4073_v37 }
 0x14c   : > { %2942 = vst [vmem:[%s4891_s25 + $0x8] sm:$0xff] %v4075_v8  ;;  %v2977_v39 = vadd.f32 %v4075_v8, %v4071_v34  ;;  %v3020_v40 = vmul.f32 %v4075_v8, %v4075_v8 }
 0x14d   : > { %v3934_v41 = vpop.f32.mrb[4].mxu1 }
 0x14e   : > { %v2978_v43 = vadd.f32 %v4069_v28, %v2977_v39  ;;  %v3055_v44 = vadd.f32 %v3020_v40, %v3019_v20  ;;  %v4076_v45 = vadd.f32 %v3934_v41, %v4901_v19  ;;  %v1485_v46 = vpop.f32.mrb[5].mxu1 }
 0x14f   : > { %v4038_v48 = vpop.f32.mrb[4].mxu0  ;;  %v4078_v49 = vadd.f32 %v4901_v19, %v1485_v46  ;;  %v3935_v50 = vpop.f32.mrb[6].mxu1 }
 0x150   : > { %v3056_v51 = vadd.f32 %v3055_v44, %v3021_v42  ;;  %v4077_v52 = vadd.f32 %v4076_v45, %v4038_v48  ;;  %v2597_v53 = vpop.f32.mrb[5].mxu0  ;;  %v2979_v54 = vadd.f32 %v4073_v37, %v2978_v43  ;;  %v4080_v55 = vadd.f32 %v3935_v50, %v4901_v19  ;;  %v1488_v56 = vpop.f32.mrb[7].mxu1 }
 0x151   : > { %v4079_v57 = vadd.f32 %v4078_v49, %v2597_v53  ;;  %v4039_v58 = vpop.f32.mrb[6].mxu0  ;;  %v4082_v59 = vadd.f32 %v4901_v19, %v1488_v56 }
 0x152   : > { %2947 = vst [vmem:[%s4891_s25 + $0x30] sm:$0xff] %v4077_v52  ;;  %v3057_v60 = vadd.f32 %v3056_v51, %v3022_v47  ;;  %v4081_v61 = vadd.f32 %v4080_v55, %v4039_v58  ;;  %v2600_v62 = vpop.f32.mrb[7].mxu0  ;;  %v3025_v6 = vmul.f32 %v4077_v52, %v4077_v52 }
 0x153   : > { %2945 = vst [vmem:[%s4891_s25 + $0x20] sm:$0xff] %v4079_v57  ;;  %v2980_v63 = vadd.f32 %v4079_v57, %v2979_v54  ;;  %v3023_v0 = vmul.f32 %v4079_v57, %v4079_v57  ;;  %v4083_v1 = vadd.f32 %v4082_v59, %v2600_v62 }
 0x154   : > { %2948 = vst [vmem:[%s4891_s25 + $0x38] sm:$0xff] %v4081_v61  ;;  %v3026_v29 = vmul.f32 %v4081_v61, %v4081_v61 }
 0x155   : > { %v3058_v2 = vadd.f32 %v3057_v60, %v3023_v0  ;;  %2946 = vst [vmem:[%s4891_s25 + $0x28] sm:$0xff] %v4083_v1  ;;  %v2981_v3 = vadd.f32 %v4083_v1, %v2980_v63  ;;  %v3024_v4 = vmul.f32 %v4083_v1, %v4083_v1 }
 0x156   : > { %v3938_v5 = vpop.f32.mrb[8].mxu1 }
 0x157   : > { %v2982_v23 = vadd.f32 %v4077_v52, %v2981_v3  ;;  %v3059_v7 = vadd.f32 %v3058_v2, %v3024_v4  ;;  %v4084_v9 = vadd.f32 %v3938_v5, %v4901_v19  ;;  %v1501_v10 = vpop.f32.mrb[9].mxu1 }
 0x158   : > { %v4042_v24 = vpop.f32.mrb[8].mxu0  ;;  %v4086_v16 = vadd.f32 %v4901_v19, %v1501_v10  ;;  %v3939_v26 = vpop.f32.mrb[10].mxu1 }
 0x159   : > { %v3060_v11 = vadd.f32 %v3059_v7, %v3025_v6  ;;  %v4085_v12 = vadd.f32 %v4084_v9, %v4042_v24  ;;  %v2613_v13 = vpop.f32.mrb[9].mxu0  ;;  %v2983_v14 = vadd.f32 %v4081_v61, %v2982_v23  ;;  %v4088_v17 = vadd.f32 %v3939_v26, %v4901_v19  ;;  %v1504_v15 = vpop.f32.mrb[11].mxu1 }
 0x15a   : > { %v4087_v30 = vadd.f32 %v4086_v16, %v2613_v13  ;;  %v4043_v18 = vpop.f32.mrb[10].mxu0  ;;  %v4090_v21 = vadd.f32 %v4901_v19, %v1504_v15 }
 0x15b   : > { %2951 = vst [vmem:[%s4891_s25 + $0x50] sm:$0xff] %v4085_v12  ;;  %v3061_v22 = vadd.f32 %v3060_v11, %v3026_v29  ;;  %v4089_v25 = vadd.f32 %v4088_v17, %v4043_v18  ;;  %v2616_v27 = vpop.f32.mrb[11].mxu0  ;;  %v3029_v37 = vmul.f32 %v4085_v12, %v4085_v12 }
 0x15c   : > { %2949 = vst [vmem:[%s4891_s25 + $0x40] sm:$0xff] %v4087_v30  ;;  %v2984_v28 = vadd.f32 %v4087_v30, %v2983_v14  ;;  %v3027_v31 = vmul.f32 %v4087_v30, %v4087_v30  ;;  %v4091_v32 = vadd.f32 %v4090_v21, %v2616_v27 }
 0x15d   : > { %2952 = vst [vmem:[%s4891_s25 + $0x58] sm:$0xff] %v4089_v25  ;;  %v3030_v40 = vmul.f32 %v4089_v25, %v4089_v25 }
 0x15e   : > { %v3062_v33 = vadd.f32 %v3061_v22, %v3027_v31  ;;  %2950 = vst [vmem:[%s4891_s25 + $0x48] sm:$0xff] %v4091_v32  ;;  %v2985_v34 = vadd.f32 %v4091_v32, %v2984_v28  ;;  %v3028_v35 = vmul.f32 %v4091_v32, %v4091_v32 }
 0x15f   : > { %v3942_v36 = vpop.f32.mrb[12].mxu1 }
 0x160   : > { %v2986_v38 = vadd.f32 %v4085_v12, %v2985_v34  ;;  %v3063_v8 = vadd.f32 %v3062_v33, %v3028_v35  ;;  %v4092_v20 = vadd.f32 %v3942_v36, %v4901_v19  ;;  %v1517_v39 = vpop.f32.mrb[13].mxu1 }
 0x161   : > { %v4046_v41 = vpop.f32.mrb[12].mxu0  ;;  %v4094_v42 = vadd.f32 %v4901_v19, %v1517_v39  ;;  %v3943_v43 = vpop.f32.mrb[14].mxu1 }
 0x162   : > { %v3064_v44 = vadd.f32 %v3063_v8, %v3029_v37  ;;  %v4093_v45 = vadd.f32 %v4092_v20, %v4046_v41  ;;  %v2629_v46 = vpop.f32.mrb[13].mxu0  ;;  %v2987_v47 = vadd.f32 %v4089_v25, %v2986_v38  ;;  %v4096_v48 = vadd.f32 %v3943_v43, %v4901_v19  ;;  %v1520_v49 = vpop.f32.mrb[15].mxu1 }
 0x163   : > { %v4095_v50 = vadd.f32 %v4094_v42, %v2629_v46  ;;  %v4047_v51 = vpop.f32.mrb[14].mxu0  ;;  %v4098_v52 = vadd.f32 %v4901_v19, %v1520_v49 }
 0x164   : > { %2955 = vst [vmem:[%s4891_s25 + $0x70] sm:$0xff] %v4093_v45  ;;  %v3065_v53 = vadd.f32 %v3064_v44, %v3030_v40  ;;  %v4097_v54 = vadd.f32 %v4096_v48, %v4047_v51  ;;  %v2632_v55 = vpop.f32.mrb[15].mxu0  ;;  %v3033_v63 = vmul.f32 %v4093_v45, %v4093_v45 }
 0x165   : > { %2953 = vst [vmem:[%s4891_s25 + $0x60] sm:$0xff] %v4095_v50  ;;  %v2988_v56 = vadd.f32 %v4095_v50, %v2987_v47  ;;  %v3031_v57 = vmul.f32 %v4095_v50, %v4095_v50  ;;  %v4099_v58 = vadd.f32 %v4098_v52, %v2632_v55 }
 0x166   : > { %2956 = vst [vmem:[%s4891_s25 + $0x78] sm:$0xff] %v4097_v54  ;;  %v3034_v4 = vmul.f32 %v4097_v54, %v4097_v54 }
 0x167   : > { %v3066_v59 = vadd.f32 %v3065_v53, %v3031_v57  ;;  %2954 = vst [vmem:[%s4891_s25 + $0x68] sm:$0xff] %v4099_v58  ;;  %v2989_v60 = vadd.f32 %v4099_v58, %v2988_v56  ;;  %v3032_v61 = vmul.f32 %v4099_v58, %v4099_v58 }
 0x168   : > { %v3946_v62 = vpop.f32.mrb[16].mxu1 }
 0x169   : > { %v2990_v0 = vadd.f32 %v4093_v45, %v2989_v60  ;;  %v3067_v1 = vadd.f32 %v3066_v59, %v3032_v61  ;;  %v4100_v2 = vadd.f32 %v3946_v62, %v4901_v19  ;;  %v1533_v3 = vpop.f32.mrb[17].mxu1 }
 0x16a   : > { %v4050_v5 = vpop.f32.mrb[16].mxu0  ;;  %v4102_v6 = vadd.f32 %v4901_v19, %v1533_v3  ;;  %v3947_v23 = vpop.f32.mrb[18].mxu1 }
 0x16b   : > { %v3068_v7 = vadd.f32 %v3067_v1, %v3033_v63  ;;  %v4101_v9 = vadd.f32 %v4100_v2, %v4050_v5  ;;  %v2645_v10 = vpop.f32.mrb[17].mxu0  ;;  %v2991_v29 = vadd.f32 %v4097_v54, %v2990_v0  ;;  %v4104_v24 = vadd.f32 %v3947_v23, %v4901_v19  ;;  %v1536_v16 = vpop.f32.mrb[19].mxu1 }
 0x16c   : > { %v4103_v26 = vadd.f32 %v4102_v6, %v2645_v10  ;;  %v4051_v11 = vpop.f32.mrb[18].mxu0  ;;  %v4106_v12 = vadd.f32 %v4901_v19, %v1536_v16 }
 0x16d   : > { %2959 = vst [vmem:[%s4891_s25 + $0x90] sm:$0xff] %v4101_v9  ;;  %v3069_v13 = vadd.f32 %v3068_v7, %v3034_v4  ;;  %v4105_v14 = vadd.f32 %v4104_v24, %v4051_v11  ;;  %v2648_v17 = vpop.f32.mrb[19].mxu0  ;;  %v3037_v28 = vmul.f32 %v4101_v9, %v4101_v9 }
 0x16e   : > { %2957 = vst [vmem:[%s4891_s25 + $0x80] sm:$0xff] %v4103_v26  ;;  %v2992_v15 = vadd.f32 %v4103_v26, %v2991_v29  ;;  %v3035_v30 = vmul.f32 %v4103_v26, %v4103_v26  ;;  %v4107_v18 = vadd.f32 %v4106_v12, %v2648_v17 }
 0x16f   : > { %2960 = vst [vmem:[%s4891_s25 + $0x98] sm:$0xff] %v4105_v14  ;;  %v3038_v35 = vmul.f32 %v4105_v14, %v4105_v14 }
 0x170   : > { %v3070_v21 = vadd.f32 %v3069_v13, %v3035_v30  ;;  %2958 = vst [vmem:[%s4891_s25 + $0x88] sm:$0xff] %v4107_v18  ;;  %v2993_v22 = vadd.f32 %v4107_v18, %v2992_v15  ;;  %v3036_v25 = vmul.f32 %v4107_v18, %v4107_v18 }
 0x171   : > { %v3950_v27 = vpop.f32.mrb[20].mxu1 }
 0x172   : > { %v2994_v31 = vadd.f32 %v4101_v9, %v2993_v22  ;;  %v3071_v32 = vadd.f32 %v3070_v21, %v3036_v25  ;;  %v4108_v33 = vadd.f32 %v3950_v27, %v4901_v19  ;;  %v1549_v34 = vpop.f32.mrb[21].mxu1 }
 0x173   : > { %v4054_v36 = vpop.f32.mrb[20].mxu0  ;;  %v4110_v37 = vadd.f32 %v4901_v19, %v1549_v34  ;;  %v3951_v38 = vpop.f32.mrb[22].mxu1 }
 0x174   : > { %v3072_v8 = vadd.f32 %v3071_v32, %v3037_v28  ;;  %v4109_v20 = vadd.f32 %v4108_v33, %v4054_v36  ;;  %v2661_v39 = vpop.f32.mrb[21].mxu0  ;;  %v2995_v40 = vadd.f32 %v4105_v14, %v2994_v31  ;;  %v4112_v41 = vadd.f32 %v3951_v38, %v4901_v19  ;;  %v1552_v42 = vpop.f32.mrb[23].mxu1 }
 0x175   : > { %v4111_v43 = vadd.f32 %v4110_v37, %v2661_v39  ;;  %v4055_v44 = vpop.f32.mrb[22].mxu0  ;;  %v4114_v45 = vadd.f32 %v4901_v19, %v1552_v42 }
 0x176   : > { %2963 = vst [vmem:[%s4891_s25 + $0xb0] sm:$0xff] %v4109_v20  ;;  %v3073_v46 = vadd.f32 %v3072_v8, %v3038_v35  ;;  %v4113_v47 = vadd.f32 %v4112_v41, %v4055_v44  ;;  %v2664_v48 = vpop.f32.mrb[23].mxu0  ;;  %v3041_v56 = vmul.f32 %v4109_v20, %v4109_v20 }
 0x177   : > { %2961 = vst [vmem:[%s4891_s25 + $0xa0] sm:$0xff] %v4111_v43  ;;  %v2996_v49 = vadd.f32 %v4111_v43, %v2995_v40  ;;  %v3039_v50 = vmul.f32 %v4111_v43, %v4111_v43  ;;  %v4115_v51 = vadd.f32 %v4114_v45, %v2664_v48 }
 0x178   : > { %2964 = vst [vmem:[%s4891_s25 + $0xb8] sm:$0xff] %v4113_v47  ;;  %v3042_v61 = vmul.f32 %v4113_v47, %v4113_v47 }
 0x179   : > { %v3074_v52 = vadd.f32 %v3073_v46, %v3039_v50  ;;  %2962 = vst [vmem:[%s4891_s25 + $0xa8] sm:$0xff] %v4115_v51  ;;  %v2997_v53 = vadd.f32 %v4115_v51, %v2996_v49  ;;  %v3040_v54 = vmul.f32 %v4115_v51, %v4115_v51 }
 0x17a   : > { %v3954_v55 = vpop.f32.mrb[24].mxu1 }
 0x17b   : > { %v2998_v57 = vadd.f32 %v4109_v20, %v2997_v53  ;;  %v3075_v58 = vadd.f32 %v3074_v52, %v3040_v54  ;;  %v4116_v59 = vadd.f32 %v3954_v55, %v4901_v19  ;;  %v1565_v60 = vpop.f32.mrb[25].mxu1 }
 0x17c   : > { %v4058_v62 = vpop.f32.mrb[24].mxu0  ;;  %v4118_v63 = vadd.f32 %v4901_v19, %v1565_v60  ;;  %v3955_v0 = vpop.f32.mrb[26].mxu1 }
 0x17d   : > { %v3076_v1 = vadd.f32 %v3075_v58, %v3041_v56  ;;  %v4117_v2 = vadd.f32 %v4116_v59, %v4058_v62  ;;  %v2677_v3 = vpop.f32.mrb[25].mxu0  ;;  %v2999_v4 = vadd.f32 %v4113_v47, %v2998_v57  ;;  %v4120_v5 = vadd.f32 %v3955_v0, %v4901_v19  ;;  %v1568_v6 = vpop.f32.mrb[27].mxu1 }
 0x17e   : > { %v4119_v23 = vadd.f32 %v4118_v63, %v2677_v3  ;;  %v4059_v7 = vpop.f32.mrb[26].mxu0  ;;  %v4122_v9 = vadd.f32 %v4901_v19, %v1568_v6 }
 0x17f   : > { %2967 = vst [vmem:[%s4891_s25 + $0xd0] sm:$0xff] %v4117_v2  ;;  %v3077_v10 = vadd.f32 %v3076_v1, %v3042_v61  ;;  %v4121_v29 = vadd.f32 %v4120_v5, %v4059_v7  ;;  %v2680_v24 = vpop.f32.mrb[27].mxu0  ;;  %v3045_v15 = vmul.f32 %v4117_v2, %v4117_v2 }
 0x180   : > { %2965 = vst [vmem:[%s4891_s25 + $0xc0] sm:$0xff] %v4119_v23  ;;  %v3000_v16 = vadd.f32 %v4119_v23, %v2999_v4  ;;  %v3043_v26 = vmul.f32 %v4119_v23, %v4119_v23  ;;  %v4123_v11 = vadd.f32 %v4122_v9, %v2680_v24 }
 0x181   : > { %2968 = vst [vmem:[%s4891_s25 + $0xd8] sm:$0xff] %v4121_v29  ;;  %v3046_v25 = vmul.f32 %v4121_v29, %v4121_v29 }
 0x182   : > { %v3078_v12 = vadd.f32 %v3077_v10, %v3043_v26  ;;  %2966 = vst [vmem:[%s4891_s25 + $0xc8] sm:$0xff] %v4123_v11  ;;  %v3001_v13 = vadd.f32 %v4123_v11, %v3000_v16  ;;  %v3044_v14 = vmul.f32 %v4123_v11, %v4123_v11 }
 0x183   : > { %v3958_v17 = vpop.f32.mrb[28].mxu1 }
 0x184   : > { %v3002_v30 = vadd.f32 %v4117_v2, %v3001_v13  ;;  %v3079_v18 = vadd.f32 %v3078_v12, %v3044_v14  ;;  %v4124_v21 = vadd.f32 %v3958_v17, %v4901_v19  ;;  %v1581_v22 = vpop.f32.mrb[29].mxu1 }
 0x185   : > { %v4062_v27 = vpop.f32.mrb[28].mxu0  ;;  %v4126_v28 = vadd.f32 %v4901_v19, %v1581_v22  ;;  %v3959_v31 = vpop.f32.mrb[30].mxu1 }
 0x186   : > { %v3080_v32 = vadd.f32 %v3079_v18, %v3045_v15  ;;  %v4125_v33 = vadd.f32 %v4124_v21, %v4062_v27  ;;  %v2693_v34 = vpop.f32.mrb[29].mxu0  ;;  %v3003_v35 = vadd.f32 %v4121_v29, %v3002_v30  ;;  %v4128_v36 = vadd.f32 %v3959_v31, %v4901_v19  ;;  %v1584_v37 = vpop.f32.mrb[31].mxu1 }
 0x187   : > { %v4127_v38 = vadd.f32 %v4126_v28, %v2693_v34  ;;  %v4063_v8 = vpop.f32.mrb[30].mxu0  ;;  %v4130_v20 = vadd.f32 %v4901_v19, %v1584_v37 }
 0x188   : > { %2971 = vst [vmem:[%s4891_s25 + $0xf0] sm:$0xff] %v4125_v33  ;;  %v3081_v39 = vadd.f32 %v3080_v32, %v3046_v25  ;;  %v4129_v40 = vadd.f32 %v4128_v36, %v4063_v8  ;;  %v2696_v41 = vpop.f32.mrb[31].mxu0  ;;  %v3049_v49 = vmul.f32 %v4125_v33, %v4125_v33 }
 0x189   : > { %2969 = vst [vmem:[%s4891_s25 + $0xe0] sm:$0xff] %v4127_v38  ;;  %v3004_v42 = vadd.f32 %v4127_v38, %v3003_v35  ;;  %v3047_v43 = vmul.f32 %v4127_v38, %v4127_v38  ;;  %v4131_v44 = vadd.f32 %v4130_v20, %v2696_v41 }
 0x18a   : > { %2972 = vst [vmem:[%s4891_s25 + $0xf8] sm:$0xff] %v4129_v40  ;;  %v3050_v54 = vmul.f32 %v4129_v40, %v4129_v40 }
 0x18b   : > { %v3082_v45 = vadd.f32 %v3081_v39, %v3047_v43  ;;  %2970 = vst [vmem:[%s4891_s25 + $0xe8] sm:$0xff] %v4131_v44  ;;  %v3005_v46 = vadd.f32 %v4131_v44, %v3004_v42  ;;  %v3048_v47 = vmul.f32 %v4131_v44, %v4131_v44 }
 0x18c   : > { %v3962_v48 = vpop.f32.mrb[36].mxu1 }
 0x18d   : > { %v3006_v50 = vadd.f32 %v4125_v33, %v3005_v46  ;;  %v3083_v51 = vadd.f32 %v3082_v45, %v3048_v47  ;;  %v1597_v52 = vpop.f32.mrb[37].mxu1 }
 0x18e   : > { %v4066_v19 = vpop.f32.mrb[36].mxu0  ;;  %v3963_v53 = vpop.f32.mrb[38].mxu1 }
 0x18f   : > { %v3007_v55 = vadd.f32 %v4129_v40, %v3006_v50  ;;  %v3084_v56 = vadd.f32 %v3083_v51, %v3049_v49  ;;  %v2709_v57 = vpop.f32.mrb[37].mxu0  ;;  %v1600_v58 = vpop.f32.mrb[39].mxu1 }
 0x190   : > { %v4067_v59 = vpop.f32.mrb[38].mxu0 }
 0x191   : > { %v3012_v60 = vrot.slane %v3007_v55, 4  ;;  %v3085_v61 = vadd.f32 %v3084_v56, %v3050_v54  ;;  %v2712_v62 = vpop.f32.mrb[39].mxu0 }
 0x193   : > { %v3013_v63 = vadd.f32 %v3012_v60, %v3007_v55  ;;  %v3090_v0 = vrot.slane %v3085_v61, 4 }
 0x195   : > { %v3014_v1 = vrot.slane %v3013_v63, 2  ;;  %v3091_v2 = vadd.f32 %v3090_v0, %v3085_v61 }
 0x197   : > { %v3015_v3 = vadd.f32 %v3014_v1, %v3013_v63  ;;  %v3092_v4 = vrot.slane %v3091_v2, 2 }
 0x199   : > { %v3016_v5 = vrot.slane %v3015_v3, 1  ;;  %v3093_v6 = vadd.f32 %v3092_v4, %v3091_v2 }
 0x19b   : > { %v3017_v23 = vadd.f32 %v3016_v5, %v3015_v3  ;;  %v3094_v7 = vrot.slane %v3093_v6, 1 }
 0x19d   : > { %3018 = vst [vmem:[%s526_s19] sm:$0x1] %v3017_v23  ;;  %v3095_v9 = vadd.f32 %v3094_v7, %v3093_v6 }
 0x19f   : > { %3096 = vst [vmem:[%s526_s19 + $0x1] sm:$0x1] %v3095_v9 }
 0x1a0 PF: > { %s20_s11 = sadd.s32 1, %s4279_s11   ;;  %s4990_s30 = smov %s4275_s10 }
 0x1a1   : > { %p17_p5 = scmp.ge.s32.totalorder %s20_s11, 4   ;;  %s4991_s10 = smov %s4993_s12 }
 0x1a3   :  { %19 = sbr.rel (!%p17_p5) target bundleno = 2 (0x2), region = 109 }

</bundles_post_ra>
